<compile_context>
chip_gen: v5e
topology: v5e:2x2
jax: 0.10.0
libtpu: 0.0.40
codegen_flags: <defaults>
</compile_context>

<pallas_src>
import functools
import math

import numpy as np
import jax
import jax.numpy as jnp
from jax.experimental import pallas as pl
from jax.experimental.pallas import tpu as pltpu

CH = 128  # lane-dense slab width


# ----------------------------- Pallas kernels -----------------------------

def _bidir_mamba_kernel(*refs, num_x, B, L, d_model, d_inner, d_state, K):
    """Fully fused BidirectionalMambaBlock on a (B*L, 128) slab."""
    x_refs = refs[:num_x]
    (w_in_ref, rot_ref, flip_ref, pp_ref, w_proj_ref, w_out_ref, ln_ref,
     o_ref) = refs[num_x:]
    M = B * L

    # Fused residual add + in_proj for BOTH directions + rotary bias (the
    # RotaryEmbedding concat is pre-multiplied into rot_ref host-side).
    x = x_refs[0][...]
    for r in x_refs[1:]:
        x = x + r[...]
    xz = jnp.dot(x.astype(jnp.bfloat16), w_in_ref[...],
                 preferred_element_type=jnp.float32) + rot_ref[...]      # (M, 2*CH)

    lane = jax.lax.broadcasted_iota(jnp.int32, (1, CH), 1)
    is_fwd = lane < d_inner                          # fwd lanes [0, d_inner)
    row = jax.lax.broadcasted_iota(jnp.int32, (M, 1), 0)
    t_idx = (row & (L - 1)) if (L & (L - 1)) == 0 else (row % L)

    def shift_time(v, s):
        # out[b, t] = v[b, t - s], zero filled; batch boundaries masked.
        if s == 0:
            return v
        sh = jnp.concatenate(
            [jnp.zeros((s, v.shape[1]), jnp.float32), v[:M - s, :]], axis=0)
        return jnp.where(t_idx >= s, sh, 0.0)

    def flip_time(v):
        # Per-batch time reversal via a constant permutation matmul (MXU).
        return jnp.dot(flip_ref[...], v, preferred_element_type=jnp.float32)

    # Backward stream runs in reversed time (== reference flip -> causal mamba).
    xi = xz[:, :CH]
    xi = jnp.where(is_fwd, xi, flip_time(xi))

    # Depthwise causal conv1d + SiLU, both directions at once.
    acc = jnp.zeros((M, CH), jnp.float32)
    for j in range(K):
        acc = acc + shift_time(xi, K - 1 - j) * pp_ref[j:j + 1, :]
    acc = acc + pp_ref[K:K + 1, :]
    xc = acc * jax.lax.logistic(acc)

    # Fused x_proj / dt_proj.  Column layout (all 128-lane aligned slices):
    #   [ dt | B_0 .. B_{S-1} | C_0 .. C_{S-1} ]  with B_n / C_n already
    # replicated across each direction's d_inner lanes by the weight matrix.
    proj = jnp.dot(xc.astype(jnp.bfloat16), w_proj_ref[...],
                   preferred_element_type=jnp.float32)
    dt_raw = proj[:, :CH] + pp_ref[K + 1:K + 2, :]
    dt = jnp.where(dt_raw > 20.0, dt_raw,
                   jnp.log1p(jnp.exp(jnp.minimum(dt_raw, 20.0))))        # softplus
    dtx = dt * xc

    # Selective scan  h_t = exp(dt_t * A) h_{t-1} + B_t dt_t x_t, vectorized
    # over (batch, fwd+bwd, channels); log2(L)-step Hillis-Steele prefix over
    # full slabs instead of a length-L serial chain of tiny fragments.
    y = pp_ref[K + 2:K + 3, :] * xc                                      # D * x
    for n in range(d_state):
        a_seq = jnp.exp(dt * pp_ref[K + 3 + n:K + 4 + n, :])             # dA
        h_seq = proj[:, (1 + n) * CH:(2 + n) * CH] * dtx                 # B*dt*x
        d = 1
        while d < L:
            h_seq = h_seq + a_seq * shift_time(h_seq, d)
            a_seq = a_seq * shift_time(a_seq, d)
            d *= 2
        y = y + proj[:, (1 + d_state + n) * CH:(2 + d_state + n) * CH] * h_seq

    # Un-reverse the backward stream, gate with SiLU(z), out_proj (both
    # directions summed by one matmul), 0.5 * for the (fwd + bwd) / 2 average.
    y = jnp.where(is_fwd, y, flip_time(y))
    z = xz[:, CH:]
    yg = y * (z * jax.lax.logistic(z))
    out = 0.5 * jnp.dot(yg.astype(jnp.bfloat16), w_out_ref[...],
                        preferred_element_type=jnp.float32)              # (M, CH)

    # LayerNorm over the d_model real lanes (padded lanes are exactly zero so
    # the moment sums need no masking), then SiLU; one dense 128-lane store.
    inv = 1.0 / d_model
    mean = jnp.sum(out, axis=-1, keepdims=True) * inv
    var = jnp.maximum(
        jnp.sum(out * out, axis=-1, keepdims=True) * inv - mean * mean, 0.0)
    yn = (out - mean) * jax.lax.rsqrt(var + 1e-5) * ln_ref[0:1, :] + ln_ref[1:2, :]
    o_ref[...] = yn * jax.lax.logistic(yn)


def _linear_ln_silu_kernel(x_ref, w_ref, b_ref, g_ref, beta_ref, o_ref, *,
                           n_chunks, n_real):
    """(x @ w + b) then LayerNorm + SiLU on each 128-lane chunk (n_real real
    features per chunk, padded lanes stay exactly zero)."""
    y = jnp.dot(x_ref[...].astype(jnp.bfloat16), w_ref[...],
                preferred_element_type=jnp.float32) + b_ref[...]
    g = g_ref[...]
    beta = beta_ref[...]
    inv = 1.0 / n_real
    outs = []
    for i in range(n_chunks):
        yi = y[:, i * CH:(i + 1) * CH]
        mean = jnp.sum(yi, axis=-1, keepdims=True) * inv
        var = jnp.maximum(
            jnp.sum(yi * yi, axis=-1, keepdims=True) * inv - mean * mean, 0.0)
        yn = (yi - mean) * jax.lax.rsqrt(var + 1e-5) * g + beta
        outs.append(yn * jax.lax.logistic(yn))
    o_ref[...] = outs[0] if n_chunks == 1 else jnp.concatenate(outs, axis=1)


def _classifier_kernel(x_ref, pool_ref, w_ref, b_ref, o_ref):
    """Mean over the sequence (via a constant pooling matmul) + linear head."""
    pooled = jnp.dot(pool_ref[...], x_ref[...], preferred_element_type=jnp.float32)
    o_ref[...] = jnp.dot(pooled.astype(jnp.bfloat16), w_ref[...],
                         preferred_element_type=jnp.float32) + b_ref[...]


# ----------------------------- kernel wrappers -----------------------------

def _vmem_call(kernel, n_in, out_shape):
    return pl.pallas_call(
        kernel,
        out_shape=out_shape,
        in_specs=[pl.BlockSpec(memory_space=pltpu.MemorySpace.VMEM)] * n_in,
        out_specs=pl.BlockSpec(memory_space=pltpu.MemorySpace.VMEM),
    )


def _pad_row(v, n=CH):
    return jnp.zeros((1, n), jnp.float32).at[0, :v.shape[0]].set(
        v.astype(jnp.float32))


def linear_ln_silu(x2d, w_bf16, b, g, beta, n_chunks, n_real):
    # TODO(synk): add M-tiling (grid over rows) + vmem_limit_bytes before these
    # shapes are scaled up (v7x has only 64 MiB VMEM); whole-array VMEM is
    # far below any limit at the current sizes.
    M = x2d.shape[0]
    N = w_bf16.shape[1]
    return _vmem_call(
        functools.partial(_linear_ln_silu_kernel, n_chunks=n_chunks, n_real=n_real),
        5, jax.ShapeDtypeStruct((M, N), jnp.float32),
    )(x2d, w_bf16, b, g, beta)


def _rot_table(L, max_freq):
    scale = 2.0 * np.pi / max_freq
    pos = np.arange(L, dtype=np.float32)[:, None] * scale
    row = (np.arange(L) // max_freq).astype(np.float32)[:, None] * scale
    return jnp.asarray(
        np.concatenate([np.sin(pos), np.cos(pos), np.sin(row), np.cos(row)],
                       axis=-1).astype(np.float32))                     # (L, 4)


def bidirectional_mamba(xs, p, max_freq):
    """xs: list of 1 or 2 (B, L, 128) padded slabs summed inside the kernel
    (residual add fused).  RotaryEmbedding is folded into a precomputed
    additive in_proj bias, so the 4 rotary lanes are never materialized."""
    Bn, L, _ = xs[0].shape
    fwd, bwd = p['fwd'], p['bwd']
    d_model, d_inner = fwd['d_model'], fwd['d_inner']
    d_state, dt_rank = fwd['d_state'], fwd['dt_rank']
    K = fwd['conv_w'].shape[0]
    E = d_model - 4
    M = Bn * L
    assert 2 * d_inner <= CH and d_model <= CH

    # --- host-side packing (constant-folded under jit) ---
    # in_proj, both directions, lane-stacked:  [ x_f | x_b | 0 ][ z_f | z_b | 0 ]
    w_in = jnp.zeros((CH, 2 * CH), jnp.float32)
    w_in = w_in.at[:d_model, 0:d_inner].set(fwd['in_proj_w'][:, :d_inner])
    w_in = w_in.at[:d_model, d_inner:2 * d_inner].set(bwd['in_proj_w'][:, :d_inner])
    w_in = w_in.at[:d_model, CH:CH + d_inner].set(fwd['in_proj_w'][:, d_inner:])
    w_in = w_in.at[:d_model, CH + d_inner:CH + 2 * d_inner].set(bwd['in_proj_w'][:, d_inner:])
    # Rotary folded into in_proj as an additive (B*L, 2*CH) bias.
    rot_bias = jnp.tile(jnp.dot(_rot_table(L, max_freq), w_in[E:E + 4, :]), (Bn, 1))

    # Per-batch time-reversal permutation (applied in-kernel via one matmul).
    perm = np.zeros((M, M), np.float32)
    rr = np.arange(M)
    perm[rr, (rr // L) * L + (L - 1 - rr % L)] = 1.0
    flip_p = jnp.asarray(perm)

    # Packed per-lane params: rows = [conv_w (K) | conv_b | dt_bias | D | A (S)]
    pp = jnp.zeros((K + 3 + d_state, CH), jnp.float32)

    def set2(a, r0, r1, vf, vb):
        a = a.at[r0:r1, 0:d_inner].set(vf)
        return a.at[r0:r1, d_inner:2 * d_inner].set(vb)

    pp = set2(pp, 0, K, fwd['conv_w'], bwd['conv_w'])
    pp = set2(pp, K, K + 1, fwd['conv_b'][None], bwd['conv_b'][None])
    pp = set2(pp, K + 1, K + 2, fwd['dt_proj_b'][None], bwd['dt_proj_b'][None])
    pp = set2(pp, K + 2, K + 3, fwd['D'][None], bwd['D'][None])
    pp = set2(pp, K + 3, K + 3 + d_state,
              -jnp.exp(fwd['A_log']).T, -jnp.exp(bwd['A_log']).T)

    # x_proj (dt part pre-composed with dt_proj); B/C columns replicated across
    # each direction's d_inner lanes so the MXU performs the lane broadcast.
    w_proj = jnp.zeros((CH, (1 + 2 * d_state) * CH), jnp.float32)
    w_proj = w_proj.at[0:d_inner, 0:d_inner].set(
        jnp.dot(fwd['x_proj_w'][:, :dt_rank], fwd['dt_proj_w']))
    w_proj = w_proj.at[d_inner:2 * d_inner, d_inner:2 * d_inner].set(
        jnp.dot(bwd['x_proj_w'][:, :dt_rank], bwd['dt_proj_w']))
    for n in range(d_state):
        for (m, off) in ((fwd, 0), (bwd, d_inner)):
            bcol = jnp.broadcast_to(m['x_proj_w'][:, dt_rank + n][:, None],
                                    (d_inner, d_inner))
            ccol = jnp.broadcast_to(m['x_proj_w'][:, dt_rank + d_state + n][:, None],
                                    (d_inner, d_inner))
            c0 = (1 + n) * CH + off
            c1 = (1 + d_state + n) * CH + off
            w_proj = w_proj.at[off:off + d_inner, c0:c0 + d_inner].set(bcol)
            w_proj = w_proj.at[off:off + d_inner, c1:c1 + d_inner].set(ccol)

    # out_proj: both directions summed by one matmul; output 128-lane padded.
    w_out = jnp.zeros((CH, CH), jnp.float32)
    w_out = w_out.at[0:d_inner, 0:d_model].set(fwd['out_proj_w'])
    w_out = w_out.at[d_inner:2 * d_inner, 0:d_model].set(bwd['out_proj_w'])

    ln = jnp.zeros((2, CH), jnp.float32)
    ln = ln.at[0, :d_model].set(p['ln_g'])
    ln = ln.at[1, :d_model].set(p['ln_b'])

    kernel = functools.partial(
        _bidir_mamba_kernel, num_x=len(xs), B=Bn, L=L,
        d_model=d_model, d_inner=d_inner, d_state=d_state, K=K)
    out = _vmem_call(kernel, len(xs) + 7,
                     jax.ShapeDtypeStruct((M, CH), jnp.float32))(
        *[xx.reshape(M, CH) for xx in xs],
        w_in.astype(jnp.bfloat16), rot_bias, flip_p, pp,
        w_proj.astype(jnp.bfloat16), w_out.astype(jnp.bfloat16), ln)
    return out.reshape(Bn, L, CH)


# ---------------------------- model components ----------------------------

def patch_embed_forward(img, p):
    P, E = p['patch'], p['embed_dim']
    Bn, C, H, W = img.shape
    hp, wp = H // P, W // P
    patches = img.reshape(Bn, C, hp, P, wp, P).transpose(0, 2, 4, 1, 3, 5)
    patches = patches.reshape(Bn * hp * wp, C * P * P)
    w_p = jnp.zeros((C * P * P, CH), jnp.float32).at[:, :E].set(p['proj_w'])
    out = linear_ln_silu(patches, w_p.astype(jnp.bfloat16), _pad_row(p['proj_b']),
                         _pad_row(p['norm_g']), _pad_row(p['norm_b']),
                         n_chunks=1, n_real=E)
    return out.reshape(Bn, hp * wp, CH)


def forward_transform(x_pad, p):
    """ConvTranspose1d(cin, cout, k, stride=k) + LayerNorm + SiLU.  The
    reference's `[:, :, :-4]` slice is realized by zero weight rows >= cin."""
    Bn, L, _ = x_pad.shape
    k, cout, cin = p['k'], p['cout'], p['cin']
    W = jnp.zeros((CH, k * CH), jnp.float32)
    b = jnp.zeros((1, k * CH), jnp.float32)
    for j in range(k):
        W = W.at[:cin, j * CH:j * CH + cout].set(p['w'][:, j * cout:(j + 1) * cout])
        b = b.at[0, j * CH:j * CH + cout].set(p['b'])
    y = linear_ln_silu(x_pad.reshape(Bn * L, CH), W.astype(jnp.bfloat16), b,
                       _pad_row(p['ln_g']), _pad_row(p['ln_b']),
                       n_chunks=k, n_real=cout)
    return y.reshape(Bn, L * k, CH)


def backward_transform(x_pad, p):
    """Conv1d(cin, cout, k, stride=k) + LayerNorm + SiLU on a padded slab."""
    Bn, L, _ = x_pad.shape
    k, cout, cin = p['k'], p['cout'], p['cin']
    W = jnp.zeros((k * CH, CH), jnp.float32)
    for j in range(k):
        W = W.at[j * CH:j * CH + cin, :cout].set(p['w'][j * cin:(j + 1) * cin, :])
    xr = x_pad.reshape(Bn * (L // k), k * CH)
    y = linear_ln_silu(xr, W.astype(jnp.bfloat16), _pad_row(p['b']),
                       _pad_row(p['ln_g']), _pad_row(p['ln_b']),
                       n_chunks=1, n_real=cout)
    return y.reshape(Bn, L // k, CH)


def classifier(x_pad, w, b, num_classes):
    Bn, L, _ = x_pad.shape
    M = Bn * L
    E = w.shape[0]
    pool = jnp.asarray(np.kron(np.eye(Bn, dtype=np.float32),
                               np.full((1, L), 1.0 / L, np.float32)))
    w_p = jnp.zeros((CH, CH), jnp.float32).at[:E, :num_classes].set(w)
    out = _vmem_call(_classifier_kernel, 4,
                     jax.ShapeDtypeStruct((Bn, CH), jnp.float32))(
        x_pad.reshape(M, CH), pool, w_p.astype(jnp.bfloat16), _pad_row(b))
    return out[:, :num_classes]


def swin_mamba_forward(x_img, params, patch_sizes, img_size, num_classes):
    n = len(patch_sizes)
    intermediates = []
    for i in range(n):
        e = patch_embed_forward(x_img, params['embeds'][i])
        if i == 0:
            xs = [e]
        else:
            ft = forward_transform(intermediates[-1], params['fwd_transforms'][i - 1])
            xs = [e, ft]                                 # residual add fused in kernel
        intermediates.append(
            bidirectional_mamba(xs, params['fwd_mambas'][i],
                                img_size // patch_sizes[i]))
    current = backward_transform(intermediates[-1], params['bwd_transforms'][-1])
    mf = img_size // patch_sizes[-2]
    # Mirrors the PyTorch reference loop exactly (including the i > 0 overwrite).
    for i in reversed(range(n - 1)):
        current = bidirectional_mamba([current, intermediates[i]],
                                      params['bwd_mambas'][i], mf)
        if i > 0:
            current = backward_transform(intermediates[i],
                                         params['bwd_transforms'][i - 1])
            mf = img_size // patch_sizes[i - 1]
    return classifier(current, params['cls_w'], params['cls_b'], num_classes)


# ------------------------- deterministic parameter init -------------------------

class KeyGen:
    def __init__(self, key):
        self.key = key

    def __call__(self):
        self.key, sub = jax.random.split(self.key)
        return sub


def _n(kg, shape, scale=0.02):
    return scale * jax.random.normal(kg(), shape, dtype=jnp.float32)


def init_mamba(kg, d_model, d_state, d_conv, expand):
    d_inner = expand * d_model
    dt_rank = math.ceil(d_model / 16)
    return dict(
        d_model=d_model, d_inner=d_inner, d_state=d_state, dt_rank=dt_rank,
        in_proj_w=_n(kg, (d_model, 2 * d_inner)),
        conv_w=_n(kg, (d_conv, d_inner), 0.1),
        conv_b=_n(kg, (d_inner,), 0.1),
        x_proj_w=_n(kg, (d_inner, dt_rank + 2 * d_state)),
        dt_proj_w=_n(kg, (dt_rank, d_inner), 0.5),
        dt_proj_b=_n(kg, (d_inner,), 0.5),
        A_log=jnp.log(jnp.broadcast_to(jnp.arange(1, d_state + 1, dtype=jnp.float32),
                                       (d_inner, d_state))),
        D=jnp.ones((d_inner,), jnp.float32),
        out_proj_w=_n(kg, (d_inner, d_model)),
    )


def init_bidir(kg, d_model, d_state, d_conv, expand):
    return dict(fwd=init_mamba(kg, d_model, d_state, d_conv, expand),
                bwd=init_mamba(kg, d_model, d_state, d_conv, expand),
                ln_g=jnp.ones((d_model,), jnp.float32),
                ln_b=jnp.zeros((d_model,), jnp.float32))


def init_patch_embed(kg, in_chans, patch, embed_dim):
    return dict(patch=patch, embed_dim=embed_dim,
                proj_w=_n(kg, (in_chans * patch * patch, embed_dim)),
                proj_b=_n(kg, (embed_dim,)),
                norm_g=jnp.ones((embed_dim,), jnp.float32),
                norm_b=jnp.zeros((embed_dim,), jnp.float32))


def init_fwd_transform(kg, cin, cout, k):
    return dict(k=k, cin=cin, cout=cout,
                w=_n(kg, (cin, k * cout)),          # ConvTranspose1d as matmul
                b=_n(kg, (cout,)),
                ln_g=jnp.ones((cout,), jnp.float32),
                ln_b=jnp.zeros((cout,), jnp.float32))


def init_bwd_transform(kg, cin, cout, k):
    return dict(k=k, cin=cin, cout=cout,
                w=_n(kg, (k * cin, cout)),          # strided Conv1d as matmul
                b=_n(kg, (cout,)),
                ln_g=jnp.ones((cout,), jnp.float32),
                ln_b=jnp.zeros((cout,), jnp.float32))


# ----------------------------------- main -----------------------------------

if __name__ == "__main__":
    patch_sizes = [8, 4]
    patch_embed_dims = [12, 8]
    img_size = 16
    d_state = 4
    d_convs = [3, 3]
    expand = 2
    num_classes = 3
    B = 2

    kg = KeyGen(jax.random.PRNGKey(0))
    n = len(patch_sizes)
    params = dict(
        embeds=[init_patch_embed(kg, 3, patch_sizes[i], patch_embed_dims[i])
                for i in range(n)],
        fwd_transforms=[init_fwd_transform(kg, patch_embed_dims[i - 1],
                                           patch_embed_dims[i],
                                           (patch_sizes[i - 1] // patch_sizes[i]) ** 2)
                        for i in range(1, n)],
        bwd_transforms=[init_bwd_transform(kg, patch_embed_dims[i],
                                           patch_embed_dims[i - 1],
                                           (patch_sizes[i - 1] // patch_sizes[i]) ** 2)
                        for i in range(1, n)],
        fwd_mambas=[init_bidir(kg, patch_embed_dims[i] + 4, d_state, d_convs[i], expand)
                    for i in range(n)],
        bwd_mambas=[init_bidir(kg, patch_embed_dims[i] + 4, d_state, d_convs[i], expand)
                    for i in range(n - 1)],
        cls_w=_n(kg, (patch_embed_dims[0] + 4, num_classes)),
        cls_b=_n(kg, (num_classes,)),
    )

    x = jax.random.normal(jax.random.PRNGKey(0), (B, 3, img_size, img_size),
                          dtype=jnp.float32)

    fwd = jax.jit(lambda img: swin_mamba_forward(img, params, patch_sizes,
                                                 img_size, num_classes))
    out = jax.block_until_ready(fwd(x))
    assert out.shape == (B, num_classes)
    assert bool(jnp.all(jnp.isfinite(out)))
    print("KERNEL_OK")
</pallas_src>

<mosaic_0001>
module attributes {stable_mosaic.version = 11 : i64} {
  func.func @_linear_ln_silu_kernel(%arg0: memref<32x48xf32, #tpu.memory_space<vmem>>, %arg1: memref<48x128xbf16, #tpu.memory_space<vmem>>, %arg2: memref<1x128xf32, #tpu.memory_space<vmem>>, %arg3: memref<1x128xf32, #tpu.memory_space<vmem>>, %arg4: memref<1x128xf32, #tpu.memory_space<vmem>>, %arg5: memref<32x128xf32, #tpu.memory_space<vmem>>) attributes {dimension_semantics = [], scalar_prefetch = 0 : i64, scratch_operands = 0 : i64, tpu.core_type = #tpu.core_type<tc>} {
    %c0 = arith.constant 0 : index
    %c0_0 = arith.constant 0 : index
    %0 = vector.load %arg0[%c0, %c0_0] : memref<32x48xf32, #tpu.memory_space<vmem>>, vector<32x48xf32>
    %1 = arith.truncf %0 : vector<32x48xf32> to vector<32x48xbf16>
    %c0_1 = arith.constant 0 : index
    %c0_2 = arith.constant 0 : index
    %2 = vector.load %arg1[%c0_1, %c0_2] : memref<48x128xbf16, #tpu.memory_space<vmem>>, vector<48x128xbf16>
    %cst = arith.constant dense<0.000000e+00> : vector<32x128xf32>
    %3 = tpu.matmul %1, %2, %cst {dimension_numbers = #tpu.dot_dimension_numbers<[1], [0], [0], [1], [0, 0, 1, 1], [], []>} : vector<32x48xbf16>, vector<48x128xbf16>, vector<32x128xf32> -> vector<32x128xf32>
    %c0_3 = arith.constant 0 : index
    %c0_4 = arith.constant 0 : index
    %4 = vector.load %arg2[%c0_3, %c0_4] : memref<1x128xf32, #tpu.memory_space<vmem>>, vector<1x128xf32>
    %5 = vector.broadcast %4 : vector<1x128xf32> to vector<32x128xf32>
    %6 = arith.addf %3, %5 : vector<32x128xf32>
    %c0_5 = arith.constant 0 : index
    %c0_6 = arith.constant 0 : index
    %7 = vector.load %arg3[%c0_5, %c0_6] : memref<1x128xf32, #tpu.memory_space<vmem>>, vector<1x128xf32>
    %c0_7 = arith.constant 0 : index
    %c0_8 = arith.constant 0 : index
    %8 = vector.load %arg4[%c0_7, %c0_8] : memref<1x128xf32, #tpu.memory_space<vmem>>, vector<1x128xf32>
    %cst_9 = arith.constant dense<0.000000e+00> : vector<32xf32>
    %9 = vector.multi_reduction <add>, %6, %cst_9 [1] : vector<32x128xf32> to vector<32xf32>
    %10 = vector.shape_cast %9 : vector<32xf32> to vector<32x1xf32>
    %cst_10 = arith.constant 1.250000e-01 : f32
    %11 = vector.broadcast %cst_10 : f32 to vector<32x1xf32>
    %12 = arith.mulf %10, %11 : vector<32x1xf32>
    %13 = arith.mulf %6, %6 : vector<32x128xf32>
    %cst_11 = arith.constant dense<0.000000e+00> : vector<32xf32>
    %14 = vector.multi_reduction <add>, %13, %cst_11 [1] : vector<32x128xf32> to vector<32xf32>
    %15 = vector.shape_cast %14 : vector<32xf32> to vector<32x1xf32>
    %cst_12 = arith.constant 1.250000e-01 : f32
    %16 = vector.broadcast %cst_12 : f32 to vector<32x1xf32>
    %17 = arith.mulf %15, %16 : vector<32x1xf32>
    %18 = arith.mulf %12, %12 : vector<32x1xf32>
    %19 = arith.subf %17, %18 : vector<32x1xf32>
    %cst_13 = arith.constant 0.000000e+00 : f32
    %20 = vector.broadcast %cst_13 : f32 to vector<32x1xf32>
    %21 = arith.maximumf %19, %20 : vector<32x1xf32>
    %22 = vector.broadcast %12 : vector<32x1xf32> to vector<32x128xf32>
    %23 = arith.subf %6, %22 : vector<32x128xf32>
    %cst_14 = arith.constant 9.99999974E-6 : f32
    %24 = vector.broadcast %cst_14 : f32 to vector<32x1xf32>
    %25 = arith.addf %21, %24 : vector<32x1xf32>
    %26 = math.rsqrt %25 : vector<32x1xf32>
    %27 = vector.broadcast %26 : vector<32x1xf32> to vector<32x128xf32>
    %28 = arith.mulf %23, %27 : vector<32x128xf32>
    %29 = vector.broadcast %7 : vector<1x128xf32> to vector<32x128xf32>
    %30 = arith.mulf %28, %29 : vector<32x128xf32>
    %31 = vector.broadcast %8 : vector<1x128xf32> to vector<32x128xf32>
    %32 = arith.addf %30, %31 : vector<32x128xf32>
    %33 = arith.negf %32 : vector<32x128xf32>
    %34 = math.exp %33 : vector<32x128xf32>
    %cst_15 = arith.constant 1.000000e+00 : f32
    %35 = vector.broadcast %cst_15 : f32 to vector<32x128xf32>
    %36 = arith.addf %35, %34 : vector<32x128xf32>
    %37 = arith.divf %35, %36 : vector<32x128xf32>
    %38 = arith.mulf %32, %37 : vector<32x128xf32>
    %c0_16 = arith.constant 0 : index
    %c0_17 = arith.constant 0 : index
    %39 = vector.load %arg5[%c0_16, %c0_17] : memref<32x128xf32, #tpu.memory_space<vmem>>, vector<32x128xf32>
    tpu.vector_store %arg5[%c0_16, %c0_17], %38 {strides = array<i32>} : memref<32x128xf32, #tpu.memory_space<vmem>>, vector<32x128xf32>,
    return
  }
}

module attributes {stable_mosaic.version = 11 : i64} {
  func.func @_linear_ln_silu_kernel(%arg0: memref<8x192xf32, #tpu.memory_space<vmem>>, %arg1: memref<192x128xbf16, #tpu.memory_space<vmem>>, %arg2: memref<1x128xf32, #tpu.memory_space<vmem>>, %arg3: memref<1x128xf32, #tpu.memory_space<vmem>>, %arg4: memref<1x128xf32, #tpu.memory_space<vmem>>, %arg5: memref<8x128xf32, #tpu.memory_space<vmem>>) attributes {dimension_semantics = [], scalar_prefetch = 0 : i64, scratch_operands = 0 : i64, tpu.core_type = #tpu.core_type<tc>} {
    %c0 = arith.constant 0 : index
    %c0_0 = arith.constant 0 : index
    %0 = vector.load %arg0[%c0, %c0_0] : memref<8x192xf32, #tpu.memory_space<vmem>>, vector<8x192xf32>
    %1 = arith.truncf %0 : vector<8x192xf32> to vector<8x192xbf16>
    %c0_1 = arith.constant 0 : index
    %c0_2 = arith.constant 0 : index
    %2 = vector.load %arg1[%c0_1, %c0_2] : memref<192x128xbf16, #tpu.memory_space<vmem>>, vector<192x128xbf16>
    %cst = arith.constant dense<0.000000e+00> : vector<8x128xf32>
    %3 = tpu.matmul %1, %2, %cst {dimension_numbers = #tpu.dot_dimension_numbers<[1], [0], [0], [1], [0, 0, 1, 1], [], []>} : vector<8x192xbf16>, vector<192x128xbf16>, vector<8x128xf32> -> vector<8x128xf32>
    %c0_3 = arith.constant 0 : index
    %c0_4 = arith.constant 0 : index
    %4 = vector.load %arg2[%c0_3, %c0_4] : memref<1x128xf32, #tpu.memory_space<vmem>>, vector<1x128xf32>
    %5 = vector.broadcast %4 : vector<1x128xf32> to vector<8x128xf32>
    %6 = arith.addf %3, %5 : vector<8x128xf32>
    %c0_5 = arith.constant 0 : index
    %c0_6 = arith.constant 0 : index
    %7 = vector.load %arg3[%c0_5, %c0_6] : memref<1x128xf32, #tpu.memory_space<vmem>>, vector<1x128xf32>
    %c0_7 = arith.constant 0 : index
    %c0_8 = arith.constant 0 : index
    %8 = vector.load %arg4[%c0_7, %c0_8] : memref<1x128xf32, #tpu.memory_space<vmem>>, vector<1x128xf32>
    %cst_9 = arith.constant dense<0.000000e+00> : vector<8xf32>
    %9 = vector.multi_reduction <add>, %6, %cst_9 [1] : vector<8x128xf32> to vector<8xf32>
    %10 = vector.shape_cast %9 : vector<8xf32> to vector<8x1xf32>
    %cst_10 = arith.constant 0.0833333358 : f32
    %11 = vector.broadcast %cst_10 : f32 to vector<8x1xf32>
    %12 = arith.mulf %10, %11 : vector<8x1xf32>
    %13 = arith.mulf %6, %6 : vector<8x128xf32>
    %cst_11 = arith.constant dense<0.000000e+00> : vector<8xf32>
    %14 = vector.multi_reduction <add>, %13, %cst_11 [1] : vector<8x128xf32> to vector<8xf32>
    %15 = vector.shape_cast %14 : vector<8xf32> to vector<8x1xf32>
    %cst_12 = arith.constant 0.0833333358 : f32
    %16 = vector.broadcast %cst_12 : f32 to vector<8x1xf32>
    %17 = arith.mulf %15, %16 : vector<8x1xf32>
    %18 = arith.mulf %12, %12 : vector<8x1xf32>
    %19 = arith.subf %17, %18 : vector<8x1xf32>
    %cst_13 = arith.constant 0.000000e+00 : f32
    %20 = vector.broadcast %cst_13 : f32 to vector<8x1xf32>
    %21 = arith.maximumf %19, %20 : vector<8x1xf32>
    %22 = vector.broadcast %12 : vector<8x1xf32> to vector<8x128xf32>
    %23 = arith.subf %6, %22 : vector<8x128xf32>
    %cst_14 = arith.constant 9.99999974E-6 : f32
    %24 = vector.broadcast %cst_14 : f32 to vector<8x1xf32>
    %25 = arith.addf %21, %24 : vector<8x1xf32>
    %26 = math.rsqrt %25 : vector<8x1xf32>
    %27 = vector.broadcast %26 : vector<8x1xf32> to vector<8x128xf32>
    %28 = arith.mulf %23, %27 : vector<8x128xf32>
    %29 = vector.broadcast %7 : vector<1x128xf32> to vector<8x128xf32>
    %30 = arith.mulf %28, %29 : vector<8x128xf32>
    %31 = vector.broadcast %8 : vector<1x128xf32> to vector<8x128xf32>
    %32 = arith.addf %30, %31 : vector<8x128xf32>
    %33 = arith.negf %32 : vector<8x128xf32>
    %34 = math.exp %33 : vector<8x128xf32>
    %cst_15 = arith.constant 1.000000e+00 : f32
    %35 = vector.broadcast %cst_15 : f32 to vector<8x128xf32>
    %36 = arith.addf %35, %34 : vector<8x128xf32>
    %37 = arith.divf %35, %36 : vector<8x128xf32>
    %38 = arith.mulf %32, %37 : vector<8x128xf32>
    %c0_16 = arith.constant 0 : index
    %c0_17 = arith.constant 0 : index
    %39 = vector.load %arg5[%c0_16, %c0_17] : memref<8x128xf32, #tpu.memory_space<vmem>>, vector<8x128xf32>
    tpu.vector_store %arg5[%c0_16, %c0_17], %38 {strides = array<i32>} : memref<8x128xf32, #tpu.memory_space<vmem>>, vector<8x128xf32>,
    return
  }
}

module attributes {stable_mosaic.version = 11 : i64} {
  func.func @_bidir_mamba_kernel(%arg0: memref<8x128xf32, #tpu.memory_space<vmem>>, %arg1: memref<128x256xbf16, #tpu.memory_space<vmem>>, %arg2: memref<8x256xf32, #tpu.memory_space<vmem>>, %arg3: memref<8x8xf32, #tpu.memory_space<vmem>>, %arg4: memref<10x128xf32, #tpu.memory_space<vmem>>, %arg5: memref<128x1152xbf16, #tpu.memory_space<vmem>>, %arg6: memref<128x128xbf16, #tpu.memory_space<vmem>>, %arg7: memref<2x128xf32, #tpu.memory_space<vmem>>, %arg8: memref<8x128xf32, #tpu.memory_space<vmem>>) attributes {dimension_semantics = [], scalar_prefetch = 0 : i64, scratch_operands = 0 : i64, tpu.core_type = #tpu.core_type<tc>} {
    %c0 = arith.constant 0 : index
    %c0_0 = arith.constant 0 : index
    %0 = vector.load %arg0[%c0, %c0_0] : memref<8x128xf32, #tpu.memory_space<vmem>>, vector<8x128xf32>
    %1 = arith.truncf %0 : vector<8x128xf32> to vector<8x128xbf16>
    %c0_1 = arith.constant 0 : index
    %c0_2 = arith.constant 0 : index
    %2 = vector.load %arg1[%c0_1, %c0_2] : memref<128x256xbf16, #tpu.memory_space<vmem>>, vector<128x256xbf16>
    %cst = arith.constant dense<0.000000e+00> : vector<8x256xf32>
    %3 = tpu.matmul %1, %2, %cst {dimension_numbers = #tpu.dot_dimension_numbers<[1], [0], [0], [1], [0, 0, 1, 1], [], []>} : vector<8x128xbf16>, vector<128x256xbf16>, vector<8x256xf32> -> vector<8x256xf32>
    %c0_3 = arith.constant 0 : index
    %c0_4 = arith.constant 0 : index
    %4 = vector.load %arg2[%c0_3, %c0_4] : memref<8x256xf32, #tpu.memory_space<vmem>>, vector<8x256xf32>
    %5 = arith.addf %3, %4 : vector<8x256xf32>
    %6 = tpu.iota {dimensions = array<i32: 1>} : vector<1x128xi32>
    %c32_i32 = arith.constant 32 : i32
    %7 = vector.broadcast %c32_i32 : i32 to vector<1x128xi32>
    %8 = arith.cmpi slt, %6, %7 : vector<1x128xi32>
    %9 = tpu.iota {dimensions = array<i32: 0>} : vector<8x1xi32>
    %c3_i32 = arith.constant 3 : i32
    %10 = vector.broadcast %c3_i32 : i32 to vector<8x1xi32>
    %11 = arith.andi %9, %10 : vector<8x1xi32>
    %12 = vector.extract_strided_slice %5 {offsets = [0, 0], sizes = [8, 128], strides = [1, 1]} : vector<8x256xf32> to vector<8x128xf32>
    %c0_5 = arith.constant 0 : index
    %c0_6 = arith.constant 0 : index
    %13 = vector.load %arg3[%c0_5, %c0_6] : memref<8x8xf32, #tpu.memory_space<vmem>>, vector<8x8xf32>
    %cst_7 = arith.constant dense<0.000000e+00> : vector<8x128xf32>
    %14 = tpu.matmul %13, %12, %cst_7 {dimension_numbers = #tpu.dot_dimension_numbers<[1], [0], [0], [1], [0, 0, 1, 1], [], []>} : vector<8x8xf32>, vector<8x128xf32>, vector<8x128xf32> -> vector<8x128xf32>
    %15 = vector.shape_cast %8 : vector<1x128xi1> to vector<1x128xi1>
    %16 = vector.broadcast %15 : vector<1x128xi1> to vector<8x128xi1>
    %17 = arith.select %16, %12, %14 : vector<8x128xi1>, vector<8x128xf32>
    %cst_8 = arith.constant 0.000000e+00 : f32
    %18 = vector.broadcast %cst_8 : f32 to vector<8x128xf32>
    %cst_9 = arith.constant 0.000000e+00 : f32
    %19 = vector.broadcast %cst_9 : f32 to vector<2x128xf32>
    %20 = vector.extract_strided_slice %17 {offsets = [0, 0], sizes = [6, 128], strides = [1, 1]} : vector<8x128xf32> to vector<6x128xf32>
    %21 = tpu.concatenate %19, %20 in 0 : vector<2x128xf32>, vector<6x128xf32> -> vector<8x128xf32>
    %c2_i32 = arith.constant 2 : i32
    %22 = vector.broadcast %c2_i32 : i32 to vector<8x1xi32>
    %23 = arith.cmpi sge, %11, %22 : vector<8x1xi32>
    %cst_10 = arith.constant 0.000000e+00 : f32
    %24 = vector.shape_cast %23 : vector<8x1xi1> to vector<8x1xi1>
    %25 = vector.broadcast %24 : vector<8x1xi1> to vector<8x128xi1>
    %26 = vector.broadcast %cst_10 : f32 to vector<8x128xf32>
    %27 = arith.select %25, %21, %26 : vector<8x128xi1>, vector<8x128xf32>
    %c0_11 = arith.constant 0 : index
    %c0_12 = arith.constant 0 : index
    %28 = vector.load %arg4[%c0_11, %c0_12] : memref<10x128xf32, #tpu.memory_space<vmem>>, vector<1x128xf32>
    %29 = vector.broadcast %28 : vector<1x128xf32> to vector<8x128xf32>
    %30 = arith.mulf %27, %29 : vector<8x128xf32>
    %31 = arith.addf %18, %30 : vector<8x128xf32>
    %cst_13 = arith.constant 0.000000e+00 : f32
    %32 = vector.broadcast %cst_13 : f32 to vector<1x128xf32>
    %33 = vector.extract_strided_slice %17 {offsets = [0, 0], sizes = [7, 128], strides = [1, 1]} : vector<8x128xf32> to vector<7x128xf32>
    %34 = tpu.concatenate %32, %33 in 0 : vector<1x128xf32>, vector<7x128xf32> -> vector<8x128xf32>
    %c1_i32 = arith.constant 1 : i32
    %35 = vector.broadcast %c1_i32 : i32 to vector<8x1xi32>
    %36 = arith.cmpi sge, %11, %35 : vector<8x1xi32>
    %cst_14 = arith.constant 0.000000e+00 : f32
    %37 = vector.shape_cast %36 : vector<8x1xi1> to vector<8x1xi1>
    %38 = vector.broadcast %37 : vector<8x1xi1> to vector<8x128xi1>
    %39 = vector.broadcast %cst_14 : f32 to vector<8x128xf32>
    %40 = arith.select %38, %34, %39 : vector<8x128xi1>, vector<8x128xf32>
    %c1 = arith.constant 1 : index
    %c0_15 = arith.constant 0 : index
    %41 = vector.load %arg4[%c1, %c0_15] : memref<10x128xf32, #tpu.memory_space<vmem>>, vector<1x128xf32>
    %42 = vector.broadcast %41 : vector<1x128xf32> to vector<8x128xf32>
    %43 = arith.mulf %40, %42 : vector<8x128xf32>
    %44 = arith.addf %31, %43 : vector<8x128xf32>
    %c2 = arith.constant 2 : index
    %c0_16 = arith.constant 0 : index
    %45 = vector.load %arg4[%c2, %c0_16] : memref<10x128xf32, #tpu.memory_space<vmem>>, vector<1x128xf32>
    %46 = vector.broadcast %45 : vector<1x128xf32> to vector<8x128xf32>
    %47 = arith.mulf %17, %46 : vector<8x128xf32>
    %48 = arith.addf %44, %47 : vector<8x128xf32>
    %c3 = arith.constant 3 : index
    %c0_17 = arith.constant 0 : index
    %49 = vector.load %arg4[%c3, %c0_17] : memref<10x128xf32, #tpu.memory_space<vmem>>, vector<1x128xf32>
    %50 = vector.broadcast %49 : vector<1x128xf32> to vector<8x128xf32>
    %51 = arith.addf %48, %50 : vector<8x128xf32>
    %52 = arith.negf %51 : vector<8x128xf32>
    %53 = math.exp %52 : vector<8x128xf32>
    %cst_18 = arith.constant 1.000000e+00 : f32
    %54 = vector.broadcast %cst_18 : f32 to vector<8x128xf32>
    %55 = arith.addf %54, %53 : vector<8x128xf32>
    %56 = arith.divf %54, %55 : vector<8x128xf32>
    %57 = arith.mulf %51, %56 : vector<8x128xf32>
    %58 = arith.truncf %57 : vector<8x128xf32> to vector<8x128xbf16>
    %c0_19 = arith.constant 0 : index
    %c0_20 = arith.constant 0 : index
    %59 = vector.load %arg5[%c0_19, %c0_20] : memref<128x1152xbf16, #tpu.memory_space<vmem>>, vector<128x1152xbf16>
    %cst_21 = arith.constant dense<0.000000e+00> : vector<8x1152xf32>
    %60 = tpu.matmul %58, %59, %cst_21 {dimension_numbers = #tpu.dot_dimension_numbers<[1], [0], [0], [1], [0, 0, 1, 1], [], []>} : vector<8x128xbf16>, vector<128x1152xbf16>, vector<8x1152xf32> -> vector<8x1152xf32>
    %61 = vector.extract_strided_slice %60 {offsets = [0, 0], sizes = [8, 128], strides = [1, 1]} : vector<8x1152xf32> to vector<8x128xf32>
    %c4 = arith.constant 4 : index
    %c0_22 = arith.constant 0 : index
    %62 = vector.load %arg4[%c4, %c0_22] : memref<10x128xf32, #tpu.memory_space<vmem>>, vector<1x128xf32>
    %63 = vector.broadcast %62 : vector<1x128xf32> to vector<8x128xf32>
    %64 = arith.addf %61, %63 : vector<8x128xf32>
    %cst_23 = arith.constant 2.000000e+01 : f32
    %65 = vector.broadcast %cst_23 : f32 to vector<8x128xf32>
    %66 = arith.cmpf ogt, %64, %65 : vector<8x128xf32>
    %cst_24 = arith.constant 2.000000e+01 : f32
    %67 = vector.broadcast %cst_24 : f32 to vector<8x128xf32>
    %68 = arith.minimumf %64, %67 : vector<8x128xf32>
    %69 = math.exp %68 : vector<8x128xf32>
    %70 = math.log1p %69 : vector<8x128xf32>
    %71 = arith.select %66, %64, %70 : vector<8x128xi1>, vector<8x128xf32>
    %72 = arith.mulf %71, %57 : vector<8x128xf32>
    %c5 = arith.constant 5 : index
    %c0_25 = arith.constant 0 : index
    %73 = vector.load %arg4[%c5, %c0_25] : memref<10x128xf32, #tpu.memory_space<vmem>>, vector<1x128xf32>
    %74 = vector.broadcast %73 : vector<1x128xf32> to vector<8x128xf32>
    %75 = arith.mulf %74, %57 : vector<8x128xf32>
    %c6 = arith.constant 6 : index
    %c0_26 = arith.constant 0 : index
    %76 = vector.load %arg4[%c6, %c0_26] : memref<10x128xf32, #tpu.memory_space<vmem>>, vector<1x128xf32>
    %77 = vector.broadcast %76 : vector<1x128xf32> to vector<8x128xf32>
    %78 = arith.mulf %71, %77 : vector<8x128xf32>
    %79 = math.exp %78 : vector<8x128xf32>
    %80 = vector.extract_strided_slice %60 {offsets = [0, 128], sizes = [8, 128], strides = [1, 1]} : vector<8x1152xf32> to vector<8x128xf32>
    %81 = arith.mulf %80, %72 : vector<8x128xf32>
    %cst_27 = arith.constant 0.000000e+00 : f32
    %82 = vector.broadcast %cst_27 : f32 to vector<1x128xf32>
    %83 = vector.extract_strided_slice %81 {offsets = [0, 0], sizes = [7, 128], strides = [1, 1]} : vector<8x128xf32> to vector<7x128xf32>
    %84 = tpu.concatenate %82, %83 in 0 : vector<1x128xf32>, vector<7x128xf32> -> vector<8x128xf32>
    %c1_i32_28 = arith.constant 1 : i32
    %85 = vector.broadcast %c1_i32_28 : i32 to vector<8x1xi32>
    %86 = arith.cmpi sge, %11, %85 : vector<8x1xi32>
    %cst_29 = arith.constant 0.000000e+00 : f32
    %87 = vector.shape_cast %86 : vector<8x1xi1> to vector<8x1xi1>
    %88 = vector.broadcast %87 : vector<8x1xi1> to vector<8x128xi1>
    %89 = vector.broadcast %cst_29 : f32 to vector<8x128xf32>
    %90 = arith.select %88, %84, %89 : vector<8x128xi1>, vector<8x128xf32>
    %91 = arith.mulf %79, %90 : vector<8x128xf32>
    %92 = arith.addf %81, %91 : vector<8x128xf32>
    %cst_30 = arith.constant 0.000000e+00 : f32
    %93 = vector.broadcast %cst_30 : f32 to vector<1x128xf32>
    %94 = vector.extract_strided_slice %79 {offsets = [0, 0], sizes = [7, 128], strides = [1, 1]} : vector<8x128xf32> to vector<7x128xf32>
    %95 = tpu.concatenate %93, %94 in 0 : vector<1x128xf32>, vector<7x128xf32> -> vector<8x128xf32>
    %c1_i32_31 = arith.constant 1 : i32
    %96 = vector.broadcast %c1_i32_31 : i32 to vector<8x1xi32>
    %97 = arith.cmpi sge, %11, %96 : vector<8x1xi32>
    %cst_32 = arith.constant 0.000000e+00 : f32
    %98 = vector.shape_cast %97 : vector<8x1xi1> to vector<8x1xi1>
    %99 = vector.broadcast %98 : vector<8x1xi1> to vector<8x128xi1>
    %100 = vector.broadcast %cst_32 : f32 to vector<8x128xf32>
    %101 = arith.select %99, %95, %100 : vector<8x128xi1>, vector<8x128xf32>
    %102 = arith.mulf %79, %101 : vector<8x128xf32>
    %cst_33 = arith.constant 0.000000e+00 : f32
    %103 = vector.broadcast %cst_33 : f32 to vector<2x128xf32>
    %104 = vector.extract_strided_slice %92 {offsets = [0, 0], sizes = [6, 128], strides = [1, 1]} : vector<8x128xf32> to vector<6x128xf32>
    %105 = tpu.concatenate %103, %104 in 0 : vector<2x128xf32>, vector<6x128xf32> -> vector<8x128xf32>
    %c2_i32_34 = arith.constant 2 : i32
    %106 = vector.broadcast %c2_i32_34 : i32 to vector<8x1xi32>
    %107 = arith.cmpi sge, %11, %106 : vector<8x1xi32>
    %cst_35 = arith.constant 0.000000e+00 : f32
    %108 = vector.shape_cast %107 : vector<8x1xi1> to vector<8x1xi1>
    %109 = vector.broadcast %108 : vector<8x1xi1> to vector<8x128xi1>
    %110 = vector.broadcast %cst_35 : f32 to vector<8x128xf32>
    %111 = arith.select %109, %105, %110 : vector<8x128xi1>, vector<8x128xf32>
    %112 = arith.mulf %102, %111 : vector<8x128xf32>
    %113 = arith.addf %92, %112 : vector<8x128xf32>
    %114 = vector.extract_strided_slice %60 {offsets = [0, 640], sizes = [8, 128], strides = [1, 1]} : vector<8x1152xf32> to vector<8x128xf32>
    %115 = arith.mulf %114, %113 : vector<8x128xf32>
    %116 = arith.addf %75, %115 : vector<8x128xf32>
    %c7 = arith.constant 7 : index
    %c0_36 = arith.constant 0 : index
    %117 = vector.load %arg4[%c7, %c0_36] : memref<10x128xf32, #tpu.memory_space<vmem>>, vector<1x128xf32>
    %118 = vector.broadcast %117 : vector<1x128xf32> to vector<8x128xf32>
    %119 = arith.mulf %71, %118 : vector<8x128xf32>
    %120 = math.exp %119 : vector<8x128xf32>
    %121 = vector.extract_strided_slice %60 {offsets = [0, 256], sizes = [8, 128], strides = [1, 1]} : vector<8x1152xf32> to vector<8x128xf32>
    %122 = arith.mulf %121, %72 : vector<8x128xf32>
    %cst_37 = arith.constant 0.000000e+00 : f32
    %123 = vector.broadcast %cst_37 : f32 to vector<1x128xf32>
    %124 = vector.extract_strided_slice %122 {offsets = [0, 0], sizes = [7, 128], strides = [1, 1]} : vector<8x128xf32> to vector<7x128xf32>
    %125 = tpu.concatenate %123, %124 in 0 : vector<1x128xf32>, vector<7x128xf32> -> vector<8x128xf32>
    %c1_i32_38 = arith.constant 1 : i32
    %126 = vector.broadcast %c1_i32_38 : i32 to vector<8x1xi32>
    %127 = arith.cmpi sge, %11, %126 : vector<8x1xi32>
    %cst_39 = arith.constant 0.000000e+00 : f32
    %128 = vector.shape_cast %127 : vector<8x1xi1> to vector<8x1xi1>
    %129 = vector.broadcast %128 : vector<8x1xi1> to vector<8x128xi1>
    %130 = vector.broadcast %cst_39 : f32 to vector<8x128xf32>
    %131 = arith.select %129, %125, %130 : vector<8x128xi1>, vector<8x128xf32>
    %132 = arith.mulf %120, %131 : vector<8x128xf32>
    %133 = arith.addf %122, %132 : vector<8x128xf32>
    %cst_40 = arith.constant 0.000000e+00 : f32
    %134 = vector.broadcast %cst_40 : f32 to vector<1x128xf32>
    %135 = vector.extract_strided_slice %120 {offsets = [0, 0], sizes = [7, 128], strides = [1, 1]} : vector<8x128xf32> to vector<7x128xf32>
    %136 = tpu.concatenate %134, %135 in 0 : vector<1x128xf32>, vector<7x128xf32> -> vector<8x128xf32>
    %c1_i32_41 = arith.constant 1 : i32
    %137 = vector.broadcast %c1_i32_41 : i32 to vector<8x1xi32>
    %138 = arith.cmpi sge, %11, %137 : vector<8x1xi32>
    %cst_42 = arith.constant 0.000000e+00 : f32
    %139 = vector.shape_cast %138 : vector<8x1xi1> to vector<8x1xi1>
    %140 = vector.broadcast %139 : vector<8x1xi1> to vector<8x128xi1>
    %141 = vector.broadcast %cst_42 : f32 to vector<8x128xf32>
    %142 = arith.select %140, %136, %141 : vector<8x128xi1>, vector<8x128xf32>
    %143 = arith.mulf %120, %142 : vector<8x128xf32>
    %cst_43 = arith.constant 0.000000e+00 : f32
    %144 = vector.broadcast %cst_43 : f32 to vector<2x128xf32>
    %145 = vector.extract_strided_slice %133 {offsets = [0, 0], sizes = [6, 128], strides = [1, 1]} : vector<8x128xf32> to vector<6x128xf32>
    %146 = tpu.concatenate %144, %145 in 0 : vector<2x128xf32>, vector<6x128xf32> -> vector<8x128xf32>
    %c2_i32_44 = arith.constant 2 : i32
    %147 = vector.broadcast %c2_i32_44 : i32 to vector<8x1xi32>
    %148 = arith.cmpi sge, %11, %147 : vector<8x1xi32>
    %cst_45 = arith.constant 0.000000e+00 : f32
    %149 = vector.shape_cast %148 : vector<8x1xi1> to vector<8x1xi1>
    %150 = vector.broadcast %149 : vector<8x1xi1> to vector<8x128xi1>
    %151 = vector.broadcast %cst_45 : f32 to vector<8x128xf32>
    %152 = arith.select %150, %146, %151 : vector<8x128xi1>, vector<8x128xf32>
    %153 = arith.mulf %143, %152 : vector<8x128xf32>
    %154 = arith.addf %133, %153 : vector<8x128xf32>
    %155 = vector.extract_strided_slice %60 {offsets = [0, 768], sizes = [8, 128], strides = [1, 1]} : vector<8x1152xf32> to vector<8x128xf32>
    %156 = arith.mulf %155, %154 : vector<8x128xf32>
    %157 = arith.addf %116, %156 : vector<8x128xf32>
    %c8 = arith.constant 8 : index
    %c0_46 = arith.constant 0 : index
    %158 = vector.load %arg4[%c8, %c0_46] : memref<10x128xf32, #tpu.memory_space<vmem>>, vector<1x128xf32>
    %159 = vector.broadcast %158 : vector<1x128xf32> to vector<8x128xf32>
    %160 = arith.mulf %71, %159 : vector<8x128xf32>
    %161 = math.exp %160 : vector<8x128xf32>
    %162 = vector.extract_strided_slice %60 {offsets = [0, 384], sizes = [8, 128], strides = [1, 1]} : vector<8x1152xf32> to vector<8x128xf32>
    %163 = arith.mulf %162, %72 : vector<8x128xf32>
    %cst_47 = arith.constant 0.000000e+00 : f32
    %164 = vector.broadcast %cst_47 : f32 to vector<1x128xf32>
    %165 = vector.extract_strided_slice %163 {offsets = [0, 0], sizes = [7, 128], strides = [1, 1]} : vector<8x128xf32> to vector<7x128xf32>
    %166 = tpu.concatenate %164, %165 in 0 : vector<1x128xf32>, vector<7x128xf32> -> vector<8x128xf32>
    %c1_i32_48 = arith.constant 1 : i32
    %167 = vector.broadcast %c1_i32_48 : i32 to vector<8x1xi32>
    %168 = arith.cmpi sge, %11, %167 : vector<8x1xi32>
    %cst_49 = arith.constant 0.000000e+00 : f32
    %169 = vector.shape_cast %168 : vector<8x1xi1> to vector<8x1xi1>
    %170 = vector.broadcast %169 : vector<8x1xi1> to vector<8x128xi1>
    %171 = vector.broadcast %cst_49 : f32 to vector<8x128xf32>
    %172 = arith.select %170, %166, %171 : vector<8x128xi1>, vector<8x128xf32>
    %173 = arith.mulf %161, %172 : vector<8x128xf32>
    %174 = arith.addf %163, %173 : vector<8x128xf32>
    %cst_50 = arith.constant 0.000000e+00 : f32
    %175 = vector.broadcast %cst_50 : f32 to vector<1x128xf32>
    %176 = vector.extract_strided_slice %161 {offsets = [0, 0], sizes = [7, 128], strides = [1, 1]} : vector<8x128xf32> to vector<7x128xf32>
    %177 = tpu.concatenate %175, %176 in 0 : vector<1x128xf32>, vector<7x128xf32> -> vector<8x128xf32>
    %c1_i32_51 = arith.constant 1 : i32
    %178 = vector.broadcast %c1_i32_51 : i32 to vector<8x1xi32>
    %179 = arith.cmpi sge, %11, %178 : vector<8x1xi32>
    %cst_52 = arith.constant 0.000000e+00 : f32
    %180 = vector.shape_cast %179 : vector<8x1xi1> to vector<8x1xi1>
    %181 = vector.broadcast %180 : vector<8x1xi1> to vector<8x128xi1>
    %182 = vector.broadcast %cst_52 : f32 to vector<8x128xf32>
    %183 = arith.select %181, %177, %182 : vector<8x128xi1>, vector<8x128xf32>
    %184 = arith.mulf %161, %183 : vector<8x128xf32>
    %cst_53 = arith.constant 0.000000e+00 : f32
    %185 = vector.broadcast %cst_53 : f32 to vector<2x128xf32>
    %186 = vector.extract_strided_slice %174 {offsets = [0, 0], sizes = [6, 128], strides = [1, 1]} : vector<8x128xf32> to vector<6x128xf32>
    %187 = tpu.concatenate %185, %186 in 0 : vector<2x128xf32>, vector<6x128xf32> -> vector<8x128xf32>
    %c2_i32_54 = arith.constant 2 : i32
    %188 = vector.broadcast %c2_i32_54 : i32 to vector<8x1xi32>
    %189 = arith.cmpi sge, %11, %188 : vector<8x1xi32>
    %cst_55 = arith.constant 0.000000e+00 : f32
    %190 = vector.shape_cast %189 : vector<8x1xi1> to vector<8x1xi1>
    %191 = vector.broadcast %190 : vector<8x1xi1> to vector<8x128xi1>
    %192 = vector.broadcast %cst_55 : f32 to vector<8x128xf32>
    %193 = arith.select %191, %187, %192 : vector<8x128xi1>, vector<8x128xf32>
    %194 = arith.mulf %184, %193 : vector<8x128xf32>
    %195 = arith.addf %174, %194 : vector<8x128xf32>
    %196 = vector.extract_strided_slice %60 {offsets = [0, 896], sizes = [8, 128], strides = [1, 1]} : vector<8x1152xf32> to vector<8x128xf32>
    %197 = arith.mulf %196, %195 : vector<8x128xf32>
    %198 = arith.addf %157, %197 : vector<8x128xf32>
    %c9 = arith.constant 9 : index
    %c0_56 = arith.constant 0 : index
    %199 = vector.load %arg4[%c9, %c0_56] : memref<10x128xf32, #tpu.memory_space<vmem>>, vector<1x128xf32>
    %200 = vector.broadcast %199 : vector<1x128xf32> to vector<8x128xf32>
    %201 = arith.mulf %71, %200 : vector<8x128xf32>
    %202 = math.exp %201 : vector<8x128xf32>
    %203 = vector.extract_strided_slice %60 {offsets = [0, 512], sizes = [8, 128], strides = [1, 1]} : vector<8x1152xf32> to vector<8x128xf32>
    %204 = arith.mulf %203, %72 : vector<8x128xf32>
    %cst_57 = arith.constant 0.000000e+00 : f32
    %205 = vector.broadcast %cst_57 : f32 to vector<1x128xf32>
    %206 = vector.extract_strided_slice %204 {offsets = [0, 0], sizes = [7, 128], strides = [1, 1]} : vector<8x128xf32> to vector<7x128xf32>
    %207 = tpu.concatenate %205, %206 in 0 : vector<1x128xf32>, vector<7x128xf32> -> vector<8x128xf32>
    %c1_i32_58 = arith.constant 1 : i32
    %208 = vector.broadcast %c1_i32_58 : i32 to vector<8x1xi32>
    %209 = arith.cmpi sge, %11, %208 : vector<8x1xi32>
    %cst_59 = arith.constant 0.000000e+00 : f32
    %210 = vector.shape_cast %209 : vector<8x1xi1> to vector<8x1xi1>
    %211 = vector.broadcast %210 : vector<8x1xi1> to vector<8x128xi1>
    %212 = vector.broadcast %cst_59 : f32 to vector<8x128xf32>
    %213 = arith.select %211, %207, %212 : vector<8x128xi1>, vector<8x128xf32>
    %214 = arith.mulf %202, %213 : vector<8x128xf32>
    %215 = arith.addf %204, %214 : vector<8x128xf32>
    %cst_60 = arith.constant 0.000000e+00 : f32
    %216 = vector.broadcast %cst_60 : f32 to vector<1x128xf32>
    %217 = vector.extract_strided_slice %202 {offsets = [0, 0], sizes = [7, 128], strides = [1, 1]} : vector<8x128xf32> to vector<7x128xf32>
    %218 = tpu.concatenate %216, %217 in 0 : vector<1x128xf32>, vector<7x128xf32> -> vector<8x128xf32>
    %c1_i32_61 = arith.constant 1 : i32
    %219 = vector.broadcast %c1_i32_61 : i32 to vector<8x1xi32>
    %220 = arith.cmpi sge, %11, %219 : vector<8x1xi32>
    %cst_62 = arith.constant 0.000000e+00 : f32
    %221 = vector.shape_cast %220 : vector<8x1xi1> to vector<8x1xi1>
    %222 = vector.broadcast %221 : vector<8x1xi1> to vector<8x128xi1>
    %223 = vector.broadcast %cst_62 : f32 to vector<8x128xf32>
    %224 = arith.select %222, %218, %223 : vector<8x128xi1>, vector<8x128xf32>
    %225 = arith.mulf %202, %224 : vector<8x128xf32>
    %cst_63 = arith.constant 0.000000e+00 : f32
    %226 = vector.broadcast %cst_63 : f32 to vector<2x128xf32>
    %227 = vector.extract_strided_slice %215 {offsets = [0, 0], sizes = [6, 128], strides = [1, 1]} : vector<8x128xf32> to vector<6x128xf32>
    %228 = tpu.concatenate %226, %227 in 0 : vector<2x128xf32>, vector<6x128xf32> -> vector<8x128xf32>
    %c2_i32_64 = arith.constant 2 : i32
    %229 = vector.broadcast %c2_i32_64 : i32 to vector<8x1xi32>
    %230 = arith.cmpi sge, %11, %229 : vector<8x1xi32>
    %cst_65 = arith.constant 0.000000e+00 : f32
    %231 = vector.shape_cast %230 : vector<8x1xi1> to vector<8x1xi1>
    %232 = vector.broadcast %231 : vector<8x1xi1> to vector<8x128xi1>
    %233 = vector.broadcast %cst_65 : f32 to vector<8x128xf32>
    %234 = arith.select %232, %228, %233 : vector<8x128xi1>, vector<8x128xf32>
    %235 = arith.mulf %225, %234 : vector<8x128xf32>
    %236 = arith.addf %215, %235 : vector<8x128xf32>
    %237 = vector.extract_strided_slice %60 {offsets = [0, 1024], sizes = [8, 128], strides = [1, 1]} : vector<8x1152xf32> to vector<8x128xf32>
    %238 = arith.mulf %237, %236 : vector<8x128xf32>
    %239 = arith.addf %198, %238 : vector<8x128xf32>
    %c0_66 = arith.constant 0 : index
    %c0_67 = arith.constant 0 : index
    %240 = vector.load %arg3[%c0_66, %c0_67] : memref<8x8xf32, #tpu.memory_space<vmem>>, vector<8x8xf32>
    %cst_68 = arith.constant dense<0.000000e+00> : vector<8x128xf32>
    %241 = tpu.matmul %240, %239, %cst_68 {dimension_numbers = #tpu.dot_dimension_numbers<[1], [0], [0], [1], [0, 0, 1, 1], [], []>} : vector<8x8xf32>, vector<8x128xf32>, vector<8x128xf32> -> vector<8x128xf32>
    %242 = vector.shape_cast %8 : vector<1x128xi1> to vector<1x128xi1>
    %243 = vector.broadcast %242 : vector<1x128xi1> to vector<8x128xi1>
    %244 = arith.select %243, %239, %241 : vector<8x128xi1>, vector<8x128xf32>
    %245 = vector.extract_strided_slice %5 {offsets = [0, 128], sizes = [8, 128], strides = [1, 1]} : vector<8x256xf32> to vector<8x128xf32>
    %246 = arith.negf %245 : vector<8x128xf32>
    %247 = math.exp %246 : vector<8x128xf32>
    %cst_69 = arith.constant 1.000000e+00 : f32
    %248 = vector.broadcast %cst_69 : f32 to vector<8x128xf32>
    %249 = arith.addf %248, %247 : vector<8x128xf32>
    %250 = arith.divf %248, %249 : vector<8x128xf32>
    %251 = arith.mulf %245, %250 : vector<8x128xf32>
    %252 = arith.mulf %244, %251 : vector<8x128xf32>
    %253 = arith.truncf %252 : vector<8x128xf32> to vector<8x128xbf16>
    %c0_70 = arith.constant 0 : index
    %c0_71 = arith.constant 0 : index
    %254 = vector.load %arg6[%c0_70, %c0_71] : memref<128x128xbf16, #tpu.memory_space<vmem>>, vector<128x128xbf16>
    %cst_72 = arith.constant dense<0.000000e+00> : vector<8x128xf32>
    %255 = tpu.matmul %253, %254, %cst_72 {dimension_numbers = #tpu.dot_dimension_numbers<[1], [0], [0], [1], [0, 0, 1, 1], [], []>} : vector<8x128xbf16>, vector<128x128xbf16>, vector<8x128xf32> -> vector<8x128xf32>
    %cst_73 = arith.constant 5.000000e-01 : f32
    %256 = vector.broadcast %cst_73 : f32 to vector<8x128xf32>
    %257 = arith.mulf %256, %255 : vector<8x128xf32>
    %cst_74 = arith.constant dense<0.000000e+00> : vector<8xf32>
    %258 = vector.multi_reduction <add>, %257, %cst_74 [1] : vector<8x128xf32> to vector<8xf32>
    %259 = vector.shape_cast %258 : vector<8xf32> to vector<8x1xf32>
    %cst_75 = arith.constant 6.250000e-02 : f32
    %260 = vector.broadcast %cst_75 : f32 to vector<8x1xf32>
    %261 = arith.mulf %259, %260 : vector<8x1xf32>
    %262 = arith.mulf %257, %257 : vector<8x128xf32>
    %cst_76 = arith.constant dense<0.000000e+00> : vector<8xf32>
    %263 = vector.multi_reduction <add>, %262, %cst_76 [1] : vector<8x128xf32> to vector<8xf32>
    %264 = vector.shape_cast %263 : vector<8xf32> to vector<8x1xf32>
    %cst_77 = arith.constant 6.250000e-02 : f32
    %265 = vector.broadcast %cst_77 : f32 to vector<8x1xf32>
    %266 = arith.mulf %264, %265 : vector<8x1xf32>
    %267 = arith.mulf %261, %261 : vector<8x1xf32>
    %268 = arith.subf %266, %267 : vector<8x1xf32>
    %cst_78 = arith.constant 0.000000e+00 : f32
    %269 = vector.broadcast %cst_78 : f32 to vector<8x1xf32>
    %270 = arith.maximumf %268, %269 : vector<8x1xf32>
    %271 = vector.broadcast %261 : vector<8x1xf32> to vector<8x128xf32>
    %272 = arith.subf %257, %271 : vector<8x128xf32>
    %cst_79 = arith.constant 9.99999974E-6 : f32
    %273 = vector.broadcast %cst_79 : f32 to vector<8x1xf32>
    %274 = arith.addf %270, %273 : vector<8x1xf32>
    %275 = math.rsqrt %274 : vector<8x1xf32>
    %276 = vector.broadcast %275 : vector<8x1xf32> to vector<8x128xf32>
    %277 = arith.mulf %272, %276 : vector<8x128xf32>
    %c0_80 = arith.constant 0 : index
    %c0_81 = arith.constant 0 : index
    %278 = vector.load %arg7[%c0_80, %c0_81] : memref<2x128xf32, #tpu.memory_space<vmem>>, vector<1x128xf32>
    %279 = vector.broadcast %278 : vector<1x128xf32> to vector<8x128xf32>
    %280 = arith.mulf %277, %279 : vector<8x128xf32>
    %c1_82 = arith.constant 1 : index
    %c0_83 = arith.constant 0 : index
    %281 = vector.load %arg7[%c1_82, %c0_83] : memref<2x128xf32, #tpu.memory_space<vmem>>, vector<1x128xf32>
    %282 = vector.broadcast %281 : vector<1x128xf32> to vector<8x128xf32>
    %283 = arith.addf %280, %282 : vector<8x128xf32>
    %284 = arith.negf %283 : vector<8x128xf32>
    %285 = math.exp %284 : vector<8x128xf32>
    %cst_84 = arith.constant 1.000000e+00 : f32
    %286 = vector.broadcast %cst_84 : f32 to vector<8x128xf32>
    %287 = arith.addf %286, %285 : vector<8x128xf32>
    %288 = arith.divf %286, %287 : vector<8x128xf32>
    %289 = arith.mulf %283, %288 : vector<8x128xf32>
    %c0_85 = arith.constant 0 : index
    %c0_86 = arith.constant 0 : index
    %290 = vector.load %arg8[%c0_85, %c0_86] : memref<8x128xf32, #tpu.memory_space<vmem>>, vector<8x128xf32>
    tpu.vector_store %arg8[%c0_85, %c0_86], %289 {strides = array<i32>} : memref<8x128xf32, #tpu.memory_space<vmem>>, vector<8x128xf32>,
    return
  }
}

module attributes {stable_mosaic.version = 11 : i64} {
  func.func @_linear_ln_silu_kernel(%arg0: memref<8x128xf32, #tpu.memory_space<vmem>>, %arg1: memref<128x512xbf16, #tpu.memory_space<vmem>>, %arg2: memref<1x512xf32, #tpu.memory_space<vmem>>, %arg3: memref<1x128xf32, #tpu.memory_space<vmem>>, %arg4: memref<1x128xf32, #tpu.memory_space<vmem>>, %arg5: memref<8x512xf32, #tpu.memory_space<vmem>>) attributes {dimension_semantics = [], scalar_prefetch = 0 : i64, scratch_operands = 0 : i64, tpu.core_type = #tpu.core_type<tc>} {
    %c0 = arith.constant 0 : index
    %c0_0 = arith.constant 0 : index
    %0 = vector.load %arg0[%c0, %c0_0] : memref<8x128xf32, #tpu.memory_space<vmem>>, vector<8x128xf32>
    %1 = arith.truncf %0 : vector<8x128xf32> to vector<8x128xbf16>
    %c0_1 = arith.constant 0 : index
    %c0_2 = arith.constant 0 : index
    %2 = vector.load %arg1[%c0_1, %c0_2] : memref<128x512xbf16, #tpu.memory_space<vmem>>, vector<128x512xbf16>
    %cst = arith.constant dense<0.000000e+00> : vector<8x512xf32>
    %3 = tpu.matmul %1, %2, %cst {dimension_numbers = #tpu.dot_dimension_numbers<[1], [0], [0], [1], [0, 0, 1, 1], [], []>} : vector<8x128xbf16>, vector<128x512xbf16>, vector<8x512xf32> -> vector<8x512xf32>
    %c0_3 = arith.constant 0 : index
    %c0_4 = arith.constant 0 : index
    %4 = vector.load %arg2[%c0_3, %c0_4] : memref<1x512xf32, #tpu.memory_space<vmem>>, vector<1x512xf32>
    %5 = vector.broadcast %4 : vector<1x512xf32> to vector<8x512xf32>
    %6 = arith.addf %3, %5 : vector<8x512xf32>
    %c0_5 = arith.constant 0 : index
    %c0_6 = arith.constant 0 : index
    %7 = vector.load %arg3[%c0_5, %c0_6] : memref<1x128xf32, #tpu.memory_space<vmem>>, vector<1x128xf32>
    %c0_7 = arith.constant 0 : index
    %c0_8 = arith.constant 0 : index
    %8 = vector.load %arg4[%c0_7, %c0_8] : memref<1x128xf32, #tpu.memory_space<vmem>>, vector<1x128xf32>
    %9 = vector.extract_strided_slice %6 {offsets = [0, 0], sizes = [8, 128], strides = [1, 1]} : vector<8x512xf32> to vector<8x128xf32>
    %cst_9 = arith.constant dense<0.000000e+00> : vector<8xf32>
    %10 = vector.multi_reduction <add>, %9, %cst_9 [1] : vector<8x128xf32> to vector<8xf32>
    %11 = vector.shape_cast %10 : vector<8xf32> to vector<8x1xf32>
    %cst_10 = arith.constant 1.250000e-01 : f32
    %12 = vector.broadcast %cst_10 : f32 to vector<8x1xf32>
    %13 = arith.mulf %11, %12 : vector<8x1xf32>
    %14 = arith.mulf %9, %9 : vector<8x128xf32>
    %cst_11 = arith.constant dense<0.000000e+00> : vector<8xf32>
    %15 = vector.multi_reduction <add>, %14, %cst_11 [1] : vector<8x128xf32> to vector<8xf32>
    %16 = vector.shape_cast %15 : vector<8xf32> to vector<8x1xf32>
    %cst_12 = arith.constant 1.250000e-01 : f32
    %17 = vector.broadcast %cst_12 : f32 to vector<8x1xf32>
    %18 = arith.mulf %16, %17 : vector<8x1xf32>
    %19 = arith.mulf %13, %13 : vector<8x1xf32>
    %20 = arith.subf %18, %19 : vector<8x1xf32>
    %cst_13 = arith.constant 0.000000e+00 : f32
    %21 = vector.broadcast %cst_13 : f32 to vector<8x1xf32>
    %22 = arith.maximumf %20, %21 : vector<8x1xf32>
    %23 = vector.broadcast %13 : vector<8x1xf32> to vector<8x128xf32>
    %24 = arith.subf %9, %23 : vector<8x128xf32>
    %cst_14 = arith.constant 9.99999974E-6 : f32
    %25 = vector.broadcast %cst_14 : f32 to vector<8x1xf32>
    %26 = arith.addf %22, %25 : vector<8x1xf32>
    %27 = math.rsqrt %26 : vector<8x1xf32>
    %28 = vector.broadcast %27 : vector<8x1xf32> to vector<8x128xf32>
    %29 = arith.mulf %24, %28 : vector<8x128xf32>
    %30 = vector.broadcast %7 : vector<1x128xf32> to vector<8x128xf32>
    %31 = arith.mulf %29, %30 : vector<8x128xf32>
    %32 = vector.broadcast %8 : vector<1x128xf32> to vector<8x128xf32>
    %33 = arith.addf %31, %32 : vector<8x128xf32>
    %34 = arith.negf %33 : vector<8x128xf32>
    %35 = math.exp %34 : vector<8x128xf32>
    %cst_15 = arith.constant 1.000000e+00 : f32
    %36 = vector.broadcast %cst_15 : f32 to vector<8x128xf32>
    %37 = arith.addf %36, %35 : vector<8x128xf32>
    %38 = arith.divf %36, %37 : vector<8x128xf32>
    %39 = arith.mulf %33, %38 : vector<8x128xf32>
    %40 = vector.extract_strided_slice %6 {offsets = [0, 128], sizes = [8, 128], strides = [1, 1]} : vector<8x512xf32> to vector<8x128xf32>
    %cst_16 = arith.constant dense<0.000000e+00> : vector<8xf32>
    %41 = vector.multi_reduction <add>, %40, %cst_16 [1] : vector<8x128xf32> to vector<8xf32>
    %42 = vector.shape_cast %41 : vector<8xf32> to vector<8x1xf32>
    %cst_17 = arith.constant 1.250000e-01 : f32
    %43 = vector.broadcast %cst_17 : f32 to vector<8x1xf32>
    %44 = arith.mulf %42, %43 : vector<8x1xf32>
    %45 = arith.mulf %40, %40 : vector<8x128xf32>
    %cst_18 = arith.constant dense<0.000000e+00> : vector<8xf32>
    %46 = vector.multi_reduction <add>, %45, %cst_18 [1] : vector<8x128xf32> to vector<8xf32>
    %47 = vector.shape_cast %46 : vector<8xf32> to vector<8x1xf32>
    %cst_19 = arith.constant 1.250000e-01 : f32
    %48 = vector.broadcast %cst_19 : f32 to vector<8x1xf32>
    %49 = arith.mulf %47, %48 : vector<8x1xf32>
    %50 = arith.mulf %44, %44 : vector<8x1xf32>
    %51 = arith.subf %49, %50 : vector<8x1xf32>
    %cst_20 = arith.constant 0.000000e+00 : f32
    %52 = vector.broadcast %cst_20 : f32 to vector<8x1xf32>
    %53 = arith.maximumf %51, %52 : vector<8x1xf32>
    %54 = vector.broadcast %44 : vector<8x1xf32> to vector<8x128xf32>
    %55 = arith.subf %40, %54 : vector<8x128xf32>
    %cst_21 = arith.constant 9.99999974E-6 : f32
    %56 = vector.broadcast %cst_21 : f32 to vector<8x1xf32>
    %57 = arith.addf %53, %56 : vector<8x1xf32>
    %58 = math.rsqrt %57 : vector<8x1xf32>
    %59 = vector.broadcast %58 : vector<8x1xf32> to vector<8x128xf32>
    %60 = arith.mulf %55, %59 : vector<8x128xf32>
    %61 = vector.broadcast %7 : vector<1x128xf32> to vector<8x128xf32>
    %62 = arith.mulf %60, %61 : vector<8x128xf32>
    %63 = vector.broadcast %8 : vector<1x128xf32> to vector<8x128xf32>
    %64 = arith.addf %62, %63 : vector<8x128xf32>
    %65 = arith.negf %64 : vector<8x128xf32>
    %66 = math.exp %65 : vector<8x128xf32>
    %cst_22 = arith.constant 1.000000e+00 : f32
    %67 = vector.broadcast %cst_22 : f32 to vector<8x128xf32>
    %68 = arith.addf %67, %66 : vector<8x128xf32>
    %69 = arith.divf %67, %68 : vector<8x128xf32>
    %70 = arith.mulf %64, %69 : vector<8x128xf32>
    %71 = vector.extract_strided_slice %6 {offsets = [0, 256], sizes = [8, 128], strides = [1, 1]} : vector<8x512xf32> to vector<8x128xf32>
    %cst_23 = arith.constant dense<0.000000e+00> : vector<8xf32>
    %72 = vector.multi_reduction <add>, %71, %cst_23 [1] : vector<8x128xf32> to vector<8xf32>
    %73 = vector.shape_cast %72 : vector<8xf32> to vector<8x1xf32>
    %cst_24 = arith.constant 1.250000e-01 : f32
    %74 = vector.broadcast %cst_24 : f32 to vector<8x1xf32>
    %75 = arith.mulf %73, %74 : vector<8x1xf32>
    %76 = arith.mulf %71, %71 : vector<8x128xf32>
    %cst_25 = arith.constant dense<0.000000e+00> : vector<8xf32>
    %77 = vector.multi_reduction <add>, %76, %cst_25 [1] : vector<8x128xf32> to vector<8xf32>
    %78 = vector.shape_cast %77 : vector<8xf32> to vector<8x1xf32>
    %cst_26 = arith.constant 1.250000e-01 : f32
    %79 = vector.broadcast %cst_26 : f32 to vector<8x1xf32>
    %80 = arith.mulf %78, %79 : vector<8x1xf32>
    %81 = arith.mulf %75, %75 : vector<8x1xf32>
    %82 = arith.subf %80, %81 : vector<8x1xf32>
    %cst_27 = arith.constant 0.000000e+00 : f32
    %83 = vector.broadcast %cst_27 : f32 to vector<8x1xf32>
    %84 = arith.maximumf %82, %83 : vector<8x1xf32>
    %85 = vector.broadcast %75 : vector<8x1xf32> to vector<8x128xf32>
    %86 = arith.subf %71, %85 : vector<8x128xf32>
    %cst_28 = arith.constant 9.99999974E-6 : f32
    %87 = vector.broadcast %cst_28 : f32 to vector<8x1xf32>
    %88 = arith.addf %84, %87 : vector<8x1xf32>
    %89 = math.rsqrt %88 : vector<8x1xf32>
    %90 = vector.broadcast %89 : vector<8x1xf32> to vector<8x128xf32>
    %91 = arith.mulf %86, %90 : vector<8x128xf32>
    %92 = vector.broadcast %7 : vector<1x128xf32> to vector<8x128xf32>
    %93 = arith.mulf %91, %92 : vector<8x128xf32>
    %94 = vector.broadcast %8 : vector<1x128xf32> to vector<8x128xf32>
    %95 = arith.addf %93, %94 : vector<8x128xf32>
    %96 = arith.negf %95 : vector<8x128xf32>
    %97 = math.exp %96 : vector<8x128xf32>
    %cst_29 = arith.constant 1.000000e+00 : f32
    %98 = vector.broadcast %cst_29 : f32 to vector<8x128xf32>
    %99 = arith.addf %98, %97 : vector<8x128xf32>
    %100 = arith.divf %98, %99 : vector<8x128xf32>
    %101 = arith.mulf %95, %100 : vector<8x128xf32>
    %102 = vector.extract_strided_slice %6 {offsets = [0, 384], sizes = [8, 128], strides = [1, 1]} : vector<8x512xf32> to vector<8x128xf32>
    %cst_30 = arith.constant dense<0.000000e+00> : vector<8xf32>
    %103 = vector.multi_reduction <add>, %102, %cst_30 [1] : vector<8x128xf32> to vector<8xf32>
    %104 = vector.shape_cast %103 : vector<8xf32> to vector<8x1xf32>
    %cst_31 = arith.constant 1.250000e-01 : f32
    %105 = vector.broadcast %cst_31 : f32 to vector<8x1xf32>
    %106 = arith.mulf %104, %105 : vector<8x1xf32>
    %107 = arith.mulf %102, %102 : vector<8x128xf32>
    %cst_32 = arith.constant dense<0.000000e+00> : vector<8xf32>
    %108 = vector.multi_reduction <add>, %107, %cst_32 [1] : vector<8x128xf32> to vector<8xf32>
    %109 = vector.shape_cast %108 : vector<8xf32> to vector<8x1xf32>
    %cst_33 = arith.constant 1.250000e-01 : f32
    %110 = vector.broadcast %cst_33 : f32 to vector<8x1xf32>
    %111 = arith.mulf %109, %110 : vector<8x1xf32>
    %112 = arith.mulf %106, %106 : vector<8x1xf32>
    %113 = arith.subf %111, %112 : vector<8x1xf32>
    %cst_34 = arith.constant 0.000000e+00 : f32
    %114 = vector.broadcast %cst_34 : f32 to vector<8x1xf32>
    %115 = arith.maximumf %113, %114 : vector<8x1xf32>
    %116 = vector.broadcast %106 : vector<8x1xf32> to vector<8x128xf32>
    %117 = arith.subf %102, %116 : vector<8x128xf32>
    %cst_35 = arith.constant 9.99999974E-6 : f32
    %118 = vector.broadcast %cst_35 : f32 to vector<8x1xf32>
    %119 = arith.addf %115, %118 : vector<8x1xf32>
    %120 = math.rsqrt %119 : vector<8x1xf32>
    %121 = vector.broadcast %120 : vector<8x1xf32> to vector<8x128xf32>
    %122 = arith.mulf %117, %121 : vector<8x128xf32>
    %123 = vector.broadcast %7 : vector<1x128xf32> to vector<8x128xf32>
    %124 = arith.mulf %122, %123 : vector<8x128xf32>
    %125 = vector.broadcast %8 : vector<1x128xf32> to vector<8x128xf32>
    %126 = arith.addf %124, %125 : vector<8x128xf32>
    %127 = arith.negf %126 : vector<8x128xf32>
    %128 = math.exp %127 : vector<8x128xf32>
    %cst_36 = arith.constant 1.000000e+00 : f32
    %129 = vector.broadcast %cst_36 : f32 to vector<8x128xf32>
    %130 = arith.addf %129, %128 : vector<8x128xf32>
    %131 = arith.divf %129, %130 : vector<8x128xf32>
    %132 = arith.mulf %126, %131 : vector<8x128xf32>
    %133 = tpu.concatenate %39, %70, %101, %132 in 1 : vector<8x128xf32>, vector<8x128xf32>, vector<8x128xf32>, vector<8x128xf32> -> vector<8x512xf32>
    %c0_37 = arith.constant 0 : index
    %c0_38 = arith.constant 0 : index
    %134 = vector.load %arg5[%c0_37, %c0_38] : memref<8x512xf32, #tpu.memory_space<vmem>>, vector<8x512xf32>
    tpu.vector_store %arg5[%c0_37, %c0_38], %133 {strides = array<i32>} : memref<8x512xf32, #tpu.memory_space<vmem>>, vector<8x512xf32>,
    return
  }
}

module attributes {stable_mosaic.version = 11 : i64} {
  func.func @_linear_ln_silu_kernel(%arg0: memref<8x512xf32, #tpu.memory_space<vmem>>, %arg1: memref<512x128xbf16, #tpu.memory_space<vmem>>, %arg2: memref<1x128xf32, #tpu.memory_space<vmem>>, %arg3: memref<1x128xf32, #tpu.memory_space<vmem>>, %arg4: memref<1x128xf32, #tpu.memory_space<vmem>>, %arg5: memref<8x128xf32, #tpu.memory_space<vmem>>) attributes {dimension_semantics = [], scalar_prefetch = 0 : i64, scratch_operands = 0 : i64, tpu.core_type = #tpu.core_type<tc>} {
    %c0 = arith.constant 0 : index
    %c0_0 = arith.constant 0 : index
    %0 = vector.load %arg0[%c0, %c0_0] : memref<8x512xf32, #tpu.memory_space<vmem>>, vector<8x512xf32>
    %1 = arith.truncf %0 : vector<8x512xf32> to vector<8x512xbf16>
    %c0_1 = arith.constant 0 : index
    %c0_2 = arith.constant 0 : index
    %2 = vector.load %arg1[%c0_1, %c0_2] : memref<512x128xbf16, #tpu.memory_space<vmem>>, vector<512x128xbf16>
    %cst = arith.constant dense<0.000000e+00> : vector<8x128xf32>
    %3 = tpu.matmul %1, %2, %cst {dimension_numbers = #tpu.dot_dimension_numbers<[1], [0], [0], [1], [0, 0, 1, 1], [], []>} : vector<8x512xbf16>, vector<512x128xbf16>, vector<8x128xf32> -> vector<8x128xf32>
    %c0_3 = arith.constant 0 : index
    %c0_4 = arith.constant 0 : index
    %4 = vector.load %arg2[%c0_3, %c0_4] : memref<1x128xf32, #tpu.memory_space<vmem>>, vector<1x128xf32>
    %5 = vector.broadcast %4 : vector<1x128xf32> to vector<8x128xf32>
    %6 = arith.addf %3, %5 : vector<8x128xf32>
    %c0_5 = arith.constant 0 : index
    %c0_6 = arith.constant 0 : index
    %7 = vector.load %arg3[%c0_5, %c0_6] : memref<1x128xf32, #tpu.memory_space<vmem>>, vector<1x128xf32>
    %c0_7 = arith.constant 0 : index
    %c0_8 = arith.constant 0 : index
    %8 = vector.load %arg4[%c0_7, %c0_8] : memref<1x128xf32, #tpu.memory_space<vmem>>, vector<1x128xf32>
    %cst_9 = arith.constant dense<0.000000e+00> : vector<8xf32>
    %9 = vector.multi_reduction <add>, %6, %cst_9 [1] : vector<8x128xf32> to vector<8xf32>
    %10 = vector.shape_cast %9 : vector<8xf32> to vector<8x1xf32>
    %cst_10 = arith.constant 0.0833333358 : f32
    %11 = vector.broadcast %cst_10 : f32 to vector<8x1xf32>
    %12 = arith.mulf %10, %11 : vector<8x1xf32>
    %13 = arith.mulf %6, %6 : vector<8x128xf32>
    %cst_11 = arith.constant dense<0.000000e+00> : vector<8xf32>
    %14 = vector.multi_reduction <add>, %13, %cst_11 [1] : vector<8x128xf32> to vector<8xf32>
    %15 = vector.shape_cast %14 : vector<8xf32> to vector<8x1xf32>
    %cst_12 = arith.constant 0.0833333358 : f32
    %16 = vector.broadcast %cst_12 : f32 to vector<8x1xf32>
    %17 = arith.mulf %15, %16 : vector<8x1xf32>
    %18 = arith.mulf %12, %12 : vector<8x1xf32>
    %19 = arith.subf %17, %18 : vector<8x1xf32>
    %cst_13 = arith.constant 0.000000e+00 : f32
    %20 = vector.broadcast %cst_13 : f32 to vector<8x1xf32>
    %21 = arith.maximumf %19, %20 : vector<8x1xf32>
    %22 = vector.broadcast %12 : vector<8x1xf32> to vector<8x128xf32>
    %23 = arith.subf %6, %22 : vector<8x128xf32>
    %cst_14 = arith.constant 9.99999974E-6 : f32
    %24 = vector.broadcast %cst_14 : f32 to vector<8x1xf32>
    %25 = arith.addf %21, %24 : vector<8x1xf32>
    %26 = math.rsqrt %25 : vector<8x1xf32>
    %27 = vector.broadcast %26 : vector<8x1xf32> to vector<8x128xf32>
    %28 = arith.mulf %23, %27 : vector<8x128xf32>
    %29 = vector.broadcast %7 : vector<1x128xf32> to vector<8x128xf32>
    %30 = arith.mulf %28, %29 : vector<8x128xf32>
    %31 = vector.broadcast %8 : vector<1x128xf32> to vector<8x128xf32>
    %32 = arith.addf %30, %31 : vector<8x128xf32>
    %33 = arith.negf %32 : vector<8x128xf32>
    %34 = math.exp %33 : vector<8x128xf32>
    %cst_15 = arith.constant 1.000000e+00 : f32
    %35 = vector.broadcast %cst_15 : f32 to vector<8x128xf32>
    %36 = arith.addf %35, %34 : vector<8x128xf32>
    %37 = arith.divf %35, %36 : vector<8x128xf32>
    %38 = arith.mulf %32, %37 : vector<8x128xf32>
    %c0_16 = arith.constant 0 : index
    %c0_17 = arith.constant 0 : index
    %39 = vector.load %arg5[%c0_16, %c0_17] : memref<8x128xf32, #tpu.memory_space<vmem>>, vector<8x128xf32>
    tpu.vector_store %arg5[%c0_16, %c0_17], %38 {strides = array<i32>} : memref<8x128xf32, #tpu.memory_space<vmem>>, vector<8x128xf32>,
    return
  }
}

module attributes {stable_mosaic.version = 11 : i64} {
  func.func @_bidir_mamba_kernel(%arg0: memref<32x128xf32, #tpu.memory_space<vmem>>, %arg1: memref<32x128xf32, #tpu.memory_space<vmem>>, %arg2: memref<128x256xbf16, #tpu.memory_space<vmem>>, %arg3: memref<32x256xf32, #tpu.memory_space<vmem>>, %arg4: memref<32x32xf32, #tpu.memory_space<vmem>>, %arg5: memref<10x128xf32, #tpu.memory_space<vmem>>, %arg6: memref<128x1152xbf16, #tpu.memory_space<vmem>>, %arg7: memref<128x128xbf16, #tpu.memory_space<vmem>>, %arg8: memref<2x128xf32, #tpu.memory_space<vmem>>, %arg9: memref<32x128xf32, #tpu.memory_space<vmem>>) attributes {dimension_semantics = [], scalar_prefetch = 0 : i64, scratch_operands = 0 : i64, tpu.core_type = #tpu.core_type<tc>} {
    %c0 = arith.constant 0 : index
    %c0_0 = arith.constant 0 : index
    %0 = vector.load %arg0[%c0, %c0_0] : memref<32x128xf32, #tpu.memory_space<vmem>>, vector<32x128xf32>
    %c0_1 = arith.constant 0 : index
    %c0_2 = arith.constant 0 : index
    %1 = vector.load %arg1[%c0_1, %c0_2] : memref<32x128xf32, #tpu.memory_space<vmem>>, vector<32x128xf32>
    %2 = arith.addf %0, %1 : vector<32x128xf32>
    %3 = arith.truncf %2 : vector<32x128xf32> to vector<32x128xbf16>
    %c0_3 = arith.constant 0 : index
    %c0_4 = arith.constant 0 : index
    %4 = vector.load %arg2[%c0_3, %c0_4] : memref<128x256xbf16, #tpu.memory_space<vmem>>, vector<128x256xbf16>
    %cst = arith.constant dense<0.000000e+00> : vector<32x256xf32>
    %5 = tpu.matmul %3, %4, %cst {dimension_numbers = #tpu.dot_dimension_numbers<[1], [0], [0], [1], [0, 0, 1, 1], [], []>} : vector<32x128xbf16>, vector<128x256xbf16>, vector<32x256xf32> -> vector<32x256xf32>
    %c0_5 = arith.constant 0 : index
    %c0_6 = arith.constant 0 : index
    %6 = vector.load %arg3[%c0_5, %c0_6] : memref<32x256xf32, #tpu.memory_space<vmem>>, vector<32x256xf32>
    %7 = arith.addf %5, %6 : vector<32x256xf32>
    %8 = tpu.iota {dimensions = array<i32: 1>} : vector<1x128xi32>
    %c24_i32 = arith.constant 24 : i32
    %9 = vector.broadcast %c24_i32 : i32 to vector<1x128xi32>
    %10 = arith.cmpi slt, %8, %9 : vector<1x128xi32>
    %11 = tpu.iota {dimensions = array<i32: 0>} : vector<32x1xi32>
    %c15_i32 = arith.constant 15 : i32
    %12 = vector.broadcast %c15_i32 : i32 to vector<32x1xi32>
    %13 = arith.andi %11, %12 : vector<32x1xi32>
    %14 = vector.extract_strided_slice %7 {offsets = [0, 0], sizes = [32, 128], strides = [1, 1]} : vector<32x256xf32> to vector<32x128xf32>
    %c0_7 = arith.constant 0 : index
    %c0_8 = arith.constant 0 : index
    %15 = vector.load %arg4[%c0_7, %c0_8] : memref<32x32xf32, #tpu.memory_space<vmem>>, vector<32x32xf32>
    %cst_9 = arith.constant dense<0.000000e+00> : vector<32x128xf32>
    %16 = tpu.matmul %15, %14, %cst_9 {dimension_numbers = #tpu.dot_dimension_numbers<[1], [0], [0], [1], [0, 0, 1, 1], [], []>} : vector<32x32xf32>, vector<32x128xf32>, vector<32x128xf32> -> vector<32x128xf32>
    %17 = vector.shape_cast %10 : vector<1x128xi1> to vector<1x128xi1>
    %18 = vector.broadcast %17 : vector<1x128xi1> to vector<32x128xi1>
    %19 = arith.select %18, %14, %16 : vector<32x128xi1>, vector<32x128xf32>
    %cst_10 = arith.constant 0.000000e+00 : f32
    %20 = vector.broadcast %cst_10 : f32 to vector<32x128xf32>
    %cst_11 = arith.constant 0.000000e+00 : f32
    %21 = vector.broadcast %cst_11 : f32 to vector<2x128xf32>
    %22 = vector.extract_strided_slice %19 {offsets = [0, 0], sizes = [30, 128], strides = [1, 1]} : vector<32x128xf32> to vector<30x128xf32>
    %23 = tpu.concatenate %21, %22 in 0 : vector<2x128xf32>, vector<30x128xf32> -> vector<32x128xf32>
    %c2_i32 = arith.constant 2 : i32
    %24 = vector.broadcast %c2_i32 : i32 to vector<32x1xi32>
    %25 = arith.cmpi sge, %13, %24 : vector<32x1xi32>
    %cst_12 = arith.constant 0.000000e+00 : f32
    %26 = vector.shape_cast %25 : vector<32x1xi1> to vector<32x1xi1>
    %27 = vector.broadcast %26 : vector<32x1xi1> to vector<32x128xi1>
    %28 = vector.broadcast %cst_12 : f32 to vector<32x128xf32>
    %29 = arith.select %27, %23, %28 : vector<32x128xi1>, vector<32x128xf32>
    %c0_13 = arith.constant 0 : index
    %c0_14 = arith.constant 0 : index
    %30 = vector.load %arg5[%c0_13, %c0_14] : memref<10x128xf32, #tpu.memory_space<vmem>>, vector<1x128xf32>
    %31 = vector.broadcast %30 : vector<1x128xf32> to vector<32x128xf32>
    %32 = arith.mulf %29, %31 : vector<32x128xf32>
    %33 = arith.addf %20, %32 : vector<32x128xf32>
    %cst_15 = arith.constant 0.000000e+00 : f32
    %34 = vector.broadcast %cst_15 : f32 to vector<1x128xf32>
    %35 = vector.extract_strided_slice %19 {offsets = [0, 0], sizes = [31, 128], strides = [1, 1]} : vector<32x128xf32> to vector<31x128xf32>
    %36 = tpu.concatenate %34, %35 in 0 : vector<1x128xf32>, vector<31x128xf32> -> vector<32x128xf32>
    %c1_i32 = arith.constant 1 : i32
    %37 = vector.broadcast %c1_i32 : i32 to vector<32x1xi32>
    %38 = arith.cmpi sge, %13, %37 : vector<32x1xi32>
    %cst_16 = arith.constant 0.000000e+00 : f32
    %39 = vector.shape_cast %38 : vector<32x1xi1> to vector<32x1xi1>
    %40 = vector.broadcast %39 : vector<32x1xi1> to vector<32x128xi1>
    %41 = vector.broadcast %cst_16 : f32 to vector<32x128xf32>
    %42 = arith.select %40, %36, %41 : vector<32x128xi1>, vector<32x128xf32>
    %c1 = arith.constant 1 : index
    %c0_17 = arith.constant 0 : index
    %43 = vector.load %arg5[%c1, %c0_17] : memref<10x128xf32, #tpu.memory_space<vmem>>, vector<1x128xf32>
    %44 = vector.broadcast %43 : vector<1x128xf32> to vector<32x128xf32>
    %45 = arith.mulf %42, %44 : vector<32x128xf32>
    %46 = arith.addf %33, %45 : vector<32x128xf32>
    %c2 = arith.constant 2 : index
    %c0_18 = arith.constant 0 : index
    %47 = vector.load %arg5[%c2, %c0_18] : memref<10x128xf32, #tpu.memory_space<vmem>>, vector<1x128xf32>
    %48 = vector.broadcast %47 : vector<1x128xf32> to vector<32x128xf32>
    %49 = arith.mulf %19, %48 : vector<32x128xf32>
    %50 = arith.addf %46, %49 : vector<32x128xf32>
    %c3 = arith.constant 3 : index
    %c0_19 = arith.constant 0 : index
    %51 = vector.load %arg5[%c3, %c0_19] : memref<10x128xf32, #tpu.memory_space<vmem>>, vector<1x128xf32>
    %52 = vector.broadcast %51 : vector<1x128xf32> to vector<32x128xf32>
    %53 = arith.addf %50, %52 : vector<32x128xf32>
    %54 = arith.negf %53 : vector<32x128xf32>
    %55 = math.exp %54 : vector<32x128xf32>
    %cst_20 = arith.constant 1.000000e+00 : f32
    %56 = vector.broadcast %cst_20 : f32 to vector<32x128xf32>
    %57 = arith.addf %56, %55 : vector<32x128xf32>
    %58 = arith.divf %56, %57 : vector<32x128xf32>
    %59 = arith.mulf %53, %58 : vector<32x128xf32>
    %60 = arith.truncf %59 : vector<32x128xf32> to vector<32x128xbf16>
    %c0_21 = arith.constant 0 : index
    %c0_22 = arith.constant 0 : index
    %61 = vector.load %arg6[%c0_21, %c0_22] : memref<128x1152xbf16, #tpu.memory_space<vmem>>, vector<128x1152xbf16>
    %cst_23 = arith.constant dense<0.000000e+00> : vector<32x1152xf32>
    %62 = tpu.matmul %60, %61, %cst_23 {dimension_numbers = #tpu.dot_dimension_numbers<[1], [0], [0], [1], [0, 0, 1, 1], [], []>} : vector<32x128xbf16>, vector<128x1152xbf16>, vector<32x1152xf32> -> vector<32x1152xf32>
    %63 = vector.extract_strided_slice %62 {offsets = [0, 0], sizes = [32, 128], strides = [1, 1]} : vector<32x1152xf32> to vector<32x128xf32>
    %c4 = arith.constant 4 : index
    %c0_24 = arith.constant 0 : index
    %64 = vector.load %arg5[%c4, %c0_24] : memref<10x128xf32, #tpu.memory_space<vmem>>, vector<1x128xf32>
    %65 = vector.broadcast %64 : vector<1x128xf32> to vector<32x128xf32>
    %66 = arith.addf %63, %65 : vector<32x128xf32>
    %cst_25 = arith.constant 2.000000e+01 : f32
    %67 = vector.broadcast %cst_25 : f32 to vector<32x128xf32>
    %68 = arith.cmpf ogt, %66, %67 : vector<32x128xf32>
    %cst_26 = arith.constant 2.000000e+01 : f32
    %69 = vector.broadcast %cst_26 : f32 to vector<32x128xf32>
    %70 = arith.minimumf %66, %69 : vector<32x128xf32>
    %71 = math.exp %70 : vector<32x128xf32>
    %72 = math.log1p %71 : vector<32x128xf32>
    %73 = arith.select %68, %66, %72 : vector<32x128xi1>, vector<32x128xf32>
    %74 = arith.mulf %73, %59 : vector<32x128xf32>
    %c5 = arith.constant 5 : index
    %c0_27 = arith.constant 0 : index
    %75 = vector.load %arg5[%c5, %c0_27] : memref<10x128xf32, #tpu.memory_space<vmem>>, vector<1x128xf32>
    %76 = vector.broadcast %75 : vector<1x128xf32> to vector<32x128xf32>
    %77 = arith.mulf %76, %59 : vector<32x128xf32>
    %c6 = arith.constant 6 : index
    %c0_28 = arith.constant 0 : index
    %78 = vector.load %arg5[%c6, %c0_28] : memref<10x128xf32, #tpu.memory_space<vmem>>, vector<1x128xf32>
    %79 = vector.broadcast %78 : vector<1x128xf32> to vector<32x128xf32>
    %80 = arith.mulf %73, %79 : vector<32x128xf32>
    %81 = math.exp %80 : vector<32x128xf32>
    %82 = vector.extract_strided_slice %62 {offsets = [0, 128], sizes = [32, 128], strides = [1, 1]} : vector<32x1152xf32> to vector<32x128xf32>
    %83 = arith.mulf %82, %74 : vector<32x128xf32>
    %cst_29 = arith.constant 0.000000e+00 : f32
    %84 = vector.broadcast %cst_29 : f32 to vector<1x128xf32>
    %85 = vector.extract_strided_slice %83 {offsets = [0, 0], sizes = [31, 128], strides = [1, 1]} : vector<32x128xf32> to vector<31x128xf32>
    %86 = tpu.concatenate %84, %85 in 0 : vector<1x128xf32>, vector<31x128xf32> -> vector<32x128xf32>
    %c1_i32_30 = arith.constant 1 : i32
    %87 = vector.broadcast %c1_i32_30 : i32 to vector<32x1xi32>
    %88 = arith.cmpi sge, %13, %87 : vector<32x1xi32>
    %cst_31 = arith.constant 0.000000e+00 : f32
    %89 = vector.shape_cast %88 : vector<32x1xi1> to vector<32x1xi1>
    %90 = vector.broadcast %89 : vector<32x1xi1> to vector<32x128xi1>
    %91 = vector.broadcast %cst_31 : f32 to vector<32x128xf32>
    %92 = arith.select %90, %86, %91 : vector<32x128xi1>, vector<32x128xf32>
    %93 = arith.mulf %81, %92 : vector<32x128xf32>
    %94 = arith.addf %83, %93 : vector<32x128xf32>
    %cst_32 = arith.constant 0.000000e+00 : f32
    %95 = vector.broadcast %cst_32 : f32 to vector<1x128xf32>
    %96 = vector.extract_strided_slice %81 {offsets = [0, 0], sizes = [31, 128], strides = [1, 1]} : vector<32x128xf32> to vector<31x128xf32>
    %97 = tpu.concatenate %95, %96 in 0 : vector<1x128xf32>, vector<31x128xf32> -> vector<32x128xf32>
    %c1_i32_33 = arith.constant 1 : i32
    %98 = vector.broadcast %c1_i32_33 : i32 to vector<32x1xi32>
    %99 = arith.cmpi sge, %13, %98 : vector<32x1xi32>
    %cst_34 = arith.constant 0.000000e+00 : f32
    %100 = vector.shape_cast %99 : vector<32x1xi1> to vector<32x1xi1>
    %101 = vector.broadcast %100 : vector<32x1xi1> to vector<32x128xi1>
    %102 = vector.broadcast %cst_34 : f32 to vector<32x128xf32>
    %103 = arith.select %101, %97, %102 : vector<32x128xi1>, vector<32x128xf32>
    %104 = arith.mulf %81, %103 : vector<32x128xf32>
    %cst_35 = arith.constant 0.000000e+00 : f32
    %105 = vector.broadcast %cst_35 : f32 to vector<2x128xf32>
    %106 = vector.extract_strided_slice %94 {offsets = [0, 0], sizes = [30, 128], strides = [1, 1]} : vector<32x128xf32> to vector<30x128xf32>
    %107 = tpu.concatenate %105, %106 in 0 : vector<2x128xf32>, vector<30x128xf32> -> vector<32x128xf32>
    %c2_i32_36 = arith.constant 2 : i32
    %108 = vector.broadcast %c2_i32_36 : i32 to vector<32x1xi32>
    %109 = arith.cmpi sge, %13, %108 : vector<32x1xi32>
    %cst_37 = arith.constant 0.000000e+00 : f32
    %110 = vector.shape_cast %109 : vector<32x1xi1> to vector<32x1xi1>
    %111 = vector.broadcast %110 : vector<32x1xi1> to vector<32x128xi1>
    %112 = vector.broadcast %cst_37 : f32 to vector<32x128xf32>
    %113 = arith.select %111, %107, %112 : vector<32x128xi1>, vector<32x128xf32>
    %114 = arith.mulf %104, %113 : vector<32x128xf32>
    %115 = arith.addf %94, %114 : vector<32x128xf32>
    %cst_38 = arith.constant 0.000000e+00 : f32
    %116 = vector.broadcast %cst_38 : f32 to vector<2x128xf32>
    %117 = vector.extract_strided_slice %104 {offsets = [0, 0], sizes = [30, 128], strides = [1, 1]} : vector<32x128xf32> to vector<30x128xf32>
    %118 = tpu.concatenate %116, %117 in 0 : vector<2x128xf32>, vector<30x128xf32> -> vector<32x128xf32>
    %c2_i32_39 = arith.constant 2 : i32
    %119 = vector.broadcast %c2_i32_39 : i32 to vector<32x1xi32>
    %120 = arith.cmpi sge, %13, %119 : vector<32x1xi32>
    %cst_40 = arith.constant 0.000000e+00 : f32
    %121 = vector.shape_cast %120 : vector<32x1xi1> to vector<32x1xi1>
    %122 = vector.broadcast %121 : vector<32x1xi1> to vector<32x128xi1>
    %123 = vector.broadcast %cst_40 : f32 to vector<32x128xf32>
    %124 = arith.select %122, %118, %123 : vector<32x128xi1>, vector<32x128xf32>
    %125 = arith.mulf %104, %124 : vector<32x128xf32>
    %cst_41 = arith.constant 0.000000e+00 : f32
    %126 = vector.broadcast %cst_41 : f32 to vector<4x128xf32>
    %127 = vector.extract_strided_slice %115 {offsets = [0, 0], sizes = [28, 128], strides = [1, 1]} : vector<32x128xf32> to vector<28x128xf32>
    %128 = tpu.concatenate %126, %127 in 0 : vector<4x128xf32>, vector<28x128xf32> -> vector<32x128xf32>
    %c4_i32 = arith.constant 4 : i32
    %129 = vector.broadcast %c4_i32 : i32 to vector<32x1xi32>
    %130 = arith.cmpi sge, %13, %129 : vector<32x1xi32>
    %cst_42 = arith.constant 0.000000e+00 : f32
    %131 = vector.shape_cast %130 : vector<32x1xi1> to vector<32x1xi1>
    %132 = vector.broadcast %131 : vector<32x1xi1> to vector<32x128xi1>
    %133 = vector.broadcast %cst_42 : f32 to vector<32x128xf32>
    %134 = arith.select %132, %128, %133 : vector<32x128xi1>, vector<32x128xf32>
    %135 = arith.mulf %125, %134 : vector<32x128xf32>
    %136 = arith.addf %115, %135 : vector<32x128xf32>
    %cst_43 = arith.constant 0.000000e+00 : f32
    %137 = vector.broadcast %cst_43 : f32 to vector<4x128xf32>
    %138 = vector.extract_strided_slice %125 {offsets = [0, 0], sizes = [28, 128], strides = [1, 1]} : vector<32x128xf32> to vector<28x128xf32>
    %139 = tpu.concatenate %137, %138 in 0 : vector<4x128xf32>, vector<28x128xf32> -> vector<32x128xf32>
    %c4_i32_44 = arith.constant 4 : i32
    %140 = vector.broadcast %c4_i32_44 : i32 to vector<32x1xi32>
    %141 = arith.cmpi sge, %13, %140 : vector<32x1xi32>
    %cst_45 = arith.constant 0.000000e+00 : f32
    %142 = vector.shape_cast %141 : vector<32x1xi1> to vector<32x1xi1>
    %143 = vector.broadcast %142 : vector<32x1xi1> to vector<32x128xi1>
    %144 = vector.broadcast %cst_45 : f32 to vector<32x128xf32>
    %145 = arith.select %143, %139, %144 : vector<32x128xi1>, vector<32x128xf32>
    %146 = arith.mulf %125, %145 : vector<32x128xf32>
    %cst_46 = arith.constant 0.000000e+00 : f32
    %147 = vector.broadcast %cst_46 : f32 to vector<8x128xf32>
    %148 = vector.extract_strided_slice %136 {offsets = [0, 0], sizes = [24, 128], strides = [1, 1]} : vector<32x128xf32> to vector<24x128xf32>
    %149 = tpu.concatenate %147, %148 in 0 : vector<8x128xf32>, vector<24x128xf32> -> vector<32x128xf32>
    %c8_i32 = arith.constant 8 : i32
    %150 = vector.broadcast %c8_i32 : i32 to vector<32x1xi32>
    %151 = arith.cmpi sge, %13, %150 : vector<32x1xi32>
    %cst_47 = arith.constant 0.000000e+00 : f32
    %152 = vector.shape_cast %151 : vector<32x1xi1> to vector<32x1xi1>
    %153 = vector.broadcast %152 : vector<32x1xi1> to vector<32x128xi1>
    %154 = vector.broadcast %cst_47 : f32 to vector<32x128xf32>
    %155 = arith.select %153, %149, %154 : vector<32x128xi1>, vector<32x128xf32>
    %156 = arith.mulf %146, %155 : vector<32x128xf32>
    %157 = arith.addf %136, %156 : vector<32x128xf32>
    %158 = vector.extract_strided_slice %62 {offsets = [0, 640], sizes = [32, 128], strides = [1, 1]} : vector<32x1152xf32> to vector<32x128xf32>
    %159 = arith.mulf %158, %157 : vector<32x128xf32>
    %160 = arith.addf %77, %159 : vector<32x128xf32>
    %c7 = arith.constant 7 : index
    %c0_48 = arith.constant 0 : index
    %161 = vector.load %arg5[%c7, %c0_48] : memref<10x128xf32, #tpu.memory_space<vmem>>, vector<1x128xf32>
    %162 = vector.broadcast %161 : vector<1x128xf32> to vector<32x128xf32>
    %163 = arith.mulf %73, %162 : vector<32x128xf32>
    %164 = math.exp %163 : vector<32x128xf32>
    %165 = vector.extract_strided_slice %62 {offsets = [0, 256], sizes = [32, 128], strides = [1, 1]} : vector<32x1152xf32> to vector<32x128xf32>
    %166 = arith.mulf %165, %74 : vector<32x128xf32>
    %cst_49 = arith.constant 0.000000e+00 : f32
    %167 = vector.broadcast %cst_49 : f32 to vector<1x128xf32>
    %168 = vector.extract_strided_slice %166 {offsets = [0, 0], sizes = [31, 128], strides = [1, 1]} : vector<32x128xf32> to vector<31x128xf32>
    %169 = tpu.concatenate %167, %168 in 0 : vector<1x128xf32>, vector<31x128xf32> -> vector<32x128xf32>
    %c1_i32_50 = arith.constant 1 : i32
    %170 = vector.broadcast %c1_i32_50 : i32 to vector<32x1xi32>
    %171 = arith.cmpi sge, %13, %170 : vector<32x1xi32>
    %cst_51 = arith.constant 0.000000e+00 : f32
    %172 = vector.shape_cast %171 : vector<32x1xi1> to vector<32x1xi1>
    %173 = vector.broadcast %172 : vector<32x1xi1> to vector<32x128xi1>
    %174 = vector.broadcast %cst_51 : f32 to vector<32x128xf32>
    %175 = arith.select %173, %169, %174 : vector<32x128xi1>, vector<32x128xf32>
    %176 = arith.mulf %164, %175 : vector<32x128xf32>
    %177 = arith.addf %166, %176 : vector<32x128xf32>
    %cst_52 = arith.constant 0.000000e+00 : f32
    %178 = vector.broadcast %cst_52 : f32 to vector<1x128xf32>
    %179 = vector.extract_strided_slice %164 {offsets = [0, 0], sizes = [31, 128], strides = [1, 1]} : vector<32x128xf32> to vector<31x128xf32>
    %180 = tpu.concatenate %178, %179 in 0 : vector<1x128xf32>, vector<31x128xf32> -> vector<32x128xf32>
    %c1_i32_53 = arith.constant 1 : i32
    %181 = vector.broadcast %c1_i32_53 : i32 to vector<32x1xi32>
    %182 = arith.cmpi sge, %13, %181 : vector<32x1xi32>
    %cst_54 = arith.constant 0.000000e+00 : f32
    %183 = vector.shape_cast %182 : vector<32x1xi1> to vector<32x1xi1>
    %184 = vector.broadcast %183 : vector<32x1xi1> to vector<32x128xi1>
    %185 = vector.broadcast %cst_54 : f32 to vector<32x128xf32>
    %186 = arith.select %184, %180, %185 : vector<32x128xi1>, vector<32x128xf32>
    %187 = arith.mulf %164, %186 : vector<32x128xf32>
    %cst_55 = arith.constant 0.000000e+00 : f32
    %188 = vector.broadcast %cst_55 : f32 to vector<2x128xf32>
    %189 = vector.extract_strided_slice %177 {offsets = [0, 0], sizes = [30, 128], strides = [1, 1]} : vector<32x128xf32> to vector<30x128xf32>
    %190 = tpu.concatenate %188, %189 in 0 : vector<2x128xf32>, vector<30x128xf32> -> vector<32x128xf32>
    %c2_i32_56 = arith.constant 2 : i32
    %191 = vector.broadcast %c2_i32_56 : i32 to vector<32x1xi32>
    %192 = arith.cmpi sge, %13, %191 : vector<32x1xi32>
    %cst_57 = arith.constant 0.000000e+00 : f32
    %193 = vector.shape_cast %192 : vector<32x1xi1> to vector<32x1xi1>
    %194 = vector.broadcast %193 : vector<32x1xi1> to vector<32x128xi1>
    %195 = vector.broadcast %cst_57 : f32 to vector<32x128xf32>
    %196 = arith.select %194, %190, %195 : vector<32x128xi1>, vector<32x128xf32>
    %197 = arith.mulf %187, %196 : vector<32x128xf32>
    %198 = arith.addf %177, %197 : vector<32x128xf32>
    %cst_58 = arith.constant 0.000000e+00 : f32
    %199 = vector.broadcast %cst_58 : f32 to vector<2x128xf32>
    %200 = vector.extract_strided_slice %187 {offsets = [0, 0], sizes = [30, 128], strides = [1, 1]} : vector<32x128xf32> to vector<30x128xf32>
    %201 = tpu.concatenate %199, %200 in 0 : vector<2x128xf32>, vector<30x128xf32> -> vector<32x128xf32>
    %c2_i32_59 = arith.constant 2 : i32
    %202 = vector.broadcast %c2_i32_59 : i32 to vector<32x1xi32>
    %203 = arith.cmpi sge, %13, %202 : vector<32x1xi32>
    %cst_60 = arith.constant 0.000000e+00 : f32
    %204 = vector.shape_cast %203 : vector<32x1xi1> to vector<32x1xi1>
    %205 = vector.broadcast %204 : vector<32x1xi1> to vector<32x128xi1>
    %206 = vector.broadcast %cst_60 : f32 to vector<32x128xf32>
    %207 = arith.select %205, %201, %206 : vector<32x128xi1>, vector<32x128xf32>
    %208 = arith.mulf %187, %207 : vector<32x128xf32>
    %cst_61 = arith.constant 0.000000e+00 : f32
    %209 = vector.broadcast %cst_61 : f32 to vector<4x128xf32>
    %210 = vector.extract_strided_slice %198 {offsets = [0, 0], sizes = [28, 128], strides = [1, 1]} : vector<32x128xf32> to vector<28x128xf32>
    %211 = tpu.concatenate %209, %210 in 0 : vector<4x128xf32>, vector<28x128xf32> -> vector<32x128xf32>
    %c4_i32_62 = arith.constant 4 : i32
    %212 = vector.broadcast %c4_i32_62 : i32 to vector<32x1xi32>
    %213 = arith.cmpi sge, %13, %212 : vector<32x1xi32>
    %cst_63 = arith.constant 0.000000e+00 : f32
    %214 = vector.shape_cast %213 : vector<32x1xi1> to vector<32x1xi1>
    %215 = vector.broadcast %214 : vector<32x1xi1> to vector<32x128xi1>
    %216 = vector.broadcast %cst_63 : f32 to vector<32x128xf32>
    %217 = arith.select %215, %211, %216 : vector<32x128xi1>, vector<32x128xf32>
    %218 = arith.mulf %208, %217 : vector<32x128xf32>
    %219 = arith.addf %198, %218 : vector<32x128xf32>
    %cst_64 = arith.constant 0.000000e+00 : f32
    %220 = vector.broadcast %cst_64 : f32 to vector<4x128xf32>
    %221 = vector.extract_strided_slice %208 {offsets = [0, 0], sizes = [28, 128], strides = [1, 1]} : vector<32x128xf32> to vector<28x128xf32>
    %222 = tpu.concatenate %220, %221 in 0 : vector<4x128xf32>, vector<28x128xf32> -> vector<32x128xf32>
    %c4_i32_65 = arith.constant 4 : i32
    %223 = vector.broadcast %c4_i32_65 : i32 to vector<32x1xi32>
    %224 = arith.cmpi sge, %13, %223 : vector<32x1xi32>
    %cst_66 = arith.constant 0.000000e+00 : f32
    %225 = vector.shape_cast %224 : vector<32x1xi1> to vector<32x1xi1>
    %226 = vector.broadcast %225 : vector<32x1xi1> to vector<32x128xi1>
    %227 = vector.broadcast %cst_66 : f32 to vector<32x128xf32>
    %228 = arith.select %226, %222, %227 : vector<32x128xi1>, vector<32x128xf32>
    %229 = arith.mulf %208, %228 : vector<32x128xf32>
    %cst_67 = arith.constant 0.000000e+00 : f32
    %230 = vector.broadcast %cst_67 : f32 to vector<8x128xf32>
    %231 = vector.extract_strided_slice %219 {offsets = [0, 0], sizes = [24, 128], strides = [1, 1]} : vector<32x128xf32> to vector<24x128xf32>
    %232 = tpu.concatenate %230, %231 in 0 : vector<8x128xf32>, vector<24x128xf32> -> vector<32x128xf32>
    %c8_i32_68 = arith.constant 8 : i32
    %233 = vector.broadcast %c8_i32_68 : i32 to vector<32x1xi32>
    %234 = arith.cmpi sge, %13, %233 : vector<32x1xi32>
    %cst_69 = arith.constant 0.000000e+00 : f32
    %235 = vector.shape_cast %234 : vector<32x1xi1> to vector<32x1xi1>
    %236 = vector.broadcast %235 : vector<32x1xi1> to vector<32x128xi1>
    %237 = vector.broadcast %cst_69 : f32 to vector<32x128xf32>
    %238 = arith.select %236, %232, %237 : vector<32x128xi1>, vector<32x128xf32>
    %239 = arith.mulf %229, %238 : vector<32x128xf32>
    %240 = arith.addf %219, %239 : vector<32x128xf32>
    %241 = vector.extract_strided_slice %62 {offsets = [0, 768], sizes = [32, 128], strides = [1, 1]} : vector<32x1152xf32> to vector<32x128xf32>
    %242 = arith.mulf %241, %240 : vector<32x128xf32>
    %243 = arith.addf %160, %242 : vector<32x128xf32>
    %c8 = arith.constant 8 : index
    %c0_70 = arith.constant 0 : index
    %244 = vector.load %arg5[%c8, %c0_70] : memref<10x128xf32, #tpu.memory_space<vmem>>, vector<1x128xf32>
    %245 = vector.broadcast %244 : vector<1x128xf32> to vector<32x128xf32>
    %246 = arith.mulf %73, %245 : vector<32x128xf32>
    %247 = math.exp %246 : vector<32x128xf32>
    %248 = vector.extract_strided_slice %62 {offsets = [0, 384], sizes = [32, 128], strides = [1, 1]} : vector<32x1152xf32> to vector<32x128xf32>
    %249 = arith.mulf %248, %74 : vector<32x128xf32>
    %cst_71 = arith.constant 0.000000e+00 : f32
    %250 = vector.broadcast %cst_71 : f32 to vector<1x128xf32>
    %251 = vector.extract_strided_slice %249 {offsets = [0, 0], sizes = [31, 128], strides = [1, 1]} : vector<32x128xf32> to vector<31x128xf32>
    %252 = tpu.concatenate %250, %251 in 0 : vector<1x128xf32>, vector<31x128xf32> -> vector<32x128xf32>
    %c1_i32_72 = arith.constant 1 : i32
    %253 = vector.broadcast %c1_i32_72 : i32 to vector<32x1xi32>
    %254 = arith.cmpi sge, %13, %253 : vector<32x1xi32>
    %cst_73 = arith.constant 0.000000e+00 : f32
    %255 = vector.shape_cast %254 : vector<32x1xi1> to vector<32x1xi1>
    %256 = vector.broadcast %255 : vector<32x1xi1> to vector<32x128xi1>
    %257 = vector.broadcast %cst_73 : f32 to vector<32x128xf32>
    %258 = arith.select %256, %252, %257 : vector<32x128xi1>, vector<32x128xf32>
    %259 = arith.mulf %247, %258 : vector<32x128xf32>
    %260 = arith.addf %249, %259 : vector<32x128xf32>
    %cst_74 = arith.constant 0.000000e+00 : f32
    %261 = vector.broadcast %cst_74 : f32 to vector<1x128xf32>
    %262 = vector.extract_strided_slice %247 {offsets = [0, 0], sizes = [31, 128], strides = [1, 1]} : vector<32x128xf32> to vector<31x128xf32>
    %263 = tpu.concatenate %261, %262 in 0 : vector<1x128xf32>, vector<31x128xf32> -> vector<32x128xf32>
    %c1_i32_75 = arith.constant 1 : i32
    %264 = vector.broadcast %c1_i32_75 : i32 to vector<32x1xi32>
    %265 = arith.cmpi sge, %13, %264 : vector<32x1xi32>
    %cst_76 = arith.constant 0.000000e+00 : f32
    %266 = vector.shape_cast %265 : vector<32x1xi1> to vector<32x1xi1>
    %267 = vector.broadcast %266 : vector<32x1xi1> to vector<32x128xi1>
    %268 = vector.broadcast %cst_76 : f32 to vector<32x128xf32>
    %269 = arith.select %267, %263, %268 : vector<32x128xi1>, vector<32x128xf32>
    %270 = arith.mulf %247, %269 : vector<32x128xf32>
    %cst_77 = arith.constant 0.000000e+00 : f32
    %271 = vector.broadcast %cst_77 : f32 to vector<2x128xf32>
    %272 = vector.extract_strided_slice %260 {offsets = [0, 0], sizes = [30, 128], strides = [1, 1]} : vector<32x128xf32> to vector<30x128xf32>
    %273 = tpu.concatenate %271, %272 in 0 : vector<2x128xf32>, vector<30x128xf32> -> vector<32x128xf32>
    %c2_i32_78 = arith.constant 2 : i32
    %274 = vector.broadcast %c2_i32_78 : i32 to vector<32x1xi32>
    %275 = arith.cmpi sge, %13, %274 : vector<32x1xi32>
    %cst_79 = arith.constant 0.000000e+00 : f32
    %276 = vector.shape_cast %275 : vector<32x1xi1> to vector<32x1xi1>
    %277 = vector.broadcast %276 : vector<32x1xi1> to vector<32x128xi1>
    %278 = vector.broadcast %cst_79 : f32 to vector<32x128xf32>
    %279 = arith.select %277, %273, %278 : vector<32x128xi1>, vector<32x128xf32>
    %280 = arith.mulf %270, %279 : vector<32x128xf32>
    %281 = arith.addf %260, %280 : vector<32x128xf32>
    %cst_80 = arith.constant 0.000000e+00 : f32
    %282 = vector.broadcast %cst_80 : f32 to vector<2x128xf32>
    %283 = vector.extract_strided_slice %270 {offsets = [0, 0], sizes = [30, 128], strides = [1, 1]} : vector<32x128xf32> to vector<30x128xf32>
    %284 = tpu.concatenate %282, %283 in 0 : vector<2x128xf32>, vector<30x128xf32> -> vector<32x128xf32>
    %c2_i32_81 = arith.constant 2 : i32
    %285 = vector.broadcast %c2_i32_81 : i32 to vector<32x1xi32>
    %286 = arith.cmpi sge, %13, %285 : vector<32x1xi32>
    %cst_82 = arith.constant 0.000000e+00 : f32
    %287 = vector.shape_cast %286 : vector<32x1xi1> to vector<32x1xi1>
    %288 = vector.broadcast %287 : vector<32x1xi1> to vector<32x128xi1>
    %289 = vector.broadcast %cst_82 : f32 to vector<32x128xf32>
    %290 = arith.select %288, %284, %289 : vector<32x128xi1>, vector<32x128xf32>
    %291 = arith.mulf %270, %290 : vector<32x128xf32>
    %cst_83 = arith.constant 0.000000e+00 : f32
    %292 = vector.broadcast %cst_83 : f32 to vector<4x128xf32>
    %293 = vector.extract_strided_slice %281 {offsets = [0, 0], sizes = [28, 128], strides = [1, 1]} : vector<32x128xf32> to vector<28x128xf32>
    %294 = tpu.concatenate %292, %293 in 0 : vector<4x128xf32>, vector<28x128xf32> -> vector<32x128xf32>
    %c4_i32_84 = arith.constant 4 : i32
    %295 = vector.broadcast %c4_i32_84 : i32 to vector<32x1xi32>
    %296 = arith.cmpi sge, %13, %295 : vector<32x1xi32>
    %cst_85 = arith.constant 0.000000e+00 : f32
    %297 = vector.shape_cast %296 : vector<32x1xi1> to vector<32x1xi1>
    %298 = vector.broadcast %297 : vector<32x1xi1> to vector<32x128xi1>
    %299 = vector.broadcast %cst_85 : f32 to vector<32x128xf32>
    %300 = arith.select %298, %294, %299 : vector<32x128xi1>, vector<32x128xf32>
    %301 = arith.mulf %291, %300 : vector<32x128xf32>
    %302 = arith.addf %281, %301 : vector<32x128xf32>
    %cst_86 = arith.constant 0.000000e+00 : f32
    %303 = vector.broadcast %cst_86 : f32 to vector<4x128xf32>
    %304 = vector.extract_strided_slice %291 {offsets = [0, 0], sizes = [28, 128], strides = [1, 1]} : vector<32x128xf32> to vector<28x128xf32>
    %305 = tpu.concatenate %303, %304 in 0 : vector<4x128xf32>, vector<28x128xf32> -> vector<32x128xf32>
    %c4_i32_87 = arith.constant 4 : i32
    %306 = vector.broadcast %c4_i32_87 : i32 to vector<32x1xi32>
    %307 = arith.cmpi sge, %13, %306 : vector<32x1xi32>
    %cst_88 = arith.constant 0.000000e+00 : f32
    %308 = vector.shape_cast %307 : vector<32x1xi1> to vector<32x1xi1>
    %309 = vector.broadcast %308 : vector<32x1xi1> to vector<32x128xi1>
    %310 = vector.broadcast %cst_88 : f32 to vector<32x128xf32>
    %311 = arith.select %309, %305, %310 : vector<32x128xi1>, vector<32x128xf32>
    %312 = arith.mulf %291, %311 : vector<32x128xf32>
    %cst_89 = arith.constant 0.000000e+00 : f32
    %313 = vector.broadcast %cst_89 : f32 to vector<8x128xf32>
    %314 = vector.extract_strided_slice %302 {offsets = [0, 0], sizes = [24, 128], strides = [1, 1]} : vector<32x128xf32> to vector<24x128xf32>
    %315 = tpu.concatenate %313, %314 in 0 : vector<8x128xf32>, vector<24x128xf32> -> vector<32x128xf32>
    %c8_i32_90 = arith.constant 8 : i32
    %316 = vector.broadcast %c8_i32_90 : i32 to vector<32x1xi32>
    %317 = arith.cmpi sge, %13, %316 : vector<32x1xi32>
    %cst_91 = arith.constant 0.000000e+00 : f32
    %318 = vector.shape_cast %317 : vector<32x1xi1> to vector<32x1xi1>
    %319 = vector.broadcast %318 : vector<32x1xi1> to vector<32x128xi1>
    %320 = vector.broadcast %cst_91 : f32 to vector<32x128xf32>
    %321 = arith.select %319, %315, %320 : vector<32x128xi1>, vector<32x128xf32>
    %322 = arith.mulf %312, %321 : vector<32x128xf32>
    %323 = arith.addf %302, %322 : vector<32x128xf32>
    %324 = vector.extract_strided_slice %62 {offsets = [0, 896], sizes = [32, 128], strides = [1, 1]} : vector<32x1152xf32> to vector<32x128xf32>
    %325 = arith.mulf %324, %323 : vector<32x128xf32>
    %326 = arith.addf %243, %325 : vector<32x128xf32>
    %c9 = arith.constant 9 : index
    %c0_92 = arith.constant 0 : index
    %327 = vector.load %arg5[%c9, %c0_92] : memref<10x128xf32, #tpu.memory_space<vmem>>, vector<1x128xf32>
    %328 = vector.broadcast %327 : vector<1x128xf32> to vector<32x128xf32>
    %329 = arith.mulf %73, %328 : vector<32x128xf32>
    %330 = math.exp %329 : vector<32x128xf32>
    %331 = vector.extract_strided_slice %62 {offsets = [0, 512], sizes = [32, 128], strides = [1, 1]} : vector<32x1152xf32> to vector<32x128xf32>
    %332 = arith.mulf %331, %74 : vector<32x128xf32>
    %cst_93 = arith.constant 0.000000e+00 : f32
    %333 = vector.broadcast %cst_93 : f32 to vector<1x128xf32>
    %334 = vector.extract_strided_slice %332 {offsets = [0, 0], sizes = [31, 128], strides = [1, 1]} : vector<32x128xf32> to vector<31x128xf32>
    %335 = tpu.concatenate %333, %334 in 0 : vector<1x128xf32>, vector<31x128xf32> -> vector<32x128xf32>
    %c1_i32_94 = arith.constant 1 : i32
    %336 = vector.broadcast %c1_i32_94 : i32 to vector<32x1xi32>
    %337 = arith.cmpi sge, %13, %336 : vector<32x1xi32>
    %cst_95 = arith.constant 0.000000e+00 : f32
    %338 = vector.shape_cast %337 : vector<32x1xi1> to vector<32x1xi1>
    %339 = vector.broadcast %338 : vector<32x1xi1> to vector<32x128xi1>
    %340 = vector.broadcast %cst_95 : f32 to vector<32x128xf32>
    %341 = arith.select %339, %335, %340 : vector<32x128xi1>, vector<32x128xf32>
    %342 = arith.mulf %330, %341 : vector<32x128xf32>
    %343 = arith.addf %332, %342 : vector<32x128xf32>
    %cst_96 = arith.constant 0.000000e+00 : f32
    %344 = vector.broadcast %cst_96 : f32 to vector<1x128xf32>
    %345 = vector.extract_strided_slice %330 {offsets = [0, 0], sizes = [31, 128], strides = [1, 1]} : vector<32x128xf32> to vector<31x128xf32>
    %346 = tpu.concatenate %344, %345 in 0 : vector<1x128xf32>, vector<31x128xf32> -> vector<32x128xf32>
    %c1_i32_97 = arith.constant 1 : i32
    %347 = vector.broadcast %c1_i32_97 : i32 to vector<32x1xi32>
    %348 = arith.cmpi sge, %13, %347 : vector<32x1xi32>
    %cst_98 = arith.constant 0.000000e+00 : f32
    %349 = vector.shape_cast %348 : vector<32x1xi1> to vector<32x1xi1>
    %350 = vector.broadcast %349 : vector<32x1xi1> to vector<32x128xi1>
    %351 = vector.broadcast %cst_98 : f32 to vector<32x128xf32>
    %352 = arith.select %350, %346, %351 : vector<32x128xi1>, vector<32x128xf32>
    %353 = arith.mulf %330, %352 : vector<32x128xf32>
    %cst_99 = arith.constant 0.000000e+00 : f32
    %354 = vector.broadcast %cst_99 : f32 to vector<2x128xf32>
    %355 = vector.extract_strided_slice %343 {offsets = [0, 0], sizes = [30, 128], strides = [1, 1]} : vector<32x128xf32> to vector<30x128xf32>
    %356 = tpu.concatenate %354, %355 in 0 : vector<2x128xf32>, vector<30x128xf32> -> vector<32x128xf32>
    %c2_i32_100 = arith.constant 2 : i32
    %357 = vector.broadcast %c2_i32_100 : i32 to vector<32x1xi32>
    %358 = arith.cmpi sge, %13, %357 : vector<32x1xi32>
    %cst_101 = arith.constant 0.000000e+00 : f32
    %359 = vector.shape_cast %358 : vector<32x1xi1> to vector<32x1xi1>
    %360 = vector.broadcast %359 : vector<32x1xi1> to vector<32x128xi1>
    %361 = vector.broadcast %cst_101 : f32 to vector<32x128xf32>
    %362 = arith.select %360, %356, %361 : vector<32x128xi1>, vector<32x128xf32>
    %363 = arith.mulf %353, %362 : vector<32x128xf32>
    %364 = arith.addf %343, %363 : vector<32x128xf32>
    %cst_102 = arith.constant 0.000000e+00 : f32
    %365 = vector.broadcast %cst_102 : f32 to vector<2x128xf32>
    %366 = vector.extract_strided_slice %353 {offsets = [0, 0], sizes = [30, 128], strides = [1, 1]} : vector<32x128xf32> to vector<30x128xf32>
    %367 = tpu.concatenate %365, %366 in 0 : vector<2x128xf32>, vector<30x128xf32> -> vector<32x128xf32>
    %c2_i32_103 = arith.constant 2 : i32
    %368 = vector.broadcast %c2_i32_103 : i32 to vector<32x1xi32>
    %369 = arith.cmpi sge, %13, %368 : vector<32x1xi32>
    %cst_104 = arith.constant 0.000000e+00 : f32
    %370 = vector.shape_cast %369 : vector<32x1xi1> to vector<32x1xi1>
    %371 = vector.broadcast %370 : vector<32x1xi1> to vector<32x128xi1>
    %372 = vector.broadcast %cst_104 : f32 to vector<32x128xf32>
    %373 = arith.select %371, %367, %372 : vector<32x128xi1>, vector<32x128xf32>
    %374 = arith.mulf %353, %373 : vector<32x128xf32>
    %cst_105 = arith.constant 0.000000e+00 : f32
    %375 = vector.broadcast %cst_105 : f32 to vector<4x128xf32>
    %376 = vector.extract_strided_slice %364 {offsets = [0, 0], sizes = [28, 128], strides = [1, 1]} : vector<32x128xf32> to vector<28x128xf32>
    %377 = tpu.concatenate %375, %376 in 0 : vector<4x128xf32>, vector<28x128xf32> -> vector<32x128xf32>
    %c4_i32_106 = arith.constant 4 : i32
    %378 = vector.broadcast %c4_i32_106 : i32 to vector<32x1xi32>
    %379 = arith.cmpi sge, %13, %378 : vector<32x1xi32>
    %cst_107 = arith.constant 0.000000e+00 : f32
    %380 = vector.shape_cast %379 : vector<32x1xi1> to vector<32x1xi1>
    %381 = vector.broadcast %380 : vector<32x1xi1> to vector<32x128xi1>
    %382 = vector.broadcast %cst_107 : f32 to vector<32x128xf32>
    %383 = arith.select %381, %377, %382 : vector<32x128xi1>, vector<32x128xf32>
    %384 = arith.mulf %374, %383 : vector<32x128xf32>
    %385 = arith.addf %364, %384 : vector<32x128xf32>
    %cst_108 = arith.constant 0.000000e+00 : f32
    %386 = vector.broadcast %cst_108 : f32 to vector<4x128xf32>
    %387 = vector.extract_strided_slice %374 {offsets = [0, 0], sizes = [28, 128], strides = [1, 1]} : vector<32x128xf32> to vector<28x128xf32>
    %388 = tpu.concatenate %386, %387 in 0 : vector<4x128xf32>, vector<28x128xf32> -> vector<32x128xf32>
    %c4_i32_109 = arith.constant 4 : i32
    %389 = vector.broadcast %c4_i32_109 : i32 to vector<32x1xi32>
    %390 = arith.cmpi sge, %13, %389 : vector<32x1xi32>
    %cst_110 = arith.constant 0.000000e+00 : f32
    %391 = vector.shape_cast %390 : vector<32x1xi1> to vector<32x1xi1>
    %392 = vector.broadcast %391 : vector<32x1xi1> to vector<32x128xi1>
    %393 = vector.broadcast %cst_110 : f32 to vector<32x128xf32>
    %394 = arith.select %392, %388, %393 : vector<32x128xi1>, vector<32x128xf32>
    %395 = arith.mulf %374, %394 : vector<32x128xf32>
    %cst_111 = arith.constant 0.000000e+00 : f32
    %396 = vector.broadcast %cst_111 : f32 to vector<8x128xf32>
    %397 = vector.extract_strided_slice %385 {offsets = [0, 0], sizes = [24, 128], strides = [1, 1]} : vector<32x128xf32> to vector<24x128xf32>
    %398 = tpu.concatenate %396, %397 in 0 : vector<8x128xf32>, vector<24x128xf32> -> vector<32x128xf32>
    %c8_i32_112 = arith.constant 8 : i32
    %399 = vector.broadcast %c8_i32_112 : i32 to vector<32x1xi32>
    %400 = arith.cmpi sge, %13, %399 : vector<32x1xi32>
    %cst_113 = arith.constant 0.000000e+00 : f32
    %401 = vector.shape_cast %400 : vector<32x1xi1> to vector<32x1xi1>
    %402 = vector.broadcast %401 : vector<32x1xi1> to vector<32x128xi1>
    %403 = vector.broadcast %cst_113 : f32 to vector<32x128xf32>
    %404 = arith.select %402, %398, %403 : vector<32x128xi1>, vector<32x128xf32>
    %405 = arith.mulf %395, %404 : vector<32x128xf32>
    %406 = arith.addf %385, %405 : vector<32x128xf32>
    %407 = vector.extract_strided_slice %62 {offsets = [0, 1024], sizes = [32, 128], strides = [1, 1]} : vector<32x1152xf32> to vector<32x128xf32>
    %408 = arith.mulf %407, %406 : vector<32x128xf32>
    %409 = arith.addf %326, %408 : vector<32x128xf32>
    %c0_114 = arith.constant 0 : index
    %c0_115 = arith.constant 0 : index
    %410 = vector.load %arg4[%c0_114, %c0_115] : memref<32x32xf32, #tpu.memory_space<vmem>>, vector<32x32xf32>
    %cst_116 = arith.constant dense<0.000000e+00> : vector<32x128xf32>
    %411 = tpu.matmul %410, %409, %cst_116 {dimension_numbers = #tpu.dot_dimension_numbers<[1], [0], [0], [1], [0, 0, 1, 1], [], []>} : vector<32x32xf32>, vector<32x128xf32>, vector<32x128xf32> -> vector<32x128xf32>
    %412 = vector.shape_cast %10 : vector<1x128xi1> to vector<1x128xi1>
    %413 = vector.broadcast %412 : vector<1x128xi1> to vector<32x128xi1>
    %414 = arith.select %413, %409, %411 : vector<32x128xi1>, vector<32x128xf32>
    %415 = vector.extract_strided_slice %7 {offsets = [0, 128], sizes = [32, 128], strides = [1, 1]} : vector<32x256xf32> to vector<32x128xf32>
    %416 = arith.negf %415 : vector<32x128xf32>
    %417 = math.exp %416 : vector<32x128xf32>
    %cst_117 = arith.constant 1.000000e+00 : f32
    %418 = vector.broadcast %cst_117 : f32 to vector<32x128xf32>
    %419 = arith.addf %418, %417 : vector<32x128xf32>
    %420 = arith.divf %418, %419 : vector<32x128xf32>
    %421 = arith.mulf %415, %420 : vector<32x128xf32>
    %422 = arith.mulf %414, %421 : vector<32x128xf32>
    %423 = arith.truncf %422 : vector<32x128xf32> to vector<32x128xbf16>
    %c0_118 = arith.constant 0 : index
    %c0_119 = arith.constant 0 : index
    %424 = vector.load %arg7[%c0_118, %c0_119] : memref<128x128xbf16, #tpu.memory_space<vmem>>, vector<128x128xbf16>
    %cst_120 = arith.constant dense<0.000000e+00> : vector<32x128xf32>
    %425 = tpu.matmul %423, %424, %cst_120 {dimension_numbers = #tpu.dot_dimension_numbers<[1], [0], [0], [1], [0, 0, 1, 1], [], []>} : vector<32x128xbf16>, vector<128x128xbf16>, vector<32x128xf32> -> vector<32x128xf32>
    %cst_121 = arith.constant 5.000000e-01 : f32
    %426 = vector.broadcast %cst_121 : f32 to vector<32x128xf32>
    %427 = arith.mulf %426, %425 : vector<32x128xf32>
    %cst_122 = arith.constant dense<0.000000e+00> : vector<32xf32>
    %428 = vector.multi_reduction <add>, %427, %cst_122 [1] : vector<32x128xf32> to vector<32xf32>
    %429 = vector.shape_cast %428 : vector<32xf32> to vector<32x1xf32>
    %cst_123 = arith.constant 0.0833333358 : f32
    %430 = vector.broadcast %cst_123 : f32 to vector<32x1xf32>
    %431 = arith.mulf %429, %430 : vector<32x1xf32>
    %432 = arith.mulf %427, %427 : vector<32x128xf32>
    %cst_124 = arith.constant dense<0.000000e+00> : vector<32xf32>
    %433 = vector.multi_reduction <add>, %432, %cst_124 [1] : vector<32x128xf32> to vector<32xf32>
    %434 = vector.shape_cast %433 : vector<32xf32> to vector<32x1xf32>
    %cst_125 = arith.constant 0.0833333358 : f32
    %435 = vector.broadcast %cst_125 : f32 to vector<32x1xf32>
    %436 = arith.mulf %434, %435 : vector<32x1xf32>
    %437 = arith.mulf %431, %431 : vector<32x1xf32>
    %438 = arith.subf %436, %437 : vector<32x1xf32>
    %cst_126 = arith.constant 0.000000e+00 : f32
    %439 = vector.broadcast %cst_126 : f32 to vector<32x1xf32>
    %440 = arith.maximumf %438, %439 : vector<32x1xf32>
    %441 = vector.broadcast %431 : vector<32x1xf32> to vector<32x128xf32>
    %442 = arith.subf %427, %441 : vector<32x128xf32>
    %cst_127 = arith.constant 9.99999974E-6 : f32
    %443 = vector.broadcast %cst_127 : f32 to vector<32x1xf32>
    %444 = arith.addf %440, %443 : vector<32x1xf32>
    %445 = math.rsqrt %444 : vector<32x1xf32>
    %446 = vector.broadcast %445 : vector<32x1xf32> to vector<32x128xf32>
    %447 = arith.mulf %442, %446 : vector<32x128xf32>
    %c0_128 = arith.constant 0 : index
    %c0_129 = arith.constant 0 : index
    %448 = vector.load %arg8[%c0_128, %c0_129] : memref<2x128xf32, #tpu.memory_space<vmem>>, vector<1x128xf32>
    %449 = vector.broadcast %448 : vector<1x128xf32> to vector<32x128xf32>
    %450 = arith.mulf %447, %449 : vector<32x128xf32>
    %c1_130 = arith.constant 1 : index
    %c0_131 = arith.constant 0 : index
    %451 = vector.load %arg8[%c1_130, %c0_131] : memref<2x128xf32, #tpu.memory_space<vmem>>, vector<1x128xf32>
    %452 = vector.broadcast %451 : vector<1x128xf32> to vector<32x128xf32>
    %453 = arith.addf %450, %452 : vector<32x128xf32>
    %454 = arith.negf %453 : vector<32x128xf32>
    %455 = math.exp %454 : vector<32x128xf32>
    %cst_132 = arith.constant 1.000000e+00 : f32
    %456 = vector.broadcast %cst_132 : f32 to vector<32x128xf32>
    %457 = arith.addf %456, %455 : vector<32x128xf32>
    %458 = arith.divf %456, %457 : vector<32x128xf32>
    %459 = arith.mulf %453, %458 : vector<32x128xf32>
    %c0_133 = arith.constant 0 : index
    %c0_134 = arith.constant 0 : index
    %460 = vector.load %arg9[%c0_133, %c0_134] : memref<32x128xf32, #tpu.memory_space<vmem>>, vector<32x128xf32>
    tpu.vector_store %arg9[%c0_133, %c0_134], %459 {strides = array<i32>} : memref<32x128xf32, #tpu.memory_space<vmem>>, vector<32x128xf32>,
    return
  }
}

module attributes {stable_mosaic.version = 11 : i64} {
  func.func @_bidir_mamba_kernel(%arg0: memref<8x128xf32, #tpu.memory_space<vmem>>, %arg1: memref<8x128xf32, #tpu.memory_space<vmem>>, %arg2: memref<128x256xbf16, #tpu.memory_space<vmem>>, %arg3: memref<8x256xf32, #tpu.memory_space<vmem>>, %arg4: memref<8x8xf32, #tpu.memory_space<vmem>>, %arg5: memref<10x128xf32, #tpu.memory_space<vmem>>, %arg6: memref<128x1152xbf16, #tpu.memory_space<vmem>>, %arg7: memref<128x128xbf16, #tpu.memory_space<vmem>>, %arg8: memref<2x128xf32, #tpu.memory_space<vmem>>, %arg9: memref<8x128xf32, #tpu.memory_space<vmem>>) attributes {dimension_semantics = [], scalar_prefetch = 0 : i64, scratch_operands = 0 : i64, tpu.core_type = #tpu.core_type<tc>} {
    %c0 = arith.constant 0 : index
    %c0_0 = arith.constant 0 : index
    %0 = vector.load %arg0[%c0, %c0_0] : memref<8x128xf32, #tpu.memory_space<vmem>>, vector<8x128xf32>
    %c0_1 = arith.constant 0 : index
    %c0_2 = arith.constant 0 : index
    %1 = vector.load %arg1[%c0_1, %c0_2] : memref<8x128xf32, #tpu.memory_space<vmem>>, vector<8x128xf32>
    %2 = arith.addf %0, %1 : vector<8x128xf32>
    %3 = arith.truncf %2 : vector<8x128xf32> to vector<8x128xbf16>
    %c0_3 = arith.constant 0 : index
    %c0_4 = arith.constant 0 : index
    %4 = vector.load %arg2[%c0_3, %c0_4] : memref<128x256xbf16, #tpu.memory_space<vmem>>, vector<128x256xbf16>
    %cst = arith.constant dense<0.000000e+00> : vector<8x256xf32>
    %5 = tpu.matmul %3, %4, %cst {dimension_numbers = #tpu.dot_dimension_numbers<[1], [0], [0], [1], [0, 0, 1, 1], [], []>} : vector<8x128xbf16>, vector<128x256xbf16>, vector<8x256xf32> -> vector<8x256xf32>
    %c0_5 = arith.constant 0 : index
    %c0_6 = arith.constant 0 : index
    %6 = vector.load %arg3[%c0_5, %c0_6] : memref<8x256xf32, #tpu.memory_space<vmem>>, vector<8x256xf32>
    %7 = arith.addf %5, %6 : vector<8x256xf32>
    %8 = tpu.iota {dimensions = array<i32: 1>} : vector<1x128xi32>
    %c32_i32 = arith.constant 32 : i32
    %9 = vector.broadcast %c32_i32 : i32 to vector<1x128xi32>
    %10 = arith.cmpi slt, %8, %9 : vector<1x128xi32>
    %11 = tpu.iota {dimensions = array<i32: 0>} : vector<8x1xi32>
    %c3_i32 = arith.constant 3 : i32
    %12 = vector.broadcast %c3_i32 : i32 to vector<8x1xi32>
    %13 = arith.andi %11, %12 : vector<8x1xi32>
    %14 = vector.extract_strided_slice %7 {offsets = [0, 0], sizes = [8, 128], strides = [1, 1]} : vector<8x256xf32> to vector<8x128xf32>
    %c0_7 = arith.constant 0 : index
    %c0_8 = arith.constant 0 : index
    %15 = vector.load %arg4[%c0_7, %c0_8] : memref<8x8xf32, #tpu.memory_space<vmem>>, vector<8x8xf32>
    %cst_9 = arith.constant dense<0.000000e+00> : vector<8x128xf32>
    %16 = tpu.matmul %15, %14, %cst_9 {dimension_numbers = #tpu.dot_dimension_numbers<[1], [0], [0], [1], [0, 0, 1, 1], [], []>} : vector<8x8xf32>, vector<8x128xf32>, vector<8x128xf32> -> vector<8x128xf32>
    %17 = vector.shape_cast %10 : vector<1x128xi1> to vector<1x128xi1>
    %18 = vector.broadcast %17 : vector<1x128xi1> to vector<8x128xi1>
    %19 = arith.select %18, %14, %16 : vector<8x128xi1>, vector<8x128xf32>
    %cst_10 = arith.constant 0.000000e+00 : f32
    %20 = vector.broadcast %cst_10 : f32 to vector<8x128xf32>
    %cst_11 = arith.constant 0.000000e+00 : f32
    %21 = vector.broadcast %cst_11 : f32 to vector<2x128xf32>
    %22 = vector.extract_strided_slice %19 {offsets = [0, 0], sizes = [6, 128], strides = [1, 1]} : vector<8x128xf32> to vector<6x128xf32>
    %23 = tpu.concatenate %21, %22 in 0 : vector<2x128xf32>, vector<6x128xf32> -> vector<8x128xf32>
    %c2_i32 = arith.constant 2 : i32
    %24 = vector.broadcast %c2_i32 : i32 to vector<8x1xi32>
    %25 = arith.cmpi sge, %13, %24 : vector<8x1xi32>
    %cst_12 = arith.constant 0.000000e+00 : f32
    %26 = vector.shape_cast %25 : vector<8x1xi1> to vector<8x1xi1>
    %27 = vector.broadcast %26 : vector<8x1xi1> to vector<8x128xi1>
    %28 = vector.broadcast %cst_12 : f32 to vector<8x128xf32>
    %29 = arith.select %27, %23, %28 : vector<8x128xi1>, vector<8x128xf32>
    %c0_13 = arith.constant 0 : index
    %c0_14 = arith.constant 0 : index
    %30 = vector.load %arg5[%c0_13, %c0_14] : memref<10x128xf32, #tpu.memory_space<vmem>>, vector<1x128xf32>
    %31 = vector.broadcast %30 : vector<1x128xf32> to vector<8x128xf32>
    %32 = arith.mulf %29, %31 : vector<8x128xf32>
    %33 = arith.addf %20, %32 : vector<8x128xf32>
    %cst_15 = arith.constant 0.000000e+00 : f32
    %34 = vector.broadcast %cst_15 : f32 to vector<1x128xf32>
    %35 = vector.extract_strided_slice %19 {offsets = [0, 0], sizes = [7, 128], strides = [1, 1]} : vector<8x128xf32> to vector<7x128xf32>
    %36 = tpu.concatenate %34, %35 in 0 : vector<1x128xf32>, vector<7x128xf32> -> vector<8x128xf32>
    %c1_i32 = arith.constant 1 : i32
    %37 = vector.broadcast %c1_i32 : i32 to vector<8x1xi32>
    %38 = arith.cmpi sge, %13, %37 : vector<8x1xi32>
    %cst_16 = arith.constant 0.000000e+00 : f32
    %39 = vector.shape_cast %38 : vector<8x1xi1> to vector<8x1xi1>
    %40 = vector.broadcast %39 : vector<8x1xi1> to vector<8x128xi1>
    %41 = vector.broadcast %cst_16 : f32 to vector<8x128xf32>
    %42 = arith.select %40, %36, %41 : vector<8x128xi1>, vector<8x128xf32>
    %c1 = arith.constant 1 : index
    %c0_17 = arith.constant 0 : index
    %43 = vector.load %arg5[%c1, %c0_17] : memref<10x128xf32, #tpu.memory_space<vmem>>, vector<1x128xf32>
    %44 = vector.broadcast %43 : vector<1x128xf32> to vector<8x128xf32>
    %45 = arith.mulf %42, %44 : vector<8x128xf32>
    %46 = arith.addf %33, %45 : vector<8x128xf32>
    %c2 = arith.constant 2 : index
    %c0_18 = arith.constant 0 : index
    %47 = vector.load %arg5[%c2, %c0_18] : memref<10x128xf32, #tpu.memory_space<vmem>>, vector<1x128xf32>
    %48 = vector.broadcast %47 : vector<1x128xf32> to vector<8x128xf32>
    %49 = arith.mulf %19, %48 : vector<8x128xf32>
    %50 = arith.addf %46, %49 : vector<8x128xf32>
    %c3 = arith.constant 3 : index
    %c0_19 = arith.constant 0 : index
    %51 = vector.load %arg5[%c3, %c0_19] : memref<10x128xf32, #tpu.memory_space<vmem>>, vector<1x128xf32>
    %52 = vector.broadcast %51 : vector<1x128xf32> to vector<8x128xf32>
    %53 = arith.addf %50, %52 : vector<8x128xf32>
    %54 = arith.negf %53 : vector<8x128xf32>
    %55 = math.exp %54 : vector<8x128xf32>
    %cst_20 = arith.constant 1.000000e+00 : f32
    %56 = vector.broadcast %cst_20 : f32 to vector<8x128xf32>
    %57 = arith.addf %56, %55 : vector<8x128xf32>
    %58 = arith.divf %56, %57 : vector<8x128xf32>
    %59 = arith.mulf %53, %58 : vector<8x128xf32>
    %60 = arith.truncf %59 : vector<8x128xf32> to vector<8x128xbf16>
    %c0_21 = arith.constant 0 : index
    %c0_22 = arith.constant 0 : index
    %61 = vector.load %arg6[%c0_21, %c0_22] : memref<128x1152xbf16, #tpu.memory_space<vmem>>, vector<128x1152xbf16>
    %cst_23 = arith.constant dense<0.000000e+00> : vector<8x1152xf32>
    %62 = tpu.matmul %60, %61, %cst_23 {dimension_numbers = #tpu.dot_dimension_numbers<[1], [0], [0], [1], [0, 0, 1, 1], [], []>} : vector<8x128xbf16>, vector<128x1152xbf16>, vector<8x1152xf32> -> vector<8x1152xf32>
    %63 = vector.extract_strided_slice %62 {offsets = [0, 0], sizes = [8, 128], strides = [1, 1]} : vector<8x1152xf32> to vector<8x128xf32>
    %c4 = arith.constant 4 : index
    %c0_24 = arith.constant 0 : index
    %64 = vector.load %arg5[%c4, %c0_24] : memref<10x128xf32, #tpu.memory_space<vmem>>, vector<1x128xf32>
    %65 = vector.broadcast %64 : vector<1x128xf32> to vector<8x128xf32>
    %66 = arith.addf %63, %65 : vector<8x128xf32>
    %cst_25 = arith.constant 2.000000e+01 : f32
    %67 = vector.broadcast %cst_25 : f32 to vector<8x128xf32>
    %68 = arith.cmpf ogt, %66, %67 : vector<8x128xf32>
    %cst_26 = arith.constant 2.000000e+01 : f32
    %69 = vector.broadcast %cst_26 : f32 to vector<8x128xf32>
    %70 = arith.minimumf %66, %69 : vector<8x128xf32>
    %71 = math.exp %70 : vector<8x128xf32>
    %72 = math.log1p %71 : vector<8x128xf32>
    %73 = arith.select %68, %66, %72 : vector<8x128xi1>, vector<8x128xf32>
    %74 = arith.mulf %73, %59 : vector<8x128xf32>
    %c5 = arith.constant 5 : index
    %c0_27 = arith.constant 0 : index
    %75 = vector.load %arg5[%c5, %c0_27] : memref<10x128xf32, #tpu.memory_space<vmem>>, vector<1x128xf32>
    %76 = vector.broadcast %75 : vector<1x128xf32> to vector<8x128xf32>
    %77 = arith.mulf %76, %59 : vector<8x128xf32>
    %c6 = arith.constant 6 : index
    %c0_28 = arith.constant 0 : index
    %78 = vector.load %arg5[%c6, %c0_28] : memref<10x128xf32, #tpu.memory_space<vmem>>, vector<1x128xf32>
    %79 = vector.broadcast %78 : vector<1x128xf32> to vector<8x128xf32>
    %80 = arith.mulf %73, %79 : vector<8x128xf32>
    %81 = math.exp %80 : vector<8x128xf32>
    %82 = vector.extract_strided_slice %62 {offsets = [0, 128], sizes = [8, 128], strides = [1, 1]} : vector<8x1152xf32> to vector<8x128xf32>
    %83 = arith.mulf %82, %74 : vector<8x128xf32>
    %cst_29 = arith.constant 0.000000e+00 : f32
    %84 = vector.broadcast %cst_29 : f32 to vector<1x128xf32>
    %85 = vector.extract_strided_slice %83 {offsets = [0, 0], sizes = [7, 128], strides = [1, 1]} : vector<8x128xf32> to vector<7x128xf32>
    %86 = tpu.concatenate %84, %85 in 0 : vector<1x128xf32>, vector<7x128xf32> -> vector<8x128xf32>
    %c1_i32_30 = arith.constant 1 : i32
    %87 = vector.broadcast %c1_i32_30 : i32 to vector<8x1xi32>
    %88 = arith.cmpi sge, %13, %87 : vector<8x1xi32>
    %cst_31 = arith.constant 0.000000e+00 : f32
    %89 = vector.shape_cast %88 : vector<8x1xi1> to vector<8x1xi1>
    %90 = vector.broadcast %89 : vector<8x1xi1> to vector<8x128xi1>
    %91 = vector.broadcast %cst_31 : f32 to vector<8x128xf32>
    %92 = arith.select %90, %86, %91 : vector<8x128xi1>, vector<8x128xf32>
    %93 = arith.mulf %81, %92 : vector<8x128xf32>
    %94 = arith.addf %83, %93 : vector<8x128xf32>
    %cst_32 = arith.constant 0.000000e+00 : f32
    %95 = vector.broadcast %cst_32 : f32 to vector<1x128xf32>
    %96 = vector.extract_strided_slice %81 {offsets = [0, 0], sizes = [7, 128], strides = [1, 1]} : vector<8x128xf32> to vector<7x128xf32>
    %97 = tpu.concatenate %95, %96 in 0 : vector<1x128xf32>, vector<7x128xf32> -> vector<8x128xf32>
    %c1_i32_33 = arith.constant 1 : i32
    %98 = vector.broadcast %c1_i32_33 : i32 to vector<8x1xi32>
    %99 = arith.cmpi sge, %13, %98 : vector<8x1xi32>
    %cst_34 = arith.constant 0.000000e+00 : f32
    %100 = vector.shape_cast %99 : vector<8x1xi1> to vector<8x1xi1>
    %101 = vector.broadcast %100 : vector<8x1xi1> to vector<8x128xi1>
    %102 = vector.broadcast %cst_34 : f32 to vector<8x128xf32>
    %103 = arith.select %101, %97, %102 : vector<8x128xi1>, vector<8x128xf32>
    %104 = arith.mulf %81, %103 : vector<8x128xf32>
    %cst_35 = arith.constant 0.000000e+00 : f32
    %105 = vector.broadcast %cst_35 : f32 to vector<2x128xf32>
    %106 = vector.extract_strided_slice %94 {offsets = [0, 0], sizes = [6, 128], strides = [1, 1]} : vector<8x128xf32> to vector<6x128xf32>
    %107 = tpu.concatenate %105, %106 in 0 : vector<2x128xf32>, vector<6x128xf32> -> vector<8x128xf32>
    %c2_i32_36 = arith.constant 2 : i32
    %108 = vector.broadcast %c2_i32_36 : i32 to vector<8x1xi32>
    %109 = arith.cmpi sge, %13, %108 : vector<8x1xi32>
    %cst_37 = arith.constant 0.000000e+00 : f32
    %110 = vector.shape_cast %109 : vector<8x1xi1> to vector<8x1xi1>
    %111 = vector.broadcast %110 : vector<8x1xi1> to vector<8x128xi1>
    %112 = vector.broadcast %cst_37 : f32 to vector<8x128xf32>
    %113 = arith.select %111, %107, %112 : vector<8x128xi1>, vector<8x128xf32>
    %114 = arith.mulf %104, %113 : vector<8x128xf32>
    %115 = arith.addf %94, %114 : vector<8x128xf32>
    %116 = vector.extract_strided_slice %62 {offsets = [0, 640], sizes = [8, 128], strides = [1, 1]} : vector<8x1152xf32> to vector<8x128xf32>
    %117 = arith.mulf %116, %115 : vector<8x128xf32>
    %118 = arith.addf %77, %117 : vector<8x128xf32>
    %c7 = arith.constant 7 : index
    %c0_38 = arith.constant 0 : index
    %119 = vector.load %arg5[%c7, %c0_38] : memref<10x128xf32, #tpu.memory_space<vmem>>, vector<1x128xf32>
    %120 = vector.broadcast %119 : vector<1x128xf32> to vector<8x128xf32>
    %121 = arith.mulf %73, %120 : vector<8x128xf32>
    %122 = math.exp %121 : vector<8x128xf32>
    %123 = vector.extract_strided_slice %62 {offsets = [0, 256], sizes = [8, 128], strides = [1, 1]} : vector<8x1152xf32> to vector<8x128xf32>
    %124 = arith.mulf %123, %74 : vector<8x128xf32>
    %cst_39 = arith.constant 0.000000e+00 : f32
    %125 = vector.broadcast %cst_39 : f32 to vector<1x128xf32>
    %126 = vector.extract_strided_slice %124 {offsets = [0, 0], sizes = [7, 128], strides = [1, 1]} : vector<8x128xf32> to vector<7x128xf32>
    %127 = tpu.concatenate %125, %126 in 0 : vector<1x128xf32>, vector<7x128xf32> -> vector<8x128xf32>
    %c1_i32_40 = arith.constant 1 : i32
    %128 = vector.broadcast %c1_i32_40 : i32 to vector<8x1xi32>
    %129 = arith.cmpi sge, %13, %128 : vector<8x1xi32>
    %cst_41 = arith.constant 0.000000e+00 : f32
    %130 = vector.shape_cast %129 : vector<8x1xi1> to vector<8x1xi1>
    %131 = vector.broadcast %130 : vector<8x1xi1> to vector<8x128xi1>
    %132 = vector.broadcast %cst_41 : f32 to vector<8x128xf32>
    %133 = arith.select %131, %127, %132 : vector<8x128xi1>, vector<8x128xf32>
    %134 = arith.mulf %122, %133 : vector<8x128xf32>
    %135 = arith.addf %124, %134 : vector<8x128xf32>
    %cst_42 = arith.constant 0.000000e+00 : f32
    %136 = vector.broadcast %cst_42 : f32 to vector<1x128xf32>
    %137 = vector.extract_strided_slice %122 {offsets = [0, 0], sizes = [7, 128], strides = [1, 1]} : vector<8x128xf32> to vector<7x128xf32>
    %138 = tpu.concatenate %136, %137 in 0 : vector<1x128xf32>, vector<7x128xf32> -> vector<8x128xf32>
    %c1_i32_43 = arith.constant 1 : i32
    %139 = vector.broadcast %c1_i32_43 : i32 to vector<8x1xi32>
    %140 = arith.cmpi sge, %13, %139 : vector<8x1xi32>
    %cst_44 = arith.constant 0.000000e+00 : f32
    %141 = vector.shape_cast %140 : vector<8x1xi1> to vector<8x1xi1>
    %142 = vector.broadcast %141 : vector<8x1xi1> to vector<8x128xi1>
    %143 = vector.broadcast %cst_44 : f32 to vector<8x128xf32>
    %144 = arith.select %142, %138, %143 : vector<8x128xi1>, vector<8x128xf32>
    %145 = arith.mulf %122, %144 : vector<8x128xf32>
    %cst_45 = arith.constant 0.000000e+00 : f32
    %146 = vector.broadcast %cst_45 : f32 to vector<2x128xf32>
    %147 = vector.extract_strided_slice %135 {offsets = [0, 0], sizes = [6, 128], strides = [1, 1]} : vector<8x128xf32> to vector<6x128xf32>
    %148 = tpu.concatenate %146, %147 in 0 : vector<2x128xf32>, vector<6x128xf32> -> vector<8x128xf32>
    %c2_i32_46 = arith.constant 2 : i32
    %149 = vector.broadcast %c2_i32_46 : i32 to vector<8x1xi32>
    %150 = arith.cmpi sge, %13, %149 : vector<8x1xi32>
    %cst_47 = arith.constant 0.000000e+00 : f32
    %151 = vector.shape_cast %150 : vector<8x1xi1> to vector<8x1xi1>
    %152 = vector.broadcast %151 : vector<8x1xi1> to vector<8x128xi1>
    %153 = vector.broadcast %cst_47 : f32 to vector<8x128xf32>
    %154 = arith.select %152, %148, %153 : vector<8x128xi1>, vector<8x128xf32>
    %155 = arith.mulf %145, %154 : vector<8x128xf32>
    %156 = arith.addf %135, %155 : vector<8x128xf32>
    %157 = vector.extract_strided_slice %62 {offsets = [0, 768], sizes = [8, 128], strides = [1, 1]} : vector<8x1152xf32> to vector<8x128xf32>
    %158 = arith.mulf %157, %156 : vector<8x128xf32>
    %159 = arith.addf %118, %158 : vector<8x128xf32>
    %c8 = arith.constant 8 : index
    %c0_48 = arith.constant 0 : index
    %160 = vector.load %arg5[%c8, %c0_48] : memref<10x128xf32, #tpu.memory_space<vmem>>, vector<1x128xf32>
    %161 = vector.broadcast %160 : vector<1x128xf32> to vector<8x128xf32>
    %162 = arith.mulf %73, %161 : vector<8x128xf32>
    %163 = math.exp %162 : vector<8x128xf32>
    %164 = vector.extract_strided_slice %62 {offsets = [0, 384], sizes = [8, 128], strides = [1, 1]} : vector<8x1152xf32> to vector<8x128xf32>
    %165 = arith.mulf %164, %74 : vector<8x128xf32>
    %cst_49 = arith.constant 0.000000e+00 : f32
    %166 = vector.broadcast %cst_49 : f32 to vector<1x128xf32>
    %167 = vector.extract_strided_slice %165 {offsets = [0, 0], sizes = [7, 128], strides = [1, 1]} : vector<8x128xf32> to vector<7x128xf32>
    %168 = tpu.concatenate %166, %167 in 0 : vector<1x128xf32>, vector<7x128xf32> -> vector<8x128xf32>
    %c1_i32_50 = arith.constant 1 : i32
    %169 = vector.broadcast %c1_i32_50 : i32 to vector<8x1xi32>
    %170 = arith.cmpi sge, %13, %169 : vector<8x1xi32>
    %cst_51 = arith.constant 0.000000e+00 : f32
    %171 = vector.shape_cast %170 : vector<8x1xi1> to vector<8x1xi1>
    %172 = vector.broadcast %171 : vector<8x1xi1> to vector<8x128xi1>
    %173 = vector.broadcast %cst_51 : f32 to vector<8x128xf32>
    %174 = arith.select %172, %168, %173 : vector<8x128xi1>, vector<8x128xf32>
    %175 = arith.mulf %163, %174 : vector<8x128xf32>
    %176 = arith.addf %165, %175 : vector<8x128xf32>
    %cst_52 = arith.constant 0.000000e+00 : f32
    %177 = vector.broadcast %cst_52 : f32 to vector<1x128xf32>
    %178 = vector.extract_strided_slice %163 {offsets = [0, 0], sizes = [7, 128], strides = [1, 1]} : vector<8x128xf32> to vector<7x128xf32>
    %179 = tpu.concatenate %177, %178 in 0 : vector<1x128xf32>, vector<7x128xf32> -> vector<8x128xf32>
    %c1_i32_53 = arith.constant 1 : i32
    %180 = vector.broadcast %c1_i32_53 : i32 to vector<8x1xi32>
    %181 = arith.cmpi sge, %13, %180 : vector<8x1xi32>
    %cst_54 = arith.constant 0.000000e+00 : f32
    %182 = vector.shape_cast %181 : vector<8x1xi1> to vector<8x1xi1>
    %183 = vector.broadcast %182 : vector<8x1xi1> to vector<8x128xi1>
    %184 = vector.broadcast %cst_54 : f32 to vector<8x128xf32>
    %185 = arith.select %183, %179, %184 : vector<8x128xi1>, vector<8x128xf32>
    %186 = arith.mulf %163, %185 : vector<8x128xf32>
    %cst_55 = arith.constant 0.000000e+00 : f32
    %187 = vector.broadcast %cst_55 : f32 to vector<2x128xf32>
    %188 = vector.extract_strided_slice %176 {offsets = [0, 0], sizes = [6, 128], strides = [1, 1]} : vector<8x128xf32> to vector<6x128xf32>
    %189 = tpu.concatenate %187, %188 in 0 : vector<2x128xf32>, vector<6x128xf32> -> vector<8x128xf32>
    %c2_i32_56 = arith.constant 2 : i32
    %190 = vector.broadcast %c2_i32_56 : i32 to vector<8x1xi32>
    %191 = arith.cmpi sge, %13, %190 : vector<8x1xi32>
    %cst_57 = arith.constant 0.000000e+00 : f32
    %192 = vector.shape_cast %191 : vector<8x1xi1> to vector<8x1xi1>
    %193 = vector.broadcast %192 : vector<8x1xi1> to vector<8x128xi1>
    %194 = vector.broadcast %cst_57 : f32 to vector<8x128xf32>
    %195 = arith.select %193, %189, %194 : vector<8x128xi1>, vector<8x128xf32>
    %196 = arith.mulf %186, %195 : vector<8x128xf32>
    %197 = arith.addf %176, %196 : vector<8x128xf32>
    %198 = vector.extract_strided_slice %62 {offsets = [0, 896], sizes = [8, 128], strides = [1, 1]} : vector<8x1152xf32> to vector<8x128xf32>
    %199 = arith.mulf %198, %197 : vector<8x128xf32>
    %200 = arith.addf %159, %199 : vector<8x128xf32>
    %c9 = arith.constant 9 : index
    %c0_58 = arith.constant 0 : index
    %201 = vector.load %arg5[%c9, %c0_58] : memref<10x128xf32, #tpu.memory_space<vmem>>, vector<1x128xf32>
    %202 = vector.broadcast %201 : vector<1x128xf32> to vector<8x128xf32>
    %203 = arith.mulf %73, %202 : vector<8x128xf32>
    %204 = math.exp %203 : vector<8x128xf32>
    %205 = vector.extract_strided_slice %62 {offsets = [0, 512], sizes = [8, 128], strides = [1, 1]} : vector<8x1152xf32> to vector<8x128xf32>
    %206 = arith.mulf %205, %74 : vector<8x128xf32>
    %cst_59 = arith.constant 0.000000e+00 : f32
    %207 = vector.broadcast %cst_59 : f32 to vector<1x128xf32>
    %208 = vector.extract_strided_slice %206 {offsets = [0, 0], sizes = [7, 128], strides = [1, 1]} : vector<8x128xf32> to vector<7x128xf32>
    %209 = tpu.concatenate %207, %208 in 0 : vector<1x128xf32>, vector<7x128xf32> -> vector<8x128xf32>
    %c1_i32_60 = arith.constant 1 : i32
    %210 = vector.broadcast %c1_i32_60 : i32 to vector<8x1xi32>
    %211 = arith.cmpi sge, %13, %210 : vector<8x1xi32>
    %cst_61 = arith.constant 0.000000e+00 : f32
    %212 = vector.shape_cast %211 : vector<8x1xi1> to vector<8x1xi1>
    %213 = vector.broadcast %212 : vector<8x1xi1> to vector<8x128xi1>
    %214 = vector.broadcast %cst_61 : f32 to vector<8x128xf32>
    %215 = arith.select %213, %209, %214 : vector<8x128xi1>, vector<8x128xf32>
    %216 = arith.mulf %204, %215 : vector<8x128xf32>
    %217 = arith.addf %206, %216 : vector<8x128xf32>
    %cst_62 = arith.constant 0.000000e+00 : f32
    %218 = vector.broadcast %cst_62 : f32 to vector<1x128xf32>
    %219 = vector.extract_strided_slice %204 {offsets = [0, 0], sizes = [7, 128], strides = [1, 1]} : vector<8x128xf32> to vector<7x128xf32>
    %220 = tpu.concatenate %218, %219 in 0 : vector<1x128xf32>, vector<7x128xf32> -> vector<8x128xf32>
    %c1_i32_63 = arith.constant 1 : i32
    %221 = vector.broadcast %c1_i32_63 : i32 to vector<8x1xi32>
    %222 = arith.cmpi sge, %13, %221 : vector<8x1xi32>
    %cst_64 = arith.constant 0.000000e+00 : f32
    %223 = vector.shape_cast %222 : vector<8x1xi1> to vector<8x1xi1>
    %224 = vector.broadcast %223 : vector<8x1xi1> to vector<8x128xi1>
    %225 = vector.broadcast %cst_64 : f32 to vector<8x128xf32>
    %226 = arith.select %224, %220, %225 : vector<8x128xi1>, vector<8x128xf32>
    %227 = arith.mulf %204, %226 : vector<8x128xf32>
    %cst_65 = arith.constant 0.000000e+00 : f32
    %228 = vector.broadcast %cst_65 : f32 to vector<2x128xf32>
    %229 = vector.extract_strided_slice %217 {offsets = [0, 0], sizes = [6, 128], strides = [1, 1]} : vector<8x128xf32> to vector<6x128xf32>
    %230 = tpu.concatenate %228, %229 in 0 : vector<2x128xf32>, vector<6x128xf32> -> vector<8x128xf32>
    %c2_i32_66 = arith.constant 2 : i32
    %231 = vector.broadcast %c2_i32_66 : i32 to vector<8x1xi32>
    %232 = arith.cmpi sge, %13, %231 : vector<8x1xi32>
    %cst_67 = arith.constant 0.000000e+00 : f32
    %233 = vector.shape_cast %232 : vector<8x1xi1> to vector<8x1xi1>
    %234 = vector.broadcast %233 : vector<8x1xi1> to vector<8x128xi1>
    %235 = vector.broadcast %cst_67 : f32 to vector<8x128xf32>
    %236 = arith.select %234, %230, %235 : vector<8x128xi1>, vector<8x128xf32>
    %237 = arith.mulf %227, %236 : vector<8x128xf32>
    %238 = arith.addf %217, %237 : vector<8x128xf32>
    %239 = vector.extract_strided_slice %62 {offsets = [0, 1024], sizes = [8, 128], strides = [1, 1]} : vector<8x1152xf32> to vector<8x128xf32>
    %240 = arith.mulf %239, %238 : vector<8x128xf32>
    %241 = arith.addf %200, %240 : vector<8x128xf32>
    %c0_68 = arith.constant 0 : index
    %c0_69 = arith.constant 0 : index
    %242 = vector.load %arg4[%c0_68, %c0_69] : memref<8x8xf32, #tpu.memory_space<vmem>>, vector<8x8xf32>
    %cst_70 = arith.constant dense<0.000000e+00> : vector<8x128xf32>
    %243 = tpu.matmul %242, %241, %cst_70 {dimension_numbers = #tpu.dot_dimension_numbers<[1], [0], [0], [1], [0, 0, 1, 1], [], []>} : vector<8x8xf32>, vector<8x128xf32>, vector<8x128xf32> -> vector<8x128xf32>
    %244 = vector.shape_cast %10 : vector<1x128xi1> to vector<1x128xi1>
    %245 = vector.broadcast %244 : vector<1x128xi1> to vector<8x128xi1>
    %246 = arith.select %245, %241, %243 : vector<8x128xi1>, vector<8x128xf32>
    %247 = vector.extract_strided_slice %7 {offsets = [0, 128], sizes = [8, 128], strides = [1, 1]} : vector<8x256xf32> to vector<8x128xf32>
    %248 = arith.negf %247 : vector<8x128xf32>
    %249 = math.exp %248 : vector<8x128xf32>
    %cst_71 = arith.constant 1.000000e+00 : f32
    %250 = vector.broadcast %cst_71 : f32 to vector<8x128xf32>
    %251 = arith.addf %250, %249 : vector<8x128xf32>
    %252 = arith.divf %250, %251 : vector<8x128xf32>
    %253 = arith.mulf %247, %252 : vector<8x128xf32>
    %254 = arith.mulf %246, %253 : vector<8x128xf32>
    %255 = arith.truncf %254 : vector<8x128xf32> to vector<8x128xbf16>
    %c0_72 = arith.constant 0 : index
    %c0_73 = arith.constant 0 : index
    %256 = vector.load %arg7[%c0_72, %c0_73] : memref<128x128xbf16, #tpu.memory_space<vmem>>, vector<128x128xbf16>
    %cst_74 = arith.constant dense<0.000000e+00> : vector<8x128xf32>
    %257 = tpu.matmul %255, %256, %cst_74 {dimension_numbers = #tpu.dot_dimension_numbers<[1], [0], [0], [1], [0, 0, 1, 1], [], []>} : vector<8x128xbf16>, vector<128x128xbf16>, vector<8x128xf32> -> vector<8x128xf32>
    %cst_75 = arith.constant 5.000000e-01 : f32
    %258 = vector.broadcast %cst_75 : f32 to vector<8x128xf32>
    %259 = arith.mulf %258, %257 : vector<8x128xf32>
    %cst_76 = arith.constant dense<0.000000e+00> : vector<8xf32>
    %260 = vector.multi_reduction <add>, %259, %cst_76 [1] : vector<8x128xf32> to vector<8xf32>
    %261 = vector.shape_cast %260 : vector<8xf32> to vector<8x1xf32>
    %cst_77 = arith.constant 6.250000e-02 : f32
    %262 = vector.broadcast %cst_77 : f32 to vector<8x1xf32>
    %263 = arith.mulf %261, %262 : vector<8x1xf32>
    %264 = arith.mulf %259, %259 : vector<8x128xf32>
    %cst_78 = arith.constant dense<0.000000e+00> : vector<8xf32>
    %265 = vector.multi_reduction <add>, %264, %cst_78 [1] : vector<8x128xf32> to vector<8xf32>
    %266 = vector.shape_cast %265 : vector<8xf32> to vector<8x1xf32>
    %cst_79 = arith.constant 6.250000e-02 : f32
    %267 = vector.broadcast %cst_79 : f32 to vector<8x1xf32>
    %268 = arith.mulf %266, %267 : vector<8x1xf32>
    %269 = arith.mulf %263, %263 : vector<8x1xf32>
    %270 = arith.subf %268, %269 : vector<8x1xf32>
    %cst_80 = arith.constant 0.000000e+00 : f32
    %271 = vector.broadcast %cst_80 : f32 to vector<8x1xf32>
    %272 = arith.maximumf %270, %271 : vector<8x1xf32>
    %273 = vector.broadcast %263 : vector<8x1xf32> to vector<8x128xf32>
    %274 = arith.subf %259, %273 : vector<8x128xf32>
    %cst_81 = arith.constant 9.99999974E-6 : f32
    %275 = vector.broadcast %cst_81 : f32 to vector<8x1xf32>
    %276 = arith.addf %272, %275 : vector<8x1xf32>
    %277 = math.rsqrt %276 : vector<8x1xf32>
    %278 = vector.broadcast %277 : vector<8x1xf32> to vector<8x128xf32>
    %279 = arith.mulf %274, %278 : vector<8x128xf32>
    %c0_82 = arith.constant 0 : index
    %c0_83 = arith.constant 0 : index
    %280 = vector.load %arg8[%c0_82, %c0_83] : memref<2x128xf32, #tpu.memory_space<vmem>>, vector<1x128xf32>
    %281 = vector.broadcast %280 : vector<1x128xf32> to vector<8x128xf32>
    %282 = arith.mulf %279, %281 : vector<8x128xf32>
    %c1_84 = arith.constant 1 : index
    %c0_85 = arith.constant 0 : index
    %283 = vector.load %arg8[%c1_84, %c0_85] : memref<2x128xf32, #tpu.memory_space<vmem>>, vector<1x128xf32>
    %284 = vector.broadcast %283 : vector<1x128xf32> to vector<8x128xf32>
    %285 = arith.addf %282, %284 : vector<8x128xf32>
    %286 = arith.negf %285 : vector<8x128xf32>
    %287 = math.exp %286 : vector<8x128xf32>
    %cst_86 = arith.constant 1.000000e+00 : f32
    %288 = vector.broadcast %cst_86 : f32 to vector<8x128xf32>
    %289 = arith.addf %288, %287 : vector<8x128xf32>
    %290 = arith.divf %288, %289 : vector<8x128xf32>
    %291 = arith.mulf %285, %290 : vector<8x128xf32>
    %c0_87 = arith.constant 0 : index
    %c0_88 = arith.constant 0 : index
    %292 = vector.load %arg9[%c0_87, %c0_88] : memref<8x128xf32, #tpu.memory_space<vmem>>, vector<8x128xf32>
    tpu.vector_store %arg9[%c0_87, %c0_88], %291 {strides = array<i32>} : memref<8x128xf32, #tpu.memory_space<vmem>>, vector<8x128xf32>,
    return
  }
}

module attributes {stable_mosaic.version = 11 : i64} {
  func.func @_classifier_kernel(%arg0: memref<8x128xf32, #tpu.memory_space<vmem>>, %arg1: memref<2x8xf32, #tpu.memory_space<vmem>>, %arg2: memref<128x128xbf16, #tpu.memory_space<vmem>>, %arg3: memref<1x128xf32, #tpu.memory_space<vmem>>, %arg4: memref<2x128xf32, #tpu.memory_space<vmem>>) attributes {dimension_semantics = [], scalar_prefetch = 0 : i64, scratch_operands = 0 : i64, tpu.core_type = #tpu.core_type<tc>} {
    %c0 = arith.constant 0 : index
    %c0_0 = arith.constant 0 : index
    %0 = vector.load %arg1[%c0, %c0_0] : memref<2x8xf32, #tpu.memory_space<vmem>>, vector<2x8xf32>
    %c0_1 = arith.constant 0 : index
    %c0_2 = arith.constant 0 : index
    %1 = vector.load %arg0[%c0_1, %c0_2] : memref<8x128xf32, #tpu.memory_space<vmem>>, vector<8x128xf32>
    %cst = arith.constant dense<0.000000e+00> : vector<2x128xf32>
    %2 = tpu.matmul %0, %1, %cst {dimension_numbers = #tpu.dot_dimension_numbers<[1], [0], [0], [1], [0, 0, 1, 1], [], []>} : vector<2x8xf32>, vector<8x128xf32>, vector<2x128xf32> -> vector<2x128xf32>
    %3 = arith.truncf %2 : vector<2x128xf32> to vector<2x128xbf16>
    %c0_3 = arith.constant 0 : index
    %c0_4 = arith.constant 0 : index
    %4 = vector.load %arg2[%c0_3, %c0_4] : memref<128x128xbf16, #tpu.memory_space<vmem>>, vector<128x128xbf16>
    %cst_5 = arith.constant dense<0.000000e+00> : vector<2x128xf32>
    %5 = tpu.matmul %3, %4, %cst_5 {dimension_numbers = #tpu.dot_dimension_numbers<[1], [0], [0], [1], [0, 0, 1, 1], [], []>} : vector<2x128xbf16>, vector<128x128xbf16>, vector<2x128xf32> -> vector<2x128xf32>
    %c0_6 = arith.constant 0 : index
    %c0_7 = arith.constant 0 : index
    %6 = vector.load %arg3[%c0_6, %c0_7] : memref<1x128xf32, #tpu.memory_space<vmem>>, vector<1x128xf32>
    %7 = vector.broadcast %6 : vector<1x128xf32> to vector<2x128xf32>
    %8 = arith.addf %5, %7 : vector<2x128xf32>
    %c0_8 = arith.constant 0 : index
    %c0_9 = arith.constant 0 : index
    %9 = vector.load %arg4[%c0_8, %c0_9] : memref<2x128xf32, #tpu.memory_space<vmem>>, vector<2x128xf32>
    tpu.vector_store %arg4[%c0_8, %c0_9], %8 {strides = array<i32>} : memref<2x128xf32, #tpu.memory_space<vmem>>, vector<2x128xf32>,
    return
  }
}

</mosaic_0001>

<bundles_post_ra>
// kernel: tile.19
= control target key start
LH: loop header
LB: loop body
LE: loop exit
PB: predicated region body
PF: predicated region fallthrough
CT: control target
= control target key end

     0   :  { %s72_s0 = inlined_call_operand.vmem [shape: f32[2,4,256], index: 0, kind: input, shape index: {}]   ;;  %s73_s1 = inlined_call_operand.vmem [shape: f32[8,256], index: 1, kind: output, shape index: {}]  }
   0x1   :  { %v32_v0 = vld [vmem:[%s72_s0 + $0xc] sm:$0xf]  ;;  %v33_v1 = vld [vmem:[%s72_s0 + $0x8] sm:$0xf]  ;;  %v34_v2 = vld [vmem:[%s72_s0 + $0x4] sm:$0xf] }
   0x2   :  { %7 = vst [vmem:[#allocation0 + $0x8] sm:$0xf] %v32_v0  ;;  %v16_v3 = vld [vmem:[%s72_s0] sm:$0xf] }
   0x3   :  { %11 = vst [vmem:[#allocation0 + $0x18] sm:$0xf] %v33_v1 }
   0x4   :  { %15 = vst [vmem:[#allocation0] sm:$0xf] %v34_v2 }
   0x5   :  { %17 = vst [vmem:[#allocation0 + $0x10] sm:$0xf] %v16_v3 }
   0x9   :  { %v29_v4 = vld [vmem:[#allocation0 + $0x8] sm:$0xf]  }
   0xa   :  { %v25_v5 = vld [vmem:[#allocation0 + $0x18] sm:$0xf]   ;;  %37 = vst [vmem:[%s73_s1 + $0xc] sm:$0xf] %v29_v4  }
   0xb   :  { %v21_v6 = vld [vmem:[#allocation0] sm:$0xf]   ;;  %36 = vst [vmem:[%s73_s1 + $0x4] sm:$0xf] %v25_v5  }
   0xc   :  { %v18_v7 = vld [vmem:[#allocation0 + $0x10] sm:$0xf]   ;;  %35 = vst [vmem:[%s73_s1 + $0x8] sm:$0xf] %v21_v6  }
   0xd   :  { %19 = vst [vmem:[%s73_s1] sm:$0xf] %v18_v7  }

// kernel: _lambda_.10
= control target key start
LH: loop header
LB: loop body
LE: loop exit
PB: predicated region body
PF: predicated region fallthrough
CT: control target
= control target key end

     0   :  { %vm55_vm0 = vcmask 392192   ;;  %s455_s1 = inlined_call_operand.vmem [shape: bf16[48,128], index: 1, kind: input, shape index: {}]   ;;  %s456_s2 = inlined_call_operand.vmem [shape: f32[1,128], index: 2, kind: input, shape index: {}]   ;;  %s457_s0 = inlined_call_operand.vmem [shape: f32[32,48], index: 0, kind: input, shape index: {}]   ;;  %s458_s3 = inlined_call_operand.vmem [shape: f32[1,128], index: 3, kind: input, shape index: {}]   ;;  %s459_s4 = inlined_call_operand.vmem [shape: f32[1,128], index: 4, kind: input, shape index: {}]   ;;  %s460_s5 = inlined_call_operand.vmem [shape: f32[32,128], index: 5, kind: output, shape index: {}]  }
   0x1   :  { %v297_v0 = vld [vmem:[%s455_s1 + $0x10] sm:$0xff]  ;;  %v296_v1 = vld [vmem:[%s455_s1 + $0x8] sm:$0xff]  ;;  %v295_v2 = vld [vmem:[%s455_s1] sm:$0xff] }
   0x2   :  { %67 = vmatpush.bf16.msra.mxu0 %v297_v0  ;;  %298 = vmatpush.bf16.msra.mxu1 %v297_v0  ;;  %v21_v3 = vld [vmem:[%s457_s0] sm:$0xff]  ;;  %v22_v4 = vld [vmem:[%s457_s0 + $0x8] sm:$0xff]  ;;  %v23_v5 = vld [vmem:[%s457_s0 + $0x10] sm:$0xff] }
   0x3   :  { %v24_v6 = vld [vmem:[%s457_s0 + $0x18] sm:$0xff]  ;;  %v25_v7 = vpack.c.bf16 %v22_v4, %v21_v3  ;;  %v301_v9 = vld [vmem:[%s456_s2] ss:$0 sm:$0xff] }
   0x4   :  { %v26_v8 = vpack.c.bf16 %v24_v6, %v23_v5  ;;  %v302_v63 = vld [vmem:[%s458_s3] ss:$0 sm:$0xff] }
   0x6   :  { %68 = vmatpush.bf16.msra.mxu0 %v296_v1  ;;  %299 = vmatpush.bf16.msra.mxu1 %v296_v1 }
   0xa   :  { %69 = vmatpush.bf16.msra.mxu0 %v295_v2  ;;  %300 = vmatpush.bf16.msra.mxu1 %v295_v2  ;;  %v303_v2 = vld [vmem:[%s459_s4] ss:$0 sm:$0xff] }
   0xd   :  { %289 = vmatmul.msk.bf16.vlgmr.msra.gmra.mxu0 %vm55_vm0, %v25_v7  ;;  %290 = vmatmul.msk.bf16.vlgmr.msra.gmra.mxu1 %vm55_vm0, %v26_v8 }
  0x8a   :  { %v71_v10 = vpop.f32.mrf.mxu0  ;;  %v76_v11 = vpop.f32.mrf.mxu1 }
  0x8b   :  { %v382_v12 = vadd.f32 %v301_v9, %v71_v10  ;;  %v384_v13 = vadd.f32 %v301_v9, %v76_v11 }
  0x8d   :  { %87 = vadd.xlane.f32.xlu1 %v384_v13  ;;  %83 = vadd.xlane.f32.xlu0 %v382_v12  ;;  %v95_v14 = vmul.f32 %v382_v12, %v382_v12  ;;  %v97_v21 = vmul.f32 %v384_v13, %v384_v13 }
  0x8f   :  { %99 = vadd.xlane.f32.xlu2 %v95_v14 }
  0x92   :  { %v73_v15 = vpop.f32.mrf.mxu0  ;;  %v78_v16 = vpop.f32.mrf.mxu1 }
  0x93   :  { %v390_v17 = vadd.f32 %v301_v9, %v73_v15  ;;  %v392_v18 = vadd.f32 %v301_v9, %v78_v16 }
  0x95   :  { %89 = vadd.xlane.f32.xlu1 %v392_v18  ;;  %85 = vadd.xlane.f32.xlu0 %v390_v17  ;;  %v96_v19 = vmul.f32 %v390_v17, %v390_v17  ;;  %v98_v20 = vmul.f32 %v392_v18, %v392_v18 }
  0x97   :  { %101 = vadd.xlane.f32.xlu2 %v96_v19 }
  0x9d   :  { %105 = vadd.xlane.f32.xlu1 %v98_v20  ;;  %103 = vadd.xlane.f32.xlu0 %v97_v21 }
 0x100   :  { %v88_v22 = vpop.xlane.xlu1 %87  ;;  %v84_v23 = vpop.xlane.xlu0 %83 }
 0x101   :  { %v91_v24 = vmul.f32 0.125, %v84_v23  ;;  %v406_v37 = vmul.f32 0.125, %v88_v22 }
 0x102   :  { %v100_v25 = vpop.xlane.xlu2 %99 }
 0x103   :  { %v111_v26 = vmul.f32 %v91_v24, %v91_v24  ;;  %v107_v27 = vmul.f32 0.125, %v100_v25  ;;  %v113_v43 = vmul.f32 %v406_v37, %v406_v37  ;;  %v123_v62 = vsub.f32 %v382_v12, %v91_v24 }
 0x105   :  { %v115_v28 = vsub.f32 %v107_v27, %v111_v26 }
 0x107   :  { %v119_v29 = vmax.f32 %v115_v28, 0.0 }
 0x108   :  { %v90_v30 = vpop.xlane.xlu1 %89  ;;  %v86_v31 = vpop.xlane.xlu0 %85 }
 0x109   :  { %v402_v32 = vmul.f32 0.125, %v86_v31  ;;  %v127_v33 = vadd.f32 1e-05, %v119_v29  ;;  %v408_v38 = vmul.f32 0.125, %v90_v30 }
 0x10a   :  { %v102_v34 = vpop.xlane.xlu2 %101 }
 0x10b   :  { %v112_v35 = vmul.f32 %v402_v32, %v402_v32  ;;  %304 = vrsqrt.f32 %v127_v33  ;;  %v108_v36 = vmul.f32 0.125, %v102_v34  ;;  %v114_v44 = vmul.f32 %v408_v38, %v408_v38 }
 0x10c   :  { %vm137_vm2 = vweird.f32 %v127_v33  ;;  %v124_v19 = vsub.f32 %v390_v17, %v402_v32  ;;  %v126_v28 = vsub.f32 %v392_v18, %v408_v38  ;;  %v125_v17 = vsub.f32 %v384_v13, %v406_v37 }
 0x10d   :  { %v116_v39 = vsub.f32 %v108_v36, %v112_v35 }
 0x10f   :  { %v120_v40 = vmax.f32 %v116_v39, 0.0 }
 0x110   :  { %v106_v41 = vpop.xlane.xlu1 %105  ;;  %v104_v42 = vpop.xlane.xlu0 %103 }
 0x111   :  { %v110_v45 = vmul.f32 0.125, %v106_v41  ;;  %v109_v46 = vmul.f32 0.125, %v104_v42  ;;  %v305_v47 = vpop.eup %304  ;;  %v128_v48 = vadd.f32 1e-05, %v120_v40 }
 0x112   :  { %v132_v49 = vmul.f32 %v305_v47, %v127_v33  ;;  %vm138_vm1 = vweird.f32 %v305_v47 }
 0x113   :  { %v118_v50 = vsub.f32 %v110_v45, %v114_v44  ;;  %v117_v51 = vsub.f32 %v109_v46, %v113_v43  ;;  %306 = vrsqrt.f32 %v128_v48  ;;  %vm139_vm3 = vmor %vm137_vm2, %vm138_vm1  ;;  %vm147_vm5 = vweird.f32 %v128_v48 }
 0x114   :  { %v133_v52 = vmul.f32 %v305_v47, %v132_v49 }
 0x115   :  { %v122_v53 = vmax.f32 %v118_v50, 0.0  ;;  %v121_v54 = vmax.f32 %v117_v51, 0.0 }
 0x116   :  { %v134_v55 = vmul.f32 0.5, %v133_v52 }
 0x117   :  { %v130_v56 = vadd.f32 1e-05, %v122_v53  ;;  %v129_v57 = vadd.f32 1e-05, %v121_v54 }
 0x118   :  { %v135_v58 = vsub.f32 1.5, %v134_v55 }
 0x119   :  { %308 = vrsqrt.f32 %v130_v56  ;;  %v307_v59 = vpop.eup %306  ;;  %vm167_vm9 = vweird.f32 %v130_v56  ;;  %vm157_vm11 = vweird.f32 %v129_v57 }
 0x11a   :  { %310 = vrsqrt.f32 %v129_v57  ;;  %v136_v60 = vmul.f32 %v305_v47, %v135_v58  ;;  %v142_v61 = vmul.f32 %v307_v59, %v128_v48  ;;  %vm148_vm4 = vweird.f32 %v307_v59 }
 0x11b   :  { %vm149_vm6 = vmor %vm147_vm5, %vm148_vm4 }
 0x11c   :  { %v140_v0 = vsel %vm139_vm3, %v305_v47, %v136_v60  ;;  %v143_v1 = vmul.f32 %v307_v59, %v142_v61 }
 0x11d   :  { %v171_v3 = vmul.f32 %v140_v0, %v123_v62 }
 0x11e   :  { %v144_v5 = vmul.f32 0.5, %v143_v1 }
 0x11f   :  { %v309_v4 = vpop.eup %308  ;;  %v178_v7 = vmul.f32 %v302_v63, %v171_v3 }
 0x120   :  { %v311_v6 = vpop.eup %310  ;;  %v162_v8 = vmul.f32 %v309_v4, %v130_v56  ;;  %v145_v9 = vsub.f32 1.5, %v144_v5  ;;  %vm168_vm7 = vweird.f32 %v309_v4 }
 0x121   :  { %v152_v10 = vmul.f32 %v311_v6, %v129_v57  ;;  %v421_v11 = vadd.f32 %v303_v2, %v178_v7  ;;  %vm158_vm8 = vweird.f32 %v311_v6  ;;  %vm169_vm10 = vmor %vm167_vm9, %vm168_vm7 }
 0x122   :  { %v163_v12 = vmul.f32 %v309_v4, %v162_v8  ;;  %v146_v14 = vmul.f32 %v307_v59, %v145_v9  ;;  %vm159_vm12 = vmor %vm157_vm11, %vm158_vm8 }
 0x123   :  { %v153_v15 = vmul.f32 %v311_v6, %v152_v10  ;;  %v291_v16 = vmul.f32 -1.442695, %v421_v11 }
 0x124   :  { %v164_v20 = vmul.f32 0.5, %v163_v12  ;;  %v150_v21 = vsel %vm149_vm6, %v307_v59, %v146_v14 }
 0x125   :  { %v154_v22 = vmul.f32 0.5, %v153_v15  ;;  %312 = vpow2.f32 %v291_v16  ;;  %v172_v23 = vmul.f32 %v150_v21, %v124_v19 }
 0x126   :  { %v165_v24 = vsub.f32 1.5, %v164_v20 }
 0x127   :  { %v155_v25 = vsub.f32 1.5, %v154_v22  ;;  %v179_v26 = vmul.f32 %v302_v63, %v172_v23 }
 0x128   :  { %v166_v27 = vmul.f32 %v309_v4, %v165_v24 }
 0x129   :  { %v156_v29 = vmul.f32 %v311_v6, %v155_v25  ;;  %v430_v30 = vadd.f32 %v303_v2, %v179_v26 }
 0x12a   :  { %v170_v31 = vsel %vm169_vm10, %v309_v4, %v166_v27 }
 0x12b   :  { %v174_v32 = vmul.f32 %v170_v31, %v126_v28  ;;  %v160_v33 = vsel %vm159_vm12, %v311_v6, %v156_v29  ;;  %v313_v34 = vpop.eup %312  ;;  %v292_v35 = vmul.f32 -1.442695, %v430_v30 }
 0x12c   :  { %v173_v36 = vmul.f32 %v160_v33, %v125_v17  ;;  %v201_v39 = vadd.f32 1.0, %v313_v34 }
 0x12d   :  { %v181_v40 = vmul.f32 %v302_v63, %v174_v32  ;;  %314 = vpow2.f32 %v292_v35 }
 0x12e   :  { %v180_v18 = vmul.f32 %v302_v63, %v173_v36  ;;  %316 = vrcp.f32 %v201_v39  ;;  %v216_v47 = vand.u32 2147483648, %v201_v39  ;;  %v214_v50 = vand.u32 2147483647, %v201_v39 }
 0x12f   :  { %v433_v38 = vadd.f32 %v303_v2, %v181_v40  ;;  %vm210_vm14 = vweird.f32 %v201_v39 }
 0x130   :  { %v435_v41 = vadd.f32 %v303_v2, %v180_v18  ;;  %v217_v56 = vor.u32 1.1754944e-38, %v216_v47  ;;  %vm215_vm0 = vcmp.eq.f32.partialorder %v214_v50, 8.507059e+37 }
 0x131   :  { %v294_v13 = vmul.f32 -1.442695, %v433_v38 }
 0x132   :  { %v293_v37 = vmul.f32 -1.442695, %v435_v41 }
 0x133   :  { %v315_v42 = vpop.eup %314  ;;  %318 = vpow2.f32 %v294_v13 }
 0x134   :  { %v317_v43 = vpop.eup %316  ;;  %v202_v44 = vadd.f32 1.0, %v315_v42  ;;  %320 = vpow2.f32 %v293_v37 }
 0x135   :  { %v206_v45 = vmul.f32 %v317_v43, %v201_v39  ;;  %vm211_vm13 = vweird.f32 %v317_v43 }
 0x136   :  { %322 = vrcp.f32 %v202_v44  ;;  %vm212_vm15 = vmor %vm210_vm14, %vm211_vm13  ;;  %v231_v62 = vand.u32 2147483648, %v202_v44  ;;  %v229_v0 = vand.u32 2147483647, %v202_v44  ;;  %vm225_vm2 = vweird.f32 %v202_v44 }
 0x137   :  { %v207_v46 = vsub.f32 1.0, %v206_v45 }
 0x138   :  { %v232_v5 = vor.u32 1.1754944e-38, %v231_v62  ;;  %vm230_vm4 = vcmp.eq.f32.partialorder %v229_v0, 8.507059e+37 }
 0x139   :  { %v319_v48 = vpop.eup %318  ;;  %v208_v49 = vmul.f32 %v317_v43, %v207_v46 }
 0x13a   :  { %v321_v51 = vpop.eup %320  ;;  %v204_v52 = vadd.f32 1.0, %v319_v48 }
 0x13b   :  { %v209_v53 = vadd.f32 %v317_v43, %v208_v49  ;;  %v203_v54 = vadd.f32 1.0, %v321_v51 }
 0x13c   :  { %v323_v55 = vpop.eup %322  ;;  %324 = vrcp.f32 %v204_v52  ;;  %v259_v10 = vand.u32 2147483647, %v204_v52  ;;  %vm255_vm7 = vweird.f32 %v204_v52 }
 0x13d   :  { %v213_v57 = vsel %vm212_vm15, %v317_v43, %v209_v53  ;;  %v221_v58 = vmul.f32 %v323_v55, %v202_v44  ;;  %326 = vrcp.f32 %v203_v54  ;;  %vm226_vm1 = vweird.f32 %v323_v55 }
 0x13e   :  { %v218_v59 = vsel %vm215_vm0, %v217_v56, %v213_v57  ;;  %vm227_vm3 = vmor %vm225_vm2, %vm226_vm1  ;;  %v246_v16 = vand.u32 2147483648, %v203_v54  ;;  %v244_v20 = vand.u32 2147483647, %v203_v54  ;;  %vm240_vm9 = vweird.f32 %v203_v54 }
 0x13f   :  { %v265_v60 = vmul.f32 %v218_v59, %v421_v11  ;;  %v222_v61 = vsub.f32 1.0, %v221_v58  ;;  %v261_v11 = vand.u32 2147483648, %v204_v52  ;;  %vm260_vm10 = vcmp.eq.f32.partialorder %v259_v10, 8.507059e+37 }
 0x140   :  { %v247_v25 = vor.u32 1.1754944e-38, %v246_v16  ;;  %vm245_vm12 = vcmp.eq.f32.partialorder %v244_v20, 8.507059e+37 }
 0x141   :  { %269 = vst [vmem:[%s460_s5] sm:$0xff] %v265_v60  ;;  %v223_v63 = vmul.f32 %v323_v55, %v222_v61  ;;  %v262_v22 = vor.u32 1.1754944e-38, %v261_v11 }
 0x142   :  { %v325_v1 = vpop.eup %324 }
 0x143   :  { %v327_v2 = vpop.eup %326  ;;  %v224_v3 = vadd.f32 %v323_v55, %v223_v63  ;;  %v251_v4 = vmul.f32 %v325_v1, %v204_v52  ;;  %vm256_vm5 = vweird.f32 %v325_v1 }
 0x144   :  { %v236_v6 = vmul.f32 %v327_v2, %v203_v54  ;;  %vm241_vm6 = vweird.f32 %v327_v2  ;;  %vm257_vm8 = vmor %vm255_vm7, %vm256_vm5 }
 0x145   :  { %v228_v7 = vsel %vm227_vm3, %v323_v55, %v224_v3  ;;  %v252_v8 = vsub.f32 1.0, %v251_v4  ;;  %vm242_vm11 = vmor %vm240_vm9, %vm241_vm6 }
 0x146   :  { %v233_v9 = vsel %vm230_vm4, %v232_v5, %v228_v7  ;;  %v237_v12 = vsub.f32 1.0, %v236_v6 }
 0x147   :  { %v266_v14 = vmul.f32 %v233_v9, %v430_v30  ;;  %v253_v15 = vmul.f32 %v325_v1, %v252_v8 }
 0x148   :  { %v238_v19 = vmul.f32 %v327_v2, %v237_v12 }
 0x149   :  { %270 = vst [vmem:[%s460_s5 + $0x8] sm:$0xff] %v266_v14  ;;  %v254_v21 = vadd.f32 %v325_v1, %v253_v15 }
 0x14a   :  { %v239_v23 = vadd.f32 %v327_v2, %v238_v19 }
 0x14b   :  { %v258_v24 = vsel %vm257_vm8, %v325_v1, %v254_v21 }
 0x14c   :  { %v263_v26 = vsel %vm260_vm10, %v262_v22, %v258_v24  ;;  %v243_v27 = vsel %vm242_vm11, %v327_v2, %v239_v23 }
 0x14d   :  { %v268_v28 = vmul.f32 %v263_v26, %v433_v38  ;;  %v248_v29 = vsel %vm245_vm12, %v247_v25, %v243_v27 }
 0x14e   :  { %v267_v17 = vmul.f32 %v248_v29, %v435_v41 }
 0x14f   :  { %272 = vst [vmem:[%s460_s5 + $0x18] sm:$0xff] %v268_v28 }
 0x150   :  { %271 = vst [vmem:[%s460_s5 + $0x10] sm:$0xff] %v267_v17 }

// kernel: _lambda_.8
= control target key start
LH: loop header
LB: loop body
LE: loop exit
PB: predicated region body
PF: predicated region fallthrough
CT: control target
= control target key end

     0   :  { %vm125_vm0 = vcmask 523264   ;;  %s368_s1 = inlined_call_operand.vmem [shape: bf16[192,128], index: 1, kind: input, shape index: {}]   ;;  %s369_s0 = inlined_call_operand.vmem [shape: f32[8,192], index: 0, kind: input, shape index: {}]   ;;  %s370_s2 = inlined_call_operand.vmem [shape: f32[1,128], index: 2, kind: input, shape index: {}]   ;;  %s371_s3 = inlined_call_operand.vmem [shape: f32[1,128], index: 3, kind: input, shape index: {}]   ;;  %s372_s4 = inlined_call_operand.vmem [shape: f32[1,128], index: 4, kind: input, shape index: {}]   ;;  %s373_s5 = inlined_call_operand.vmem [shape: f32[8,128], index: 5, kind: output, shape index: {}]  }
   0x1   :  { %v270_v0 = vld [vmem:[%s368_s1 + $0x38] sm:$0xff]  ;;  %v269_v2 = vld [vmem:[%s368_s1 + $0x30] sm:$0xff]  ;;  %v268_v4 = vld [vmem:[%s368_s1 + $0x28] sm:$0xff] }
   0x2   :  { %v274_v1 = vld [vmem:[%s368_s1 + $0x58] sm:$0xff]  ;;  %129 = vmatpush.bf16.msra.mxu0 %v270_v0  ;;  %v273_v3 = vld [vmem:[%s368_s1 + $0x50] sm:$0xff]  ;;  %v272_v5 = vld [vmem:[%s368_s1 + $0x48] sm:$0xff] }
   0x3   :  { %146 = vmatpush.bf16.msra.mxu1 %v274_v1  ;;  %v267_v6 = vld [vmem:[%s368_s1 + $0x20] sm:$0xff]  ;;  %v22_v8 = vld [vmem:[%s369_s0 + $0x8] sm:$0xff]  ;;  %v266_v9 = vld [vmem:[%s368_s1 + $0x18] sm:$0xff] }
   0x4   :  { %v271_v7 = vld [vmem:[%s368_s1 + $0x40] sm:$0xff]  ;;  %v24_v10 = vpack.c.bf16 %v22_v8, %v22_v8  ;;  %v265_v11 = vld [vmem:[%s368_s1 + $0x10] sm:$0xff]  ;;  %v264_v12 = vld [vmem:[%s368_s1 + $0x8] sm:$0xff] }
   0x5   :  { %v263_v13 = vld [vmem:[%s368_s1] sm:$0xff] }
   0x6   :  { %130 = vmatpush.bf16.msra.mxu0 %v269_v2  ;;  %v21_v14 = vld [vmem:[%s369_s0] sm:$0xff] }
   0x7   :  { %147 = vmatpush.bf16.msra.mxu1 %v273_v3  ;;  %v23_v15 = vpack.c.bf16 %v21_v14, %v21_v14  ;;  %v275_v18 = vld [vmem:[%s370_s2] ss:$0 sm:$0xff] }
   0x8   :  { %v276_v39 = vld [vmem:[%s371_s3] ss:$0 sm:$0xff] }
   0x9   :  { %v277_v41 = vld [vmem:[%s372_s4] ss:$0 sm:$0xff] }
   0xa   :  { %131 = vmatpush.bf16.msra.mxu0 %v268_v4 }
   0xb   :  { %148 = vmatpush.bf16.msra.mxu1 %v272_v5 }
   0xe   :  { %132 = vmatpush.bf16.msra.mxu0 %v267_v6 }
   0xf   :  { %149 = vmatpush.bf16.msra.mxu1 %v271_v7 }
  0x12   :  { %133 = vmatpush.bf16.msra.mxu0 %v266_v9  ;;  %261 = vmatmul.msk.bf16.vlgmr.msra.gmra.mxu1 %vm125_vm0, %v24_v10 }
  0x16   :  { %134 = vmatpush.bf16.msra.mxu0 %v265_v11 }
  0x1a   :  { %135 = vmatpush.bf16.msra.mxu0 %v264_v12 }
  0x1e   :  { %136 = vmatpush.bf16.msra.mxu0 %v263_v13 }
  0x21   :  { %137 = vmatmul.bf16.vlgmr.msra.gmra.mxu0 %v23_v15 }
  0x8f   :  { %v151_v16 = vpop.f32.mrf.mxu1 }
  0x97   :  { %v153_v17 = vpop.f32.mrf.mxu1 }
  0x9e   :  { %v138_v19 = vpop.f32.mrf.mxu0 }
  0x9f   :  { %v139_v20 = vadd.f32 %v275_v18, %v138_v19 }
  0xa1   :  { %v152_v21 = vadd.f32 %v151_v16, %v139_v20 }
  0xa3   :  { %157 = vadd.xlane.f32.xlu0 %v152_v21  ;;  %v160_v23 = vmul.f32 %v152_v21, %v152_v21 }
  0xa6   :  { %v140_v22 = vpop.f32.mrf.mxu0 }
  0xab   :  { %161 = vadd.xlane.f32.xlu0 %v160_v23 }
 0x116   :  { %v158_v24 = vpop.xlane.xlu0 %157 }
 0x117   :  { %v159_v25 = vmul.f32 0.083333336, %v158_v24 }
 0x119   :  { %v164_v27 = vmul.f32 %v159_v25, %v159_v25  ;;  %v167_v38 = vsub.f32 %v152_v21, %v159_v25 }
 0x11e   :  { %v162_v26 = vpop.xlane.xlu0 %161 }
 0x11f   :  { %v163_v28 = vmul.f32 0.083333336, %v162_v26 }
 0x121   :  { %v165_v29 = vsub.f32 %v163_v28, %v164_v27 }
 0x123   :  { %v166_v30 = vmax.f32 %v165_v29, 0.0 }
 0x125   :  { %v168_v31 = vadd.f32 1e-05, %v166_v30 }
 0x127   :  { %278 = vrsqrt.f32 %v168_v31  ;;  %vm175_vm2 = vweird.f32 %v168_v31 }
 0x12d   :  { %v279_v32 = vpop.eup %278 }
 0x12e   :  { %v170_v33 = vmul.f32 %v279_v32, %v168_v31  ;;  %vm176_vm1 = vweird.f32 %v279_v32 }
 0x12f   :  { %vm177_vm3 = vmor %vm175_vm2, %vm176_vm1 }
 0x130   :  { %v171_v34 = vmul.f32 %v279_v32, %v170_v33 }
 0x132   :  { %v172_v35 = vmul.f32 0.5, %v171_v34 }
 0x134   :  { %v173_v36 = vsub.f32 1.5, %v172_v35 }
 0x136   :  { %v174_v37 = vmul.f32 %v279_v32, %v173_v36 }
 0x138   :  { %v178_v40 = vsel %vm177_vm3, %v279_v32, %v174_v37 }
 0x139   :  { %v179_v42 = vmul.f32 %v178_v40, %v167_v38 }
 0x13b   :  { %v183_v43 = vmul.f32 %v276_v39, %v179_v42 }
 0x13d   :  { %v187_v44 = vadd.f32 %v277_v41, %v183_v43 }
 0x13f   :  { %v262_v45 = vmul.f32 -1.442695, %v187_v44 }
 0x141   :  { %280 = vpow2.f32 %v262_v45 }
 0x147   :  { %v281_v46 = vpop.eup %280 }
 0x148   :  { %v191_v47 = vadd.f32 1.0, %v281_v46 }
 0x14a   :  { %282 = vrcp.f32 %v191_v47  ;;  %v203_v51 = vand.u32 2147483648, %v191_v47  ;;  %v201_v53 = vand.u32 2147483647, %v191_v47  ;;  %vm197_vm5 = vweird.f32 %v191_v47 }
 0x14c   :  { %v204_v55 = vor.u32 1.1754944e-38, %v203_v51  ;;  %vm202_vm7 = vcmp.eq.f32.partialorder %v201_v53, 8.507059e+37 }
 0x150   :  { %v283_v48 = vpop.eup %282 }
 0x151   :  { %v193_v49 = vmul.f32 %v283_v48, %v191_v47  ;;  %vm198_vm4 = vweird.f32 %v283_v48 }
 0x152   :  { %vm199_vm6 = vmor %vm197_vm5, %vm198_vm4 }
 0x153   :  { %v194_v50 = vsub.f32 1.0, %v193_v49 }
 0x155   :  { %v195_v52 = vmul.f32 %v283_v48, %v194_v50 }
 0x157   :  { %v196_v54 = vadd.f32 %v283_v48, %v195_v52 }
 0x159   :  { %v200_v56 = vsel %vm199_vm6, %v283_v48, %v196_v54 }
 0x15a   :  { %v205_v57 = vsel %vm202_vm7, %v204_v55, %v200_v56 }
 0x15b   :  { %v207_v58 = vmul.f32 %v205_v57, %v187_v44 }
 0x15d   :  { %208 = vst [vmem:[%s373_s5] sm:$0xff] %v207_v58 }

// kernel: _lambda_.9
= control target key start
LH: loop header
LB: loop body
LE: loop exit
PB: predicated region body
PF: predicated region fallthrough
CT: control target
= control target key end

     0   :  { %vm162_vm0 = vcmask 64512   ;;  %vm192_vm2 = vcmask 1041408   ;;  %vm204_vm4 = vcmask 1040384   ;;  %s2382_s1 = inlined_call_operand.vmem [shape: bf16[128,256], index: 1, kind: input, shape index: {}]   ;;  %s2383_s0 = inlined_call_operand.vmem [shape: f32[8,128], index: 0, kind: input, shape index: {}]   ;;  %s2384_s4 = inlined_call_operand.vmem [shape: f32[10,128], index: 4, kind: input, shape index: {}]   ;;  %s2385_s5 = inlined_call_operand.vmem [shape: bf16[128,1152], index: 5, kind: input, shape index: {}]   ;;  %s2386_s2 = inlined_call_operand.vmem [shape: f32[8,256], index: 2, kind: input, shape index: {}]   ;;  %s2387_s3 = inlined_call_operand.vmem [shape: f32[8,8], index: 3, kind: input, shape index: {}]   ;;  %s2388_s6 = inlined_call_operand.vmem [shape: bf16[128,128], index: 6, kind: input, shape index: {}]   ;;  %s2389_s7 = inlined_call_operand.vmem [shape: f32[2,128], index: 7, kind: input, shape index: {}]   ;;  %s2390_s8 = inlined_call_operand.vmem [shape: f32[8,128], index: 8, kind: output, shape index: {}]  }
   0x1   :  { %v1173_v0 = vld [vmem:[%s2382_s1 + $0x70] sm:$0xf]  ;;  %v1519_v1 = vld [vmem:[%s2382_s1 + $0x74] sm:$0xf0]  ;;  %v1165_v2 = vld [vmem:[%s2382_s1 + $0x60] sm:$0xf] }
   0x2   :  { %v1174_v3 = vor.u32 %v1519_v1, %v1173_v0  ;;  %v1517_v4 = vld [vmem:[%s2382_s1 + $0x64] sm:$0xf0]  ;;  %v1157_v6 = vld [vmem:[%s2382_s1 + $0x50] sm:$0xf]  ;;  %v1515_v7 = vld [vmem:[%s2382_s1 + $0x54] sm:$0xf0] }
   0x3   :  { %v1166_v5 = vor.u32 %v1517_v4, %v1165_v2  ;;  %v1158_v8 = vor.u32 %v1515_v7, %v1157_v6  ;;  %v1149_v9 = vld [vmem:[%s2382_s1 + $0x40] sm:$0xf]  ;;  %v1513_v10 = vld [vmem:[%s2382_s1 + $0x44] sm:$0xf0]  ;;  %v1141_v12 = vld [vmem:[%s2382_s1 + $0x30] sm:$0xf] }
   0x4   :  { %129 = vmatpush.bf16.msra.mxu0 %v1174_v3  ;;  %v1150_v11 = vor.u32 %v1513_v10, %v1149_v9  ;;  %v1511_v13 = vld [vmem:[%s2382_s1 + $0x34] sm:$0xf0]  ;;  %v1133_v15 = vld [vmem:[%s2382_s1 + $0x20] sm:$0xf]  ;;  %v1509_v16 = vld [vmem:[%s2382_s1 + $0x24] sm:$0xf0] }
   0x5   :  { %v1142_v14 = vor.u32 %v1511_v13, %v1141_v12  ;;  %v1134_v17 = vor.u32 %v1509_v16, %v1133_v15  ;;  %v1125_v18 = vld [vmem:[%s2382_s1 + $0x10] sm:$0xf]  ;;  %v1507_v19 = vld [vmem:[%s2382_s1 + $0x14] sm:$0xf0]  ;;  %v1117_v21 = vld [vmem:[%s2382_s1] sm:$0xf] }
   0x6   :  { %v1126_v20 = vor.u32 %v1507_v19, %v1125_v18  ;;  %v1505_v22 = vld [vmem:[%s2382_s1 + $0x4] sm:$0xf0]  ;;  %v29_v24 = vld [vmem:[%s2383_s0] sm:$0xff]  ;;  %v1518_v26 = vld [vmem:[%s2382_s1 + $0x74] sm:$0xf] }
   0x7   :  { %v1118_v23 = vor.u32 %v1505_v22, %v1117_v21  ;;  %v1734_v25 = vpack.c.bf16 %v29_v24, %v29_v24  ;;  %v1175_v27 = vld [vmem:[%s2382_s1 + $0x78] sm:$0xf0]  ;;  %v1516_v28 = vld [vmem:[%s2382_s1 + $0x64] sm:$0xf]  ;;  %v1167_v30 = vld [vmem:[%s2382_s1 + $0x68] sm:$0xf0] }
   0x8   :  { %130 = vmatpush.bf16.msra.mxu0 %v1166_v5  ;;  %v1178_v29 = vor.u32 %v1518_v26, %v1175_v27  ;;  %v1170_v31 = vor.u32 %v1516_v28, %v1167_v30  ;;  %v1435_v32 = vld [vmem:[%s2385_s5 + $0x1f8] sm:$0xf]  ;;  %v1587_v33 = vld [vmem:[%s2385_s5 + $0x218] sm:$0xf0]  ;;  %v1514_v34 = vld [vmem:[%s2382_s1 + $0x54] sm:$0xf] }
   0x9   :  { %v1159_v35 = vld [vmem:[%s2382_s1 + $0x58] sm:$0xf0]  ;;  %v1436_v36 = vor.u32 %v1587_v33, %v1435_v32  ;;  %v1399_v37 = vld [vmem:[%s2385_s5 + $0x1b0] sm:$0xf]  ;;  %v1578_v38 = vld [vmem:[%s2385_s5 + $0x1d0] sm:$0xf0] }
   0xa   :  { %142 = vmatpush.bf16.msra.mxu1 %v1178_v29  ;;  %v1400_v39 = vor.u32 %v1578_v38, %v1399_v37  ;;  %v1162_v40 = vor.u32 %v1514_v34, %v1159_v35  ;;  %v1363_v41 = vld [vmem:[%s2385_s5 + $0x168] sm:$0xf]  ;;  %v1569_v42 = vld [vmem:[%s2385_s5 + $0x188] sm:$0xf0]  ;;  %v1512_v43 = vld [vmem:[%s2382_s1 + $0x44] sm:$0xf] }
   0xb   :  { %690 = vmatpush.bf16.msra.mxu3 %v1436_v36  ;;  %v1151_v44 = vld [vmem:[%s2382_s1 + $0x48] sm:$0xf0]  ;;  %v1364_v45 = vor.u32 %v1569_v42, %v1363_v41  ;;  %v1510_v47 = vld [vmem:[%s2382_s1 + $0x34] sm:$0xf]  ;;  %v1143_v48 = vld [vmem:[%s2382_s1 + $0x38] sm:$0xf0] }
   0xc   :  { %131 = vmatpush.bf16.msra.mxu0 %v1158_v8  ;;  %v1154_v46 = vor.u32 %v1512_v43, %v1151_v44  ;;  %v1146_v49 = vor.u32 %v1510_v47, %v1143_v48  ;;  %v1508_v50 = vld [vmem:[%s2382_s1 + $0x24] sm:$0xf]  ;;  %v1135_v51 = vld [vmem:[%s2382_s1 + $0x28] sm:$0xf0]  ;;  %v1506_v53 = vld [vmem:[%s2382_s1 + $0x14] sm:$0xf] }
   0xd   :  { %v1138_v52 = vor.u32 %v1508_v50, %v1135_v51  ;;  %v1127_v54 = vld [vmem:[%s2382_s1 + $0x18] sm:$0xf0]  ;;  %v47_v55 = vld [vmem:[%s2386_s2] sm:$0xff]  ;;  %v1119_v62 = vld [vmem:[%s2382_s1 + $0x8] sm:$0xf0] }
   0xe   :  { %143 = vmatpush.bf16.msra.mxu1 %v1170_v31  ;;  %v1130_v56 = vor.u32 %v1506_v53, %v1127_v54  ;;  %v1805_v59 = vld [vmem:[%s2387_s3] sm:$0xff]  ;;  %v1583_v2 = vld [vmem:[%s2385_s5 + $0x1fc] sm:$0xf]  ;;  %v1445_v10 = vld [vmem:[%s2385_s5 + $0x224] sm:$0xf0]  ;;  %v155_v54 = vlaneseq }
   0xf   :  { %691 = vmatpush.bf16.msra.mxu3 %v1400_v39  ;;  %v1504_v61 = vld [vmem:[%s2382_s1 + $0x4] sm:$0xf]  ;;  %v1327_v63 = vld [vmem:[%s2385_s5 + $0x120] sm:$0xf]  ;;  %v1291_v12 = vld [vmem:[%s2385_s5 + $0xd8] sm:$0xf] }
  0x10   :  { %132 = vmatpush.bf16.msra.mxu0 %v1150_v11  ;;  %v1122_v0 = vor.u32 %v1504_v61, %v1119_v62  ;;  %v1560_v1 = vld [vmem:[%s2385_s5 + $0x140] sm:$0xf0]  ;;  %v1437_v3 = vld [vmem:[%s2385_s5 + $0x21c] sm:$0xf0]  ;;  %v1551_v13 = vld [vmem:[%s2385_s5 + $0xf8] sm:$0xf0] }
  0x11   :  { %v1328_v4 = vor.u32 %v1560_v1, %v1327_v63  ;;  %v1440_v5 = vor.u32 %v1583_v2, %v1437_v3  ;;  %v1443_v6 = vld [vmem:[%s2385_s5 + $0x200] sm:$0xf]  ;;  %v1588_v7 = vld [vmem:[%s2385_s5 + $0x220] sm:$0xf0]  ;;  %v1574_v15 = vld [vmem:[%s2385_s5 + $0x1b4] sm:$0xf] }
  0x12   :  { %144 = vmatpush.bf16.msra.mxu1 %v1162_v40  ;;  %v1444_v8 = vor.u32 %v1588_v7, %v1443_v6  ;;  %v1584_v9 = vld [vmem:[%s2385_s5 + $0x204] sm:$0xf]  ;;  %v1401_v16 = vld [vmem:[%s2385_s5 + $0x1d4] sm:$0xf0]  ;;  %v1579_v19 = vld [vmem:[%s2385_s5 + $0x1d8] sm:$0xf0] }
  0x13   :  { %692 = vmatpush.bf16.msra.mxu3 %v1364_v45  ;;  %v1448_v11 = vor.u32 %v1584_v9, %v1445_v10  ;;  %v1407_v18 = vld [vmem:[%s2385_s5 + $0x1b8] sm:$0xf]  ;;  %v1409_v22 = vld [vmem:[%s2385_s5 + $0x1dc] sm:$0xf0]  ;;  %v1542_v24 = vld [vmem:[%s2385_s5 + $0xb0] sm:$0xf0] }
  0x14   :  { %133 = vmatpush.bf16.msra.mxu0 %v1142_v14  ;;  %v1292_v14 = vor.u32 %v1551_v13, %v1291_v12  ;;  %v1408_v21 = vor.u32 %v1579_v19, %v1407_v18  ;;  %v1365_v28 = vld [vmem:[%s2385_s5 + $0x18c] sm:$0xf0]  ;;  %v1570_v31 = vld [vmem:[%s2385_s5 + $0x190] sm:$0xf0]  ;;  %v1373_v33 = vld [vmem:[%s2385_s5 + $0x194] sm:$0xf0] }
  0x15   :  { %v1371_v29 = vld [vmem:[%s2385_s5 + $0x170] sm:$0xf]  ;;  %v1566_v32 = vld [vmem:[%s2385_s5 + $0x174] sm:$0xf]  ;;  %v1219_v36 = vld [vmem:[%s2385_s5 + $0x48] sm:$0xf] }
  0x16   :  { %145 = vmatpush.bf16.msra.mxu1 %v1154_v46  ;;  %v1372_v34 = vor.u32 %v1570_v31, %v1371_v29  ;;  %v1376_v35 = vor.u32 %v1566_v32, %v1373_v33  ;;  %v1533_v37 = vld [vmem:[%s2385_s5 + $0x68] sm:$0xf0]  ;;  %v1556_v39 = vld [vmem:[%s2385_s5 + $0x124] sm:$0xf]  ;;  %v1329_v40 = vld [vmem:[%s2385_s5 + $0x144] sm:$0xf0] }
  0x17   :  { %693 = vmatpush.bf16.msra.mxu3 %v1328_v4  ;;  %v1220_v38 = vor.u32 %v1533_v37, %v1219_v36  ;;  %v1335_v41 = vld [vmem:[%s2385_s5 + $0x128] sm:$0xf]  ;;  %v1332_v42 = vor.u32 %v1556_v39, %v1329_v40  ;;  %v1561_v43 = vld [vmem:[%s2385_s5 + $0x148] sm:$0xf0]  ;;  %v1337_v45 = vld [vmem:[%s2385_s5 + $0x14c] sm:$0xf0] }
  0x18   :  { %134 = vmatpush.bf16.msra.mxu0 %v1134_v17  ;;  %v1404_v17 = vor.u32 %v1574_v15, %v1401_v16  ;;  %v1557_v44 = vld [vmem:[%s2385_s5 + $0x12c] sm:$0xf]  ;;  %v1336_v46 = vor.u32 %v1561_v43, %v1335_v41  ;;  %v1183_v48 = vld [vmem:[%s2385_s5] sm:$0xf]  ;;  %v1547_v51 = vld [vmem:[%s2385_s5 + $0xdc] sm:$0xf] }
  0x19   :  { %v1340_v47 = vor.u32 %v1557_v44, %v1337_v45  ;;  %v1299_v53 = vld [vmem:[%s2385_s5 + $0xe0] sm:$0xf]  ;;  %v1451_v63 = vld [vmem:[%s2385_s5 + $0x208] sm:$0xf]  ;;  %v159_v1 = vshrl.u32 %v155_v54, 7  ;;  %v1961_v10 = vand.u32 127, %v155_v54 }
  0x1a   :  { %146 = vmatpush.bf16.msra.mxu1 %v1146_v49  ;;  %v1524_v49 = vld [vmem:[%s2385_s5 + $0x20] sm:$0xf0]  ;;  %v1538_v3 = vld [vmem:[%s2385_s5 + $0x94] sm:$0xf]  ;;  %v1257_v4 = vld [vmem:[%s2385_s5 + $0xb4] sm:$0xf0] }
  0x1b   :  { %694 = vmatpush.bf16.msra.mxu3 %v1292_v14  ;;  %v1184_v50 = vor.u32 %v1524_v49, %v1183_v48  ;;  %v1260_v6 = vor.u32 %v1538_v3, %v1257_v4  ;;  %v1543_v7 = vld [vmem:[%s2385_s5 + $0xb8] sm:$0xf0]  ;;  %v1265_v9 = vld [vmem:[%s2385_s5 + $0xbc] sm:$0xf0]  ;;  %v1580_v14 = vld [vmem:[%s2385_s5 + $0x1e0] sm:$0xf0] }
  0x1c   :  { %135 = vmatpush.bf16.msra.mxu0 %v1126_v20  ;;  %v1575_v20 = vld [vmem:[%s2385_s5 + $0x1bc] sm:$0xf]  ;;  %v1415_v13 = vld [vmem:[%s2385_s5 + $0x1c0] sm:$0xf]  ;;  %v160_v15 = vand.u32 3, %v159_v1  ;;  %vm157_vm1 = vcmp.lt.s32.totalorder %v1961_v10, 32 }
  0x1d   :  { %v1412_v26 = vor.u32 %v1575_v20, %v1409_v22  ;;  %v1416_v16 = vor.u32 %v1580_v14, %v1415_v13  ;;  %v1221_v18 = vld [vmem:[%s2385_s5 + $0x6c] sm:$0xf0]  ;;  %v1530_v22 = vld [vmem:[%s2385_s5 + $0x54] sm:$0xf]  ;;  %v1520_v31 = vld [vmem:[%s2385_s5 + $0x4] sm:$0xf] }
  0x1e   :  { %147 = vmatpush.bf16.msra.mxu1 %v1138_v52  ;;  %v1293_v52 = vld [vmem:[%s2385_s5 + $0xfc] sm:$0xf0]  ;;  %v1227_v19 = vld [vmem:[%s2385_s5 + $0x50] sm:$0xf]  ;;  %vm1994_vm3 = vcmp.ge.s32.totalorder %v160_v15, 2  ;;  %vm1998_vm5 = vcmp.ge.s32.totalorder %v160_v15, 1 }
  0x1f   :  { %v1185_v32 = vld [vmem:[%s2385_s5 + $0x24] sm:$0xf0]  ;;  %v1521_v36 = vld [vmem:[%s2385_s5 + $0xc] sm:$0xf]  ;;  %v1193_v37 = vld [vmem:[%s2385_s5 + $0x2c] sm:$0xf0] }
  0x20   :  { %136 = vmatpush.bf16.msra.mxu0 %v1118_v23  ;;  %v1255_v23 = vld [vmem:[%s2385_s5 + $0x90] sm:$0xf]  ;;  %v1191_v33 = vld [vmem:[%s2385_s5 + $0x8] sm:$0xf]  ;;  %v1196_v39 = vor.u32 %v1521_v36, %v1193_v37  ;;  %v1562_v41 = vld [vmem:[%s2385_s5 + $0x150] sm:$0xf0] }
  0x21   :  { %v1256_v27 = vor.u32 %v1542_v24, %v1255_v23  ;;  %v1229_v23 = vld [vmem:[%s2385_s5 + $0x74] sm:$0xf0]  ;;  %v1343_v40 = vld [vmem:[%s2385_s5 + $0x130] sm:$0xf]  ;;  %v1586_v49 = vld [vmem:[%s2385_s5 + $0x214] sm:$0xf] }
  0x22   :  { %148 = vmatpush.bf16.msra.mxu1 %v1130_v56  ;;  %v1552_v56 = vld [vmem:[%s2385_s5 + $0x100] sm:$0xf0]  ;;  %v1344_v43 = vor.u32 %v1562_v41, %v1343_v40  ;;  %v1453_v44 = vld [vmem:[%s2385_s5 + $0x22c] sm:$0xf0]  ;;  %v1577_v1 = vld [vmem:[%s2385_s5 + $0x1cc] sm:$0xf] }
  0x23   :  { %137 = vmatmul.bf16.vlgmr.msra.gmra.mxu0 %v1734_v25  ;;  %695 = vmatpush.bf16.msra.mxu3 %v1256_v27  ;;  %v1300_v61 = vor.u32 %v1552_v56, %v1299_v53  ;;  %v1379_v27 = vld [vmem:[%s2385_s5 + $0x178] sm:$0xf]  ;;  %v1459_v45 = vld [vmem:[%s2385_s5 + $0x210] sm:$0xf]  ;;  %v1600_v53 = vld [vmem:[%s2384_s4] ss:$0 sm:$0xff] }
  0x24   :  { %716 = vmatpush.bf16.msrb.mxu0 %v1444_v8  ;;  %v1539_v8 = vld [vmem:[%s2385_s5 + $0x9c] sm:$0xf]  ;;  %v1576_v56 = vld [vmem:[%s2385_s5 + $0x1c4] sm:$0xf]  ;;  %v1381_v15 = vld [vmem:[%s2385_s5 + $0x19c] sm:$0xf0] }
  0x25   :  { %v1268_v12 = vor.u32 %v1539_v8, %v1265_v9  ;;  %v1271_v8 = vld [vmem:[%s2385_s5 + $0xa0] sm:$0xf]  ;;  %v1544_v9 = vld [vmem:[%s2385_s5 + $0xc0] sm:$0xf0]  ;;  %v1567_v14 = vld [vmem:[%s2385_s5 + $0x17c] sm:$0xf] }
  0x26   :  { %149 = vmatpush.bf16.msra.mxu1 %v1122_v0  ;;  %v1589_v0 = vld [vmem:[%s2385_s5 + $0x228] sm:$0xf0]  ;;  %v1272_v13 = vor.u32 %v1544_v9, %v1271_v8  ;;  %v1345_v36 = vld [vmem:[%s2385_s5 + $0x154] sm:$0xf0]  ;;  %v1559_v40 = vld [vmem:[%s2385_s5 + $0x13c] sm:$0xf] }
  0x27   :  { %696 = vmatpush.bf16.msra.mxu3 %v1220_v38  ;;  %v1452_v2 = vor.u32 %v1589_v0, %v1451_v63  ;;  %v1423_v63 = vld [vmem:[%s2385_s5 + $0x1c8] sm:$0xf]  ;;  %v1581_v0 = vld [vmem:[%s2385_s5 + $0x1e8] sm:$0xf0]  ;;  %v1351_v37 = vld [vmem:[%s2385_s5 + $0x138] sm:$0xf] }
  0x28   :  { %717 = vmatpush.bf16.msrb.mxu0 %v1408_v21  ;;  %v1534_v21 = vld [vmem:[%s2385_s5 + $0x70] sm:$0xf0]  ;;  %v1424_v4 = vor.u32 %v1581_v0, %v1423_v63  ;;  %v1353_v41 = vld [vmem:[%s2385_s5 + $0x15c] sm:$0xf0]  ;;  %v1279_v63 = vld [vmem:[%s2385_s5 + $0xa8] sm:$0xf] }
  0x29   :  { %150 = vmatmul.bf16.vlgmr.msra.gmra.mxu1 %v1734_v25  ;;  %v1565_v25 = vld [vmem:[%s2385_s5 + $0x16c] sm:$0xf]  ;;  %v1228_v24 = vor.u32 %v1534_v21, %v1227_v19  ;;  %v1387_v19 = vld [vmem:[%s2385_s5 + $0x180] sm:$0xf]  ;;  %v1536_v9 = vld [vmem:[%s2385_s5 + $0x80] sm:$0xf0] }
  0x2a   :  { %729 = vmatpush.bf16.msrb.mxu1 %v1448_v11  ;;  %v1368_v30 = vor.u32 %v1565_v25, %v1365_v28  ;;  %v1571_v25 = vld [vmem:[%s2385_s5 + $0x198] sm:$0xf0]  ;;  %v1593_v28 = vld [vmem:[%s2388_s6 + $0x8] sm:$0xff] }
  0x2b   :  { %697 = vmatpush.bf16.msra.mxu3 %v1184_v50  ;;  %v1461_v50 = vld [vmem:[%s2385_s5 + $0x234] sm:$0xf0] }
  0x2c   :  { %718 = vmatpush.bf16.msrb.mxu0 %v1372_v34  ;;  %v1188_v34 = vor.u32 %v1520_v31, %v1185_v32  ;;  %v1464_v54 = vor.u32 %v1586_v49, %v1461_v50  ;;  %v1535_v31 = vld [vmem:[%s2385_s5 + $0x78] sm:$0xf0]  ;;  %v1549_v49 = vld [vmem:[%s2385_s5 + $0xec] sm:$0xf]  ;;  %v1309_v50 = vld [vmem:[%s2385_s5 + $0x10c] sm:$0xf0] }
  0x2e   :  { %730 = vmatpush.bf16.msrb.mxu1 %v1412_v26  ;;  %v1232_v26 = vor.u32 %v1530_v22, %v1229_v23 }
  0x2f   :  { %742 = vmatpush.bf16.msrb.mxu3 %v1452_v2 }
  0x30   :  { %719 = vmatpush.bf16.msrb.mxu0 %v1336_v46  ;;  %v1590_v46 = vld [vmem:[%s2385_s5 + $0x230] sm:$0xf0] }
  0x31   :  { %v1460_v48 = vor.u32 %v1590_v46, %v1459_v45  ;;  %v1199_v46 = vld [vmem:[%s2385_s5 + $0x10] sm:$0xf] }
  0x32   :  { %731 = vmatpush.bf16.msrb.mxu1 %v1376_v35  ;;  %v1525_v35 = vld [vmem:[%s2385_s5 + $0x28] sm:$0xf0] }
  0x33   :  { %743 = vmatpush.bf16.msrb.mxu3 %v1416_v16  ;;  %v1192_v38 = vor.u32 %v1525_v35, %v1191_v33  ;;  %v1558_v35 = vld [vmem:[%s2385_s5 + $0x134] sm:$0xf] }
  0x34   :  { %720 = vmatpush.bf16.msrb.mxu0 %v1300_v61 }
  0x36   :  { %732 = vmatpush.bf16.msrb.mxu1 %v1340_v47 }
  0xa0   :  { %v138_v57 = vpop.f32.mrf.mxu0 }
  0xa1   :  { %v1800_v58 = vadd.f32 %v138_v57, %v47_v55  ;;  %v1296_v55 = vor.u32 %v1547_v51, %v1293_v52  ;;  %v1548_v57 = vld [vmem:[%s2385_s5 + $0xe4] sm:$0xf]  ;;  %v1307_v51 = vld [vmem:[%s2385_s5 + $0xe8] sm:$0xf] }
  0xa3   :  { %181 = vmatpush.msra.mxu2 %v1800_v58 }
  0xa4   :  { %1179 = vmatmul.msk.f32.vlgmr.msra.gmra.mxu2 %vm162_vm0, %v1805_v59 }
  0xa5   :  { %703 = vmatpush.bf16.msrb.mxu2 %v1440_v5  ;;  %v1263_v5 = vld [vmem:[%s2385_s5 + $0x98] sm:$0xf] }
  0xa6   :  { %v1264_v11 = vor.u32 %v1543_v7, %v1263_v5  ;;  %v1425_v5 = vld [vmem:[%s2385_s5 + $0x1ec] sm:$0xf0] }
  0xa7   :  { %v1428_v7 = vor.u32 %v1577_v1, %v1425_v5  ;;  %v1545_v1 = vld [vmem:[%s2385_s5 + $0xc8] sm:$0xf0]  ;;  %v1531_v5 = vld [vmem:[%s2385_s5 + $0x5c] sm:$0xf] }
  0xa8   :  { %v140_v60 = vpop.f32.mrf.mxu0  ;;  %721 = vmatpush.bf16.msrb.mxu0 %v1264_v11 }
  0xa9   :  { %704 = vmatpush.bf16.msrb.mxu2 %v1404_v17  ;;  %v1301_v60 = vld [vmem:[%s2385_s5 + $0x104] sm:$0xf0]  ;;  %v1529_v17 = vld [vmem:[%s2385_s5 + $0x4c] sm:$0xf] }
  0xaa   :  { %v1304_v62 = vor.u32 %v1548_v57, %v1301_v60  ;;  %v1224_v20 = vor.u32 %v1529_v17, %v1221_v18  ;;  %v1417_v57 = vld [vmem:[%s2385_s5 + $0x1e4] sm:$0xf0]  ;;  %v1384_v18 = vor.u32 %v1567_v14, %v1381_v15 }
  0xac   :  { %733 = vmatpush.bf16.msrb.mxu1 %v1304_v62  ;;  %722 = vmatpush.bf16.msrb.mxu0 %v1228_v24  ;;  %v1420_v62 = vor.u32 %v1576_v56, %v1417_v57  ;;  %v1568_v24 = vld [vmem:[%s2385_s5 + $0x184] sm:$0xf]  ;;  %v1317_v57 = vld [vmem:[%s2385_s5 + $0x114] sm:$0xf0] }
  0xad   :  { %705 = vmatpush.bf16.msrb.mxu2 %v1368_v30  ;;  %v1380_v30 = vor.u32 %v1571_v25, %v1379_v27  ;;  %v1603_v27 = vld [vmem:[%s2384_s4 + $0x3] ss:$0 sm:$0xff] }
  0xaf   :  { %744 = vmatpush.bf16.msrb.mxu3 %v1380_v30  ;;  %v1235_v30 = vld [vmem:[%s2385_s5 + $0x58] sm:$0xf] }
  0xb0   :  { %734 = vmatpush.bf16.msrb.mxu1 %v1268_v12  ;;  %723 = vmatpush.bf16.msrb.mxu0 %v1192_v38  ;;  %v1348_v38 = vor.u32 %v1558_v35, %v1345_v36 }
  0xb1   :  { %706 = vmatpush.bf16.msrb.mxu2 %v1332_v42  ;;  %v1585_v42 = vld [vmem:[%s2385_s5 + $0x20c] sm:$0xf] }
  0xb2   :  { %v1456_v47 = vor.u32 %v1585_v42, %v1453_v44  ;;  %v1356_v44 = vor.u32 %v1559_v40, %v1353_v41 }
  0xb3   :  { %745 = vmatpush.bf16.msrb.mxu3 %v1344_v43 }
  0xb4   :  { %735 = vmatpush.bf16.msrb.mxu1 %v1232_v26  ;;  %768 = vmatpush.bf16.msra.mxu0 %v1460_v48  ;;  %v1389_v26 = vld [vmem:[%s2385_s5 + $0x1a4] sm:$0xf0] }
  0xb5   :  { %707 = vmatpush.bf16.msrb.mxu2 %v1296_v55  ;;  %v1553_v55 = vld [vmem:[%s2385_s5 + $0x108] sm:$0xf0]  ;;  %v1392_v25 = vor.u32 %v1568_v24, %v1389_v26  ;;  %v1209_v24 = vld [vmem:[%s2385_s5 + $0x3c] sm:$0xf0] }
  0xb6   :  { %v1308_v61 = vor.u32 %v1553_v55, %v1307_v51  ;;  %v1315_v51 = vld [vmem:[%s2385_s5 + $0xf0] sm:$0xf]  ;;  %v1550_v55 = vld [vmem:[%s2385_s5 + $0xf4] sm:$0xf] }
  0xb8   :  { %736 = vmatpush.bf16.msrb.mxu1 %v1196_v39  ;;  %746 = vmatpush.bf16.msrb.mxu3 %v1308_v61  ;;  %v1563_v39 = vld [vmem:[%s2385_s5 + $0x158] sm:$0xf0]  ;;  %v1540_v61 = vld [vmem:[%s2385_s5 + $0xa4] sm:$0xf] }
  0xb9   :  { %708 = vmatpush.bf16.msrb.mxu2 %v1260_v6  ;;  %v1602_v6 = vld [vmem:[%s2384_s4 + $0x2] ss:$0 sm:$0xff]  ;;  %769 = vmatpush.bf16.msra.mxu0 %v1424_v4  ;;  %v1352_v43 = vor.u32 %v1563_v39, %v1351_v37  ;;  %v1591_v39 = vld [vmem:[%s2385_s5 + $0x238] sm:$0xf0] }
  0xbc   :  { %781 = vmatpush.bf16.msra.mxu1 %v1464_v54  ;;  %747 = vmatpush.bf16.msrb.mxu3 %v1272_v13  ;;  %v1554_v54 = vld [vmem:[%s2385_s5 + $0x110] sm:$0xf0] }
  0xbd   :  { %709 = vmatpush.bf16.msrb.mxu2 %v1224_v20  ;;  %v1572_v20 = vld [vmem:[%s2385_s5 + $0x1a0] sm:$0xf0]  ;;  %v1316_v56 = vor.u32 %v1554_v54, %v1315_v51 }
  0xbe   :  { %v1388_v23 = vor.u32 %v1572_v20, %v1387_v19  ;;  %v1207_v19 = vld [vmem:[%s2385_s5 + $0x18] sm:$0xf]  ;;  %v1527_v20 = vld [vmem:[%s2385_s5 + $0x38] sm:$0xf0] }
  0xc0   :  { %782 = vmatpush.bf16.msra.mxu1 %v1428_v7  ;;  %770 = vmatpush.bf16.msra.mxu0 %v1388_v23  ;;  %v1243_v7 = vld [vmem:[%s2385_s5 + $0x60] sm:$0xf]  ;;  %v1523_v23 = vld [vmem:[%s2385_s5 + $0x1c] sm:$0xf] }
  0xc1   :  { %710 = vmatpush.bf16.msrb.mxu2 %v1188_v34  ;;  %v1236_v34 = vor.u32 %v1535_v31, %v1235_v30  ;;  %v1244_v14 = vor.u32 %v1536_v9, %v1243_v7  ;;  %v1212_v26 = vor.u32 %v1523_v23, %v1209_v24 }
  0xc3   :  { %748 = vmatpush.bf16.msrb.mxu3 %v1236_v34 }
  0xc4   :  { %783 = vmatpush.bf16.msra.mxu1 %v1392_v25  ;;  %771 = vmatpush.bf16.msra.mxu0 %v1352_v43  ;;  %v1431_v43 = vld [vmem:[%s2385_s5 + $0x1d0] sm:$0xf] }
  0xc5   :  { %755 = vmatpush.bf16.msra.mxu2 %v1456_v47  ;;  %v1526_v47 = vld [vmem:[%s2385_s5 + $0x30] sm:$0xf0] }
  0xc6   :  { %v1200_v48 = vor.u32 %v1526_v47, %v1199_v46  ;;  %v1573_v47 = vld [vmem:[%s2385_s5 + $0x1a8] sm:$0xf0] }
  0xc8   :  { %784 = vmatpush.bf16.msra.mxu1 %v1356_v44  ;;  %749 = vmatpush.bf16.msrb.mxu3 %v1200_v48  ;;  %v1582_v44 = vld [vmem:[%s2385_s5 + $0x1f0] sm:$0xf0] }
  0xc9   :  { %756 = vmatpush.bf16.msra.mxu2 %v1420_v62  ;;  %v1273_v62 = vld [vmem:[%s2385_s5 + $0xc4] sm:$0xf0]  ;;  %772 = vmatpush.bf16.msra.mxu0 %v1316_v56  ;;  %v1432_v46 = vor.u32 %v1582_v44, %v1431_v43  ;;  %v1546_v56 = vld [vmem:[%s2385_s5 + $0xd0] sm:$0xf0] }
  0xca   :  { %v1276_v0 = vor.u32 %v1540_v61, %v1273_v62  ;;  %v1537_v61 = vld [vmem:[%s2385_s5 + $0x88] sm:$0xf0] }
  0xcd   :  { %757 = vmatpush.bf16.msra.mxu2 %v1384_v18  ;;  %v1201_v18 = vld [vmem:[%s2385_s5 + $0x34] sm:$0xf0] }
  0xd1   :  { %758 = vmatpush.bf16.msra.mxu2 %v1348_v38  ;;  %v1467_v38 = vld [vmem:[%s2385_s5 + $0x218] sm:$0xf] }
 0x127   :  { %v183_v52 = vpop.f32.mrf.mxu2 }
 0x128   :  { %v188_v60 = vsel %vm157_vm1, %v1800_v58, %v183_v52  ;;  %v1601_v58 = vld [vmem:[%s2384_s4 + $0x1] ss:$0 sm:$0xff] }
 0x129   :  { %v190_v2 = vrot.slane %v188_v60, 6  ;;  %v202_v3 = vrot.slane %v188_v60, 7  ;;  %v216_v33 = vmul.f32 %v1602_v6, %v188_v60  ;;  %v1320_v60 = vor.u32 %v1550_v55, %v1317_v57  ;;  %v1237_v6 = vld [vmem:[%s2385_s5 + $0x7c] sm:$0xf0]  ;;  %v1287_v55 = vld [vmem:[%s2385_s5 + $0xb0] sm:$0xf] }
 0x12a   :  { %v1240_v8 = vor.u32 %v1531_v5, %v1237_v6  ;;  %v1288_v57 = vor.u32 %v1546_v56, %v1287_v55  ;;  %v1604_v5 = vld [vmem:[%s2384_s4 + $0x4] ss:$0 sm:$0xff] }
 0x12b   :  { %v193_v11 = vsel %vm192_vm2, 0.0, %v190_v2  ;;  %v205_v12 = vsel %vm204_vm4, 0.0, %v202_v3  ;;  %v1541_v2 = vld [vmem:[%s2385_s5 + $0xac] sm:$0xf]  ;;  %v1281_v3 = vld [vmem:[%s2385_s5 + $0xcc] sm:$0xf0]  ;;  %785 = vmatpush.bf16.msra.mxu1 %v1320_v60 }
 0x12c   :  { %v197_v16 = vsel %vm1994_vm3, %v193_v11, 0.0  ;;  %v209_v17 = vsel %vm1998_vm5, %v205_v12, 0.0  ;;  %v1284_v4 = vor.u32 %v1541_v2, %v1281_v3  ;;  %v1532_v11 = vld [vmem:[%s2385_s5 + $0x64] sm:$0xf]  ;;  %v1245_v12 = vld [vmem:[%s2385_s5 + $0x84] sm:$0xf0]  ;;  %v2271_v2 = vpop.f32.mrf.mxu1 }
 0x12d   :  { %v200_v21 = vmul.f32 %v1600_v53, %v197_v16  ;;  %v212_v22 = vmul.f32 %v1601_v58, %v209_v17  ;;  %v1312_v53 = vor.u32 %v1549_v49, %v1309_v50  ;;  %v1280_v58 = vor.u32 %v1545_v1, %v1279_v63  ;;  %v1522_v17 = vld [vmem:[%s2385_s5 + $0x14] sm:$0xf]  ;;  %v1359_v49 = vld [vmem:[%s2385_s5 + $0x140] sm:$0xf]  ;;  %v1564_v50 = vld [vmem:[%s2385_s5 + $0x160] sm:$0xf0] }
 0x12e   :  { %v1248_v15 = vor.u32 %v1532_v11, %v1245_v12  ;;  %v1360_v51 = vor.u32 %v1564_v50, %v1359_v49  ;;  %v1251_v60 = vld [vmem:[%s2385_s5 + $0x68] sm:$0xf]  ;;  %v1215_v63 = vld [vmem:[%s2385_s5 + $0x20] sm:$0xf] }
 0x12f   :  { %v213_v32 = vadd.f32 %v212_v22, %v200_v21  ;;  %759 = vmatpush.bf16.msra.mxu2 %v1312_v53  ;;  %773 = vmatpush.bf16.msra.mxu0 %v1280_v58  ;;  %v1204_v21 = vor.u32 %v1522_v17, %v1201_v18  ;;  %v1208_v22 = vor.u32 %v1527_v20, %v1207_v19  ;;  %v1555_v53 = vld [vmem:[%s2385_s5 + $0x118] sm:$0xf0] }
 0x130   :  { %786 = vmatpush.bf16.msra.mxu1 %v1284_v4  ;;  %v1252_v62 = vor.u32 %v1537_v61, %v1251_v60  ;;  %v1598_v60 = vld [vmem:[%s2388_s6 + $0x30] sm:$0xff] }
 0x131   :  { %v217_v42 = vadd.f32 %v216_v33, %v213_v32 }
 0x133   :  { %v2137_v45 = vadd.f32 %v1603_v27, %v217_v42  ;;  %760 = vmatpush.bf16.msra.mxu2 %v1276_v0  ;;  %774 = vmatpush.bf16.msra.mxu0 %v1244_v14  ;;  %v1468_v42 = vor.u32 %v1591_v39, %v1467_v38  ;;  %v1528_v0 = vld [vmem:[%s2385_s5 + $0x40] sm:$0xf0] }
 0x134   :  { %787 = vmatpush.bf16.msra.mxu1 %v1248_v15  ;;  %v1216_v1 = vor.u32 %v1528_v0, %v1215_v63  ;;  %v153_v3 = vpop.f32.mrf.mxu1 }
 0x135   :  { %v1180_v52 = vmul.f32 -1.442695, %v2137_v45 }
 0x137   :  { %1612 = vpow2.f32 %v1180_v52  ;;  %761 = vmatpush.bf16.msra.mxu2 %v1240_v8  ;;  %775 = vmatpush.bf16.msra.mxu0 %v1208_v22  ;;  %v1323_v52 = vld [vmem:[%s2385_s5 + $0xf8] sm:$0xf] }
 0x138   :  { %788 = vmatpush.bf16.msra.mxu1 %v1212_v26  ;;  %v1324_v54 = vor.u32 %v1555_v53, %v1323_v52  ;;  %v1599_v53 = vld [vmem:[%s2388_s6 + $0x38] sm:$0xff] }
 0x13b   :  { %762 = vmatpush.bf16.msra.mxu2 %v1204_v21 }
 0x13d   :  { %v1613_v13 = vpop.eup %1612 }
 0x13e   :  { %v224_v16 = vadd.f32 1.0, %v1613_v13 }
 0x140   :  { %1614 = vrcp.f32 %v224_v16  ;;  %v236_v31 = vand.u32 2147483648, %v224_v16  ;;  %v234_v33 = vand.u32 2147483647, %v224_v16  ;;  %vm230_vm7 = vweird.f32 %v224_v16 }
 0x142   :  { %v237_v35 = vor.u32 1.1754944e-38, %v236_v31  ;;  %vm235_vm9 = vcmp.eq.f32.partialorder %v234_v33, 8.507059e+37  ;;  %v1606_v31 = vld [vmem:[%s2384_s4 + $0x7] ss:$0 sm:$0xff] }
 0x146   :  { %v1615_v27 = vpop.eup %1614 }
 0x147   :  { %v226_v25 = vmul.f32 %v1615_v27, %v224_v16  ;;  %vm231_vm6 = vweird.f32 %v1615_v27 }
 0x148   :  { %vm232_vm8 = vmor %vm230_vm7, %vm231_vm6 }
 0x149   :  { %v227_v30 = vsub.f32 1.0, %v226_v25 }
 0x14b   :  { %v228_v32 = vmul.f32 %v1615_v27, %v227_v30  ;;  %v1605_v30 = vld [vmem:[%s2384_s4 + $0x6] ss:$0 sm:$0xff] }
 0x14d   :  { %v229_v34 = vadd.f32 %v1615_v27, %v228_v32 }
 0x14f   :  { %v233_v36 = vsel %vm232_vm8, %v1615_v27, %v229_v34  ;;  %v1607_v34 = vld [vmem:[%s2384_s4 + $0x8] ss:$0 sm:$0xff] }
 0x150   :  { %v238_v37 = vsel %vm235_vm9, %v237_v35, %v233_v36  ;;  %v1608_v35 = vld [vmem:[%s2384_s4 + $0x9] ss:$0 sm:$0xff] }
 0x151   :  { %v2225_v40 = vmul.f32 %v238_v37, %v2137_v45  ;;  %v1395_v45 = vld [vmem:[%s2385_s5 + $0x188] sm:$0xf] }
 0x152   :  { %v1396_v48 = vor.u32 %v1573_v47, %v1395_v45 }
 0x153   :  { %v241_v41 = vpack.c.bf16 %v2225_v40, %v2225_v40 }
 0x155   :  { %698 = vmatmul.bf16.vlgmr.msra.gmra.mxu3 %v241_v41  ;;  %711 = vmatmul.bf16.vlgmr.msrb.gmra.mxu2 %v241_v41 }
 0x156   :  { %724 = vmatmul.bf16.vlgmr.msrb.gmra.mxu0 %v241_v41  ;;  %737 = vmatmul.bf16.vlgmr.msrb.gmra.mxu1 %v241_v41 }
 0x157   :  { %794 = vmatpush.bf16.msra.mxu3 %v1468_v42  ;;  %1047 = vmatpush.bf16.msrb.mxu2 %v1599_v53 }
 0x15b   :  { %795 = vmatpush.bf16.msra.mxu3 %v1432_v46  ;;  %1048 = vmatpush.bf16.msrb.mxu2 %v1598_v60 }
 0x15f   :  { %796 = vmatpush.bf16.msra.mxu3 %v1396_v48 }
 0x163   :  { %797 = vmatpush.bf16.msra.mxu3 %v1360_v51 }
 0x165   :  { %750 = vmatmul.bf16.vlgmr.msrb.gmra.mxu3 %v241_v41  ;;  %763 = vmatmul.bf16.vlgmr.msra.gmra.mxu2 %v241_v41 }
 0x166   :  { %776 = vmatmul.bf16.vlgmr.msra.gmra.mxu0 %v241_v41  ;;  %789 = vmatmul.bf16.vlgmr.msra.gmra.mxu1 %v241_v41 }
 0x167   :  { %798 = vmatpush.bf16.msra.mxu3 %v1324_v54 }
 0x16b   :  { %799 = vmatpush.bf16.msra.mxu3 %v1288_v57 }
 0x16f   :  { %800 = vmatpush.bf16.msra.mxu3 %v1252_v62 }
 0x173   :  { %801 = vmatpush.bf16.msra.mxu3 %v1216_v1 }
 0x176   :  { %802 = vmatmul.bf16.vlgmr.msra.gmra.mxu3 %v241_v41 }
 0x1d3   :  { %v725_v58 = vpop.f32.mrf.mxu0  ;;  %v738_v4 = vpop.f32.mrf.mxu1 }
 0x1d8   :  { %v699_v6 = vpop.f32.mrf.mxu3  ;;  %v712_v7 = vpop.f32.mrf.mxu2 }
 0x1d9   :  { %v809_v8 = vadd.f32 %v1604_v5, %v699_v6 }
 0x1db   :  { %v811_v9 = vmin.f32 %v809_v8, 20.0  ;;  %v727_v11 = vpop.f32.mrf.mxu0  ;;  %v740_v12 = vpop.f32.mrf.mxu1  ;;  %vm810_vm11 = vcmp.gt.f32.partialorder %v809_v8, 20.0 }
 0x1dd   :  { %v812_v13 = vmul.f32 1.442695, %v811_v9 }
 0x1df   :  { %1616 = vpow2.f32 %v812_v13 }
 0x1e0   :  { %v701_v14 = vpop.f32.mrf.mxu3  ;;  %v714_v15 = vpop.f32.mrf.mxu2 }
 0x1e3   :  { %v2276_v16 = vpop.f32.mrf.mxu0  ;;  %v2278_v17 = vpop.f32.mrf.mxu1 }
 0x1e5   :  { %v1617_v18 = vpop.eup %1616 }
 0x1e6   :  { %v814_v19 = vadd.f32 1.0, %v1617_v18  ;;  %v817_v20 = vmul.f32 -0.5, %v1617_v18  ;;  %v820_v27 = vand.u32 2147483647, %v1617_v18 }
 0x1e8   :  { %1618 = vlog2.f32 %v814_v19  ;;  %v751_v21 = vpop.f32.mrf.mxu3  ;;  %v2280_v22 = vpop.f32.mrf.mxu2  ;;  %v818_v23 = vadd.f32 1.0, %v817_v20  ;;  %vm821_vm10 = vcmp.lt.f32.partialorder %v820_v27, 0.0004427343 }
 0x1ea   :  { %v819_v33 = vmul.f32 %v1617_v18, %v818_v23 }
 0x1eb   :  { %v779_v24 = vpop.f32.mrf.mxu0  ;;  %v792_v26 = vpop.f32.mrf.mxu1 }
 0x1ec   :  { %v1596_v24 = vld [vmem:[%s2388_s6 + $0x20] sm:$0xff] }
 0x1ee   :  { %v1619_v25 = vpop.eup %1618 }
 0x1ef   :  { %v816_v32 = vmul.f32 0.6931472, %v1619_v25 }
 0x1f0   :  { %v753_v36 = vpop.f32.mrf.mxu3  ;;  %v766_v37 = vpop.f32.mrf.mxu2 }
 0x1f1   :  { %v822_v38 = vsel %vm821_vm10, %v819_v33, %v816_v32 }
 0x1f2   :  { %v823_v39 = vsel %vm810_vm11, %v809_v8, %v822_v38 }
 0x1f3   :  { %v830_v41 = vmul.f32 %v1605_v30, %v823_v39  ;;  %v858_v42 = vmul.f32 %v1606_v31, %v823_v39  ;;  %v886_v43 = vmul.f32 %v1607_v34, %v823_v39  ;;  %v914_v44 = vmul.f32 %v1608_v35, %v823_v39 }
 0x1f4   :  { %v824_v46 = vmul.f32 %v823_v39, %v2225_v40 }
 0x1f5   :  { %v831_v45 = vmul.f32 1.442695, %v830_v41  ;;  %v859_v47 = vmul.f32 1.442695, %v858_v42  ;;  %v887_v48 = vmul.f32 1.442695, %v886_v43 }
 0x1f6   :  { %v915_v49 = vmul.f32 1.442695, %v914_v44  ;;  %v833_v50 = vmul.f32 %v824_v46, %v712_v7  ;;  %v861_v51 = vmul.f32 %v824_v46, %v725_v58  ;;  %v889_v52 = vmul.f32 %v824_v46, %v738_v4  ;;  %v1597_v58 = vld [vmem:[%s2388_s6 + $0x28] sm:$0xff]  ;;  %v1595_v44 = vld [vmem:[%s2388_s6 + $0x18] sm:$0xff] }
 0x1f7   :  { %1620 = vpow2.f32 %v831_v45  ;;  %v917_v54 = vmul.f32 %v824_v46, %v751_v21  ;;  %1049 = vmatpush.bf16.msrb.mxu2 %v1597_v58 }
 0x1f8   :  { %1622 = vpow2.f32 %v859_v47  ;;  %v835_v55 = vrot.slane %v833_v50, 7  ;;  %v863_v56 = vrot.slane %v861_v51, 7  ;;  %v891_v57 = vrot.slane %v889_v52, 7 }
 0x1f9   :  { %1624 = vpow2.f32 %v887_v48  ;;  %v919_v61 = vrot.slane %v917_v54, 7  ;;  %v2301_v62 = vpop.f32.mrf.mxu3 }
 0x1fa   :  { %1626 = vpow2.f32 %v915_v49  ;;  %v837_v63 = vsel %vm204_vm4, 0.0, %v835_v55  ;;  %v865_v0 = vsel %vm204_vm4, 0.0, %v863_v56  ;;  %v893_v1 = vsel %vm204_vm4, 0.0, %v891_v57 }
 0x1fb   :  { %v921_v3 = vsel %vm204_vm4, 0.0, %v919_v61  ;;  %v838_v5 = vsel %vm1998_vm5, %v837_v63, 0.0  ;;  %v866_v8 = vsel %vm1998_vm5, %v865_v0, 0.0  ;;  %v894_v14 = vsel %vm1998_vm5, %v893_v1, 0.0  ;;  %1050 = vmatpush.bf16.msrb.mxu2 %v1596_v24  ;;  %v1594_v1 = vld [vmem:[%s2388_s6 + $0x10] sm:$0xff] }
 0x1fc   :  { %v922_v15 = vsel %vm1998_vm5, %v921_v3, 0.0 }
 0x1fd   :  { %v1621_v4 = vpop.eup %1620 }
 0x1fe   :  { %v1623_v6 = vpop.eup %1622  ;;  %v839_v7 = vmul.f32 %v1621_v4, %v838_v5  ;;  %v842_v9 = vrot.slane %v1621_v4, 7 }
 0x1ff   :  { %v1625_v11 = vpop.eup %1624  ;;  %v867_v12 = vmul.f32 %v1623_v6, %v866_v8  ;;  %v870_v13 = vrot.slane %v1623_v6, 7  ;;  %1051 = vmatpush.bf16.msrb.mxu2 %v1595_v44 }
 0x200   :  { %v1627_v18 = vpop.eup %1626  ;;  %v840_v19 = vadd.f32 %v839_v7, %v833_v50  ;;  %v895_v20 = vmul.f32 %v1625_v11, %v894_v14  ;;  %v898_v21 = vrot.slane %v1625_v11, 7  ;;  %v844_v23 = vsel %vm204_vm4, 0.0, %v842_v9 }
 0x201   :  { %v868_v26 = vadd.f32 %v867_v12, %v861_v51  ;;  %v872_v27 = vsel %vm204_vm4, 0.0, %v870_v13  ;;  %v923_v25 = vmul.f32 %v1627_v18, %v922_v15  ;;  %v845_v30 = vsel %vm1998_vm5, %v844_v23, 0.0  ;;  %v805_v31 = vpop.f32.mrf.mxu3 }
 0x202   :  { %v848_v32 = vrot.slane %v840_v19, 6  ;;  %v873_v33 = vsel %vm1998_vm5, %v872_v27, 0.0  ;;  %v896_v34 = vadd.f32 %v895_v20, %v889_v52  ;;  %v900_v35 = vsel %vm204_vm4, 0.0, %v898_v21  ;;  %v1609_v52 = vld [vmem:[%s2384_s4 + $0x5] ss:$0 sm:$0xff] }
 0x203   :  { %v876_v36 = vrot.slane %v868_v26, 6  ;;  %v901_v37 = vsel %vm1998_vm5, %v900_v35, 0.0  ;;  %v924_v38 = vadd.f32 %v923_v25, %v917_v54  ;;  %v874_v39 = vmul.f32 %v1623_v6, %v873_v33  ;;  %1052 = vmatpush.bf16.msrb.mxu2 %v1594_v1 }
 0x204   :  { %v904_v41 = vrot.slane %v896_v34, 6  ;;  %v846_v42 = vmul.f32 %v1621_v4, %v845_v30  ;;  %v850_v43 = vsel %vm192_vm2, 0.0, %v848_v32  ;;  %v926_v48 = vrot.slane %v1627_v18, 7 }
 0x205   :  { %v878_v46 = vsel %vm192_vm2, 0.0, %v876_v36  ;;  %v932_v45 = vrot.slane %v924_v38, 6  ;;  %v851_v47 = vsel %vm1994_vm3, %v850_v43, 0.0  ;;  %v902_v50 = vmul.f32 %v1625_v11, %v901_v37 }
 0x206   :  { %v879_v49 = vsel %vm1994_vm3, %v878_v46, 0.0  ;;  %v906_v51 = vsel %vm192_vm2, 0.0, %v904_v41  ;;  %v852_v53 = vmul.f32 %v851_v47, %v846_v42  ;;  %v928_v56 = vsel %vm204_vm4, 0.0, %v926_v48 }
 0x207   :  { %v880_v54 = vmul.f32 %v879_v49, %v874_v39  ;;  %v907_v55 = vsel %vm1994_vm3, %v906_v51, 0.0  ;;  %v934_v57 = vsel %vm192_vm2, 0.0, %v932_v45  ;;  %v929_v63 = vsel %vm1998_vm5, %v928_v56, 0.0  ;;  %1053 = vmatpush.bf16.msrb.mxu2 %v1593_v28  ;;  %v1611_v56 = vld [vmem:[%s2389_s7 + $0x1] ss:$0 sm:$0xff] }
 0x208   :  { %v908_v60 = vmul.f32 %v907_v55, %v902_v50  ;;  %v853_v61 = vadd.f32 %v852_v53, %v840_v19  ;;  %v935_v0 = vsel %vm1994_vm3, %v934_v57, 0.0  ;;  %v930_v58 = vmul.f32 %v1627_v18, %v929_v63 }
 0x209   :  { %v881_v3 = vadd.f32 %v880_v54, %v868_v26  ;;  %v827_v5 = vmul.f32 %v1609_v52, %v2225_v40  ;;  %v1610_v54 = vld [vmem:[%s2389_s7] ss:$0 sm:$0xff] }
 0x20a   :  { %v909_v4 = vadd.f32 %v908_v60, %v896_v34  ;;  %v854_v6 = vmul.f32 %v853_v61, %v2280_v22  ;;  %v936_v7 = vmul.f32 %v935_v0, %v930_v58 }
 0x20b   :  { %v882_v8 = vmul.f32 %v881_v3, %v2276_v16  ;;  %v48_v16 = vld [vmem:[%s2386_s2 + $0x8] sm:$0xff] }
 0x20c   :  { %v855_v29 = vadd.f32 %v854_v6, %v827_v5  ;;  %v937_v9 = vadd.f32 %v936_v7, %v924_v38  ;;  %v910_v11 = vmul.f32 %v909_v4, %v2278_v17  ;;  %v152_v22 = vadd.f32 %v2271_v2, %v48_v16 }
 0x20e   :  { %v883_v12 = vadd.f32 %v882_v8, %v855_v29  ;;  %v938_v14 = vmul.f32 %v937_v9, %v2301_v62  ;;  %v1470_v15 = vmul.f32 -1.442695, %v152_v22  ;;  %v1592_v62 = vld [vmem:[%s2388_s6] sm:$0xff] }
 0x20f   :  { %1054 = vmatpush.bf16.msrb.mxu2 %v1592_v62 }
 0x210   :  { %v911_v13 = vadd.f32 %v910_v11, %v883_v12  ;;  %1628 = vpow2.f32 %v1470_v15 }
 0x212   :  { %v939_v40 = vadd.f32 %v938_v14, %v911_v13 }
 0x214   :  { %955 = vmatpush.msrb.mxu0 %v939_v40 }
 0x215   :  { %1469 = vmatmul.msk.f32.vlgmr.msrb.gmra.mxu0 %vm162_vm0, %v1805_v59 }
 0x216   :  { %v1629_v18 = vpop.eup %1628 }
 0x217   :  { %v964_v17 = vadd.f32 1.0, %v1629_v18 }
 0x219   :  { %1630 = vrcp.f32 %v964_v17  ;;  %vm970_vm12 = vweird.f32 %v964_v17  ;;  %v976_v23 = vand.u32 2147483648, %v964_v17  ;;  %v974_v26 = vand.u32 2147483647, %v964_v17 }
 0x21b   :  { %v977_v2 = vor.u32 1.1754944e-38, %v976_v23  ;;  %vm975_vm15 = vcmp.eq.f32.partialorder %v974_v26, 8.507059e+37 }
 0x21f   :  { %v1631_v19 = vpop.eup %1630 }
 0x220   :  { %v966_v20 = vmul.f32 %v1631_v19, %v964_v17  ;;  %vm971_vm13 = vweird.f32 %v1631_v19 }
 0x221   :  { %vm972_vm14 = vmor %vm970_vm12, %vm971_vm13 }
 0x222   :  { %v967_v21 = vsub.f32 1.0, %v966_v20 }
 0x224   :  { %v968_v59 = vmul.f32 %v1631_v19, %v967_v21 }
 0x226   :  { %v969_v24 = vadd.f32 %v1631_v19, %v968_v59 }
 0x228   :  { %v973_v27 = vsel %vm972_vm14, %v1631_v19, %v969_v24 }
 0x229   :  { %v978_v25 = vsel %vm975_vm15, %v977_v2, %v973_v27 }
 0x22a   :  { %v980_v30 = vmul.f32 %v978_v25, %v152_v22 }
 0x292   :  { %v957_v31 = vpop.f32.mrf.mxu0 }
 0x293   :  { %v960_v32 = vsel %vm157_vm1, %v939_v40, %v957_v31 }
 0x294   :  { %v981_v33 = vmul.f32 %v980_v30, %v960_v32 }
 0x296   :  { %v982_v34 = vpack.c.bf16 %v981_v33, %v981_v33 }
 0x298   :  { %1055 = vmatmul.bf16.vlgmr.msrb.gmra.mxu2 %v982_v34 }
 0x31b   :  { %v1056_v35 = vpop.f32.mrf.mxu2 }
 0x31c   :  { %v1060_v36 = vmul.f32 0.5, %v1056_v35 }
 0x31e   :  { %1061 = vadd.xlane.f32.xlu0 %v1060_v36  ;;  %v1064_v38 = vmul.f32 %v1060_v36, %v1060_v36 }
 0x323   :  { %v1058_v37 = vpop.f32.mrf.mxu2 }
 0x326   :  { %1065 = vadd.xlane.f32.xlu0 %v1064_v38 }
 0x391   :  { %v1062_v39 = vpop.xlane.xlu0 %1061 }
 0x392   :  { %v1063_v41 = vmul.f32 0.0625, %v1062_v39 }
 0x394   :  { %v1068_v43 = vmul.f32 %v1063_v41, %v1063_v41  ;;  %v1071_v53 = vsub.f32 %v1060_v36, %v1063_v41 }
 0x399   :  { %v1066_v42 = vpop.xlane.xlu0 %1065 }
 0x39a   :  { %v1067_v44 = vmul.f32 0.0625, %v1066_v42 }
 0x39c   :  { %v1069_v46 = vsub.f32 %v1067_v44, %v1068_v43 }
 0x39e   :  { %v1070_v45 = vmax.f32 %v1069_v46, 0.0 }
 0x3a0   :  { %v1072_v47 = vadd.f32 1e-05, %v1070_v45 }
 0x3a2   :  { %1632 = vrsqrt.f32 %v1072_v47  ;;  %vm1079_vm1 = vweird.f32 %v1072_v47 }
 0x3a8   :  { %v1633_v10 = vpop.eup %1632 }
 0x3a9   :  { %v1074_v48 = vmul.f32 %v1633_v10, %v1072_v47  ;;  %vm1080_vm0 = vweird.f32 %v1633_v10 }
 0x3aa   :  { %vm1081_vm2 = vmor %vm1079_vm1, %vm1080_vm0 }
 0x3ab   :  { %v1075_v49 = vmul.f32 %v1633_v10, %v1074_v48 }
 0x3ad   :  { %v1076_v50 = vmul.f32 0.5, %v1075_v49 }
 0x3af   :  { %v1077_v51 = vsub.f32 1.5, %v1076_v50 }
 0x3b1   :  { %v1078_v52 = vmul.f32 %v1633_v10, %v1077_v51 }
 0x3b3   :  { %v1082_v55 = vsel %vm1081_vm2, %v1633_v10, %v1078_v52 }
 0x3b4   :  { %v1083_v57 = vmul.f32 %v1082_v55, %v1071_v53 }
 0x3b6   :  { %v1086_v60 = vmul.f32 %v1610_v54, %v1083_v57 }
 0x3b8   :  { %v1089_v61 = vadd.f32 %v1611_v56, %v1086_v60 }
 0x3ba   :  { %v1503_v63 = vmul.f32 -1.442695, %v1089_v61 }
 0x3bc   :  { %1634 = vpow2.f32 %v1503_v63 }
 0x3c2   :  { %v1635_v0 = vpop.eup %1634 }
 0x3c3   :  { %v1093_v1 = vadd.f32 1.0, %v1635_v0 }
 0x3c5   :  { %1636 = vrcp.f32 %v1093_v1  ;;  %v1105_v5 = vand.u32 2147483648, %v1093_v1  ;;  %v1103_v7 = vand.u32 2147483647, %v1093_v1  ;;  %vm1099_vm4 = vweird.f32 %v1093_v1 }
 0x3c7   :  { %v1106_v29 = vor.u32 1.1754944e-38, %v1105_v5  ;;  %vm1104_vm6 = vcmp.eq.f32.partialorder %v1103_v7, 8.507059e+37 }
 0x3cb   :  { %v1637_v3 = vpop.eup %1636 }
 0x3cc   :  { %v1095_v58 = vmul.f32 %v1637_v3, %v1093_v1  ;;  %vm1100_vm3 = vweird.f32 %v1637_v3 }
 0x3cd   :  { %vm1101_vm5 = vmor %vm1099_vm4, %vm1100_vm3 }
 0x3ce   :  { %v1096_v4 = vsub.f32 1.0, %v1095_v58 }
 0x3d0   :  { %v1097_v6 = vmul.f32 %v1637_v3, %v1096_v4 }
 0x3d2   :  { %v1098_v8 = vadd.f32 %v1637_v3, %v1097_v6 }
 0x3d4   :  { %v1102_v28 = vsel %vm1101_vm5, %v1637_v3, %v1098_v8 }
 0x3d5   :  { %v1107_v9 = vsel %vm1104_vm6, %v1106_v29, %v1102_v28 }
 0x3d6   :  { %v1109_v11 = vmul.f32 %v1107_v9, %v1089_v61 }
 0x3d8   :  { %1110 = vst [vmem:[%s2390_s8] sm:$0xff] %v1109_v11 }

// kernel: _lambda_.11
= control target key start
LH: loop header
LB: loop body
LE: loop exit
PB: predicated region body
PF: predicated region fallthrough
CT: control target
= control target key end

     0   :  { %s958_s1 = inlined_call_operand.vmem [shape: bf16[128,512], index: 1, kind: input, shape index: {}]   ;;  %s959_s0 = inlined_call_operand.vmem [shape: f32[8,128], index: 0, kind: input, shape index: {}]   ;;  %s960_s2 = inlined_call_operand.vmem [shape: f32[1,512], index: 2, kind: input, shape index: {}]   ;;  %s961_s3 = inlined_call_operand.vmem [shape: f32[1,128], index: 3, kind: input, shape index: {}]   ;;  %s962_s4 = inlined_call_operand.vmem [shape: f32[1,128], index: 4, kind: input, shape index: {}]   ;;  %s963_s5 = inlined_call_operand.vmem [shape: f32[8,512], index: 5, kind: output, shape index: {}]  }
   0x1   :  { %v586_v0 = vld [vmem:[%s958_s1 + $0xe0] sm:$0xf]  ;;  %v634_v1 = vld [vmem:[%s958_s1 + $0xec] sm:$0xf0]  ;;  %v594_v2 = vld [vmem:[%s958_s1 + $0xe8] sm:$0xf] }
   0x2   :  { %v587_v3 = vor.u32 %v634_v1, %v586_v0  ;;  %v635_v4 = vld [vmem:[%s958_s1 + $0xf4] sm:$0xf0]  ;;  %v633_v5 = vld [vmem:[%s958_s1 + $0xec] sm:$0xf]  ;;  %v596_v6 = vld [vmem:[%s958_s1 + $0xf8] sm:$0xf0] }
   0x3   :  { %v595_v7 = vor.u32 %v635_v4, %v594_v2  ;;  %v599_v8 = vor.u32 %v633_v5, %v596_v6  ;;  %v570_v9 = vld [vmem:[%s958_s1 + $0xc0] sm:$0xf]  ;;  %v630_v10 = vld [vmem:[%s958_s1 + $0xcc] sm:$0xf0]  ;;  %v578_v11 = vld [vmem:[%s958_s1 + $0xc8] sm:$0xf] }
   0x4   :  { %224 = vmatpush.bf16.msra.mxu0 %v587_v3  ;;  %v571_v12 = vor.u32 %v630_v10, %v570_v9  ;;  %v631_v13 = vld [vmem:[%s958_s1 + $0xd4] sm:$0xf0]  ;;  %v629_v14 = vld [vmem:[%s958_s1 + $0xcc] sm:$0xf]  ;;  %v580_v15 = vld [vmem:[%s958_s1 + $0xd8] sm:$0xf0] }
   0x5   :  { %250 = vmatpush.bf16.msra.mxu2 %v595_v7  ;;  %263 = vmatpush.bf16.msra.mxu3 %v599_v8  ;;  %v579_v16 = vor.u32 %v631_v13, %v578_v11  ;;  %v583_v17 = vor.u32 %v629_v14, %v580_v15  ;;  %v632_v18 = vld [vmem:[%s958_s1 + $0xe4] sm:$0xf]  ;;  %v588_v19 = vld [vmem:[%s958_s1 + $0xf0] sm:$0xf0]  ;;  %v554_v20 = vld [vmem:[%s958_s1 + $0xa0] sm:$0xf] }
   0x6   :  { %v591_v21 = vor.u32 %v632_v18, %v588_v19  ;;  %v626_v22 = vld [vmem:[%s958_s1 + $0xac] sm:$0xf0]  ;;  %v562_v23 = vld [vmem:[%s958_s1 + $0xa8] sm:$0xf]  ;;  %v627_v24 = vld [vmem:[%s958_s1 + $0xb4] sm:$0xf0] }
   0x7   :  { %v625_v25 = vld [vmem:[%s958_s1 + $0xac] sm:$0xf]  ;;  %v564_v26 = vld [vmem:[%s958_s1 + $0xb8] sm:$0xf0]  ;;  %v628_v27 = vld [vmem:[%s958_s1 + $0xc4] sm:$0xf]  ;;  %v555_v28 = vor.u32 %v626_v22, %v554_v20  ;;  %v563_v32 = vor.u32 %v627_v24, %v562_v23 }
   0x8   :  { %225 = vmatpush.bf16.msra.mxu0 %v571_v12  ;;  %237 = vmatpush.bf16.msra.mxu1 %v591_v21  ;;  %v572_v29 = vld [vmem:[%s958_s1 + $0xd0] sm:$0xf0]  ;;  %v538_v30 = vld [vmem:[%s958_s1 + $0x80] sm:$0xf]  ;;  %v622_v31 = vld [vmem:[%s958_s1 + $0x8c] sm:$0xf0]  ;;  %v567_v33 = vor.u32 %v625_v25, %v564_v26 }
   0x9   :  { %251 = vmatpush.bf16.msra.mxu2 %v579_v16  ;;  %264 = vmatpush.bf16.msra.mxu3 %v583_v17  ;;  %v575_v34 = vor.u32 %v628_v27, %v572_v29  ;;  %v546_v35 = vld [vmem:[%s958_s1 + $0x88] sm:$0xf]  ;;  %v623_v36 = vld [vmem:[%s958_s1 + $0x94] sm:$0xf0]  ;;  %v621_v37 = vld [vmem:[%s958_s1 + $0x8c] sm:$0xf]  ;;  %v539_v41 = vor.u32 %v622_v31, %v538_v30 }
   0xa   :  { %v548_v38 = vld [vmem:[%s958_s1 + $0x98] sm:$0xf0]  ;;  %v624_v39 = vld [vmem:[%s958_s1 + $0xa4] sm:$0xf]  ;;  %v556_v40 = vld [vmem:[%s958_s1 + $0xb0] sm:$0xf0]  ;;  %v547_v45 = vor.u32 %v623_v36, %v546_v35 }
   0xb   :  { %v559_v42 = vor.u32 %v624_v39, %v556_v40  ;;  %v522_v43 = vld [vmem:[%s958_s1 + $0x60] sm:$0xf]  ;;  %v618_v44 = vld [vmem:[%s958_s1 + $0x6c] sm:$0xf0]  ;;  %v551_v46 = vor.u32 %v621_v37, %v548_v38  ;;  %v530_v47 = vld [vmem:[%s958_s1 + $0x68] sm:$0xf] }
   0xc   :  { %226 = vmatpush.bf16.msra.mxu0 %v555_v28  ;;  %238 = vmatpush.bf16.msra.mxu1 %v575_v34  ;;  %v620_v48 = vld [vmem:[%s958_s1 + $0x84] sm:$0xf]  ;;  %v540_v49 = vld [vmem:[%s958_s1 + $0x90] sm:$0xf0]  ;;  %v619_v50 = vld [vmem:[%s958_s1 + $0x74] sm:$0xf0]  ;;  %v523_v53 = vor.u32 %v618_v44, %v522_v43 }
   0xd   :  { %252 = vmatpush.bf16.msra.mxu2 %v563_v32  ;;  %265 = vmatpush.bf16.msra.mxu3 %v567_v33  ;;  %v617_v51 = vld [vmem:[%s958_s1 + $0x6c] sm:$0xf]  ;;  %v532_v52 = vld [vmem:[%s958_s1 + $0x78] sm:$0xf0]  ;;  %v543_v54 = vor.u32 %v620_v48, %v540_v49  ;;  %v506_v55 = vld [vmem:[%s958_s1 + $0x40] sm:$0xf]  ;;  %v531_v57 = vor.u32 %v619_v50, %v530_v47 }
   0xe   :  { %v614_v56 = vld [vmem:[%s958_s1 + $0x4c] sm:$0xf0]  ;;  %v535_v58 = vor.u32 %v617_v51, %v532_v52  ;;  %v514_v59 = vld [vmem:[%s958_s1 + $0x48] sm:$0xf]  ;;  %v616_v60 = vld [vmem:[%s958_s1 + $0x64] sm:$0xf] }
   0xf   :  { %v524_v61 = vld [vmem:[%s958_s1 + $0x70] sm:$0xf0]  ;;  %v615_v62 = vld [vmem:[%s958_s1 + $0x54] sm:$0xf0]  ;;  %v613_v63 = vld [vmem:[%s958_s1 + $0x4c] sm:$0xf]  ;;  %v507_v1 = vor.u32 %v614_v56, %v506_v55 }
  0x10   :  { %227 = vmatpush.bf16.msra.mxu0 %v539_v41  ;;  %239 = vmatpush.bf16.msra.mxu1 %v559_v42  ;;  %v516_v0 = vld [vmem:[%s958_s1 + $0x58] sm:$0xf0]  ;;  %v527_v2 = vor.u32 %v616_v60, %v524_v61  ;;  %v490_v3 = vld [vmem:[%s958_s1 + $0x20] sm:$0xf]  ;;  %v610_v4 = vld [vmem:[%s958_s1 + $0x2c] sm:$0xf0]  ;;  %v515_v5 = vor.u32 %v615_v62, %v514_v59 }
  0x11   :  { %253 = vmatpush.bf16.msra.mxu2 %v547_v45  ;;  %266 = vmatpush.bf16.msra.mxu3 %v551_v46  ;;  %v519_v6 = vor.u32 %v613_v63, %v516_v0  ;;  %v498_v7 = vld [vmem:[%s958_s1 + $0x28] sm:$0xf]  ;;  %v612_v8 = vld [vmem:[%s958_s1 + $0x44] sm:$0xf]  ;;  %v508_v9 = vld [vmem:[%s958_s1 + $0x50] sm:$0xf0]  ;;  %v491_v13 = vor.u32 %v610_v4, %v490_v3 }
  0x12   :  { %v611_v10 = vld [vmem:[%s958_s1 + $0x34] sm:$0xf0]  ;;  %v609_v11 = vld [vmem:[%s958_s1 + $0x2c] sm:$0xf]  ;;  %v500_v12 = vld [vmem:[%s958_s1 + $0x38] sm:$0xf0]  ;;  %v511_v14 = vor.u32 %v612_v8, %v508_v9 }
  0x13   :  { %v474_v15 = vld [vmem:[%s958_s1] sm:$0xf]  ;;  %v606_v16 = vld [vmem:[%s958_s1 + $0xc] sm:$0xf0]  ;;  %v499_v17 = vor.u32 %v611_v10, %v498_v7  ;;  %v503_v18 = vor.u32 %v609_v11, %v500_v12  ;;  %v482_v19 = vld [vmem:[%s958_s1 + $0x8] sm:$0xf] }
  0x14   :  { %228 = vmatpush.bf16.msra.mxu0 %v523_v53  ;;  %240 = vmatpush.bf16.msra.mxu1 %v543_v54  ;;  %v608_v20 = vld [vmem:[%s958_s1 + $0x24] sm:$0xf]  ;;  %v492_v21 = vld [vmem:[%s958_s1 + $0x30] sm:$0xf0]  ;;  %v607_v22 = vld [vmem:[%s958_s1 + $0x14] sm:$0xf0]  ;;  %v475_v25 = vor.u32 %v606_v16, %v474_v15 }
  0x15   :  { %254 = vmatpush.bf16.msra.mxu2 %v531_v57  ;;  %267 = vmatpush.bf16.msra.mxu3 %v535_v58  ;;  %v605_v23 = vld [vmem:[%s958_s1 + $0xc] sm:$0xf]  ;;  %v484_v24 = vld [vmem:[%s958_s1 + $0x18] sm:$0xf0]  ;;  %v495_v26 = vor.u32 %v608_v20, %v492_v21  ;;  %v20_v27 = vld [vmem:[%s959_s0] sm:$0xff]  ;;  %v483_v28 = vor.u32 %v607_v22, %v482_v19 }
  0x16   :  { %v487_v29 = vor.u32 %v605_v23, %v484_v24  ;;  %v604_v30 = vld [vmem:[%s958_s1 + $0x4] sm:$0xf]  ;;  %v476_v31 = vld [vmem:[%s958_s1 + $0x10] sm:$0xf0]  ;;  %v21_v32 = vpack.c.bf16 %v20_v27, %v20_v27  ;;  %v54_v34 = vld [vmem:[%s960_s2] sm:$0xf] }
  0x17   :  { %v479_v33 = vor.u32 %v604_v30, %v476_v31  ;;  %v56_v35 = vperm.slane %v54_v34, 0  ;;  %v57_v38 = vperm.slane %v54_v34, 1  ;;  %v58_v40 = vperm.slane %v54_v34, 2 }
  0x18   :  { %229 = vmatpush.bf16.msra.mxu0 %v507_v1  ;;  %241 = vmatpush.bf16.msra.mxu1 %v527_v2  ;;  %v59_v48 = vperm.slane %v54_v34, 3 }
  0x19   :  { %255 = vmatpush.bf16.msra.mxu2 %v515_v5  ;;  %268 = vmatpush.bf16.msra.mxu3 %v519_v6 }
  0x1c   :  { %230 = vmatpush.bf16.msra.mxu0 %v491_v13  ;;  %242 = vmatpush.bf16.msra.mxu1 %v511_v14 }
  0x1d   :  { %256 = vmatpush.bf16.msra.mxu2 %v499_v17  ;;  %269 = vmatpush.bf16.msra.mxu3 %v503_v18 }
  0x20   :  { %231 = vmatpush.bf16.msra.mxu0 %v475_v25  ;;  %243 = vmatpush.bf16.msra.mxu1 %v495_v26 }
  0x21   :  { %257 = vmatpush.bf16.msra.mxu2 %v483_v28  ;;  %270 = vmatpush.bf16.msra.mxu3 %v487_v29  ;;  %v636_v29 = vld [vmem:[%s961_s3] ss:$0 sm:$0xff] }
  0x23   :  { %232 = vmatmul.bf16.vlgmr.msra.gmra.mxu0 %v21_v32 }
  0x24   :  { %258 = vmatmul.bf16.vlgmr.msra.gmra.mxu2 %v21_v32  ;;  %271 = vmatmul.bf16.vlgmr.msra.gmra.mxu3 %v21_v32 }
  0x25   :  { %244 = vmatpush.bf16.msra.mxu1 %v479_v33  ;;  %v637_v33 = vld [vmem:[%s962_s4] ss:$0 sm:$0xff] }
  0x28   :  { %245 = vmatmul.bf16.vlgmr.msra.gmra.mxu1 %v21_v32 }
  0xa0   :  { %v233_v36 = vpop.f32.mrf.mxu0 }
  0xa1   :  { %v890_v37 = vadd.f32 %v233_v36, %v56_v35 }
  0xa3   :  { %278 = vadd.xlane.f32.xlu0 %v890_v37  ;;  %v281_v39 = vmul.f32 %v890_v37, %v890_v37 }
  0xa5   :  { %282 = vadd.xlane.f32.xlu2 %v281_v39  ;;  %v246_v41 = vpop.f32.mrf.mxu1 }
  0xa6   :  { %v895_v42 = vadd.f32 %v246_v41, %v57_v38 }
  0xa7   :  { %v259_v43 = vpop.f32.mrf.mxu2  ;;  %v272_v44 = vpop.f32.mrf.mxu3 }
  0xa8   :  { %v897_v45 = vadd.f32 %v259_v43, %v58_v40  ;;  %v235_v46 = vpop.f32.mrf.mxu0  ;;  %v332_v47 = vmul.f32 %v895_v42, %v895_v42  ;;  %v903_v50 = vadd.f32 %v272_v44, %v59_v48 }
  0xaa   :  { %374 = vadd.xlane.f32.xlu1 %v897_v45  ;;  %v377_v53 = vmul.f32 %v897_v45, %v897_v45  ;;  %v422_v54 = vmul.f32 %v903_v50, %v903_v50 }
  0xab   :  { %329 = vadd.xlane.f32.xlu0 %v895_v42 }
  0xad   :  { %333 = vadd.xlane.f32.xlu2 %v332_v47  ;;  %v248_v49 = vpop.f32.mrf.mxu1 }
  0xaf   :  { %v261_v51 = vpop.f32.mrf.mxu2  ;;  %v274_v52 = vpop.f32.mrf.mxu3 }
  0xb2   :  { %419 = vadd.xlane.f32.xlu1 %v903_v50 }
  0xb3   :  { %378 = vadd.xlane.f32.xlu0 %v377_v53 }
  0xba   :  { %423 = vadd.xlane.f32.xlu1 %v422_v54 }
 0x116   :  { %v279_v55 = vpop.xlane.xlu0 %278 }
 0x117   :  { %v280_v56 = vmul.f32 0.125, %v279_v55 }
 0x118   :  { %v283_v57 = vpop.xlane.xlu2 %282 }
 0x119   :  { %v285_v58 = vmul.f32 %v280_v56, %v280_v56  ;;  %v284_v59 = vmul.f32 0.125, %v283_v57  ;;  %v288_v28 = vsub.f32 %v890_v37, %v280_v56 }
 0x11b   :  { %v286_v60 = vsub.f32 %v284_v59, %v285_v58 }
 0x11d   :  { %v287_v61 = vmax.f32 %v286_v60, 0.0  ;;  %v375_v62 = vpop.xlane.xlu1 %374 }
 0x11e   :  { %v330_v63 = vpop.xlane.xlu0 %329  ;;  %v910_v5 = vmul.f32 0.125, %v375_v62 }
 0x11f   :  { %v289_v0 = vadd.f32 1e-05, %v287_v61  ;;  %v331_v1 = vmul.f32 0.125, %v330_v63 }
 0x120   :  { %v334_v2 = vpop.xlane.xlu2 %333  ;;  %v381_v11 = vmul.f32 %v910_v5, %v910_v5  ;;  %v384_v58 = vsub.f32 %v897_v45, %v910_v5 }
 0x121   :  { %638 = vrsqrt.f32 %v289_v0  ;;  %v336_v3 = vmul.f32 %v331_v1, %v331_v1  ;;  %v335_v4 = vmul.f32 0.125, %v334_v2  ;;  %vm296_vm0 = vweird.f32 %v289_v0 }
 0x122   :  { %v339_v48 = vsub.f32 %v895_v42, %v331_v1 }
 0x123   :  { %v337_v6 = vsub.f32 %v335_v4, %v336_v3 }
 0x125   :  { %v420_v7 = vpop.xlane.xlu1 %419  ;;  %v338_v8 = vmax.f32 %v337_v6, 0.0 }
 0x126   :  { %v379_v9 = vpop.xlane.xlu0 %378  ;;  %v914_v17 = vmul.f32 0.125, %v420_v7 }
 0x127   :  { %v639_v10 = vpop.eup %638  ;;  %v380_v12 = vmul.f32 0.125, %v379_v9  ;;  %v340_v14 = vadd.f32 1e-05, %v338_v8 }
 0x128   :  { %v291_v13 = vmul.f32 %v639_v10, %v289_v0  ;;  %vm297_vm1 = vweird.f32 %v639_v10  ;;  %v426_v23 = vmul.f32 %v914_v17, %v914_v17  ;;  %v429_v45 = vsub.f32 %v903_v50, %v914_v17 }
 0x129   :  { %v382_v15 = vsub.f32 %v380_v12, %v381_v11  ;;  %640 = vrsqrt.f32 %v340_v14  ;;  %vm298_vm2 = vmor %vm296_vm0, %vm297_vm1  ;;  %vm347_vm3 = vweird.f32 %v340_v14 }
 0x12a   :  { %v292_v16 = vmul.f32 %v639_v10, %v291_v13 }
 0x12b   :  { %v383_v18 = vmax.f32 %v382_v15, 0.0 }
 0x12c   :  { %v293_v19 = vmul.f32 0.5, %v292_v16 }
 0x12d   :  { %v385_v20 = vadd.f32 1e-05, %v383_v18  ;;  %v424_v21 = vpop.xlane.xlu1 %423 }
 0x12e   :  { %v294_v22 = vsub.f32 1.5, %v293_v19  ;;  %v425_v24 = vmul.f32 0.125, %v424_v21 }
 0x12f   :  { %642 = vrsqrt.f32 %v385_v20  ;;  %v641_v25 = vpop.eup %640  ;;  %vm392_vm7 = vweird.f32 %v385_v20 }
 0x130   :  { %v295_v26 = vmul.f32 %v639_v10, %v294_v22  ;;  %v427_v27 = vsub.f32 %v425_v24, %v426_v23  ;;  %v342_v30 = vmul.f32 %v641_v25, %v340_v14  ;;  %vm348_vm4 = vweird.f32 %v641_v25 }
 0x131   :  { %vm349_vm5 = vmor %vm347_vm3, %vm348_vm4 }
 0x132   :  { %v299_v31 = vsel %vm298_vm2, %v639_v10, %v295_v26  ;;  %v428_v32 = vmax.f32 %v427_v27, 0.0  ;;  %v343_v35 = vmul.f32 %v641_v25, %v342_v30 }
 0x133   :  { %v300_v34 = vmul.f32 %v299_v31, %v288_v28 }
 0x134   :  { %v430_v36 = vadd.f32 1e-05, %v428_v32  ;;  %v344_v40 = vmul.f32 0.5, %v343_v35 }
 0x135   :  { %v643_v38 = vpop.eup %642  ;;  %v304_v39 = vmul.f32 %v636_v29, %v300_v34 }
 0x136   :  { %v387_v41 = vmul.f32 %v643_v38, %v385_v20  ;;  %644 = vrsqrt.f32 %v430_v36  ;;  %v345_v43 = vsub.f32 1.5, %v344_v40  ;;  %vm393_vm6 = vweird.f32 %v643_v38 }
 0x137   :  { %v925_v37 = vadd.f32 %v637_v33, %v304_v39  ;;  %vm394_vm8 = vmor %vm392_vm7, %vm393_vm6  ;;  %vm437_vm10 = vweird.f32 %v430_v36 }
 0x138   :  { %v388_v44 = vmul.f32 %v643_v38, %v387_v41  ;;  %v346_v47 = vmul.f32 %v641_v25, %v345_v43 }
 0x139   :  { %v600_v46 = vmul.f32 -1.442695, %v925_v37 }
 0x13a   :  { %v389_v49 = vmul.f32 0.5, %v388_v44  ;;  %v350_v51 = vsel %vm349_vm5, %v641_v25, %v346_v47 }
 0x13b   :  { %646 = vpow2.f32 %v600_v46  ;;  %v351_v53 = vmul.f32 %v350_v51, %v339_v48 }
 0x13c   :  { %v645_v52 = vpop.eup %644  ;;  %v390_v54 = vsub.f32 1.5, %v389_v49 }
 0x13d   :  { %v432_v55 = vmul.f32 %v645_v52, %v430_v36  ;;  %v352_v56 = vmul.f32 %v636_v29, %v351_v53  ;;  %vm438_vm9 = vweird.f32 %v645_v52 }
 0x13e   :  { %v391_v57 = vmul.f32 %v643_v38, %v390_v54  ;;  %vm439_vm11 = vmor %vm437_vm10, %vm438_vm9 }
 0x13f   :  { %v433_v59 = vmul.f32 %v645_v52, %v432_v55  ;;  %v931_v60 = vadd.f32 %v637_v33, %v352_v56 }
 0x140   :  { %v395_v42 = vsel %vm394_vm8, %v643_v38, %v391_v57 }
 0x141   :  { %v647_v61 = vpop.eup %646  ;;  %v396_v62 = vmul.f32 %v395_v42, %v384_v58  ;;  %v434_v63 = vmul.f32 0.5, %v433_v59  ;;  %v601_v1 = vmul.f32 -1.442695, %v931_v60 }
 0x142   :  { %v312_v0 = vadd.f32 1.0, %v647_v61 }
 0x143   :  { %v397_v2 = vmul.f32 %v636_v29, %v396_v62  ;;  %v435_v3 = vsub.f32 1.5, %v434_v63 }
 0x144   :  { %648 = vrcp.f32 %v312_v0  ;;  %v324_v16 = vand.u32 2147483648, %v312_v0  ;;  %v322_v50 = vand.u32 2147483647, %v312_v0  ;;  %vm318_vm13 = vweird.f32 %v312_v0 }
 0x145   :  { %650 = vpow2.f32 %v601_v1  ;;  %v934_v4 = vadd.f32 %v637_v33, %v397_v2  ;;  %v436_v6 = vmul.f32 %v645_v52, %v435_v3 }
 0x146   :  { %v325_v22 = vor.u32 1.1754944e-38, %v324_v16  ;;  %vm323_vm15 = vcmp.eq.f32.partialorder %v322_v50, 8.507059e+37 }
 0x147   :  { %v602_v5 = vmul.f32 -1.442695, %v934_v4  ;;  %v440_v7 = vsel %vm439_vm11, %v645_v52, %v436_v6 }
 0x148   :  { %v441_v8 = vmul.f32 %v440_v7, %v429_v45 }
 0x149   :  { %652 = vpow2.f32 %v602_v5 }
 0x14a   :  { %v649_v9 = vpop.eup %648  ;;  %v442_v10 = vmul.f32 %v636_v29, %v441_v8 }
 0x14b   :  { %v651_v11 = vpop.eup %650  ;;  %v314_v12 = vmul.f32 %v649_v9, %v312_v0  ;;  %vm319_vm12 = vweird.f32 %v649_v9 }
 0x14c   :  { %v357_v13 = vadd.f32 1.0, %v651_v11  ;;  %v939_v14 = vadd.f32 %v637_v33, %v442_v10  ;;  %vm320_vm14 = vmor %vm318_vm13, %vm319_vm12 }
 0x14d   :  { %v315_v15 = vsub.f32 1.0, %v314_v12 }
 0x14e   :  { %654 = vrcp.f32 %v357_v13  ;;  %v603_v17 = vmul.f32 -1.442695, %v939_v14  ;;  %v367_v31 = vand.u32 2147483647, %v357_v13  ;;  %v369_v32 = vand.u32 2147483648, %v357_v13 }
 0x14f   :  { %v653_v18 = vpop.eup %652  ;;  %v316_v19 = vmul.f32 %v649_v9, %v315_v15  ;;  %vm363_vm1 = vweird.f32 %v357_v13 }
 0x150   :  { %v402_v20 = vadd.f32 1.0, %v653_v18  ;;  %656 = vpow2.f32 %v603_v17  ;;  %vm368_vm3 = vcmp.eq.f32.partialorder %v367_v31, 8.507059e+37  ;;  %v370_v39 = vor.u32 1.1754944e-38, %v369_v32 }
 0x151   :  { %v317_v21 = vadd.f32 %v649_v9, %v316_v19 }
 0x152   :  { %658 = vrcp.f32 %v402_v20  ;;  %v414_v40 = vand.u32 2147483648, %v402_v20  ;;  %v412_v43 = vand.u32 2147483647, %v402_v20  ;;  %vm408_vm5 = vweird.f32 %v402_v20 }
 0x153   :  { %v321_v23 = vsel %vm320_vm14, %v649_v9, %v317_v21 }
 0x154   :  { %v655_v24 = vpop.eup %654  ;;  %v326_v25 = vsel %vm323_vm15, %v325_v22, %v321_v23  ;;  %v415_v49 = vor.u32 1.1754944e-38, %v414_v40  ;;  %vm413_vm7 = vcmp.eq.f32.partialorder %v412_v43, 8.507059e+37 }
 0x155   :  { %v328_v26 = vmul.f32 %v326_v25, %v925_v37  ;;  %v359_v27 = vmul.f32 %v655_v24, %v357_v13  ;;  %vm364_vm0 = vweird.f32 %v655_v24 }
 0x156   :  { %v657_v28 = vpop.eup %656  ;;  %vm365_vm2 = vmor %vm363_vm1, %vm364_vm0 }
 0x157   :  { %464 = vst [vmem:[%s963_s5] sm:$0xff] %v328_v26  ;;  %v360_v29 = vsub.f32 1.0, %v359_v27  ;;  %v447_v33 = vadd.f32 1.0, %v657_v28 }
 0x158   :  { %v659_v30 = vpop.eup %658 }
 0x159   :  { %v361_v34 = vmul.f32 %v655_v24, %v360_v29  ;;  %v404_v35 = vmul.f32 %v659_v30, %v402_v20  ;;  %660 = vrcp.f32 %v447_v33  ;;  %vm409_vm4 = vweird.f32 %v659_v30 }
 0x15a   :  { %vm410_vm6 = vmor %vm408_vm5, %vm409_vm4  ;;  %v459_v56 = vand.u32 2147483648, %v447_v33  ;;  %v457_v58 = vand.u32 2147483647, %v447_v33  ;;  %vm453_vm9 = vweird.f32 %v447_v33 }
 0x15b   :  { %v362_v36 = vadd.f32 %v655_v24, %v361_v34  ;;  %v405_v38 = vsub.f32 1.0, %v404_v35 }
 0x15c   :  { %vm458_vm11 = vcmp.eq.f32.partialorder %v457_v58, 8.507059e+37 }
 0x15d   :  { %v366_v41 = vsel %vm365_vm2, %v655_v24, %v362_v36  ;;  %v406_v37 = vmul.f32 %v659_v30, %v405_v38 }
 0x15e   :  { %v371_v44 = vsel %vm368_vm3, %v370_v39, %v366_v41 }
 0x15f   :  { %v373_v46 = vmul.f32 %v371_v44, %v931_v60  ;;  %v407_v47 = vadd.f32 %v659_v30, %v406_v37  ;;  %v661_v48 = vpop.eup %660  ;;  %v460_v60 = vor.u32 1.1754944e-38, %v459_v56 }
 0x160   :  { %v449_v52 = vmul.f32 %v661_v48, %v447_v33  ;;  %vm454_vm8 = vweird.f32 %v661_v48 }
 0x161   :  { %465 = vst [vmem:[%s963_s5 + $0x8] sm:$0xff] %v373_v46  ;;  %v411_v51 = vsel %vm410_vm6, %v659_v30, %v407_v47  ;;  %vm455_vm10 = vmor %vm453_vm9, %vm454_vm8 }
 0x162   :  { %v416_v53 = vsel %vm413_vm7, %v415_v49, %v411_v51  ;;  %v450_v55 = vsub.f32 1.0, %v449_v52 }
 0x163   :  { %v418_v54 = vmul.f32 %v416_v53, %v934_v4 }
 0x164   :  { %v451_v57 = vmul.f32 %v661_v48, %v450_v55 }
 0x165   :  { %466 = vst [vmem:[%s963_s5 + $0x10] sm:$0xff] %v418_v54 }
 0x166   :  { %v452_v59 = vadd.f32 %v661_v48, %v451_v57 }
 0x168   :  { %v456_v42 = vsel %vm455_vm10, %v661_v48, %v452_v59 }
 0x169   :  { %v461_v61 = vsel %vm458_vm11, %v460_v60, %v456_v42 }
 0x16a   :  { %v463_v62 = vmul.f32 %v461_v61, %v939_v14 }
 0x16c   :  { %467 = vst [vmem:[%s963_s5 + $0x18] sm:$0xff] %v463_v62 }

// kernel: _lambda_.13
= control target key start
LH: loop header
LB: loop body
LE: loop exit
PB: predicated region body
PF: predicated region fallthrough
CT: control target
= control target key end

     0   :  { %s718_s1 = inlined_call_operand.vmem [shape: bf16[512,128], index: 1, kind: input, shape index: {}]   ;;  %s719_s2 = inlined_call_operand.vmem [shape: f32[1,128], index: 2, kind: input, shape index: {}]   ;;  %s720_s0 = inlined_call_operand.vmem [shape: f32[8,512], index: 0, kind: input, shape index: {}]   ;;  %s721_s3 = inlined_call_operand.vmem [shape: f32[1,128], index: 3, kind: input, shape index: {}]   ;;  %s722_s4 = inlined_call_operand.vmem [shape: f32[1,128], index: 4, kind: input, shape index: {}]   ;;  %s723_s5 = inlined_call_operand.vmem [shape: f32[8,128], index: 5, kind: output, shape index: {}]  }
   0x1   :  { %v534_v0 = vld [vmem:[%s718_s1 + $0x38] sm:$0xff]  ;;  %v533_v4 = vld [vmem:[%s718_s1 + $0x30] sm:$0xff]  ;;  %v532_v8 = vld [vmem:[%s718_s1 + $0x28] sm:$0xff] }
   0x2   :  { %v542_v1 = vld [vmem:[%s718_s1 + $0x78] sm:$0xff]  ;;  %288 = vmatpush.bf16.msra.mxu0 %v534_v0  ;;  %v541_v5 = vld [vmem:[%s718_s1 + $0x70] sm:$0xff]  ;;  %v540_v9 = vld [vmem:[%s718_s1 + $0x68] sm:$0xff] }
   0x3   :  { %v550_v2 = vld [vmem:[%s718_s1 + $0xb8] sm:$0xff]  ;;  %301 = vmatpush.bf16.msra.mxu1 %v542_v1  ;;  %v549_v6 = vld [vmem:[%s718_s1 + $0xb0] sm:$0xff]  ;;  %v548_v10 = vld [vmem:[%s718_s1 + $0xa8] sm:$0xff] }
   0x4   :  { %v558_v3 = vld [vmem:[%s718_s1 + $0xf8] sm:$0xff]  ;;  %314 = vmatpush.bf16.msra.mxu2 %v550_v2  ;;  %v557_v7 = vld [vmem:[%s718_s1 + $0xf0] sm:$0xff]  ;;  %v556_v11 = vld [vmem:[%s718_s1 + $0xe8] sm:$0xff] }
   0x5   :  { %327 = vmatpush.bf16.msra.mxu3 %v558_v3  ;;  %v531_v12 = vld [vmem:[%s718_s1 + $0x20] sm:$0xff]  ;;  %v530_v16 = vld [vmem:[%s718_s1 + $0x18] sm:$0xff]  ;;  %v529_v20 = vld [vmem:[%s718_s1 + $0x10] sm:$0xff] }
   0x6   :  { %289 = vmatpush.bf16.msra.mxu0 %v533_v4  ;;  %v539_v13 = vld [vmem:[%s718_s1 + $0x60] sm:$0xff]  ;;  %v538_v17 = vld [vmem:[%s718_s1 + $0x58] sm:$0xff]  ;;  %v537_v21 = vld [vmem:[%s718_s1 + $0x50] sm:$0xff] }
   0x7   :  { %302 = vmatpush.bf16.msra.mxu1 %v541_v5  ;;  %v547_v14 = vld [vmem:[%s718_s1 + $0xa0] sm:$0xff]  ;;  %v546_v18 = vld [vmem:[%s718_s1 + $0x98] sm:$0xff]  ;;  %v545_v22 = vld [vmem:[%s718_s1 + $0x90] sm:$0xff] }
   0x8   :  { %315 = vmatpush.bf16.msra.mxu2 %v549_v6  ;;  %v555_v15 = vld [vmem:[%s718_s1 + $0xe0] sm:$0xff]  ;;  %v554_v19 = vld [vmem:[%s718_s1 + $0xd8] sm:$0xff]  ;;  %v553_v23 = vld [vmem:[%s718_s1 + $0xd0] sm:$0xff] }
   0x9   :  { %328 = vmatpush.bf16.msra.mxu3 %v557_v7  ;;  %v528_v24 = vld [vmem:[%s718_s1 + $0x8] sm:$0xff]  ;;  %v527_v28 = vld [vmem:[%s718_s1] sm:$0xff]  ;;  %v22_v34 = vld [vmem:[%s720_s0 + $0x10] sm:$0xff] }
   0xa   :  { %290 = vmatpush.bf16.msra.mxu0 %v532_v8  ;;  %v536_v25 = vld [vmem:[%s718_s1 + $0x48] sm:$0xff]  ;;  %v535_v29 = vld [vmem:[%s718_s1 + $0x40] sm:$0xff]  ;;  %v23_v35 = vld [vmem:[%s720_s0 + $0x18] sm:$0xff]  ;;  %v26_v38 = vpack.c.bf16 %v22_v34, %v22_v34 }
   0xb   :  { %303 = vmatpush.bf16.msra.mxu1 %v540_v9  ;;  %v544_v26 = vld [vmem:[%s718_s1 + $0x88] sm:$0xff]  ;;  %v543_v30 = vld [vmem:[%s718_s1 + $0x80] sm:$0xff]  ;;  %v27_v39 = vpack.c.bf16 %v23_v35, %v23_v35 }
   0xc   :  { %316 = vmatpush.bf16.msra.mxu2 %v548_v10  ;;  %v552_v27 = vld [vmem:[%s718_s1 + $0xc8] sm:$0xff]  ;;  %v20_v31 = vld [vmem:[%s720_s0] sm:$0xff] }
   0xd   :  { %329 = vmatpush.bf16.msra.mxu3 %v556_v11  ;;  %v21_v32 = vld [vmem:[%s720_s0 + $0x8] sm:$0xff]  ;;  %v551_v33 = vld [vmem:[%s718_s1 + $0xc0] sm:$0xff]  ;;  %v24_v36 = vpack.c.bf16 %v20_v31, %v20_v31 }
   0xe   :  { %291 = vmatpush.bf16.msra.mxu0 %v531_v12  ;;  %v25_v37 = vpack.c.bf16 %v21_v32, %v21_v32  ;;  %v559_v40 = vld [vmem:[%s719_s2] ss:$0 sm:$0xff] }
   0xf   :  { %304 = vmatpush.bf16.msra.mxu1 %v539_v13  ;;  %v560_v5 = vld [vmem:[%s721_s3] ss:$0 sm:$0xff] }
  0x10   :  { %317 = vmatpush.bf16.msra.mxu2 %v547_v14  ;;  %v561_v7 = vld [vmem:[%s722_s4] ss:$0 sm:$0xff] }
  0x11   :  { %330 = vmatpush.bf16.msra.mxu3 %v555_v15 }
  0x12   :  { %292 = vmatpush.bf16.msra.mxu0 %v530_v16 }
  0x13   :  { %305 = vmatpush.bf16.msra.mxu1 %v538_v17 }
  0x14   :  { %318 = vmatpush.bf16.msra.mxu2 %v546_v18 }
  0x15   :  { %331 = vmatpush.bf16.msra.mxu3 %v554_v19 }
  0x16   :  { %293 = vmatpush.bf16.msra.mxu0 %v529_v20 }
  0x17   :  { %306 = vmatpush.bf16.msra.mxu1 %v537_v21 }
  0x18   :  { %319 = vmatpush.bf16.msra.mxu2 %v545_v22 }
  0x19   :  { %332 = vmatpush.bf16.msra.mxu3 %v553_v23 }
  0x1a   :  { %294 = vmatpush.bf16.msra.mxu0 %v528_v24 }
  0x1b   :  { %307 = vmatpush.bf16.msra.mxu1 %v536_v25 }
  0x1c   :  { %320 = vmatpush.bf16.msra.mxu2 %v544_v26 }
  0x1d   :  { %333 = vmatpush.bf16.msra.mxu3 %v552_v27 }
  0x1e   :  { %295 = vmatpush.bf16.msra.mxu0 %v527_v28 }
  0x1f   :  { %308 = vmatpush.bf16.msra.mxu1 %v535_v29 }
  0x20   :  { %321 = vmatpush.bf16.msra.mxu2 %v543_v30 }
  0x21   :  { %334 = vmatpush.bf16.msra.mxu3 %v551_v33  ;;  %296 = vmatmul.bf16.vlgmr.msra.gmra.mxu0 %v24_v36 }
  0x22   :  { %309 = vmatmul.bf16.vlgmr.msra.gmra.mxu1 %v25_v37 }
  0x23   :  { %322 = vmatmul.bf16.vlgmr.msra.gmra.mxu2 %v26_v38 }
  0x24   :  { %335 = vmatmul.bf16.vlgmr.msra.gmra.mxu3 %v27_v39 }
  0x9e   :  { %v297_v41 = vpop.f32.mrf.mxu0 }
  0x9f   :  { %v310_v42 = vpop.f32.mrf.mxu1  ;;  %v298_v43 = vadd.f32 %v559_v40, %v297_v41 }
  0xa1   :  { %v311_v44 = vadd.f32 %v310_v42, %v298_v43 }
  0xa6   :  { %v323_v45 = vpop.f32.mrf.mxu2  ;;  %v299_v48 = vpop.f32.mrf.mxu0 }
  0xa7   :  { %v336_v46 = vpop.f32.mrf.mxu3  ;;  %v324_v47 = vadd.f32 %v323_v45, %v311_v44  ;;  %v312_v49 = vpop.f32.mrf.mxu1 }
  0xa9   :  { %v337_v50 = vadd.f32 %v336_v46, %v324_v47 }
  0xab   :  { %342 = vadd.xlane.f32.xlu0 %v337_v50  ;;  %v345_v53 = vmul.f32 %v337_v50, %v337_v50 }
  0xae   :  { %v325_v51 = vpop.f32.mrf.mxu2 }
  0xaf   :  { %v338_v52 = vpop.f32.mrf.mxu3 }
  0xb3   :  { %346 = vadd.xlane.f32.xlu0 %v345_v53 }
 0x11e   :  { %v343_v54 = vpop.xlane.xlu0 %342 }
 0x11f   :  { %v344_v55 = vmul.f32 0.083333336, %v343_v54 }
 0x121   :  { %v349_v57 = vmul.f32 %v344_v55, %v344_v55  ;;  %v352_v4 = vsub.f32 %v337_v50, %v344_v55 }
 0x126   :  { %v347_v56 = vpop.xlane.xlu0 %346 }
 0x127   :  { %v348_v58 = vmul.f32 0.083333336, %v347_v56 }
 0x129   :  { %v350_v59 = vsub.f32 %v348_v58, %v349_v57 }
 0x12b   :  { %v351_v60 = vmax.f32 %v350_v59, 0.0 }
 0x12d   :  { %v353_v61 = vadd.f32 1e-05, %v351_v60 }
 0x12f   :  { %562 = vrsqrt.f32 %v353_v61  ;;  %vm360_vm1 = vweird.f32 %v353_v61 }
 0x135   :  { %v563_v62 = vpop.eup %562 }
 0x136   :  { %v355_v63 = vmul.f32 %v563_v62, %v353_v61  ;;  %vm361_vm0 = vweird.f32 %v563_v62 }
 0x137   :  { %vm362_vm2 = vmor %vm360_vm1, %vm361_vm0 }
 0x138   :  { %v356_v0 = vmul.f32 %v563_v62, %v355_v63 }
 0x13a   :  { %v357_v1 = vmul.f32 0.5, %v356_v0 }
 0x13c   :  { %v358_v2 = vsub.f32 1.5, %v357_v1 }
 0x13e   :  { %v359_v3 = vmul.f32 %v563_v62, %v358_v2 }
 0x140   :  { %v363_v6 = vsel %vm362_vm2, %v563_v62, %v359_v3 }
 0x141   :  { %v364_v8 = vmul.f32 %v363_v6, %v352_v4 }
 0x143   :  { %v368_v9 = vmul.f32 %v560_v5, %v364_v8 }
 0x145   :  { %v372_v10 = vadd.f32 %v561_v7, %v368_v9 }
 0x147   :  { %v526_v11 = vmul.f32 -1.442695, %v372_v10 }
 0x149   :  { %564 = vpow2.f32 %v526_v11 }
 0x14f   :  { %v565_v12 = vpop.eup %564 }
 0x150   :  { %v376_v13 = vadd.f32 1.0, %v565_v12 }
 0x152   :  { %566 = vrcp.f32 %v376_v13  ;;  %v388_v17 = vand.u32 2147483648, %v376_v13  ;;  %v386_v19 = vand.u32 2147483647, %v376_v13  ;;  %vm382_vm4 = vweird.f32 %v376_v13 }
 0x154   :  { %v389_v21 = vor.u32 1.1754944e-38, %v388_v17  ;;  %vm387_vm6 = vcmp.eq.f32.partialorder %v386_v19, 8.507059e+37 }
 0x158   :  { %v567_v14 = vpop.eup %566 }
 0x159   :  { %v378_v15 = vmul.f32 %v567_v14, %v376_v13  ;;  %vm383_vm3 = vweird.f32 %v567_v14 }
 0x15a   :  { %vm384_vm5 = vmor %vm382_vm4, %vm383_vm3 }
 0x15b   :  { %v379_v16 = vsub.f32 1.0, %v378_v15 }
 0x15d   :  { %v380_v18 = vmul.f32 %v567_v14, %v379_v16 }
 0x15f   :  { %v381_v20 = vadd.f32 %v567_v14, %v380_v18 }
 0x161   :  { %v385_v22 = vsel %vm384_vm5, %v567_v14, %v381_v20 }
 0x162   :  { %v390_v23 = vsel %vm387_vm6, %v389_v21, %v385_v22 }
 0x163   :  { %v392_v24 = vmul.f32 %v390_v23, %v372_v10 }
 0x165   :  { %393 = vst [vmem:[%s723_s5] sm:$0xff] %v392_v24 }

// kernel: _lambda_.15
= control target key start
LH: loop header
LB: loop body
LE: loop exit
PB: predicated region body
PF: predicated region fallthrough
CT: control target
= control target key end

     0   :  { %vm20_vm0 = vcmask 64512   ;;  %s274_s0 = inlined_call_operand.vmem [shape: f32[8,128], index: 0, kind: input, shape index: {}]   ;;  %s275_s1 = inlined_call_operand.vmem [shape: f32[2,8], index: 1, kind: input, shape index: {}]   ;;  %s276_s2 = inlined_call_operand.vmem [shape: bf16[128,128], index: 2, kind: input, shape index: {}]   ;;  %s277_s3 = inlined_call_operand.vmem [shape: f32[1,128], index: 3, kind: input, shape index: {}]   ;;  %s278_s4 = inlined_call_operand.hbm [shape: f32[2,128], index: 4, kind: output, shape index: {}]  }
   0x1   :  { %v19_v0 = vld [vmem:[%s274_s0] sm:$0xff]  ;;  %v183_v2 = vld [vmem:[%s276_s2 + $0x38] sm:$0xff]  ;;  %v182_v3 = vld [vmem:[%s276_s2 + $0x30] sm:$0xff] }
   0x2   :  { %v18_v1 = vld [vmem:[%s275_s1] sm:$0x3]  ;;  %39 = vmatpush.msra.mxu0 %v19_v0  ;;  %113 = vmatpush.bf16.msra.mxu1 %v183_v2 }
   0x3   :  { %143 = vmatmul.msk.f32.vlgmr.msra.gmra.mxu0 %vm20_vm0, %v18_v1 }
   0x4   :  { %9 = vsyncpa [#allocation3], 0  ;;  %v181_v4 = vld [vmem:[%s276_s2 + $0x28] sm:$0xff]  ;;  %v180_v5 = vld [vmem:[%s276_s2 + $0x20] sm:$0xff]  ;;  %s212_s9 = smov [#allocation2]   ;;  %s134_s13 = sshll.u32 %s278_s4, 4  ;;  %s135_s13 = int_to_ptr.hbm [resolvable:$true] %s134_s13 }
   0x5   :  { %v179_v6 = vld [vmem:[%s276_s2 + $0x18] sm:$0xff]  ;;  %v178_v7 = vld [vmem:[%s276_s2 + $0x10] sm:$0xff]  ;;  %v177_v8 = vld [vmem:[%s276_s2 + $0x8] sm:$0xff]  ;;  %s132_s10 = sshll.u32 %s212_s9, 4  ;;  %s133_s10 = int_to_ptr.vmem [resolvable:$true] %s132_s10 }
   0x6   :  { %114 = vmatpush.bf16.msra.mxu1 %v182_v3  ;;  %v176_v9 = vld [vmem:[%s276_s2] sm:$0xff] }
   0x7   :  { %v185_v12 = vld [vmem:[%s277_s3] ss:$0 sm:$0xff] }
   0xa   :  { %115 = vmatpush.bf16.msra.mxu1 %v181_v4 }
   0xe   :  { %116 = vmatpush.bf16.msra.mxu1 %v180_v5 }
  0x12   :  { %117 = vmatpush.bf16.msra.mxu1 %v179_v6 }
  0x16   :  { %118 = vmatpush.bf16.msra.mxu1 %v178_v7 }
  0x1a   :  { %119 = vmatpush.bf16.msra.mxu1 %v177_v8 }
  0x1e   :  { %120 = vmatpush.bf16.msra.mxu1 %v176_v9 }
  0x80   :  { %v41_v10 = vpop.f32.mrf.mxu0 }
  0x81   :  { %v44_v11 = vpack.c.bf16 %v41_v10, %v41_v10 }
  0x83   :  { %121 = vmatmul.bf16.vlgmr.msra.gmra.mxu1 %v44_v11 }
 0x100   :  { %v122_v13 = vpop.f32.mrf.mxu1 }
 0x101   :  { %v123_v14 = vadd.f32 %v185_v12, %v122_v13 }
 0x103   :  { %126 = vst [vmem:[#allocation2] sm:$0x3] %v123_v14 }
 0x104   :  { %137 = dma.vmem_to_hbm [thread:$0]  %s133_s10, 32, %s135_s13, [#allocation3]  }
 0x108   :  { %v124_v15 = vpop.f32.mrf.mxu1 }
 0x109   :  { %210 = dma.done.wait [#allocation3], 32  }
 0x10a   :  { %211 = vsyncadd [#allocation3], 4294967264 }
 0x10b   :  { %142 = vsyncpa [#allocation3], 1 }

// kernel: _lambda_.14
= control target key start
LH: loop header
LB: loop body
LE: loop exit
PB: predicated region body
PF: predicated region fallthrough
CT: control target
= control target key end

     0   :  { %vm167_vm0 = vcmask 64512   ;;  %vm197_vm2 = vcmask 1041408   ;;  %vm209_vm4 = vcmask 1040384   ;;  %s2395_s2 = inlined_call_operand.vmem [shape: bf16[128,256], index: 2, kind: input, shape index: {}]   ;;  %s2396_s0 = inlined_call_operand.vmem [shape: f32[8,128], index: 0, kind: input, shape index: {}]   ;;  %s2397_s1 = inlined_call_operand.vmem [shape: f32[8,128], index: 1, kind: input, shape index: {}]   ;;  %s2398_s5 = inlined_call_operand.vmem [shape: f32[10,128], index: 5, kind: input, shape index: {}]   ;;  %s2399_s6 = inlined_call_operand.vmem [shape: bf16[128,1152], index: 6, kind: input, shape index: {}]   ;;  %s2400_s3 = inlined_call_operand.vmem [shape: f32[8,256], index: 3, kind: input, shape index: {}]   ;;  %s2401_s4 = inlined_call_operand.vmem [shape: f32[8,8], index: 4, kind: input, shape index: {}]   ;;  %s2402_s7 = inlined_call_operand.vmem [shape: bf16[128,128], index: 7, kind: input, shape index: {}]   ;;  %s2403_s8 = inlined_call_operand.vmem [shape: f32[2,128], index: 8, kind: input, shape index: {}]   ;;  %s2404_s9 = inlined_call_operand.vmem [shape: f32[8,128], index: 9, kind: output, shape index: {}]  }
   0x1   :  { %v1178_v0 = vld [vmem:[%s2395_s2 + $0x70] sm:$0xf]  ;;  %v1524_v1 = vld [vmem:[%s2395_s2 + $0x74] sm:$0xf0]  ;;  %v1170_v2 = vld [vmem:[%s2395_s2 + $0x60] sm:$0xf] }
   0x2   :  { %v1179_v3 = vor.u32 %v1524_v1, %v1178_v0  ;;  %v1522_v4 = vld [vmem:[%s2395_s2 + $0x64] sm:$0xf0]  ;;  %v1162_v6 = vld [vmem:[%s2395_s2 + $0x50] sm:$0xf]  ;;  %v1520_v7 = vld [vmem:[%s2395_s2 + $0x54] sm:$0xf0] }
   0x3   :  { %v1171_v5 = vor.u32 %v1522_v4, %v1170_v2  ;;  %v1163_v8 = vor.u32 %v1520_v7, %v1162_v6  ;;  %v1154_v9 = vld [vmem:[%s2395_s2 + $0x40] sm:$0xf]  ;;  %v1518_v10 = vld [vmem:[%s2395_s2 + $0x44] sm:$0xf0]  ;;  %v1146_v12 = vld [vmem:[%s2395_s2 + $0x30] sm:$0xf] }
   0x4   :  { %134 = vmatpush.bf16.msra.mxu0 %v1179_v3  ;;  %v1155_v11 = vor.u32 %v1518_v10, %v1154_v9  ;;  %v1516_v13 = vld [vmem:[%s2395_s2 + $0x34] sm:$0xf0]  ;;  %v1138_v15 = vld [vmem:[%s2395_s2 + $0x20] sm:$0xf]  ;;  %v1514_v16 = vld [vmem:[%s2395_s2 + $0x24] sm:$0xf0] }
   0x5   :  { %v1147_v14 = vor.u32 %v1516_v13, %v1146_v12  ;;  %v1139_v17 = vor.u32 %v1514_v16, %v1138_v15  ;;  %v1130_v18 = vld [vmem:[%s2395_s2 + $0x10] sm:$0xf]  ;;  %v1512_v19 = vld [vmem:[%s2395_s2 + $0x14] sm:$0xf0]  ;;  %v32_v21 = vld [vmem:[%s2396_s0] sm:$0xff] }
   0x6   :  { %v1131_v20 = vor.u32 %v1512_v19, %v1130_v18  ;;  %v33_v22 = vld [vmem:[%s2397_s1] sm:$0xff]  ;;  %v1510_v24 = vld [vmem:[%s2395_s2 + $0x4] sm:$0xf0]  ;;  %v1523_v28 = vld [vmem:[%s2395_s2 + $0x74] sm:$0xf] }
   0x7   :  { %v1122_v23 = vld [vmem:[%s2395_s2] sm:$0xf]  ;;  %v34_v25 = vadd.f32 %v33_v22, %v32_v21  ;;  %v1180_v29 = vld [vmem:[%s2395_s2 + $0x78] sm:$0xf0]  ;;  %v1521_v30 = vld [vmem:[%s2395_s2 + $0x64] sm:$0xf] }
   0x8   :  { %135 = vmatpush.bf16.msra.mxu0 %v1171_v5  ;;  %v1123_v26 = vor.u32 %v1510_v24, %v1122_v23  ;;  %v1183_v31 = vor.u32 %v1523_v28, %v1180_v29  ;;  %v1172_v32 = vld [vmem:[%s2395_s2 + $0x68] sm:$0xf0]  ;;  %v1440_v34 = vld [vmem:[%s2399_s6 + $0x1f8] sm:$0xf]  ;;  %v1592_v35 = vld [vmem:[%s2399_s6 + $0x218] sm:$0xf0] }
   0x9   :  { %v1747_v27 = vpack.c.bf16 %v34_v25, %v34_v25  ;;  %v1175_v33 = vor.u32 %v1521_v30, %v1172_v32  ;;  %v1519_v36 = vld [vmem:[%s2395_s2 + $0x54] sm:$0xf]  ;;  %v1164_v37 = vld [vmem:[%s2395_s2 + $0x58] sm:$0xf0]  ;;  %v1441_v38 = vor.u32 %v1592_v35, %v1440_v34  ;;  %v1404_v39 = vld [vmem:[%s2399_s6 + $0x1b0] sm:$0xf] }
   0xa   :  { %147 = vmatpush.bf16.msra.mxu1 %v1183_v31  ;;  %v1583_v40 = vld [vmem:[%s2399_s6 + $0x1d0] sm:$0xf0]  ;;  %v1167_v42 = vor.u32 %v1519_v36, %v1164_v37  ;;  %v1368_v43 = vld [vmem:[%s2399_s6 + $0x168] sm:$0xf]  ;;  %v1574_v44 = vld [vmem:[%s2399_s6 + $0x188] sm:$0xf0] }
   0xb   :  { %695 = vmatpush.bf16.msra.mxu3 %v1441_v38  ;;  %v1405_v41 = vor.u32 %v1583_v40, %v1404_v39  ;;  %v1517_v45 = vld [vmem:[%s2395_s2 + $0x44] sm:$0xf]  ;;  %v1156_v46 = vld [vmem:[%s2395_s2 + $0x48] sm:$0xf0]  ;;  %v1369_v47 = vor.u32 %v1574_v44, %v1368_v43  ;;  %v1515_v49 = vld [vmem:[%s2395_s2 + $0x34] sm:$0xf] }
   0xc   :  { %136 = vmatpush.bf16.msra.mxu0 %v1163_v8  ;;  %v1159_v48 = vor.u32 %v1517_v45, %v1156_v46  ;;  %v1148_v50 = vld [vmem:[%s2395_s2 + $0x38] sm:$0xf0]  ;;  %v1513_v52 = vld [vmem:[%s2395_s2 + $0x24] sm:$0xf]  ;;  %v1140_v53 = vld [vmem:[%s2395_s2 + $0x28] sm:$0xf0] }
   0xd   :  { %v1151_v51 = vor.u32 %v1515_v49, %v1148_v50  ;;  %v1143_v54 = vor.u32 %v1513_v52, %v1140_v53  ;;  %v1511_v55 = vld [vmem:[%s2395_s2 + $0x14] sm:$0xf]  ;;  %v1132_v56 = vld [vmem:[%s2395_s2 + $0x18] sm:$0xf0]  ;;  %v52_v57 = vld [vmem:[%s2400_s3] sm:$0xff] }
   0xe   :  { %148 = vmatpush.bf16.msra.mxu1 %v1175_v33  ;;  %v1135_v58 = vor.u32 %v1511_v55, %v1132_v56  ;;  %v1818_v61 = vld [vmem:[%s2401_s4] sm:$0xff]  ;;  %v1124_v0 = vld [vmem:[%s2395_s2 + $0x8] sm:$0xf0]  ;;  %v1588_v4 = vld [vmem:[%s2399_s6 + $0x1fc] sm:$0xf]  ;;  %v160_v56 = vlaneseq }
   0xf   :  { %696 = vmatpush.bf16.msra.mxu3 %v1405_v41  ;;  %v1509_v63 = vld [vmem:[%s2395_s2 + $0x4] sm:$0xf]  ;;  %v1332_v1 = vld [vmem:[%s2399_s6 + $0x120] sm:$0xf]  ;;  %v1450_v12 = vld [vmem:[%s2399_s6 + $0x224] sm:$0xf0] }
  0x10   :  { %137 = vmatpush.bf16.msra.mxu0 %v1155_v11  ;;  %v1127_v2 = vor.u32 %v1509_v63, %v1124_v0  ;;  %v1565_v3 = vld [vmem:[%s2399_s6 + $0x140] sm:$0xf0]  ;;  %v1442_v5 = vld [vmem:[%s2399_s6 + $0x21c] sm:$0xf0]  ;;  %v1556_v15 = vld [vmem:[%s2399_s6 + $0xf8] sm:$0xf0] }
  0x11   :  { %v1333_v6 = vor.u32 %v1565_v3, %v1332_v1  ;;  %v1445_v7 = vor.u32 %v1588_v4, %v1442_v5  ;;  %v1448_v8 = vld [vmem:[%s2399_s6 + $0x200] sm:$0xf]  ;;  %v1593_v9 = vld [vmem:[%s2399_s6 + $0x220] sm:$0xf0]  ;;  %v1406_v18 = vld [vmem:[%s2399_s6 + $0x1d4] sm:$0xf0] }
  0x12   :  { %149 = vmatpush.bf16.msra.mxu1 %v1167_v42  ;;  %v1449_v10 = vor.u32 %v1593_v9, %v1448_v8  ;;  %v1589_v11 = vld [vmem:[%s2399_s6 + $0x204] sm:$0xf]  ;;  %v1584_v21 = vld [vmem:[%s2399_s6 + $0x1d8] sm:$0xf0]  ;;  %v1414_v24 = vld [vmem:[%s2399_s6 + $0x1dc] sm:$0xf0] }
  0x13   :  { %697 = vmatpush.bf16.msra.mxu3 %v1369_v47  ;;  %v1453_v13 = vor.u32 %v1589_v11, %v1450_v12  ;;  %v1580_v22 = vld [vmem:[%s2399_s6 + $0x1bc] sm:$0xf]  ;;  %v1260_v25 = vld [vmem:[%s2399_s6 + $0x90] sm:$0xf]  ;;  %v1575_v33 = vld [vmem:[%s2399_s6 + $0x190] sm:$0xf0] }
  0x14   :  { %138 = vmatpush.bf16.msra.mxu0 %v1147_v14  ;;  %v1296_v14 = vld [vmem:[%s2399_s6 + $0xd8] sm:$0xf]  ;;  %v1417_v28 = vor.u32 %v1580_v22, %v1414_v24  ;;  %v1370_v30 = vld [vmem:[%s2399_s6 + $0x18c] sm:$0xf0]  ;;  %v1571_v34 = vld [vmem:[%s2399_s6 + $0x174] sm:$0xf] }
  0x15   :  { %v1297_v16 = vor.u32 %v1556_v15, %v1296_v14  ;;  %v1376_v31 = vld [vmem:[%s2399_s6 + $0x170] sm:$0xf]  ;;  %v1378_v35 = vld [vmem:[%s2399_s6 + $0x194] sm:$0xf0]  ;;  %v1224_v38 = vld [vmem:[%s2399_s6 + $0x48] sm:$0xf] }
  0x16   :  { %150 = vmatpush.bf16.msra.mxu1 %v1159_v48  ;;  %v1377_v36 = vor.u32 %v1575_v33, %v1376_v31  ;;  %v1381_v37 = vor.u32 %v1571_v34, %v1378_v35  ;;  %v1538_v39 = vld [vmem:[%s2399_s6 + $0x68] sm:$0xf0]  ;;  %v1561_v41 = vld [vmem:[%s2399_s6 + $0x124] sm:$0xf]  ;;  %v1334_v42 = vld [vmem:[%s2399_s6 + $0x144] sm:$0xf0] }
  0x17   :  { %698 = vmatpush.bf16.msra.mxu3 %v1333_v6  ;;  %v1225_v40 = vor.u32 %v1538_v39, %v1224_v38  ;;  %v1340_v43 = vld [vmem:[%s2399_s6 + $0x128] sm:$0xf]  ;;  %v1337_v44 = vor.u32 %v1561_v41, %v1334_v42  ;;  %v1566_v45 = vld [vmem:[%s2399_s6 + $0x148] sm:$0xf0]  ;;  %v1342_v47 = vld [vmem:[%s2399_s6 + $0x14c] sm:$0xf0] }
  0x18   :  { %139 = vmatpush.bf16.msra.mxu0 %v1139_v17  ;;  %v1579_v17 = vld [vmem:[%s2399_s6 + $0x1b4] sm:$0xf]  ;;  %v1562_v46 = vld [vmem:[%s2399_s6 + $0x12c] sm:$0xf]  ;;  %v1341_v48 = vor.u32 %v1566_v45, %v1340_v43  ;;  %v1188_v50 = vld [vmem:[%s2399_s6] sm:$0xf] }
  0x19   :  { %v1409_v19 = vor.u32 %v1579_v17, %v1406_v18  ;;  %v1345_v49 = vor.u32 %v1562_v46, %v1342_v47  ;;  %v1552_v53 = vld [vmem:[%s2399_s6 + $0xdc] sm:$0xf]  ;;  %v1304_v55 = vld [vmem:[%s2399_s6 + $0xe0] sm:$0xf]  ;;  %v1456_v1 = vld [vmem:[%s2399_s6 + $0x208] sm:$0xf] }
  0x1a   :  { %151 = vmatpush.bf16.msra.mxu1 %v1151_v51  ;;  %v1529_v51 = vld [vmem:[%s2399_s6 + $0x20] sm:$0xf0]  ;;  %v164_v3 = vshrl.u32 %v160_v56, 7  ;;  %v1543_v5 = vld [vmem:[%s2399_s6 + $0x94] sm:$0xf]  ;;  %v1974_v12 = vand.u32 127, %v160_v56 }
  0x1b   :  { %699 = vmatpush.bf16.msra.mxu3 %v1297_v16  ;;  %v1189_v52 = vor.u32 %v1529_v51, %v1188_v50  ;;  %v1262_v6 = vld [vmem:[%s2399_s6 + $0xb4] sm:$0xf0]  ;;  %v1548_v9 = vld [vmem:[%s2399_s6 + $0xb8] sm:$0xf0]  ;;  %v1270_v11 = vld [vmem:[%s2399_s6 + $0xbc] sm:$0xf0] }
  0x1c   :  { %140 = vmatpush.bf16.msra.mxu0 %v1131_v20  ;;  %v1412_v20 = vld [vmem:[%s2399_s6 + $0x1b8] sm:$0xf]  ;;  %v1265_v8 = vor.u32 %v1543_v5, %v1262_v6  ;;  %v1420_v15 = vld [vmem:[%s2399_s6 + $0x1c0] sm:$0xf]  ;;  %v1585_v16 = vld [vmem:[%s2399_s6 + $0x1e0] sm:$0xf0] }
  0x1d   :  { %v1413_v23 = vor.u32 %v1584_v21, %v1412_v20  ;;  %v165_v17 = vand.u32 3, %v164_v3  ;;  %v1421_v18 = vor.u32 %v1585_v16, %v1420_v15  ;;  %v1226_v20 = vld [vmem:[%s2399_s6 + $0x6c] sm:$0xf0]  ;;  %v1535_v24 = vld [vmem:[%s2399_s6 + $0x54] sm:$0xf]  ;;  %vm162_vm1 = vcmp.lt.s32.totalorder %v1974_v12, 32 }
  0x1e   :  { %152 = vmatpush.bf16.msra.mxu1 %v1143_v54  ;;  %v1298_v54 = vld [vmem:[%s2399_s6 + $0xfc] sm:$0xf0]  ;;  %v1232_v21 = vld [vmem:[%s2399_s6 + $0x50] sm:$0xf]  ;;  %v1525_v33 = vld [vmem:[%s2399_s6 + $0x4] sm:$0xf] }
  0x1f   :  { %vm2007_vm3 = vcmp.ge.s32.totalorder %v165_v17, 2  ;;  %vm2011_vm5 = vcmp.ge.s32.totalorder %v165_v17, 1  ;;  %v1190_v34 = vld [vmem:[%s2399_s6 + $0x24] sm:$0xf0]  ;;  %v1526_v38 = vld [vmem:[%s2399_s6 + $0xc] sm:$0xf] }
  0x20   :  { %141 = vmatpush.bf16.msra.mxu0 %v1123_v26  ;;  %v1547_v26 = vld [vmem:[%s2399_s6 + $0xb0] sm:$0xf0]  ;;  %v1196_v35 = vld [vmem:[%s2399_s6 + $0x8] sm:$0xf]  ;;  %v1198_v39 = vld [vmem:[%s2399_s6 + $0x2c] sm:$0xf0] }
  0x21   :  { %v1261_v29 = vor.u32 %v1547_v26, %v1260_v25  ;;  %v1234_v25 = vld [vmem:[%s2399_s6 + $0x74] sm:$0xf0]  ;;  %v1201_v41 = vor.u32 %v1526_v38, %v1198_v39  ;;  %v1348_v42 = vld [vmem:[%s2399_s6 + $0x130] sm:$0xf]  ;;  %v1567_v43 = vld [vmem:[%s2399_s6 + $0x150] sm:$0xf0] }
  0x22   :  { %153 = vmatpush.bf16.msra.mxu1 %v1135_v58  ;;  %v1557_v58 = vld [vmem:[%s2399_s6 + $0x100] sm:$0xf0]  ;;  %v1349_v45 = vor.u32 %v1567_v43, %v1348_v42  ;;  %v1458_v46 = vld [vmem:[%s2399_s6 + $0x22c] sm:$0xf0]  ;;  %v1591_v51 = vld [vmem:[%s2399_s6 + $0x214] sm:$0xf] }
  0x23   :  { %142 = vmatmul.bf16.vlgmr.msra.gmra.mxu0 %v1747_v27  ;;  %700 = vmatpush.bf16.msra.mxu3 %v1261_v29  ;;  %v1305_v63 = vor.u32 %v1557_v58, %v1304_v55  ;;  %v1384_v29 = vld [vmem:[%s2399_s6 + $0x178] sm:$0xf]  ;;  %v1464_v47 = vld [vmem:[%s2399_s6 + $0x210] sm:$0xf]  ;;  %v1605_v55 = vld [vmem:[%s2398_s5] ss:$0 sm:$0xff] }
  0x24   :  { %721 = vmatpush.bf16.msrb.mxu0 %v1449_v10  ;;  %v1544_v10 = vld [vmem:[%s2399_s6 + $0x9c] sm:$0xf]  ;;  %v1581_v58 = vld [vmem:[%s2399_s6 + $0x1c4] sm:$0xf]  ;;  %v1582_v3 = vld [vmem:[%s2399_s6 + $0x1cc] sm:$0xf] }
  0x25   :  { %v1273_v14 = vor.u32 %v1544_v10, %v1270_v11  ;;  %v1276_v10 = vld [vmem:[%s2399_s6 + $0xa0] sm:$0xf]  ;;  %v1549_v11 = vld [vmem:[%s2399_s6 + $0xc0] sm:$0xf0]  ;;  %v1572_v16 = vld [vmem:[%s2399_s6 + $0x17c] sm:$0xf] }
  0x26   :  { %154 = vmatpush.bf16.msra.mxu1 %v1127_v2  ;;  %v1594_v2 = vld [vmem:[%s2399_s6 + $0x228] sm:$0xf0]  ;;  %v1277_v15 = vor.u32 %v1549_v11, %v1276_v10  ;;  %v1386_v17 = vld [vmem:[%s2399_s6 + $0x19c] sm:$0xf0]  ;;  %v1350_v38 = vld [vmem:[%s2399_s6 + $0x154] sm:$0xf0] }
  0x27   :  { %701 = vmatpush.bf16.msra.mxu3 %v1225_v40  ;;  %v1457_v4 = vor.u32 %v1594_v2, %v1456_v1  ;;  %v1428_v1 = vld [vmem:[%s2399_s6 + $0x1c8] sm:$0xf]  ;;  %v1586_v2 = vld [vmem:[%s2399_s6 + $0x1e8] sm:$0xf0]  ;;  %v1356_v39 = vld [vmem:[%s2399_s6 + $0x138] sm:$0xf] }
  0x28   :  { %722 = vmatpush.bf16.msrb.mxu0 %v1413_v23  ;;  %v1539_v23 = vld [vmem:[%s2399_s6 + $0x70] sm:$0xf0]  ;;  %v1429_v6 = vor.u32 %v1586_v2, %v1428_v1  ;;  %v1564_v42 = vld [vmem:[%s2399_s6 + $0x13c] sm:$0xf]  ;;  %v1358_v43 = vld [vmem:[%s2399_s6 + $0x15c] sm:$0xf0] }
  0x29   :  { %155 = vmatmul.bf16.vlgmr.msra.gmra.mxu1 %v1747_v27  ;;  %v1570_v27 = vld [vmem:[%s2399_s6 + $0x16c] sm:$0xf]  ;;  %v1233_v26 = vor.u32 %v1539_v23, %v1232_v21  ;;  %v1392_v21 = vld [vmem:[%s2399_s6 + $0x180] sm:$0xf]  ;;  %v1284_v1 = vld [vmem:[%s2399_s6 + $0xa8] sm:$0xf] }
  0x2a   :  { %734 = vmatpush.bf16.msrb.mxu1 %v1453_v13  ;;  %v1373_v32 = vor.u32 %v1570_v27, %v1370_v30  ;;  %v1576_v27 = vld [vmem:[%s2399_s6 + $0x198] sm:$0xf0]  ;;  %v1541_v11 = vld [vmem:[%s2399_s6 + $0x80] sm:$0xf0]  ;;  %v1598_v30 = vld [vmem:[%s2402_s7 + $0x8] sm:$0xff] }
  0x2b   :  { %702 = vmatpush.bf16.msra.mxu3 %v1189_v52  ;;  %v1466_v52 = vld [vmem:[%s2399_s6 + $0x234] sm:$0xf0] }
  0x2c   :  { %723 = vmatpush.bf16.msrb.mxu0 %v1377_v36  ;;  %v1193_v36 = vor.u32 %v1525_v33, %v1190_v34  ;;  %v1469_v56 = vor.u32 %v1591_v51, %v1466_v52  ;;  %v1540_v33 = vld [vmem:[%s2399_s6 + $0x78] sm:$0xf0]  ;;  %v1554_v51 = vld [vmem:[%s2399_s6 + $0xec] sm:$0xf]  ;;  %v1314_v52 = vld [vmem:[%s2399_s6 + $0x10c] sm:$0xf0] }
  0x2e   :  { %735 = vmatpush.bf16.msrb.mxu1 %v1417_v28  ;;  %v1237_v28 = vor.u32 %v1535_v24, %v1234_v25 }
  0x2f   :  { %747 = vmatpush.bf16.msrb.mxu3 %v1457_v4 }
  0x30   :  { %724 = vmatpush.bf16.msrb.mxu0 %v1341_v48  ;;  %v1595_v48 = vld [vmem:[%s2399_s6 + $0x230] sm:$0xf0] }
  0x31   :  { %v1465_v50 = vor.u32 %v1595_v48, %v1464_v47  ;;  %v1204_v48 = vld [vmem:[%s2399_s6 + $0x10] sm:$0xf] }
  0x32   :  { %736 = vmatpush.bf16.msrb.mxu1 %v1381_v37  ;;  %v1530_v37 = vld [vmem:[%s2399_s6 + $0x28] sm:$0xf0] }
  0x33   :  { %748 = vmatpush.bf16.msrb.mxu3 %v1421_v18  ;;  %v1197_v40 = vor.u32 %v1530_v37, %v1196_v35  ;;  %v1563_v37 = vld [vmem:[%s2399_s6 + $0x134] sm:$0xf] }
  0x34   :  { %725 = vmatpush.bf16.msrb.mxu0 %v1305_v63 }
  0x36   :  { %737 = vmatpush.bf16.msrb.mxu1 %v1345_v49 }
  0xa0   :  { %v143_v59 = vpop.f32.mrf.mxu0 }
  0xa1   :  { %v1813_v60 = vadd.f32 %v143_v59, %v52_v57  ;;  %v1301_v57 = vor.u32 %v1552_v53, %v1298_v54  ;;  %v1553_v59 = vld [vmem:[%s2399_s6 + $0xe4] sm:$0xf]  ;;  %v1312_v53 = vld [vmem:[%s2399_s6 + $0xe8] sm:$0xf] }
  0xa3   :  { %186 = vmatpush.msra.mxu2 %v1813_v60 }
  0xa4   :  { %1184 = vmatmul.msk.f32.vlgmr.msra.gmra.mxu2 %vm167_vm0, %v1818_v61 }
  0xa5   :  { %708 = vmatpush.bf16.msrb.mxu2 %v1445_v7  ;;  %v1268_v7 = vld [vmem:[%s2399_s6 + $0x98] sm:$0xf] }
  0xa6   :  { %v1269_v13 = vor.u32 %v1548_v9, %v1268_v7  ;;  %v1430_v7 = vld [vmem:[%s2399_s6 + $0x1ec] sm:$0xf0] }
  0xa7   :  { %v1433_v9 = vor.u32 %v1582_v3, %v1430_v7  ;;  %v1550_v3 = vld [vmem:[%s2399_s6 + $0xc8] sm:$0xf0]  ;;  %v1536_v7 = vld [vmem:[%s2399_s6 + $0x5c] sm:$0xf] }
  0xa8   :  { %v145_v62 = vpop.f32.mrf.mxu0  ;;  %726 = vmatpush.bf16.msrb.mxu0 %v1269_v13 }
  0xa9   :  { %709 = vmatpush.bf16.msrb.mxu2 %v1409_v19  ;;  %v1306_v62 = vld [vmem:[%s2399_s6 + $0x104] sm:$0xf0]  ;;  %v1534_v19 = vld [vmem:[%s2399_s6 + $0x4c] sm:$0xf] }
  0xaa   :  { %v1309_v0 = vor.u32 %v1553_v59, %v1306_v62  ;;  %v1229_v22 = vor.u32 %v1534_v19, %v1226_v20  ;;  %v1422_v59 = vld [vmem:[%s2399_s6 + $0x1e4] sm:$0xf0]  ;;  %v1389_v20 = vor.u32 %v1572_v16, %v1386_v17 }
  0xac   :  { %738 = vmatpush.bf16.msrb.mxu1 %v1309_v0  ;;  %727 = vmatpush.bf16.msrb.mxu0 %v1233_v26  ;;  %v1425_v0 = vor.u32 %v1581_v58, %v1422_v59  ;;  %v1573_v26 = vld [vmem:[%s2399_s6 + $0x184] sm:$0xf]  ;;  %v1322_v59 = vld [vmem:[%s2399_s6 + $0x114] sm:$0xf0] }
  0xad   :  { %710 = vmatpush.bf16.msrb.mxu2 %v1373_v32  ;;  %v1385_v32 = vor.u32 %v1576_v27, %v1384_v29  ;;  %v1608_v29 = vld [vmem:[%s2398_s5 + $0x3] ss:$0 sm:$0xff] }
  0xaf   :  { %749 = vmatpush.bf16.msrb.mxu3 %v1385_v32  ;;  %v1240_v32 = vld [vmem:[%s2399_s6 + $0x58] sm:$0xf] }
  0xb0   :  { %739 = vmatpush.bf16.msrb.mxu1 %v1273_v14  ;;  %728 = vmatpush.bf16.msrb.mxu0 %v1197_v40  ;;  %v1353_v40 = vor.u32 %v1563_v37, %v1350_v38 }
  0xb1   :  { %711 = vmatpush.bf16.msrb.mxu2 %v1337_v44  ;;  %v1590_v44 = vld [vmem:[%s2399_s6 + $0x20c] sm:$0xf] }
  0xb2   :  { %v1461_v49 = vor.u32 %v1590_v44, %v1458_v46  ;;  %v1361_v46 = vor.u32 %v1564_v42, %v1358_v43 }
  0xb3   :  { %750 = vmatpush.bf16.msrb.mxu3 %v1349_v45 }
  0xb4   :  { %740 = vmatpush.bf16.msrb.mxu1 %v1237_v28  ;;  %773 = vmatpush.bf16.msra.mxu0 %v1465_v50  ;;  %v1394_v28 = vld [vmem:[%s2399_s6 + $0x1a4] sm:$0xf0] }
  0xb5   :  { %712 = vmatpush.bf16.msrb.mxu2 %v1301_v57  ;;  %v1558_v57 = vld [vmem:[%s2399_s6 + $0x108] sm:$0xf0]  ;;  %v1397_v27 = vor.u32 %v1573_v26, %v1394_v28  ;;  %v1214_v26 = vld [vmem:[%s2399_s6 + $0x3c] sm:$0xf0] }
  0xb6   :  { %v1313_v63 = vor.u32 %v1558_v57, %v1312_v53  ;;  %v1320_v53 = vld [vmem:[%s2399_s6 + $0xf0] sm:$0xf]  ;;  %v1555_v57 = vld [vmem:[%s2399_s6 + $0xf4] sm:$0xf] }
  0xb8   :  { %741 = vmatpush.bf16.msrb.mxu1 %v1201_v41  ;;  %751 = vmatpush.bf16.msrb.mxu3 %v1313_v63  ;;  %v1568_v41 = vld [vmem:[%s2399_s6 + $0x158] sm:$0xf0]  ;;  %v1545_v63 = vld [vmem:[%s2399_s6 + $0xa4] sm:$0xf] }
  0xb9   :  { %713 = vmatpush.bf16.msrb.mxu2 %v1265_v8  ;;  %v1607_v8 = vld [vmem:[%s2398_s5 + $0x2] ss:$0 sm:$0xff]  ;;  %774 = vmatpush.bf16.msra.mxu0 %v1429_v6  ;;  %v1357_v45 = vor.u32 %v1568_v41, %v1356_v39  ;;  %v1596_v41 = vld [vmem:[%s2399_s6 + $0x238] sm:$0xf0] }
  0xbc   :  { %786 = vmatpush.bf16.msra.mxu1 %v1469_v56  ;;  %752 = vmatpush.bf16.msrb.mxu3 %v1277_v15  ;;  %v1559_v56 = vld [vmem:[%s2399_s6 + $0x110] sm:$0xf0] }
  0xbd   :  { %714 = vmatpush.bf16.msrb.mxu2 %v1229_v22  ;;  %v1577_v22 = vld [vmem:[%s2399_s6 + $0x1a0] sm:$0xf0]  ;;  %v1321_v58 = vor.u32 %v1559_v56, %v1320_v53 }
  0xbe   :  { %v1393_v25 = vor.u32 %v1577_v22, %v1392_v21  ;;  %v1212_v21 = vld [vmem:[%s2399_s6 + $0x18] sm:$0xf]  ;;  %v1532_v22 = vld [vmem:[%s2399_s6 + $0x38] sm:$0xf0] }
  0xc0   :  { %787 = vmatpush.bf16.msra.mxu1 %v1433_v9  ;;  %775 = vmatpush.bf16.msra.mxu0 %v1393_v25  ;;  %v1248_v9 = vld [vmem:[%s2399_s6 + $0x60] sm:$0xf]  ;;  %v1528_v25 = vld [vmem:[%s2399_s6 + $0x1c] sm:$0xf] }
  0xc1   :  { %715 = vmatpush.bf16.msrb.mxu2 %v1193_v36  ;;  %v1241_v36 = vor.u32 %v1540_v33, %v1240_v32  ;;  %v1249_v16 = vor.u32 %v1541_v11, %v1248_v9  ;;  %v1217_v28 = vor.u32 %v1528_v25, %v1214_v26 }
  0xc3   :  { %753 = vmatpush.bf16.msrb.mxu3 %v1241_v36 }
  0xc4   :  { %788 = vmatpush.bf16.msra.mxu1 %v1397_v27  ;;  %776 = vmatpush.bf16.msra.mxu0 %v1357_v45  ;;  %v1436_v45 = vld [vmem:[%s2399_s6 + $0x1d0] sm:$0xf] }
  0xc5   :  { %760 = vmatpush.bf16.msra.mxu2 %v1461_v49  ;;  %v1531_v49 = vld [vmem:[%s2399_s6 + $0x30] sm:$0xf0] }
  0xc6   :  { %v1205_v50 = vor.u32 %v1531_v49, %v1204_v48  ;;  %v1578_v49 = vld [vmem:[%s2399_s6 + $0x1a8] sm:$0xf0] }
  0xc8   :  { %789 = vmatpush.bf16.msra.mxu1 %v1361_v46  ;;  %754 = vmatpush.bf16.msrb.mxu3 %v1205_v50  ;;  %v1587_v46 = vld [vmem:[%s2399_s6 + $0x1f0] sm:$0xf0] }
  0xc9   :  { %761 = vmatpush.bf16.msra.mxu2 %v1425_v0  ;;  %v1278_v0 = vld [vmem:[%s2399_s6 + $0xc4] sm:$0xf0]  ;;  %777 = vmatpush.bf16.msra.mxu0 %v1321_v58  ;;  %v1437_v48 = vor.u32 %v1587_v46, %v1436_v45  ;;  %v1551_v58 = vld [vmem:[%s2399_s6 + $0xd0] sm:$0xf0] }
  0xca   :  { %v1281_v2 = vor.u32 %v1545_v63, %v1278_v0  ;;  %v1542_v63 = vld [vmem:[%s2399_s6 + $0x88] sm:$0xf0] }
  0xcd   :  { %762 = vmatpush.bf16.msra.mxu2 %v1389_v20  ;;  %v1206_v20 = vld [vmem:[%s2399_s6 + $0x34] sm:$0xf0] }
  0xd1   :  { %763 = vmatpush.bf16.msra.mxu2 %v1353_v40  ;;  %v1472_v40 = vld [vmem:[%s2399_s6 + $0x218] sm:$0xf] }
 0x127   :  { %v188_v54 = vpop.f32.mrf.mxu2 }
 0x128   :  { %v193_v62 = vsel %vm162_vm1, %v1813_v60, %v188_v54  ;;  %v1606_v60 = vld [vmem:[%s2398_s5 + $0x1] ss:$0 sm:$0xff] }
 0x129   :  { %v195_v4 = vrot.slane %v193_v62, 6  ;;  %v207_v5 = vrot.slane %v193_v62, 7  ;;  %v221_v35 = vmul.f32 %v1607_v8, %v193_v62  ;;  %v1325_v62 = vor.u32 %v1555_v57, %v1322_v59  ;;  %v1242_v8 = vld [vmem:[%s2399_s6 + $0x7c] sm:$0xf0]  ;;  %v1292_v57 = vld [vmem:[%s2399_s6 + $0xb0] sm:$0xf] }
 0x12a   :  { %v1245_v10 = vor.u32 %v1536_v7, %v1242_v8  ;;  %v1293_v59 = vor.u32 %v1551_v58, %v1292_v57  ;;  %v1609_v7 = vld [vmem:[%s2398_s5 + $0x4] ss:$0 sm:$0xff] }
 0x12b   :  { %v198_v13 = vsel %vm197_vm2, 0.0, %v195_v4  ;;  %v210_v14 = vsel %vm209_vm4, 0.0, %v207_v5  ;;  %v1546_v4 = vld [vmem:[%s2399_s6 + $0xac] sm:$0xf]  ;;  %v1286_v5 = vld [vmem:[%s2399_s6 + $0xcc] sm:$0xf0]  ;;  %790 = vmatpush.bf16.msra.mxu1 %v1325_v62 }
 0x12c   :  { %v202_v18 = vsel %vm2007_vm3, %v198_v13, 0.0  ;;  %v214_v19 = vsel %vm2011_vm5, %v210_v14, 0.0  ;;  %v1289_v6 = vor.u32 %v1546_v4, %v1286_v5  ;;  %v1537_v13 = vld [vmem:[%s2399_s6 + $0x64] sm:$0xf]  ;;  %v1250_v14 = vld [vmem:[%s2399_s6 + $0x84] sm:$0xf0]  ;;  %v2284_v4 = vpop.f32.mrf.mxu1 }
 0x12d   :  { %v205_v23 = vmul.f32 %v1605_v55, %v202_v18  ;;  %v217_v24 = vmul.f32 %v1606_v60, %v214_v19  ;;  %v1317_v55 = vor.u32 %v1554_v51, %v1314_v52  ;;  %v1285_v60 = vor.u32 %v1550_v3, %v1284_v1  ;;  %v1527_v19 = vld [vmem:[%s2399_s6 + $0x14] sm:$0xf]  ;;  %v1364_v51 = vld [vmem:[%s2399_s6 + $0x140] sm:$0xf]  ;;  %v1569_v52 = vld [vmem:[%s2399_s6 + $0x160] sm:$0xf0] }
 0x12e   :  { %v1253_v17 = vor.u32 %v1537_v13, %v1250_v14  ;;  %v1365_v53 = vor.u32 %v1569_v52, %v1364_v51  ;;  %v1256_v62 = vld [vmem:[%s2399_s6 + $0x68] sm:$0xf]  ;;  %v1220_v1 = vld [vmem:[%s2399_s6 + $0x20] sm:$0xf] }
 0x12f   :  { %v218_v34 = vadd.f32 %v217_v24, %v205_v23  ;;  %764 = vmatpush.bf16.msra.mxu2 %v1317_v55  ;;  %778 = vmatpush.bf16.msra.mxu0 %v1285_v60  ;;  %v1209_v23 = vor.u32 %v1527_v19, %v1206_v20  ;;  %v1213_v24 = vor.u32 %v1532_v22, %v1212_v21  ;;  %v1560_v55 = vld [vmem:[%s2399_s6 + $0x118] sm:$0xf0] }
 0x130   :  { %791 = vmatpush.bf16.msra.mxu1 %v1289_v6  ;;  %v1257_v0 = vor.u32 %v1542_v63, %v1256_v62  ;;  %v1603_v62 = vld [vmem:[%s2402_s7 + $0x30] sm:$0xff] }
 0x131   :  { %v222_v44 = vadd.f32 %v221_v35, %v218_v34 }
 0x133   :  { %v2150_v47 = vadd.f32 %v1608_v29, %v222_v44  ;;  %765 = vmatpush.bf16.msra.mxu2 %v1281_v2  ;;  %779 = vmatpush.bf16.msra.mxu0 %v1249_v16  ;;  %v1473_v44 = vor.u32 %v1596_v41, %v1472_v40  ;;  %v1533_v2 = vld [vmem:[%s2399_s6 + $0x40] sm:$0xf0] }
 0x134   :  { %792 = vmatpush.bf16.msra.mxu1 %v1253_v17  ;;  %v1221_v3 = vor.u32 %v1533_v2, %v1220_v1  ;;  %v158_v5 = vpop.f32.mrf.mxu1 }
 0x135   :  { %v1185_v54 = vmul.f32 -1.442695, %v2150_v47 }
 0x137   :  { %1617 = vpow2.f32 %v1185_v54  ;;  %766 = vmatpush.bf16.msra.mxu2 %v1245_v10  ;;  %780 = vmatpush.bf16.msra.mxu0 %v1213_v24  ;;  %v1328_v54 = vld [vmem:[%s2399_s6 + $0xf8] sm:$0xf] }
 0x138   :  { %793 = vmatpush.bf16.msra.mxu1 %v1217_v28  ;;  %v1329_v56 = vor.u32 %v1560_v55, %v1328_v54  ;;  %v1604_v55 = vld [vmem:[%s2402_s7 + $0x38] sm:$0xff] }
 0x13b   :  { %767 = vmatpush.bf16.msra.mxu2 %v1209_v23 }
 0x13d   :  { %v1618_v15 = vpop.eup %1617 }
 0x13e   :  { %v229_v18 = vadd.f32 1.0, %v1618_v15 }
 0x140   :  { %1619 = vrcp.f32 %v229_v18  ;;  %v241_v33 = vand.u32 2147483648, %v229_v18  ;;  %v239_v35 = vand.u32 2147483647, %v229_v18  ;;  %vm235_vm7 = vweird.f32 %v229_v18 }
 0x142   :  { %v242_v37 = vor.u32 1.1754944e-38, %v241_v33  ;;  %vm240_vm9 = vcmp.eq.f32.partialorder %v239_v35, 8.507059e+37  ;;  %v1611_v33 = vld [vmem:[%s2398_s5 + $0x7] ss:$0 sm:$0xff] }
 0x146   :  { %v1620_v29 = vpop.eup %1619 }
 0x147   :  { %v231_v27 = vmul.f32 %v1620_v29, %v229_v18  ;;  %vm236_vm6 = vweird.f32 %v1620_v29 }
 0x148   :  { %vm237_vm8 = vmor %vm235_vm7, %vm236_vm6 }
 0x149   :  { %v232_v32 = vsub.f32 1.0, %v231_v27 }
 0x14b   :  { %v233_v34 = vmul.f32 %v1620_v29, %v232_v32  ;;  %v1610_v32 = vld [vmem:[%s2398_s5 + $0x6] ss:$0 sm:$0xff] }
 0x14d   :  { %v234_v36 = vadd.f32 %v1620_v29, %v233_v34 }
 0x14f   :  { %v238_v38 = vsel %vm237_vm8, %v1620_v29, %v234_v36  ;;  %v1612_v36 = vld [vmem:[%s2398_s5 + $0x8] ss:$0 sm:$0xff] }
 0x150   :  { %v243_v39 = vsel %vm240_vm9, %v242_v37, %v238_v38  ;;  %v1613_v37 = vld [vmem:[%s2398_s5 + $0x9] ss:$0 sm:$0xff] }
 0x151   :  { %v2238_v42 = vmul.f32 %v243_v39, %v2150_v47  ;;  %v1400_v47 = vld [vmem:[%s2399_s6 + $0x188] sm:$0xf] }
 0x152   :  { %v1401_v50 = vor.u32 %v1578_v49, %v1400_v47 }
 0x153   :  { %v246_v43 = vpack.c.bf16 %v2238_v42, %v2238_v42 }
 0x155   :  { %703 = vmatmul.bf16.vlgmr.msra.gmra.mxu3 %v246_v43  ;;  %716 = vmatmul.bf16.vlgmr.msrb.gmra.mxu2 %v246_v43 }
 0x156   :  { %729 = vmatmul.bf16.vlgmr.msrb.gmra.mxu0 %v246_v43  ;;  %742 = vmatmul.bf16.vlgmr.msrb.gmra.mxu1 %v246_v43 }
 0x157   :  { %799 = vmatpush.bf16.msra.mxu3 %v1473_v44  ;;  %1052 = vmatpush.bf16.msrb.mxu2 %v1604_v55 }
 0x15b   :  { %800 = vmatpush.bf16.msra.mxu3 %v1437_v48  ;;  %1053 = vmatpush.bf16.msrb.mxu2 %v1603_v62 }
 0x15f   :  { %801 = vmatpush.bf16.msra.mxu3 %v1401_v50 }
 0x163   :  { %802 = vmatpush.bf16.msra.mxu3 %v1365_v53 }
 0x165   :  { %755 = vmatmul.bf16.vlgmr.msrb.gmra.mxu3 %v246_v43  ;;  %768 = vmatmul.bf16.vlgmr.msra.gmra.mxu2 %v246_v43 }
 0x166   :  { %781 = vmatmul.bf16.vlgmr.msra.gmra.mxu0 %v246_v43  ;;  %794 = vmatmul.bf16.vlgmr.msra.gmra.mxu1 %v246_v43 }
 0x167   :  { %803 = vmatpush.bf16.msra.mxu3 %v1329_v56 }
 0x16b   :  { %804 = vmatpush.bf16.msra.mxu3 %v1293_v59 }
 0x16f   :  { %805 = vmatpush.bf16.msra.mxu3 %v1257_v0 }
 0x173   :  { %806 = vmatpush.bf16.msra.mxu3 %v1221_v3 }
 0x176   :  { %807 = vmatmul.bf16.vlgmr.msra.gmra.mxu3 %v246_v43 }
 0x1d3   :  { %v730_v60 = vpop.f32.mrf.mxu0  ;;  %v743_v6 = vpop.f32.mrf.mxu1 }
 0x1d8   :  { %v704_v8 = vpop.f32.mrf.mxu3  ;;  %v717_v9 = vpop.f32.mrf.mxu2 }
 0x1d9   :  { %v814_v10 = vadd.f32 %v1609_v7, %v704_v8 }
 0x1db   :  { %v816_v11 = vmin.f32 %v814_v10, 20.0  ;;  %v732_v13 = vpop.f32.mrf.mxu0  ;;  %v745_v14 = vpop.f32.mrf.mxu1  ;;  %vm815_vm11 = vcmp.gt.f32.partialorder %v814_v10, 20.0 }
 0x1dd   :  { %v817_v15 = vmul.f32 1.442695, %v816_v11 }
 0x1df   :  { %1621 = vpow2.f32 %v817_v15 }
 0x1e0   :  { %v706_v16 = vpop.f32.mrf.mxu3  ;;  %v719_v17 = vpop.f32.mrf.mxu2 }
 0x1e3   :  { %v2289_v18 = vpop.f32.mrf.mxu0  ;;  %v2291_v19 = vpop.f32.mrf.mxu1 }
 0x1e5   :  { %v1622_v20 = vpop.eup %1621 }
 0x1e6   :  { %v819_v21 = vadd.f32 1.0, %v1622_v20  ;;  %v822_v22 = vmul.f32 -0.5, %v1622_v20  ;;  %v825_v29 = vand.u32 2147483647, %v1622_v20 }
 0x1e8   :  { %1623 = vlog2.f32 %v819_v21  ;;  %v756_v23 = vpop.f32.mrf.mxu3  ;;  %v2293_v24 = vpop.f32.mrf.mxu2  ;;  %v823_v25 = vadd.f32 1.0, %v822_v22  ;;  %vm826_vm10 = vcmp.lt.f32.partialorder %v825_v29, 0.0004427343 }
 0x1ea   :  { %v824_v35 = vmul.f32 %v1622_v20, %v823_v25 }
 0x1eb   :  { %v784_v26 = vpop.f32.mrf.mxu0  ;;  %v797_v28 = vpop.f32.mrf.mxu1 }
 0x1ec   :  { %v1601_v26 = vld [vmem:[%s2402_s7 + $0x20] sm:$0xff] }
 0x1ee   :  { %v1624_v27 = vpop.eup %1623 }
 0x1ef   :  { %v821_v34 = vmul.f32 0.6931472, %v1624_v27 }
 0x1f0   :  { %v758_v38 = vpop.f32.mrf.mxu3  ;;  %v771_v39 = vpop.f32.mrf.mxu2 }
 0x1f1   :  { %v827_v40 = vsel %vm826_vm10, %v824_v35, %v821_v34 }
 0x1f2   :  { %v828_v41 = vsel %vm815_vm11, %v814_v10, %v827_v40 }
 0x1f3   :  { %v835_v43 = vmul.f32 %v1610_v32, %v828_v41  ;;  %v863_v44 = vmul.f32 %v1611_v33, %v828_v41  ;;  %v891_v45 = vmul.f32 %v1612_v36, %v828_v41  ;;  %v919_v46 = vmul.f32 %v1613_v37, %v828_v41 }
 0x1f4   :  { %v829_v48 = vmul.f32 %v828_v41, %v2238_v42 }
 0x1f5   :  { %v836_v47 = vmul.f32 1.442695, %v835_v43  ;;  %v864_v49 = vmul.f32 1.442695, %v863_v44  ;;  %v892_v50 = vmul.f32 1.442695, %v891_v45 }
 0x1f6   :  { %v920_v51 = vmul.f32 1.442695, %v919_v46  ;;  %v838_v52 = vmul.f32 %v829_v48, %v717_v9  ;;  %v866_v53 = vmul.f32 %v829_v48, %v730_v60  ;;  %v894_v54 = vmul.f32 %v829_v48, %v743_v6  ;;  %v1602_v60 = vld [vmem:[%s2402_s7 + $0x28] sm:$0xff]  ;;  %v1600_v46 = vld [vmem:[%s2402_s7 + $0x18] sm:$0xff] }
 0x1f7   :  { %1625 = vpow2.f32 %v836_v47  ;;  %v922_v56 = vmul.f32 %v829_v48, %v756_v23  ;;  %1054 = vmatpush.bf16.msrb.mxu2 %v1602_v60 }
 0x1f8   :  { %1627 = vpow2.f32 %v864_v49  ;;  %v840_v57 = vrot.slane %v838_v52, 7  ;;  %v868_v58 = vrot.slane %v866_v53, 7  ;;  %v896_v59 = vrot.slane %v894_v54, 7 }
 0x1f9   :  { %1629 = vpow2.f32 %v892_v50  ;;  %v924_v63 = vrot.slane %v922_v56, 7  ;;  %v2314_v0 = vpop.f32.mrf.mxu3 }
 0x1fa   :  { %1631 = vpow2.f32 %v920_v51  ;;  %v842_v1 = vsel %vm209_vm4, 0.0, %v840_v57  ;;  %v870_v2 = vsel %vm209_vm4, 0.0, %v868_v58  ;;  %v898_v3 = vsel %vm209_vm4, 0.0, %v896_v59 }
 0x1fb   :  { %v926_v5 = vsel %vm209_vm4, 0.0, %v924_v63  ;;  %v843_v7 = vsel %vm2011_vm5, %v842_v1, 0.0  ;;  %v871_v10 = vsel %vm2011_vm5, %v870_v2, 0.0  ;;  %v899_v16 = vsel %vm2011_vm5, %v898_v3, 0.0  ;;  %1055 = vmatpush.bf16.msrb.mxu2 %v1601_v26  ;;  %v1599_v3 = vld [vmem:[%s2402_s7 + $0x10] sm:$0xff] }
 0x1fc   :  { %v927_v17 = vsel %vm2011_vm5, %v926_v5, 0.0 }
 0x1fd   :  { %v1626_v6 = vpop.eup %1625 }
 0x1fe   :  { %v1628_v8 = vpop.eup %1627  ;;  %v844_v9 = vmul.f32 %v1626_v6, %v843_v7  ;;  %v847_v11 = vrot.slane %v1626_v6, 7 }
 0x1ff   :  { %v1630_v13 = vpop.eup %1629  ;;  %v872_v14 = vmul.f32 %v1628_v8, %v871_v10  ;;  %v875_v15 = vrot.slane %v1628_v8, 7  ;;  %1056 = vmatpush.bf16.msrb.mxu2 %v1600_v46 }
 0x200   :  { %v1632_v20 = vpop.eup %1631  ;;  %v845_v21 = vadd.f32 %v844_v9, %v838_v52  ;;  %v900_v22 = vmul.f32 %v1630_v13, %v899_v16  ;;  %v903_v23 = vrot.slane %v1630_v13, 7  ;;  %v849_v25 = vsel %vm209_vm4, 0.0, %v847_v11 }
 0x201   :  { %v873_v28 = vadd.f32 %v872_v14, %v866_v53  ;;  %v877_v29 = vsel %vm209_vm4, 0.0, %v875_v15  ;;  %v928_v27 = vmul.f32 %v1632_v20, %v927_v17  ;;  %v850_v32 = vsel %vm2011_vm5, %v849_v25, 0.0  ;;  %v810_v33 = vpop.f32.mrf.mxu3 }
 0x202   :  { %v853_v34 = vrot.slane %v845_v21, 6  ;;  %v878_v35 = vsel %vm2011_vm5, %v877_v29, 0.0  ;;  %v901_v36 = vadd.f32 %v900_v22, %v894_v54  ;;  %v905_v37 = vsel %vm209_vm4, 0.0, %v903_v23  ;;  %v1614_v54 = vld [vmem:[%s2398_s5 + $0x5] ss:$0 sm:$0xff] }
 0x203   :  { %v881_v38 = vrot.slane %v873_v28, 6  ;;  %v906_v39 = vsel %vm2011_vm5, %v905_v37, 0.0  ;;  %v929_v40 = vadd.f32 %v928_v27, %v922_v56  ;;  %v879_v41 = vmul.f32 %v1628_v8, %v878_v35  ;;  %1057 = vmatpush.bf16.msrb.mxu2 %v1599_v3 }
 0x204   :  { %v909_v43 = vrot.slane %v901_v36, 6  ;;  %v851_v44 = vmul.f32 %v1626_v6, %v850_v32  ;;  %v855_v45 = vsel %vm197_vm2, 0.0, %v853_v34  ;;  %v931_v50 = vrot.slane %v1632_v20, 7 }
 0x205   :  { %v883_v48 = vsel %vm197_vm2, 0.0, %v881_v38  ;;  %v937_v47 = vrot.slane %v929_v40, 6  ;;  %v856_v49 = vsel %vm2007_vm3, %v855_v45, 0.0  ;;  %v907_v52 = vmul.f32 %v1630_v13, %v906_v39 }
 0x206   :  { %v884_v51 = vsel %vm2007_vm3, %v883_v48, 0.0  ;;  %v911_v53 = vsel %vm197_vm2, 0.0, %v909_v43  ;;  %v857_v55 = vmul.f32 %v856_v49, %v851_v44  ;;  %v933_v58 = vsel %vm209_vm4, 0.0, %v931_v50 }
 0x207   :  { %v885_v56 = vmul.f32 %v884_v51, %v879_v41  ;;  %v912_v57 = vsel %vm2007_vm3, %v911_v53, 0.0  ;;  %v939_v59 = vsel %vm197_vm2, 0.0, %v937_v47  ;;  %v934_v1 = vsel %vm2011_vm5, %v933_v58, 0.0  ;;  %1058 = vmatpush.bf16.msrb.mxu2 %v1598_v30  ;;  %v1616_v58 = vld [vmem:[%s2403_s8 + $0x1] ss:$0 sm:$0xff] }
 0x208   :  { %v913_v62 = vmul.f32 %v912_v57, %v907_v52  ;;  %v858_v63 = vadd.f32 %v857_v55, %v845_v21  ;;  %v940_v2 = vsel %vm2007_vm3, %v939_v59, 0.0  ;;  %v935_v60 = vmul.f32 %v1632_v20, %v934_v1 }
 0x209   :  { %v886_v5 = vadd.f32 %v885_v56, %v873_v28  ;;  %v832_v7 = vmul.f32 %v1614_v54, %v2238_v42  ;;  %v1615_v56 = vld [vmem:[%s2403_s8] ss:$0 sm:$0xff] }
 0x20a   :  { %v914_v6 = vadd.f32 %v913_v62, %v901_v36  ;;  %v859_v8 = vmul.f32 %v858_v63, %v2293_v24  ;;  %v941_v9 = vmul.f32 %v940_v2, %v935_v60 }
 0x20b   :  { %v887_v10 = vmul.f32 %v886_v5, %v2289_v18  ;;  %v53_v18 = vld [vmem:[%s2400_s3 + $0x8] sm:$0xff] }
 0x20c   :  { %v860_v31 = vadd.f32 %v859_v8, %v832_v7  ;;  %v942_v11 = vadd.f32 %v941_v9, %v929_v40  ;;  %v915_v13 = vmul.f32 %v914_v6, %v2291_v19  ;;  %v157_v24 = vadd.f32 %v2284_v4, %v53_v18 }
 0x20e   :  { %v888_v14 = vadd.f32 %v887_v10, %v860_v31  ;;  %v943_v16 = vmul.f32 %v942_v11, %v2314_v0  ;;  %v1475_v17 = vmul.f32 -1.442695, %v157_v24  ;;  %v1597_v0 = vld [vmem:[%s2402_s7] sm:$0xff] }
 0x20f   :  { %1059 = vmatpush.bf16.msrb.mxu2 %v1597_v0 }
 0x210   :  { %v916_v15 = vadd.f32 %v915_v13, %v888_v14  ;;  %1633 = vpow2.f32 %v1475_v17 }
 0x212   :  { %v944_v42 = vadd.f32 %v943_v16, %v916_v15 }
 0x214   :  { %960 = vmatpush.msrb.mxu0 %v944_v42 }
 0x215   :  { %1474 = vmatmul.msk.f32.vlgmr.msrb.gmra.mxu0 %vm167_vm0, %v1818_v61 }
 0x216   :  { %v1634_v20 = vpop.eup %1633 }
 0x217   :  { %v969_v19 = vadd.f32 1.0, %v1634_v20 }
 0x219   :  { %1635 = vrcp.f32 %v969_v19  ;;  %vm975_vm12 = vweird.f32 %v969_v19  ;;  %v981_v25 = vand.u32 2147483648, %v969_v19  ;;  %v979_v28 = vand.u32 2147483647, %v969_v19 }
 0x21b   :  { %v982_v4 = vor.u32 1.1754944e-38, %v981_v25  ;;  %vm980_vm15 = vcmp.eq.f32.partialorder %v979_v28, 8.507059e+37 }
 0x21f   :  { %v1636_v21 = vpop.eup %1635 }
 0x220   :  { %v971_v22 = vmul.f32 %v1636_v21, %v969_v19  ;;  %vm976_vm13 = vweird.f32 %v1636_v21 }
 0x221   :  { %vm977_vm14 = vmor %vm975_vm12, %vm976_vm13 }
 0x222   :  { %v972_v23 = vsub.f32 1.0, %v971_v22 }
 0x224   :  { %v973_v61 = vmul.f32 %v1636_v21, %v972_v23 }
 0x226   :  { %v974_v26 = vadd.f32 %v1636_v21, %v973_v61 }
 0x228   :  { %v978_v29 = vsel %vm977_vm14, %v1636_v21, %v974_v26 }
 0x229   :  { %v983_v27 = vsel %vm980_vm15, %v982_v4, %v978_v29 }
 0x22a   :  { %v985_v32 = vmul.f32 %v983_v27, %v157_v24 }
 0x292   :  { %v962_v33 = vpop.f32.mrf.mxu0 }
 0x293   :  { %v965_v34 = vsel %vm162_vm1, %v944_v42, %v962_v33 }
 0x294   :  { %v986_v35 = vmul.f32 %v985_v32, %v965_v34 }
 0x296   :  { %v987_v36 = vpack.c.bf16 %v986_v35, %v986_v35 }
 0x298   :  { %1060 = vmatmul.bf16.vlgmr.msrb.gmra.mxu2 %v987_v36 }
 0x31b   :  { %v1061_v37 = vpop.f32.mrf.mxu2 }
 0x31c   :  { %v1065_v38 = vmul.f32 0.5, %v1061_v37 }
 0x31e   :  { %1066 = vadd.xlane.f32.xlu0 %v1065_v38  ;;  %v1069_v40 = vmul.f32 %v1065_v38, %v1065_v38 }
 0x323   :  { %v1063_v39 = vpop.f32.mrf.mxu2 }
 0x326   :  { %1070 = vadd.xlane.f32.xlu0 %v1069_v40 }
 0x391   :  { %v1067_v41 = vpop.xlane.xlu0 %1066 }
 0x392   :  { %v1068_v43 = vmul.f32 0.0625, %v1067_v41 }
 0x394   :  { %v1073_v45 = vmul.f32 %v1068_v43, %v1068_v43  ;;  %v1076_v55 = vsub.f32 %v1065_v38, %v1068_v43 }
 0x399   :  { %v1071_v44 = vpop.xlane.xlu0 %1070 }
 0x39a   :  { %v1072_v46 = vmul.f32 0.0625, %v1071_v44 }
 0x39c   :  { %v1074_v48 = vsub.f32 %v1072_v46, %v1073_v45 }
 0x39e   :  { %v1075_v47 = vmax.f32 %v1074_v48, 0.0 }
 0x3a0   :  { %v1077_v49 = vadd.f32 1e-05, %v1075_v47 }
 0x3a2   :  { %1637 = vrsqrt.f32 %v1077_v49  ;;  %vm1084_vm1 = vweird.f32 %v1077_v49 }
 0x3a8   :  { %v1638_v12 = vpop.eup %1637 }
 0x3a9   :  { %v1079_v50 = vmul.f32 %v1638_v12, %v1077_v49  ;;  %vm1085_vm0 = vweird.f32 %v1638_v12 }
 0x3aa   :  { %vm1086_vm2 = vmor %vm1084_vm1, %vm1085_vm0 }
 0x3ab   :  { %v1080_v51 = vmul.f32 %v1638_v12, %v1079_v50 }
 0x3ad   :  { %v1081_v52 = vmul.f32 0.5, %v1080_v51 }
 0x3af   :  { %v1082_v53 = vsub.f32 1.5, %v1081_v52 }
 0x3b1   :  { %v1083_v54 = vmul.f32 %v1638_v12, %v1082_v53 }
 0x3b3   :  { %v1087_v57 = vsel %vm1086_vm2, %v1638_v12, %v1083_v54 }
 0x3b4   :  { %v1088_v59 = vmul.f32 %v1087_v57, %v1076_v55 }
 0x3b6   :  { %v1091_v62 = vmul.f32 %v1615_v56, %v1088_v59 }
 0x3b8   :  { %v1094_v63 = vadd.f32 %v1616_v58, %v1091_v62 }
 0x3ba   :  { %v1508_v1 = vmul.f32 -1.442695, %v1094_v63 }
 0x3bc   :  { %1639 = vpow2.f32 %v1508_v1 }
 0x3c2   :  { %v1640_v2 = vpop.eup %1639 }
 0x3c3   :  { %v1098_v3 = vadd.f32 1.0, %v1640_v2 }
 0x3c5   :  { %1641 = vrcp.f32 %v1098_v3  ;;  %v1110_v7 = vand.u32 2147483648, %v1098_v3  ;;  %v1108_v9 = vand.u32 2147483647, %v1098_v3  ;;  %vm1104_vm4 = vweird.f32 %v1098_v3 }
 0x3c7   :  { %v1111_v31 = vor.u32 1.1754944e-38, %v1110_v7  ;;  %vm1109_vm6 = vcmp.eq.f32.partialorder %v1108_v9, 8.507059e+37 }
 0x3cb   :  { %v1642_v5 = vpop.eup %1641 }
 0x3cc   :  { %v1100_v60 = vmul.f32 %v1642_v5, %v1098_v3  ;;  %vm1105_vm3 = vweird.f32 %v1642_v5 }
 0x3cd   :  { %vm1106_vm5 = vmor %vm1104_vm4, %vm1105_vm3 }
 0x3ce   :  { %v1101_v6 = vsub.f32 1.0, %v1100_v60 }
 0x3d0   :  { %v1102_v8 = vmul.f32 %v1642_v5, %v1101_v6 }
 0x3d2   :  { %v1103_v10 = vadd.f32 %v1642_v5, %v1102_v8 }
 0x3d4   :  { %v1107_v30 = vsel %vm1106_vm5, %v1642_v5, %v1103_v10 }
 0x3d5   :  { %v1112_v11 = vsel %vm1109_vm6, %v1111_v31, %v1107_v30 }
 0x3d6   :  { %v1114_v13 = vmul.f32 %v1112_v11, %v1094_v63 }
 0x3d8   :  { %1115 = vst [vmem:[%s2404_s9] sm:$0xff] %v1114_v13 }

// kernel: _lambda_.12
= control target key start
LH: loop header
LB: loop body
LE: loop exit
PB: predicated region body
PF: predicated region fallthrough
CT: control target
= control target key end

     0   :  { %vm204_vm0 = vcmask 261120   ;;  %vm256_vm2 = vcmask 1041408   ;;  %vm295_vm3 = vcmask 1040384   ;;  %s4987_s2 = inlined_call_operand.vmem [shape: bf16[128,256], index: 2, kind: input, shape index: {}]   ;;  %s4988_s0 = inlined_call_operand.vmem [shape: f32[32,128], index: 0, kind: input, shape index: {}]   ;;  %s4989_s1 = inlined_call_operand.vmem [shape: f32[32,128], index: 1, kind: input, shape index: {}]   ;;  %s4990_s5 = inlined_call_operand.vmem [shape: f32[10,128], index: 5, kind: input, shape index: {}]   ;;  %s4991_s3 = inlined_call_operand.vmem [shape: f32[32,256], index: 3, kind: input, shape index: {}]   ;;  %s4992_s4 = inlined_call_operand.vmem [shape: f32[32,32], index: 4, kind: input, shape index: {}]   ;;  %s4993_s6 = inlined_call_operand.vmem [shape: bf16[128,1152], index: 6, kind: input, shape index: {}]   ;;  %s4994_s7 = inlined_call_operand.vmem [shape: bf16[128,128], index: 7, kind: input, shape index: {}]   ;;  %s4995_s8 = inlined_call_operand.vmem [shape: f32[2,128], index: 8, kind: input, shape index: {}]   ;;  %s4996_s9 = inlined_call_operand.vmem [shape: f32[32,128], index: 9, kind: output, shape index: {}]  }
   0x1   :  { %v2373_v0 = vld [vmem:[%s4987_s2 + $0x70] sm:$0xf]  ;;  %v2734_v1 = vld [vmem:[%s4987_s2 + $0x74] sm:$0xf0]  ;;  %v2365_v2 = vld [vmem:[%s4987_s2 + $0x60] sm:$0xf] }
   0x2   :  { %v2374_v3 = vor.u32 %v2734_v1, %v2373_v0  ;;  %v2732_v4 = vld [vmem:[%s4987_s2 + $0x64] sm:$0xf0]  ;;  %v2357_v6 = vld [vmem:[%s4987_s2 + $0x50] sm:$0xf]  ;;  %v2730_v7 = vld [vmem:[%s4987_s2 + $0x54] sm:$0xf0] }
   0x3   :  { %v2366_v5 = vor.u32 %v2732_v4, %v2365_v2  ;;  %v2358_v8 = vor.u32 %v2730_v7, %v2357_v6  ;;  %v2349_v9 = vld [vmem:[%s4987_s2 + $0x40] sm:$0xf]  ;;  %v2728_v10 = vld [vmem:[%s4987_s2 + $0x44] sm:$0xf0]  ;;  %v2341_v12 = vld [vmem:[%s4987_s2 + $0x30] sm:$0xf] }
   0x4   :  { %150 = vmatpush.bf16.msra.mxu0 %v2374_v3  ;;  %v2350_v11 = vor.u32 %v2728_v10, %v2349_v9  ;;  %v2726_v13 = vld [vmem:[%s4987_s2 + $0x34] sm:$0xf0]  ;;  %v2333_v15 = vld [vmem:[%s4987_s2 + $0x20] sm:$0xf]  ;;  %v2724_v16 = vld [vmem:[%s4987_s2 + $0x24] sm:$0xf0] }
   0x5   :  { %v2342_v14 = vor.u32 %v2726_v13, %v2341_v12  ;;  %v2334_v17 = vor.u32 %v2724_v16, %v2333_v15  ;;  %v2325_v18 = vld [vmem:[%s4987_s2 + $0x10] sm:$0xf]  ;;  %v2722_v19 = vld [vmem:[%s4987_s2 + $0x14] sm:$0xf0]  ;;  %v32_v20 = vld [vmem:[%s4988_s0] sm:$0xff]  ;;  %v188_v13 = vlaneseq }
   0x6   :  { %v2326_v21 = vor.u32 %v2722_v19, %v2325_v18  ;;  %v33_v22 = vld [vmem:[%s4988_s0 + $0x8] sm:$0xff]  ;;  %v36_v23 = vld [vmem:[%s4989_s1] sm:$0xff]  ;;  %v34_v31 = vld [vmem:[%s4988_s0 + $0x10] sm:$0xff] }
   0x7   :  { %v37_v24 = vld [vmem:[%s4989_s1 + $0x8] sm:$0xff]  ;;  %v2317_v25 = vld [vmem:[%s4987_s2] sm:$0xf]  ;;  %v40_v27 = vadd.f32 %v36_v23, %v32_v20  ;;  %v35_v32 = vld [vmem:[%s4988_s0 + $0x18] sm:$0xff]  ;;  %v192_v15 = vshrl.u32 %v188_v13, 7 }
   0x8   :  { %151 = vmatpush.bf16.msra.mxu0 %v2366_v5  ;;  %v2720_v26 = vld [vmem:[%s4987_s2 + $0x4] sm:$0xf0]  ;;  %v41_v28 = vadd.f32 %v37_v24, %v33_v22  ;;  %v38_v33 = vld [vmem:[%s4989_s1 + $0x10] sm:$0xff]  ;;  %v39_v34 = vld [vmem:[%s4989_s1 + $0x18] sm:$0xff] }
   0x9   :  { %v2318_v29 = vor.u32 %v2720_v26, %v2317_v25  ;;  %v42_v35 = vadd.f32 %v38_v33, %v34_v31  ;;  %v43_v36 = vadd.f32 %v39_v34, %v35_v32  ;;  %v68_v41 = vld [vmem:[%s4991_s3 + $0x30] sm:$0xff]  ;;  %v66_v42 = vld [vmem:[%s4991_s3 + $0x20] sm:$0xff]  ;;  %v2375_v47 = vld [vmem:[%s4987_s2 + $0x78] sm:$0xf0] }
   0xa   :  { %v3053_v30 = vpack.c.bf16 %v41_v28, %v40_v27  ;;  %v64_v44 = vld [vmem:[%s4991_s3 + $0x10] sm:$0xff]  ;;  %v2731_v48 = vld [vmem:[%s4987_s2 + $0x64] sm:$0xf]  ;;  %v2367_v51 = vld [vmem:[%s4987_s2 + $0x68] sm:$0xf0]  ;;  %v3184_v27 = vand.u32 127, %v188_v13 }
   0xb   :  { %v3068_v37 = vpack.c.bf16 %v43_v36, %v42_v35  ;;  %v2733_v46 = vld [vmem:[%s4987_s2 + $0x74] sm:$0xf]  ;;  %v62_v52 = vld [vmem:[%s4991_s3] sm:$0xff]  ;;  %v2370_v54 = vor.u32 %v2731_v48, %v2367_v51  ;;  %v2359_v56 = vld [vmem:[%s4987_s2 + $0x58] sm:$0xf0]  ;;  %v194_v28 = vadd.s32 16, %v192_v15 }
   0xc   :  { %152 = vmatpush.bf16.msra.mxu0 %v2358_v8  ;;  %v2378_v50 = vor.u32 %v2733_v46, %v2375_v47  ;;  %v2729_v55 = vld [vmem:[%s4987_s2 + $0x54] sm:$0xf]  ;;  %v200_v58 = vld [vmem:[%s4992_s4] sm:$0xff]  ;;  %v201_v60 = vld [vmem:[%s4992_s4 + $0x8] sm:$0xff]  ;;  %5041 = vst [vmem:[#allocation2_spill] sm:$0xff] %v3184_v27  ;;  %vm190_vm1 = vcmp.lt.s32.totalorder %v3184_v27, 24 }
   0xd   :  { %v2362_v59 = vor.u32 %v2729_v55, %v2359_v56  ;;  %v202_v61 = vld [vmem:[%s4992_s4 + $0x10] sm:$0xff]  ;;  %v203_v62 = vld [vmem:[%s4992_s4 + $0x18] sm:$0xff]  ;;  %v2727_v63 = vld [vmem:[%s4987_s2 + $0x44] sm:$0xf] }
   0xe   :  { %169 = vmatpush.bf16.msra.mxu1 %v2378_v50  ;;  %v2351_v0 = vld [vmem:[%s4987_s2 + $0x48] sm:$0xf0]  ;;  %v2725_v2 = vld [vmem:[%s4987_s2 + $0x34] sm:$0xf]  ;;  %v2343_v3 = vld [vmem:[%s4987_s2 + $0x38] sm:$0xf0] }
   0xf   :  { %v2354_v1 = vor.u32 %v2727_v63, %v2351_v0  ;;  %v2346_v4 = vor.u32 %v2725_v2, %v2343_v3  ;;  %v2723_v5 = vld [vmem:[%s4987_s2 + $0x24] sm:$0xf]  ;;  %v2335_v6 = vld [vmem:[%s4987_s2 + $0x28] sm:$0xf0]  ;;  %v2721_v8 = vld [vmem:[%s4987_s2 + $0x14] sm:$0xf] }
  0x10   :  { %153 = vmatpush.bf16.msra.mxu0 %v2350_v11  ;;  %v2338_v7 = vor.u32 %v2723_v5, %v2335_v6  ;;  %v2327_v9 = vld [vmem:[%s4987_s2 + $0x18] sm:$0xf0]  ;;  %v2719_v11 = vld [vmem:[%s4987_s2 + $0x4] sm:$0xf]  ;;  %v2319_v12 = vld [vmem:[%s4987_s2 + $0x8] sm:$0xf0] }
  0x11   :  { %v2330_v10 = vor.u32 %v2721_v8, %v2327_v9  ;;  %v2641_v16 = vld [vmem:[%s4993_s6 + $0x1f8] sm:$0xf]  ;;  %v2798_v18 = vld [vmem:[%s4993_s6 + $0x1fc] sm:$0xf]  ;;  %v2643_v20 = vld [vmem:[%s4993_s6 + $0x21c] sm:$0xf0] }
  0x12   :  { %170 = vmatpush.bf16.msra.mxu1 %v2370_v54  ;;  %v2803_v22 = vld [vmem:[%s4993_s6 + $0x220] sm:$0xf0]  ;;  %v2646_v23 = vor.u32 %v2798_v18, %v2643_v20  ;;  %v2651_v26 = vld [vmem:[%s4993_s6 + $0x224] sm:$0xf0]  ;;  %v2793_v31 = vld [vmem:[%s4993_s6 + $0x1d0] sm:$0xf0] }
  0x13   :  { %v2799_v25 = vld [vmem:[%s4993_s6 + $0x204] sm:$0xf]  ;;  %v2789_v32 = vld [vmem:[%s4993_s6 + $0x1b4] sm:$0xf]  ;;  %v2607_v34 = vld [vmem:[%s4993_s6 + $0x1d4] sm:$0xf0] }
  0x14   :  { %154 = vmatpush.bf16.msra.mxu0 %v2342_v14  ;;  %v2322_v14 = vor.u32 %v2719_v11, %v2319_v12  ;;  %v2613_v35 = vld [vmem:[%s4993_s6 + $0x1b8] sm:$0xf]  ;;  %v2794_v36 = vld [vmem:[%s4993_s6 + $0x1d8] sm:$0xf0]  ;;  %v2569_v46 = vld [vmem:[%s4993_s6 + $0x168] sm:$0xf] }
  0x15   :  { %v2784_v47 = vld [vmem:[%s4993_s6 + $0x188] sm:$0xf0]  ;;  %v2571_v51 = vld [vmem:[%s4993_s6 + $0x18c] sm:$0xf0]  ;;  %v2785_v54 = vld [vmem:[%s4993_s6 + $0x190] sm:$0xf0] }
  0x16   :  { %171 = vmatpush.bf16.msra.mxu1 %v2362_v59  ;;  %v2780_v48 = vld [vmem:[%s4993_s6 + $0x16c] sm:$0xf]  ;;  %v2570_v50 = vor.u32 %v2784_v47, %v2569_v46  ;;  %v2579_v59 = vld [vmem:[%s4993_s6 + $0x194] sm:$0xf0]  ;;  %v2775_v2 = vld [vmem:[%s4993_s6 + $0x140] sm:$0xf0] }
  0x17   :  { %v2574_v55 = vor.u32 %v2780_v48, %v2571_v51  ;;  %v2771_v3 = vld [vmem:[%s4993_s6 + $0x124] sm:$0xf]  ;;  %v2535_v6 = vld [vmem:[%s4993_s6 + $0x144] sm:$0xf0]  ;;  %v2776_v9 = vld [vmem:[%s4993_s6 + $0x148] sm:$0xf0] }
  0x18   :  { %155 = vmatpush.bf16.msra.mxu0 %v2334_v17  ;;  %v2802_v17 = vld [vmem:[%s4993_s6 + $0x218] sm:$0xf0]  ;;  %v2538_v8 = vor.u32 %v2771_v3, %v2535_v6  ;;  %v2543_v11 = vld [vmem:[%s4993_s6 + $0x14c] sm:$0xf0]  ;;  %v2463_v47 = vld [vmem:[%s4993_s6 + $0xb4] sm:$0xf0] }
  0x19   :  { %v2642_v19 = vor.u32 %v2802_v17, %v2641_v16  ;;  %v2766_v20 = vld [vmem:[%s4993_s6 + $0xf8] sm:$0xf0]  ;;  %v2469_v48 = vld [vmem:[%s4993_s6 + $0x98] sm:$0xf]  ;;  %v2748_v3 = vld [vmem:[%s4993_s6 + $0x68] sm:$0xf0] }
  0x1a   :  { %172 = vmatpush.bf16.msra.mxu1 %v2354_v1  ;;  %v2533_v1 = vld [vmem:[%s4993_s6 + $0x120] sm:$0xf]  ;;  %v2427_v6 = vld [vmem:[%s4993_s6 + $0x6c] sm:$0xf0] }
  0x1b   :  { %880 = vmatpush.bf16.msra.mxu3 %v2642_v19  ;;  %v2497_v19 = vld [vmem:[%s4993_s6 + $0xd8] sm:$0xf] }
  0x1c   :  { %156 = vmatpush.bf16.msra.mxu0 %v2326_v21  ;;  %v2649_v21 = vld [vmem:[%s4993_s6 + $0x200] sm:$0xf] }
  0x1d   :  { %v2650_v24 = vor.u32 %v2803_v22, %v2649_v21 }
  0x1e   :  { %173 = vmatpush.bf16.msra.mxu1 %v2346_v4 }
  0x20   :  { %157 = vmatpush.bf16.msra.mxu0 %v2318_v29  ;;  %v2654_v29 = vor.u32 %v2799_v25, %v2651_v26  ;;  %v2499_v25 = vld [vmem:[%s4993_s6 + $0xfc] sm:$0xf0] }
  0x21   :  { %v2505_v26 = vld [vmem:[%s4993_s6 + $0xe0] sm:$0xf] }
  0x22   :  { %174 = vmatpush.bf16.msra.mxu1 %v2338_v7  ;;  %v2541_v7 = vld [vmem:[%s4993_s6 + $0x128] sm:$0xf] }
  0x23   :  { %158 = vmatmul.bf16.vlgmr.msra.gmra.mxu0 %v3053_v30 }
  0x24   :  { %918 = vmatpush.bf16.msrb.mxu0 %v2650_v24  ;;  %v2762_v24 = vld [vmem:[%s4993_s6 + $0xdc] sm:$0xf] }
  0x26   :  { %175 = vmatpush.bf16.msra.mxu1 %v2330_v10  ;;  %v2772_v10 = vld [vmem:[%s4993_s6 + $0x12c] sm:$0xf] }
  0x27   :  { %v2546_v16 = vor.u32 %v2772_v10, %v2543_v11  ;;  %v2749_v11 = vld [vmem:[%s4993_s6 + $0x70] sm:$0xf0] }
  0x2a   :  { %176 = vmatpush.bf16.msra.mxu1 %v2322_v14  ;;  %v3287_v14 = vld [vmem:[%s4990_s5 + $0x2] ss:$0 sm:$0xff] }
  0x2d   :  { %177 = vmatmul.bf16.vlgmr.msra.gmra.mxu1 %v3053_v30  ;;  %v2605_v30 = vld [vmem:[%s4993_s6 + $0x1b0] sm:$0xf] }
  0x2e   :  { %937 = vmatpush.bf16.msrb.mxu1 %v2654_v29  ;;  %v2606_v33 = vor.u32 %v2793_v31, %v2605_v30  ;;  %v2767_v29 = vld [vmem:[%s4993_s6 + $0x100] sm:$0xf0]  ;;  %v2507_v31 = vld [vmem:[%s4993_s6 + $0x104] sm:$0xf0] }
  0x2f   :  { %v2763_v30 = vld [vmem:[%s4993_s6 + $0xe4] sm:$0xf] }
  0x30   :  { %881 = vmatpush.bf16.msra.mxu3 %v2606_v33 }
  0x33   :  { %163 = vmatmul.bf16.gmra.mxu0 %v3068_v37 }
  0x34   :  { %882 = vmatpush.bf16.msra.mxu3 %v2570_v50 }
  0x3d   :  { %182 = vmatmul.bf16.gmra.mxu1 %v3068_v37  ;;  %v3325_v37 = vld [vmem:[%s4990_s5 + $0x3] ss:$0 sm:$0xff] }
  0xa0   :  { %v159_v38 = vpop.f32.mrf.mxu0 }
  0xa1   :  { %v3109_v57 = vadd.f32 %v159_v38, %v62_v52  ;;  %v2610_v38 = vor.u32 %v2789_v32, %v2607_v34  ;;  %v2577_v52 = vld [vmem:[%s4993_s6 + $0x170] sm:$0xf] }
  0xa2   :  { %v2578_v56 = vor.u32 %v2785_v54, %v2577_v52  ;;  %v2758_v52 = vld [vmem:[%s4993_s6 + $0xb8] sm:$0xf0] }
  0xa3   :  { %v2754_v54 = vld [vmem:[%s4993_s6 + $0x9c] sm:$0xf] }
  0xa8   :  { %v161_v39 = vpop.f32.mrf.mxu0 }
  0xa9   :  { %v3100_v53 = vadd.f32 %v161_v39, %v64_v44  ;;  %v2614_v39 = vor.u32 %v2794_v36, %v2613_v35  ;;  %v2506_v35 = vor.u32 %v2767_v29, %v2505_v26  ;;  %v2510_v36 = vor.u32 %v2763_v30, %v2507_v31  ;;  %v2397_v26 = vld [vmem:[%s4993_s6 + $0x8] sm:$0xf]  ;;  %v2740_v30 = vld [vmem:[%s4993_s6 + $0x28] sm:$0xf0] }
  0xaa   :  { %v2736_v31 = vld [vmem:[%s4993_s6 + $0xc] sm:$0xf] }
  0xab   :  { %919 = vmatpush.bf16.msrb.mxu0 %v2614_v39  ;;  %v2461_v39 = vld [vmem:[%s4993_s6 + $0x90] sm:$0xf] }
  0xaf   :  { %920 = vmatpush.bf16.msrb.mxu0 %v2578_v56 }
  0xb0   :  { %v164_v40 = vpop.f32.mrf.mxu0 }
  0xb1   :  { %v3091_v49 = vadd.f32 %v164_v40, %v66_v42  ;;  %v2790_v40 = vld [vmem:[%s4993_s6 + $0x1bc] sm:$0xf]  ;;  %v3211_v42 = vand.u32 15, %v192_v15  ;;  %v2542_v15 = vor.u32 %v2776_v9, %v2541_v7  ;;  %v2433_v7 = vld [vmem:[%s4993_s6 + $0x50] sm:$0xf] }
  0xb3   :  { %vm269_vm4 = vcmp.ge.s32.totalorder %v3211_v42, 2  ;;  %vm308_vm5 = vcmp.ge.s32.totalorder %v3211_v42, 1  ;;  %921 = vmatpush.bf16.msrb.mxu0 %v2542_v15 }
  0xb7   :  { %922 = vmatpush.bf16.msrb.mxu0 %v2506_v35  ;;  %v2398_v35 = vor.u32 %v2740_v30, %v2397_v26  ;;  %v2786_v26 = vld [vmem:[%s4993_s6 + $0x198] sm:$0xf0] }
  0xb8   :  { %v166_v43 = vpop.f32.mrf.mxu0 }
  0xb9   :  { %v3080_v45 = vadd.f32 %v166_v43, %v68_v41  ;;  %v2615_v41 = vld [vmem:[%s4993_s6 + $0x1dc] sm:$0xf0]  ;;  %v3213_v43 = vand.u32 15, %v194_v28  ;;  %v2502_v28 = vor.u32 %v2762_v24, %v2499_v25  ;;  %v2391_v25 = vld [vmem:[%s4993_s6 + $0x24] sm:$0xf0] }
  0xba   :  { %v2618_v44 = vor.u32 %v2790_v40, %v2615_v41  ;;  %v2757_v40 = vld [vmem:[%s4993_s6 + $0xb0] sm:$0xf0] }
  0xbb   :  { %229 = vmatpush.msra.mxu2 %v3080_v45  ;;  %v2753_v41 = vld [vmem:[%s4993_s6 + $0x94] sm:$0xf]  ;;  %vm271_vm6 = vcmp.ge.s32.totalorder %v3213_v43, 2  ;;  %v2462_v50 = vor.u32 %v2757_v40, %v2461_v39  ;;  %vm310_vm7 = vcmp.ge.s32.totalorder %v3213_v43, 1 }
  0xbc   :  { %938 = vmatpush.bf16.msrb.mxu1 %v2618_v44  ;;  %v2466_v51 = vor.u32 %v2753_v41, %v2463_v47  ;;  %v2657_v41 = vld [vmem:[%s4993_s6 + $0x208] sm:$0xf]  ;;  %v2804_v47 = vld [vmem:[%s4993_s6 + $0x228] sm:$0xf0] }
  0xbd   :  { %230 = vmatpush.msra.mxu2 %v3091_v49 }
  0xbf   :  { %231 = vmatpush.msra.mxu2 %v3100_v53 }
  0xc1   :  { %232 = vmatpush.msra.mxu2 %v3109_v57 }
  0xc2   :  { %2379 = vmatmul.msk.f32.vlgmr.msra.gmra.mxu2 %vm204_vm0, %v200_v58  ;;  %v2781_v58 = vld [vmem:[%s4993_s6 + $0x174] sm:$0xf] }
  0xc3   :  { %899 = vmatpush.bf16.msrb.mxu2 %v2646_v23  ;;  %v2582_v63 = vor.u32 %v2781_v58, %v2579_v59  ;;  %v2498_v23 = vor.u32 %v2766_v20, %v2497_v19  ;;  %v2389_v20 = vld [vmem:[%s4993_s6] sm:$0xf] }
  0xc5   :  { %939 = vmatpush.bf16.msrb.mxu1 %v2582_v63 }
  0xc7   :  { %900 = vmatpush.bf16.msrb.mxu2 %v2610_v38 }
  0xc9   :  { %940 = vmatpush.bf16.msrb.mxu1 %v2546_v16  ;;  %v2434_v16 = vor.u32 %v2749_v11, %v2433_v7  ;;  %v2791_v7 = vld [vmem:[%s4993_s6 + $0x1c4] sm:$0xf] }
  0xca   :  { %2380 = vmatmul.msk.f32.gmra.mxu2 %vm204_vm0, %v201_v60 }
  0xcb   :  { %901 = vmatpush.bf16.msrb.mxu2 %v2574_v55  ;;  %v2471_v55 = vld [vmem:[%s4993_s6 + $0xbc] sm:$0xf0] }
  0xcd   :  { %941 = vmatpush.bf16.msrb.mxu1 %v2510_v36 }
  0xcf   :  { %902 = vmatpush.bf16.msrb.mxu2 %v2538_v8 }
  0xd2   :  { %2381 = vmatmul.msk.f32.gmra.mxu2 %vm204_vm0, %v202_v61  ;;  %v3243_v61 = vld [vmem:[%s4990_s5] ss:$0 sm:$0xff] }
  0xd3   :  { %903 = vmatpush.bf16.msrb.mxu2 %v2502_v28 }
  0xd7   :  { %904 = vmatpush.bf16.msrb.mxu2 %v2466_v51 }
  0xda   :  { %2382 = vmatmul.msk.f32.gmra.mxu2 %vm204_vm0, %v203_v62  ;;  %v3249_v62 = vld [vmem:[%s4990_s5 + $0x1] ss:$0 sm:$0xff] }
 0x145   :  { %v234_v60 = vpop.f32.mrf.mxu2 }
 0x146   :  { %v3254_v0 = vsel %vm190_vm1, %v3109_v57, %v234_v60  ;;  %v2534_v57 = vor.u32 %v2775_v2, %v2533_v1  ;;  %v2470_v60 = vor.u32 %v2758_v52, %v2469_v48  ;;  %v2474_v1 = vor.u32 %v2754_v54, %v2471_v55  ;;  %v2425_v2 = vld [vmem:[%s4993_s6 + $0x48] sm:$0xf]  ;;  %v2800_v48 = vld [vmem:[%s4993_s6 + $0x20c] sm:$0xf]  ;;  %v2665_v55 = vld [vmem:[%s4993_s6 + $0x210] sm:$0xf] }
 0x147   :  { %v257_v4 = vrot.slane %v3254_v0, 6  ;;  %v296_v5 = vrot.slane %v3254_v0, 7  ;;  %v336_v33 = vmul.f32 %v3287_v14, %v3254_v0  ;;  %v2658_v52 = vor.u32 %v2804_v47, %v2657_v41  ;;  %v2549_v41 = vld [vmem:[%s4993_s6 + $0x130] sm:$0xf]  ;;  %v2777_v47 = vld [vmem:[%s4993_s6 + $0x150] sm:$0xf0] }
 0x148   :  { %883 = vmatpush.bf16.msra.mxu3 %v2534_v57  ;;  %923 = vmatpush.bf16.msrb.mxu0 %v2470_v60  ;;  %v2426_v57 = vor.u32 %v2748_v3, %v2425_v2  ;;  %v2667_v2 = vld [vmem:[%s4993_s6 + $0x234] sm:$0xf0]  ;;  %v2621_v3 = vld [vmem:[%s4993_s6 + $0x1c0] sm:$0xf] }
 0x149   :  { %v268_v12 = vsel %vm256_vm2, 0.0, %v257_v4  ;;  %v307_v13 = vsel %vm295_vm3, 0.0, %v296_v5  ;;  %942 = vmatpush.bf16.msrb.mxu1 %v2474_v1  ;;  %v2801_v1 = vld [vmem:[%s4993_s6 + $0x214] sm:$0xf] }
 0x14a   :  { %v281_v17 = vsel %vm269_vm4, %v268_v12, 0.0  ;;  %v320_v18 = vsel %vm308_vm5, %v307_v13, 0.0  ;;  %v2745_v12 = vld [vmem:[%s4993_s6 + $0x54] sm:$0xf]  ;;  %v2435_v13 = vld [vmem:[%s4993_s6 + $0x74] sm:$0xf0] }
 0x14b   :  { %v287_v21 = vmul.f32 %v3243_v61, %v281_v17  ;;  %v326_v22 = vmul.f32 %v3249_v62, %v320_v18  ;;  %v2438_v17 = vor.u32 %v2745_v12, %v2435_v13 }
 0x14c   :  { %884 = vmatpush.bf16.msra.mxu3 %v2498_v23  ;;  %924 = vmatpush.bf16.msrb.mxu0 %v2434_v16  ;;  %v2792_v16 = vld [vmem:[%s4993_s6 + $0x1cc] sm:$0xf] }
 0x14d   :  { %v330_v32 = vadd.f32 %v326_v22, %v287_v21  ;;  %v237_v34 = vpop.f32.mrf.mxu2  ;;  %v2739_v21 = vld [vmem:[%s4993_s6 + $0x20] sm:$0xf0]  ;;  %943 = vmatpush.bf16.msrb.mxu1 %v2438_v17  ;;  %v2631_v17 = vld [vmem:[%s4993_s6 + $0x1ec] sm:$0xf0] }
 0x14e   :  { %v3330_v38 = vsel %vm190_vm1, %v3100_v53, %v237_v34  ;;  %v2735_v22 = vld [vmem:[%s4993_s6 + $0x4] sm:$0xf] }
 0x14f   :  { %v340_v44 = vadd.f32 %v336_v33, %v330_v32  ;;  %v258_v46 = vrot.slane %v3330_v38, 6  ;;  %v297_v53 = vrot.slane %v3330_v38, 7  ;;  %v337_v9 = vmul.f32 %v3287_v14, %v3330_v38  ;;  %v2399_v32 = vld [vmem:[%s4993_s6 + $0x2c] sm:$0xf0] }
 0x150   :  { %885 = vmatpush.bf16.msra.mxu3 %v2462_v50  ;;  %v2394_v29 = vor.u32 %v2735_v22, %v2391_v25  ;;  %v2402_v36 = vor.u32 %v2736_v31, %v2399_v32  ;;  %925 = vmatpush.bf16.msrb.mxu0 %v2398_v35  ;;  %v2659_v50 = vld [vmem:[%s4993_s6 + $0x22c] sm:$0xf0]  ;;  %v2585_v25 = vld [vmem:[%s4993_s6 + $0x178] sm:$0xf]  ;;  %v2587_v31 = vld [vmem:[%s4993_s6 + $0x19c] sm:$0xf0] }
 0x151   :  { %v3360_v56 = vadd.f32 %v3325_v37, %v340_v44  ;;  %v259_v58 = vsel %vm256_vm2, %v257_v4, %v258_v46  ;;  %v298_v59 = vsel %vm295_vm3, %v296_v5, %v297_v53  ;;  %v2744_v4 = vld [vmem:[%s4993_s6 + $0x4c] sm:$0xf]  ;;  %v2662_v54 = vor.u32 %v2800_v48, %v2659_v50  ;;  %v2593_v35 = vld [vmem:[%s4993_s6 + $0x180] sm:$0xf]  ;;  %v2773_v48 = vld [vmem:[%s4993_s6 + $0x134] sm:$0xf] }
 0x152   :  { %v288_v63 = vmul.f32 %v3243_v61, %v259_v58  ;;  %v327_v0 = vmul.f32 %v3249_v62, %v298_v59  ;;  %v2430_v10 = vor.u32 %v2744_v4, %v2427_v6  ;;  %944 = vmatpush.bf16.msrb.mxu1 %v2402_v36  ;;  %v2805_v58 = vld [vmem:[%s4993_s6 + $0x230] sm:$0xf0]  ;;  %v2795_v6 = vld [vmem:[%s4993_s6 + $0x1e0] sm:$0xf0] }
 0x153   :  { %v2383_v5 = vmul.f32 -1.442695, %v3360_v56  ;;  %v2622_v12 = vor.u32 %v2795_v6, %v2621_v3  ;;  %v2768_v6 = vld [vmem:[%s4993_s6 + $0x108] sm:$0xf0] }
 0x154   :  { %v331_v8 = vadd.f32 %v327_v0, %v288_v63  ;;  %886 = vmatpush.bf16.msra.mxu3 %v2426_v57  ;;  %905 = vmatpush.bf16.msrb.mxu2 %v2430_v10  ;;  %v2666_v0 = vor.u32 %v2805_v58, %v2665_v55  ;;  %v2670_v57 = vor.u32 %v2801_v1, %v2667_v2  ;;  %v2557_v55 = vld [vmem:[%s4993_s6 + $0x138] sm:$0xf] }
 0x155   :  { %2835 = vpow2.f32 %v2383_v5  ;;  %v240_v15 = vpop.f32.mrf.mxu2 }
 0x156   :  { %v341_v18 = vadd.f32 %v337_v9, %v331_v8  ;;  %v3397_v19 = vsel %vm190_vm1, %v3091_v49, %v240_v15  ;;  %v2390_v49 = vor.u32 %v2739_v21, %v2389_v20  ;;  %994 = vmatpush.bf16.msra.mxu0 %v2666_v0  ;;  %v2623_v8 = vld [vmem:[%s4993_s6 + $0x1e4] sm:$0xf0]  ;;  %1013 = vmatpush.bf16.msra.mxu1 %v2670_v57  ;;  %v2796_v15 = vld [vmem:[%s4993_s6 + $0x1e8] sm:$0xf0]  ;;  %v2559_v0 = vld [vmem:[%s4993_s6 + $0x15c] sm:$0xf0] }
 0x157   :  { %v260_v23 = vrot.slane %v3397_v19, 6  ;;  %v299_v24 = vrot.slane %v3397_v19, 7  ;;  %v338_v60 = vmul.f32 %v3287_v14, %v3397_v19  ;;  %v2626_v13 = vor.u32 %v2791_v7, %v2623_v8  ;;  %v2513_v57 = vld [vmem:[%s4993_s6 + $0xe8] sm:$0xf] }
 0x158   :  { %v3417_v28 = vadd.f32 %v3325_v37, %v341_v18  ;;  %887 = vmatpush.bf16.msra.mxu3 %v2390_v49  ;;  %906 = vmatpush.bf16.msrb.mxu2 %v2394_v29  ;;  %v2634_v49 = vor.u32 %v2792_v16, %v2631_v17  ;;  %v2782_v29 = vld [vmem:[%s4993_s6 + $0x17c] sm:$0xf] }
 0x159   :  { %v261_v33 = vsel %vm256_vm2, %v258_v46, %v260_v23  ;;  %v300_v34 = vsel %vm295_vm3, %v297_v53, %v299_v24 }
 0x15a   :  { %v2384_v38 = vmul.f32 -1.442695, %v3417_v28  ;;  %v283_v39 = vsel %vm271_vm6, %v261_v33, 0.0  ;;  %v322_v40 = vsel %vm310_vm7, %v300_v34, 0.0  ;;  %v2586_v33 = vor.u32 %v2786_v26, %v2585_v25  ;;  %1014 = vmatpush.bf16.msra.mxu1 %v2634_v49  ;;  %v2477_v25 = vld [vmem:[%s4993_s6 + $0xa0] sm:$0xf] }
 0x15b   :  { %v2836_v44 = vpop.eup %2835  ;;  %v289_v46 = vmul.f32 %v3243_v61, %v283_v39  ;;  %v328_v53 = vmul.f32 %v3249_v62, %v322_v40  ;;  %v2590_v34 = vor.u32 %v2782_v29, %v2587_v31  ;;  %v2759_v29 = vld [vmem:[%s4993_s6 + $0xc0] sm:$0xf0] }
 0x15c   :  { %v3453_v51 = vadd.f32 1.0, %v2836_v44  ;;  %2837 = vpow2.f32 %v2384_v38  ;;  %956 = vmatpush.bf16.msrb.mxu3 %v2658_v52  ;;  %975 = vmatpush.bf16.msra.mxu2 %v2662_v54  ;;  %v2595_v38 = vld [vmem:[%s4993_s6 + $0x1a4] sm:$0xf0]  ;;  %v2550_v52 = vor.u32 %v2777_v47, %v2549_v41  ;;  %v2551_v54 = vld [vmem:[%s4993_s6 + $0x154] sm:$0xf0] }
 0x15d   :  { %v332_v59 = vadd.f32 %v328_v53, %v289_v46  ;;  %v243_v63 = vpop.f32.mrf.mxu2 }
 0x15e   :  { %2839 = vrcp.f32 %v3453_v51  ;;  %v251_v5 = vsel %vm190_vm1, %v3080_v45, %v243_v63  ;;  %v2629_v45 = vld [vmem:[%s4993_s6 + $0x1c8] sm:$0xf]  ;;  %v375_v50 = vand.u32 2147483647, %v3453_v51  ;;  %v2774_v63 = vld [vmem:[%s4993_s6 + $0x13c] sm:$0xf]  ;;  %vm371_vm9 = vweird.f32 %v3453_v51 }
 0x15f   :  { %v342_v4 = vadd.f32 %v338_v60, %v332_v59  ;;  %v262_v9 = vrot.slane %v251_v5, 6  ;;  %v301_v10 = vrot.slane %v251_v5, 7  ;;  %v2630_v22 = vor.u32 %v2796_v15, %v2629_v45  ;;  %v2778_v60 = vld [vmem:[%s4993_s6 + $0x158] sm:$0xf0] }
 0x160   :  { %957 = vmatpush.bf16.msrb.mxu3 %v2622_v12  ;;  %976 = vmatpush.bf16.msra.mxu2 %v2626_v13  ;;  %v339_v40 = vmul.f32 %v3287_v14, %v251_v5  ;;  %v2554_v59 = vor.u32 %v2773_v48, %v2551_v54  ;;  %v2558_v3 = vor.u32 %v2778_v60, %v2557_v55  ;;  %v2515_v12 = vld [vmem:[%s4993_s6 + $0x10c] sm:$0xf0]  ;;  %v377_v15 = vand.u32 2147483648, %v3453_v51  ;;  %v2750_v48 = vld [vmem:[%s4993_s6 + $0x78] sm:$0xf0] }
 0x161   :  { %v3489_v11 = vadd.f32 %v3325_v37, %v342_v4  ;;  %v263_v20 = vsel %vm256_vm2, %v260_v23, %v262_v9  ;;  %v302_v21 = vsel %vm295_vm3, %v299_v24, %v301_v10  ;;  %995 = vmatpush.bf16.msra.mxu0 %v2630_v22  ;;  %v2562_v4 = vor.u32 %v2774_v63, %v2559_v0  ;;  %v2521_v13 = vld [vmem:[%s4993_s6 + $0xf0] sm:$0xf]  ;;  %v2751_v60 = vld [vmem:[%s4993_s6 + $0x80] sm:$0xf0] }
 0x162   :  { %v2838_v18 = vpop.eup %2837  ;;  %v290_v23 = vmul.f32 %v3243_v61, %v263_v20  ;;  %v329_v24 = vmul.f32 %v3249_v62, %v302_v21  ;;  %v2787_v61 = vld [vmem:[%s4993_s6 + $0x1a0] sm:$0xf0]  ;;  %v2514_v45 = vor.u32 %v2768_v6, %v2513_v57  ;;  %v2765_v20 = vld [vmem:[%s4993_s6 + $0xf4] sm:$0xf]  ;;  %vm376_vm12 = vcmp.eq.f32.partialorder %v375_v50, 8.507059e+37 }
 0x163   :  { %v3515_v30 = vadd.f32 1.0, %v2838_v18  ;;  %v2385_v19 = vmul.f32 -1.442695, %v3489_v11  ;;  %v2783_v62 = vld [vmem:[%s4993_s6 + $0x184] sm:$0xf]  ;;  %v2594_v46 = vor.u32 %v2787_v61, %v2593_v35  ;;  %v378_v61 = vor.u32 1.1754944e-38, %v377_v15 }
 0x164   :  { %v3523_v32 = vpop.eup %2839  ;;  %v333_v39 = vadd.f32 %v329_v24, %v290_v23  ;;  %958 = vmatpush.bf16.msrb.mxu3 %v2586_v33  ;;  %977 = vmatpush.bf16.msra.mxu2 %v2590_v34  ;;  %v2598_v53 = vor.u32 %v2783_v62, %v2595_v38  ;;  %v2769_v18 = vld [vmem:[%s4993_s6 + $0x110] sm:$0xf0]  ;;  %v2478_v33 = vor.u32 %v2759_v29, %v2477_v25  ;;  %v2479_v34 = vld [vmem:[%s4993_s6 + $0xc4] sm:$0xf0]  ;;  %v2746_v50 = vld [vmem:[%s4993_s6 + $0x5c] sm:$0xf] }
 0x165   :  { %v367_v36 = vmul.f32 %v3523_v32, %v3453_v51  ;;  %2841 = vrcp.f32 %v3515_v30  ;;  %996 = vmatpush.bf16.msra.mxu0 %v2594_v46  ;;  %v390_v1 = vand.u32 2147483647, %v3515_v30  ;;  %vm372_vm8 = vweird.f32 %v3523_v32  ;;  %v2523_v51 = vld [vmem:[%s4993_s6 + $0x114] sm:$0xf0]  ;;  %v2485_v35 = vld [vmem:[%s4993_s6 + $0xa8] sm:$0xf] }
 0x166   :  { %2843 = vpow2.f32 %v2385_v19  ;;  %v343_v14 = vadd.f32 %v339_v40, %v333_v39  ;;  %1015 = vmatpush.bf16.msra.mxu1 %v2598_v53  ;;  %v392_v22 = vand.u32 2147483648, %v3515_v30  ;;  %v2522_v49 = vor.u32 %v2769_v18, %v2521_v13  ;;  %vm3612_vm10 = vmor %vm371_vm9, %vm372_vm8  ;;  %v2755_v19 = vld [vmem:[%s4993_s6 + $0xa4] sm:$0xf]  ;;  %v2441_v46 = vld [vmem:[%s4993_s6 + $0x58] sm:$0xf] }
 0x167   :  { %v368_v44 = vsub.f32 1.0, %v367_v36  ;;  %v2526_v31 = vor.u32 %v2765_v20, %v2523_v51  ;;  %vm386_vm13 = vweird.f32 %v3515_v30  ;;  %v2482_v62 = vor.u32 %v2755_v19, %v2479_v34  ;;  %v2756_v36 = vld [vmem:[%s4993_s6 + $0xac] sm:$0xf]  ;;  %v2747_v63 = vld [vmem:[%s4993_s6 + $0x64] sm:$0xf] }
 0x168   :  { %v3569_v2 = vadd.f32 %v3325_v37, %v343_v14  ;;  %959 = vmatpush.bf16.msrb.mxu3 %v2550_v52  ;;  %978 = vmatpush.bf16.msra.mxu2 %v2554_v59  ;;  %v2764_v37 = vld [vmem:[%s4993_s6 + $0xec] sm:$0xf]  ;;  %vm3648_vm15 = vcmp.eq.f32.partialorder %v390_v1, 8.507059e+37  ;;  %v393_v40 = vor.u32 1.1754944e-38, %v392_v22  ;;  %v2443_v14 = vld [vmem:[%s4993_s6 + $0x7c] sm:$0xf0]  ;;  %v2442_v55 = vor.u32 %v2750_v48, %v2441_v46 }
 0x169   :  { %v369_v58 = vmul.f32 %v3523_v32, %v368_v44  ;;  %997 = vmatpush.bf16.msra.mxu0 %v2558_v3  ;;  %v2518_v17 = vor.u32 %v2764_v37, %v2515_v12  ;;  %v2487_v44 = vld [vmem:[%s4993_s6 + $0xcc] sm:$0xf0]  ;;  %v2449_v59 = vld [vmem:[%s4993_s6 + $0x60] sm:$0xf]  ;;  %v2742_v15 = vld [vmem:[%s4993_s6 + $0x38] sm:$0xf0] }
 0x16a   :  { %v2386_v10 = vmul.f32 -1.442695, %v3569_v2  ;;  %1016 = vmatpush.bf16.msra.mxu1 %v2562_v4  ;;  %v2490_v47 = vor.u32 %v2756_v36, %v2487_v44  ;;  %v2450_v4 = vor.u32 %v2751_v60, %v2449_v59  ;;  %v2405_v57 = vld [vmem:[%s4993_s6 + $0x10] sm:$0xf]  ;;  %v2738_v20 = vld [vmem:[%s4993_s6 + $0x1c] sm:$0xf] }
 0x16b   :  { %v3571_v5 = vpop.eup %2841  ;;  %v370_v8 = vadd.f32 %v3523_v32, %v369_v58  ;;  %v2446_v58 = vor.u32 %v2746_v50, %v2443_v14  ;;  %v2806_v51 = vld [vmem:[%s4993_s6 + $0x238] sm:$0xf0]  ;;  %v2637_v19 = vld [vmem:[%s4993_s6 + $0x1d0] sm:$0xf]  ;;  %v2565_v44 = vld [vmem:[%s4993_s6 + $0x140] sm:$0xf] }
 0x16c   :  { %v2844_v7 = vpop.eup %2843  ;;  %v382_v9 = vmul.f32 %v3571_v5, %v3515_v30  ;;  %2845 = vpow2.f32 %v2386_v10  ;;  %vm387_vm11 = vweird.f32 %v3571_v5  ;;  %960 = vmatpush.bf16.msrb.mxu3 %v2514_v45  ;;  %979 = vmatpush.bf16.msra.mxu2 %v2518_v17  ;;  %v2770_v59 = vld [vmem:[%s4993_s6 + $0x118] sm:$0xf0] }
 0x16d   :  { %v3595_v16 = vadd.f32 1.0, %v2844_v7  ;;  %v374_v23 = vsel %vm3612_vm10, %v3523_v32, %v370_v8  ;;  %998 = vmatpush.bf16.msra.mxu0 %v2522_v49  ;;  %v2760_v32 = vld [vmem:[%s4993_s6 + $0xc8] sm:$0xf0]  ;;  %vm3644_vm14 = vmor %vm386_vm13, %vm387_vm11  ;;  %v2741_v8 = vld [vmem:[%s4993_s6 + $0x30] sm:$0xf0] }
 0x16e   :  { %v383_v21 = vsub.f32 1.0, %v382_v9  ;;  %1017 = vmatpush.bf16.msra.mxu1 %v2526_v31  ;;  %v2486_v41 = vor.u32 %v2760_v32, %v2485_v35  ;;  %v379_v53 = vsel %vm376_vm12, %v378_v61, %v374_v23  ;;  %v2737_v9 = vld [vmem:[%s4993_s6 + $0x14] sm:$0xf]  ;;  %v2406_v13 = vor.u32 %v2741_v8, %v2405_v57  ;;  %v2673_v49 = vld [vmem:[%s4993_s6 + $0x218] sm:$0xf] }
 0x16f   :  { %2847 = vrcp.f32 %v3595_v16  ;;  %v3692_v6 = vmul.f32 %v379_v53, %v3360_v56  ;;  %v2407_v56 = vld [vmem:[%s4993_s6 + $0x34] sm:$0xf0]  ;;  %v2674_v26 = vor.u32 %v2806_v51, %v2673_v49  ;;  %v2797_v23 = vld [vmem:[%s4993_s6 + $0x1f0] sm:$0xf0]  ;;  %v407_v34 = vand.u32 2147483648, %v3595_v16 }
 0x170   :  { %v384_v24 = vmul.f32 %v3571_v5, %v383_v21  ;;  %961 = vmatpush.bf16.msrb.mxu3 %v2478_v33  ;;  %980 = vmatpush.bf16.msra.mxu2 %v2482_v62  ;;  %v2410_v17 = vor.u32 %v2737_v9, %v2407_v56  ;;  %v2415_v21 = vld [vmem:[%s4993_s6 + $0x3c] sm:$0xf0]  ;;  %v2638_v33 = vor.u32 %v2797_v23, %v2637_v19  ;;  %v2601_v35 = vld [vmem:[%s4993_s6 + $0x188] sm:$0xf]  ;;  %v2788_v61 = vld [vmem:[%s4993_s6 + $0x1a8] sm:$0xf0]  ;;  %vm401_vm9 = vweird.f32 %v3595_v16 }
 0x171   :  { %999 = vmatpush.bf16.msra.mxu0 %v2486_v41  ;;  %v2418_v25 = vor.u32 %v2738_v20, %v2415_v21  ;;  %v405_v62 = vand.u32 2147483647, %v3595_v16  ;;  %v408_v41 = vor.u32 1.1754944e-38, %v407_v34  ;;  %v3814_v23 = vld [vmem:[%s4990_s5 + $0x6] ss:$0 sm:$0xff] }
 0x172   :  { %v385_v38 = vadd.f32 %v3571_v5, %v384_v24  ;;  %v2846_v52 = vpop.eup %2845  ;;  %1018 = vmatpush.bf16.msra.mxu1 %v2490_v47 }
 0x173   :  { %v3683_v3 = vadd.f32 1.0, %v2846_v52  ;;  %vm406_vm12 = vcmp.eq.f32.partialorder %v405_v62, 8.507059e+37 }
 0x174   :  { %v389_v54 = vsel %vm3644_vm14, %v3571_v5, %v385_v38  ;;  %v2451_v5 = vld [vmem:[%s4993_s6 + $0x84] sm:$0xf0]  ;;  %962 = vmatpush.bf16.msrb.mxu3 %v2442_v55  ;;  %981 = vmatpush.bf16.msra.mxu2 %v2446_v58  ;;  %v2529_v58 = vld [vmem:[%s4993_s6 + $0xf8] sm:$0xf] }
 0x175   :  { %v3679_v0 = vpop.eup %2847  ;;  %v394_v1 = vsel %vm3648_vm15, %v393_v40, %v389_v54  ;;  %2849 = vrcp.f32 %v3683_v3  ;;  %v2454_v12 = vor.u32 %v2747_v63, %v2451_v5  ;;  %1000 = vmatpush.bf16.msra.mxu0 %v2450_v4  ;;  %v420_v36 = vand.u32 2147483647, %v3683_v3  ;;  %v2421_v4 = vld [vmem:[%s4993_s6 + $0x20] sm:$0xf]  ;;  %v2743_v5 = vld [vmem:[%s4993_s6 + $0x40] sm:$0xf0] }
 0x176   :  { %v3695_v37 = vmul.f32 %v394_v1, %v3417_v28  ;;  %v397_v7 = vmul.f32 %v3679_v0, %v3595_v16  ;;  %v2413_v28 = vld [vmem:[%s4993_s6 + $0x18] sm:$0xf]  ;;  %vm402_vm8 = vweird.f32 %v3679_v0  ;;  %v422_v38 = vand.u32 2147483648, %v3683_v3  ;;  %v2779_v16 = vld [vmem:[%s4993_s6 + $0x160] sm:$0xf0] }
 0x177   :  { %v2414_v18 = vor.u32 %v2742_v15, %v2413_v28  ;;  %1019 = vmatpush.bf16.msra.mxu1 %v2454_v12  ;;  %vm403_vm10 = vmor %vm401_vm9, %vm402_vm8  ;;  %v2602_v40 = vor.u32 %v2788_v61, %v2601_v35  ;;  %vm416_vm13 = vweird.f32 %v3683_v3  ;;  %vm421_vm15 = vcmp.eq.f32.partialorder %v420_v36, 8.507059e+37  ;;  %v2752_v1 = vld [vmem:[%s4993_s6 + $0x88] sm:$0xf0]  ;;  %v3804_v28 = vpop.f32.mrf.mxu1 }
 0x178   :  { %v3714_v10 = vpack.c.bf16 %v3695_v37, %v3692_v6  ;;  %v398_v45 = vsub.f32 1.0, %v397_v7  ;;  %963 = vmatpush.bf16.msrb.mxu3 %v2406_v13  ;;  %982 = vmatpush.bf16.msra.mxu2 %v2410_v17  ;;  %v423_v47 = vor.u32 1.1754944e-38, %v422_v38  ;;  %v2566_v50 = vor.u32 %v2779_v16, %v2565_v44  ;;  %v2827_v7 = vld [vmem:[%s4990_s5 + $0x4] ss:$0 sm:$0xff]  ;;  %5048 = vst [vmem:[#allocation3_spill] sm:$0xff] %v3804_v28 }
 0x179   :  { %1001 = vmatpush.bf16.msra.mxu0 %v2414_v18  ;;  %v2530_v60 = vor.u32 %v2770_v59, %v2529_v58  ;;  %v2422_v57 = vor.u32 %v2743_v5, %v2421_v4  ;;  %v3845_v4 = vld [vmem:[%s4990_s5 + $0x5] ss:$0 sm:$0xff] }
 0x17a   :  { %v399_v22 = vmul.f32 %v3679_v0, %v398_v45  ;;  %888 = vmatmul.bf16.vlgmr.msra.gmra.mxu3 %v3714_v10  ;;  %907 = vmatmul.bf16.vlgmr.msrb.gmra.mxu2 %v3714_v10 }
 0x17b   :  { %926 = vmatmul.bf16.vlgmr.msrb.gmra.mxu0 %v3714_v10  ;;  %945 = vmatmul.bf16.vlgmr.msrb.gmra.mxu1 %v3714_v10  ;;  %v2850_v29 = vpop.eup %2849 }
 0x17c   :  { %v400_v24 = vadd.f32 %v3679_v0, %v399_v22  ;;  %v412_v31 = vmul.f32 %v2850_v29, %v3683_v3  ;;  %1032 = vmatpush.bf16.msra.mxu3 %v2674_v26  ;;  %1020 = vmatpush.bf16.msra.mxu1 %v2418_v25  ;;  %vm417_vm11 = vweird.f32 %v2850_v29 }
 0x17d   :  { %vm418_vm14 = vmor %vm416_vm13, %vm417_vm11 }
 0x17e   :  { %v413_v32 = vsub.f32 1.0, %v412_v31  ;;  %v404_v39 = vsel %vm403_vm10, %v3679_v0, %v400_v24  ;;  %v2457_v0 = vld [vmem:[%s4993_s6 + $0x68] sm:$0xf]  ;;  %v3819_v24 = vld [vmem:[%s4990_s5 + $0x7] ss:$0 sm:$0xff] }
 0x17f   :  { %v409_v53 = vsel %vm406_vm12, %v408_v41, %v404_v39  ;;  %v2458_v3 = vor.u32 %v2752_v1, %v2457_v0  ;;  %v3806_v21 = vpop.f32.mrf.mxu1 }
 0x180   :  { %v414_v30 = vmul.f32 %v2850_v29, %v413_v32  ;;  %1033 = vmatpush.bf16.msra.mxu3 %v2638_v33  ;;  %v3765_v52 = vmul.f32 %v409_v53, %v3489_v11  ;;  %v2493_v11 = vld [vmem:[%s4993_s6 + $0xb0] sm:$0xf]  ;;  %5049 = vst [vmem:[#allocation4_spill] sm:$0xff] %v3806_v21 }
 0x182   :  { %v415_v46 = vadd.f32 %v2850_v29, %v414_v30 }
 0x184   :  { %v419_v48 = vsel %vm418_vm14, %v2850_v29, %v415_v46  ;;  %1034 = vmatpush.bf16.msra.mxu3 %v2602_v40 }
 0x185   :  { %v424_v14 = vsel %vm421_vm15, %v423_v47, %v419_v48  ;;  %vm1249_vm15 = vcmask 1043456  }
 0x186   :  { %v3768_v54 = vmul.f32 %v424_v14, %v3569_v2  ;;  %v2761_v2 = vld [vmem:[%s4993_s6 + $0xd0] sm:$0xf0] }
 0x187   :  { %v2494_v63 = vor.u32 %v2761_v2, %v2493_v11  ;;  %v3821_v62 = vpop.f32.mrf.mxu1  ;;  %v3837_v2 = vld [vmem:[%s4990_s5 + $0x8] ss:$0 sm:$0xff] }
 0x188   :  { %v431_v55 = vpack.c.bf16 %v3768_v54, %v3765_v52  ;;  %1035 = vmatpush.bf16.msra.mxu3 %v2566_v50  ;;  %5050 = vst [vmem:[#allocation5_spill] sm:$0xff] %v3821_v62 }
 0x18a   :  { %893 = vmatmul.bf16.gmra.mxu3 %v431_v55  ;;  %912 = vmatmul.bf16.gmra.mxu2 %v431_v55 }
 0x18b   :  { %931 = vmatmul.bf16.gmra.mxu0 %v431_v55  ;;  %950 = vmatmul.bf16.gmra.mxu1 %v431_v55 }
 0x18c   :  { %1036 = vmatpush.bf16.msra.mxu3 %v2530_v60 }
 0x18f   :  { %v3840_v1 = vpop.f32.mrf.mxu1 }
 0x190   :  { %1037 = vmatpush.bf16.msra.mxu3 %v2494_v63  ;;  %5051 = vst [vmem:[#allocation6_spill] sm:$0xff] %v3840_v1 }
 0x194   :  { %1038 = vmatpush.bf16.msra.mxu3 %v2458_v3 }
 0x198   :  { %1039 = vmatpush.bf16.msra.mxu3 %v2422_v57  ;;  %v3851_v57 = vld [vmem:[%s4990_s5 + $0x9] ss:$0 sm:$0xff] }
 0x19a   :  { %964 = vmatmul.bf16.vlgmr.msrb.gmra.mxu3 %v3714_v10  ;;  %983 = vmatmul.bf16.vlgmr.msra.gmra.mxu2 %v3714_v10 }
 0x19b   :  { %1002 = vmatmul.bf16.vlgmr.msra.gmra.mxu0 %v3714_v10  ;;  %1021 = vmatmul.bf16.vlgmr.msra.gmra.mxu1 %v3714_v10 }
 0x1aa   :  { %969 = vmatmul.bf16.gmra.mxu3 %v431_v55  ;;  %988 = vmatmul.bf16.gmra.mxu2 %v431_v55 }
 0x1ab   :  { %1007 = vmatmul.bf16.gmra.mxu0 %v431_v55  ;;  %1026 = vmatmul.bf16.gmra.mxu1 %v431_v55 }
 0x1ba   :  { %1040 = vmatmul.bf16.vlgmr.msra.gmra.mxu3 %v3714_v10 }
 0x1ca   :  { %1045 = vmatmul.bf16.gmra.mxu3 %v431_v55 }
 0x1fd   :  { %v889_v8 = vpop.f32.mrf.mxu3  ;;  %v908_v46 = vpop.f32.mrf.mxu2 }
 0x1fe   :  { %v1053_v9 = vadd.f32 %v2827_v7, %v889_v8 }
 0x200   :  { %v1061_v56 = vmin.f32 %v1053_v9, 20.0  ;;  %vm1057_vm9 = vcmp.gt.f32.partialorder %v1053_v9, 20.0 }
 0x202   :  { %v1065_v45 = vmul.f32 1.442695, %v1061_v56 }
 0x204   :  { %2851 = vpow2.f32 %v1065_v45 }
 0x205   :  { %v891_v12 = vpop.f32.mrf.mxu3 }
 0x206   :  { %v1054_v13 = vadd.f32 %v2827_v7, %v891_v12  ;;  %v910_v12 = vpop.f32.mrf.mxu2 }
 0x208   :  { %v1062_v15 = vmin.f32 %v1054_v13, 20.0  ;;  %vm1058_vm11 = vcmp.gt.f32.partialorder %v1054_v13, 20.0 }
 0x20a   :  { %v2852_v17 = vpop.eup %2851  ;;  %v1067_v18 = vmul.f32 1.442695, %v1062_v15 }
 0x20b   :  { %v1073_v20 = vadd.f32 1.0, %v2852_v17  ;;  %v1076_v10 = vmul.f32 -0.5, %v2852_v17  ;;  %v1079_v25 = vand.u32 2147483647, %v2852_v17 }
 0x20c   :  { %2853 = vpow2.f32 %v1067_v18 }
 0x20d   :  { %2855 = vlog2.f32 %v1073_v20  ;;  %v894_v22 = vpop.f32.mrf.mxu3  ;;  %v1077_v49 = vadd.f32 1.0, %v1076_v10  ;;  %vm1080_vm8 = vcmp.lt.f32.partialorder %v1079_v25, 0.0004427343 }
 0x20e   :  { %v3808_v51 = vadd.f32 %v2827_v7, %v894_v22 }
 0x20f   :  { %v1078_v34 = vmul.f32 %v2852_v17, %v1077_v49  ;;  %v3864_v17 = vmul.f32 %v3845_v4, %v3692_v6 }
 0x210   :  { %v1063_v29 = vmin.f32 %v3808_v51, 20.0  ;;  %vm1059_vm12 = vcmp.gt.f32.partialorder %v3808_v51, 20.0 }
 0x212   :  { %v2854_v26 = vpop.eup %2853  ;;  %v1069_v61 = vmul.f32 1.442695, %v1063_v29 }
 0x213   :  { %v2856_v19 = vpop.eup %2855  ;;  %v1082_v31 = vadd.f32 1.0, %v2854_v26  ;;  %v1085_v35 = vmul.f32 -0.5, %v2854_v26  ;;  %v1088_v44 = vand.u32 2147483647, %v2854_v26 }
 0x214   :  { %v1075_v33 = vmul.f32 0.6931472, %v2856_v19 }
 0x215   :  { %2857 = vlog2.f32 %v1082_v31  ;;  %v1086_v30 = vadd.f32 1.0, %v1085_v35  ;;  %v896_v40 = vpop.f32.mrf.mxu3  ;;  %vm1089_vm10 = vcmp.lt.f32.partialorder %v1088_v44, 0.0004427343 }
 0x216   :  { %v1081_v32 = vsel %vm1080_vm8, %v1078_v34, %v1075_v33  ;;  %2859 = vpow2.f32 %v1069_v61  ;;  %v3831_v50 = vadd.f32 %v2827_v7, %v896_v40 }
 0x217   :  { %v1109_v36 = vsel %vm1057_vm9, %v1053_v9, %v1081_v32  ;;  %v1087_v58 = vmul.f32 %v2854_v26, %v1086_v30  ;;  %v927_v9 = vpop.f32.mrf.mxu0  ;;  %vm1262_vm9 = vcmp.ge.s32.totalorder %v3211_v42, 4 }
 0x218   :  { %v1125_v38 = vmul.f32 %v3814_v23, %v1109_v36  ;;  %v1340_v39 = vmul.f32 %v3819_v24, %v1109_v36  ;;  %v3826_v41 = vmul.f32 %v1109_v36, %v3692_v6  ;;  %v1064_v0 = vmin.f32 %v3831_v50, 20.0 }
 0x219   :  { %v1533_v56 = vmul.f32 %v3837_v2, %v1109_v36  ;;  %v1726_v25 = vmul.f32 %v3851_v57, %v1109_v36  ;;  %v3878_v6 = vmul.f32 %v3845_v4, %v3695_v37  ;;  %vm1060_vm14 = vcmp.gt.f32.partialorder %v3831_v50, 20.0 }
 0x21a   :  { %v1129_v16 = vmul.f32 1.442695, %v1125_v38  ;;  %v1344_v47 = vmul.f32 1.442695, %v1340_v39  ;;  %v3829_v48 = vmul.f32 %v3826_v41, %v908_v46  ;;  %v1071_v45 = vmul.f32 1.442695, %v1064_v0  ;;  %v946_v38 = vpop.f32.mrf.mxu1 }
 0x21b   :  { %v2858_v53 = vpop.eup %2857  ;;  %v3860_v15 = vmul.f32 %v3826_v41, %v927_v9  ;;  %v1537_v19 = vmul.f32 1.442695, %v1533_v56  ;;  %v1730_v39 = vmul.f32 1.442695, %v1726_v25  ;;  %v913_v9 = vpop.f32.mrf.mxu2 }
 0x21c   :  { %v2860_v14 = vpop.eup %2859  ;;  %v1084_v55 = vmul.f32 0.6931472, %v2858_v53  ;;  %2861 = vpow2.f32 %v1129_v16  ;;  %v1145_v60 = vrot.slane %v3829_v48, 7  ;;  %v3896_v53 = vmul.f32 %v3826_v41, %v946_v38 }
 0x21d   :  { %v1091_v59 = vadd.f32 1.0, %v2860_v14  ;;  %2863 = vpow2.f32 %v1344_v47  ;;  %v1094_v3 = vmul.f32 -0.5, %v2860_v14  ;;  %v1097_v49 = vand.u32 2147483647, %v2860_v14 }
 0x21e   :  { %v1090_v11 = vsel %vm1089_vm10, %v1087_v58, %v1084_v55  ;;  %v1156_v7 = vsel %vm295_vm3, 0.0, %v1145_v60  ;;  %v3900_v47 = vmul.f32 %v3845_v4, %v3765_v52 }
 0x21f   :  { %v1110_v63 = vsel %vm1058_vm11, %v1054_v13, %v1090_v11  ;;  %2865 = vlog2.f32 %v1091_v59  ;;  %v1095_v13 = vadd.f32 1.0, %v1094_v3  ;;  %v1157_v20 = vsel %vm308_vm5, %v1156_v7, 0.0 }
 0x220   :  { %v1126_v5 = vmul.f32 %v3814_v23, %v1110_v63  ;;  %v3871_v22 = vmul.f32 %v1110_v63, %v3695_v37  ;;  %v1341_v31 = vmul.f32 %v3819_v24, %v1110_v63  ;;  %v1534_v33 = vmul.f32 %v3837_v2, %v1110_v63  ;;  %5052 = vst [vmem:[#allocation7_spill] sm:$0xff] %v3900_v47 }
 0x221   :  { %2867 = vpow2.f32 %v1071_v45  ;;  %v1096_v61 = vmul.f32 %v2860_v14, %v1095_v13  ;;  %vm1098_vm13 = vcmp.lt.f32.partialorder %v1097_v49, 0.0004427343  ;;  %v5001_v37 = vrot.slane %v3860_v15, 7 }
 0x222   :  { %v3856_v8 = vpop.eup %2861  ;;  %v1131_v10 = vmul.f32 1.442695, %v1126_v5  ;;  %v1138_v36 = vmul.f32 %v3871_v22, %v910_v12  ;;  %v1727_v40 = vmul.f32 %v3851_v57, %v1110_v63  ;;  %v1346_v16 = vmul.f32 1.442695, %v1341_v31  ;;  %v948_v62 = vpop.f32.mrf.mxu1 }
 0x223   :  { %v3866_v18 = vpop.eup %2863  ;;  %v1161_v26 = vmul.f32 %v3856_v8, %v1157_v20  ;;  %v1173_v34 = vrot.slane %v3856_v8, 7  ;;  %v1539_v14 = vmul.f32 1.442695, %v1534_v33  ;;  %v1371_v0 = vsel %vm295_vm3, 0.0, %v5001_v37 }
 0x224   :  { %v5002_v32 = vrot.slane %v3866_v18, 7  ;;  %2869 = vpow2.f32 %v1131_v10  ;;  %v1146_v11 = vrot.slane %v1138_v36, 7  ;;  %v1732_v5 = vmul.f32 1.442695, %v1727_v40 }
 0x225   :  { %v2866_v29 = vpop.eup %2865  ;;  %v3887_v30 = vadd.f32 %v1161_v26, %v3829_v48  ;;  %2871 = vpow2.f32 %v1537_v19  ;;  %v4998_v12 = vrot.slane %v3896_v53, 7  ;;  %v1372_v10 = vsel %vm308_vm5, %v1371_v0, 0.0 }
 0x226   :  { %v1093_v35 = vmul.f32 0.6931472, %v2866_v29  ;;  %v1399_v58 = vsel %vm295_vm3, 0.0, %v5002_v32  ;;  %2873 = vpow2.f32 %v1730_v39  ;;  %v1147_v49 = vsel %vm295_vm3, %v1145_v60, %v1146_v11 }
 0x227   :  { %v3907_v59 = vpop.eup %2867  ;;  %v1197_v3 = vrot.slane %v3887_v30, 6  ;;  %2875 = vpow2.f32 %v1346_v16  ;;  %v1376_v26 = vmul.f32 %v3866_v18, %v1372_v10  ;;  %v5056_v1 = vrot.slane %v3866_v18, 7 }
 0x228   :  { %v1099_v44 = vsel %vm1098_vm13, %v1096_v61, %v1093_v35  ;;  %v1100_v20 = vadd.f32 1.0, %v3907_v59  ;;  %v1103_v60 = vmul.f32 -0.5, %v3907_v59  ;;  %v1564_v61 = vsel %vm295_vm3, 0.0, %v4998_v12 }
 0x229   :  { %v3893_v46 = vsel %vm1059_vm12, %v3808_v51, %v1099_v44  ;;  %v1184_v51 = vsel %vm295_vm3, 0.0, %v1173_v34  ;;  %v1208_v19 = vsel %vm256_vm2, 0.0, %v1197_v3  ;;  %v3952_v35 = vadd.f32 %v1376_v26, %v3860_v15 }
 0x22a   :  { %v1127_v55 = vmul.f32 %v3814_v23, %v3893_v46  ;;  %v3914_v63 = vmul.f32 %v3893_v46, %v3765_v52  ;;  %v3920_v56 = vpop.eup %2869  ;;  %v1400_v52 = vsel %vm308_vm5, %v1399_v58, 0.0  ;;  %v1185_v13 = vsel %vm308_vm5, %v1184_v51, 0.0 }
 0x22b   :  { %v3938_v29 = vpop.eup %2871  ;;  %v1162_v31 = vmul.f32 %v3920_v56, %v1147_v49  ;;  %v3945_v33 = vmul.f32 %v3866_v18, %v1400_v52  ;;  %v3960_v39 = vmul.f32 %v3856_v8, %v1185_v13  ;;  %v3965_v44 = vmul.f32 %v3845_v4, %v3768_v54 }
 0x22c   :  { %v1133_v7 = vmul.f32 1.442695, %v1127_v55  ;;  %v3923_v45 = vmul.f32 %v3914_v63, %v913_v9  ;;  %v3957_v38 = vpop.eup %2873  ;;  %v4997_v55 = vrot.slane %v3952_v35, 6  ;;  %v1565_v58 = vsel %vm308_vm5, %v1564_v61, 0.0 }
 0x22d   :  { %v4999_v40 = vrot.slane %v3945_v33, 6  ;;  %v3967_v16 = vpop.eup %2875  ;;  %v5000_v51 = vrot.slane %v3938_v29, 7  ;;  %v3978_v0 = vadd.f32 %v1162_v31, %v1138_v36  ;;  %v1174_v4 = vrot.slane %v3920_v56, 7 }
 0x22e   :  { %2877 = vpow2.f32 %v1133_v7  ;;  %v1148_v25 = vrot.slane %v3923_v45, 7  ;;  %v1569_v7 = vmul.f32 %v3938_v29, %v1565_v58  ;;  %v1104_v13 = vadd.f32 1.0, %v1103_v60 }
 0x22f   :  { %2879 = vpow2.f32 %v1539_v14  ;;  %v1209_v14 = vsel %vm269_vm4, %v1208_v19, 0.0  ;;  %v1451_v36 = vsel %vm256_vm2, 0.0, %v4999_v40  ;;  %v1106_v49 = vand.u32 2147483647, %v3907_v59 }
 0x230   :  { %2881 = vpow2.f32 %v1732_v5  ;;  %v1149_v48 = vsel %vm295_vm3, %v1146_v11, %v1148_v25  ;;  %v3999_v19 = vadd.f32 %v1569_v7, %v3896_v53  ;;  %v1592_v31 = vsel %vm295_vm3, 0.0, %v5000_v51 }
 0x231   :  { %2883 = vlog2.f32 %v1100_v20  ;;  %v1159_v5 = vsel %vm310_vm7, %v1149_v48, 0.0  ;;  %v1423_v20 = vsel %vm256_vm2, 0.0, %v4997_v55  ;;  %v1213_v48 = vmul.f32 %v1209_v14, %v3960_v39 }
 0x232   :  { %v1424_v26 = vsel %vm269_vm4, %v1423_v20, 0.0  ;;  %v1342_v60 = vmul.f32 %v3819_v24, %v3893_v46  ;;  %v1535_v61 = vmul.f32 %v3837_v2, %v3893_v46  ;;  %v1593_v58 = vsel %vm308_vm5, %v1592_v31, 0.0 }
 0x233   :  { %v1198_v7 = vrot.slane %v3978_v0, 6  ;;  %v1428_v12 = vmul.f32 %v1424_v26, %v3945_v33  ;;  %v1452_v14 = vsel %vm269_vm4, %v1451_v36, 0.0  ;;  %v1175_v40 = vsel %vm295_vm3, %v1173_v34, %v1174_v4 }
 0x234   :  { %v3976_v11 = vpop.eup %2877  ;;  %v1105_v31 = vmul.f32 %v3907_v59, %v1104_v13  ;;  %v5003_v37 = vrot.slane %v3999_v19, 6  ;;  %vm1107_vm8 = vcmp.lt.f32.partialorder %v1106_v49, 0.0004427343  ;;  %v4031_v36 = vadd.f32 %v1213_v48, %v3887_v30 }
 0x235   :  { %v3984_v9 = vpop.eup %2879  ;;  %v1163_v52 = vmul.f32 %v3976_v11, %v1159_v5  ;;  %v965_v5 = vpop.f32.mrf.mxu3  ;;  %v5010_v32 = vrot.slane %v3976_v11, 7  ;;  %v1728_v8 = vmul.f32 %v3851_v57, %v3893_v46  ;;  %v4037_v59 = vmul.f32 %v1452_v14, %v3945_v33 }
 0x236   :  { %v3993_v10 = vpop.eup %2881  ;;  %v4028_v26 = vmul.f32 %v3826_v41, %v965_v5  ;;  %v1199_v13 = vsel %vm256_vm2, %v1197_v3, %v1198_v7  ;;  %v4047_v48 = vadd.f32 %v1428_v12, %v3952_v35  ;;  %v4050_v46 = vmul.f32 %v3920_v56, %v1175_v40 }
 0x237   :  { %v2884_v20 = vpop.eup %2883  ;;  %v4013_v55 = vadd.f32 %v1163_v52, %v3923_v45  ;;  %v4025_v52 = vmul.f32 %v3938_v29, %v1593_v58  ;;  %v1616_v30 = vsel %vm256_vm2, 0.0, %v5003_v37  ;;  %v1177_v3 = vsel %vm295_vm3, %v1174_v4, %v5010_v32 }
 0x238   :  { %v1102_v51 = vmul.f32 0.6931472, %v2884_v20  ;;  %v5008_v12 = vrot.slane %v4028_v26, 7  ;;  %v1214_v56 = vmul.f32 %v1199_v13, %v4050_v46  ;;  %v1541_v40 = vmul.f32 1.442695, %v1535_v61  ;;  %v915_v13 = vpop.f32.mrf.mxu2 }
 0x239   :  { %v5007_v49 = vrot.slane %v4013_v55, 6  ;;  %v5014_v20 = vrot.slane %v4031_v36, 4  ;;  %v5006_v4 = vrot.slane %v4047_v48, 4  ;;  %v1187_v61 = vsel %vm310_vm7, %v1177_v3, 0.0 }
 0x23a   :  { %v1108_v34 = vsel %vm1107_vm8, %v1105_v31, %v1102_v51  ;;  %v1348_v51 = vmul.f32 1.442695, %v1342_v60  ;;  %v1757_v37 = vsel %vm295_vm3, 0.0, %v5008_v12  ;;  %v5058_v18 = vrot.slane %v3860_v15, 7 }
 0x23b   :  { %v1112_v41 = vsel %vm1060_vm14, %v3831_v50, %v1108_v34  ;;  %v5005_v50 = vrot.slane %v4025_v52, 6  ;;  %v1201_v14 = vsel %vm256_vm2, %v1198_v7, %v5007_v49  ;;  %v1734_v34 = vmul.f32 1.442695, %v1728_v8 }
 0x23c   :  { %v1128_v58 = vmul.f32 %v3814_v23, %v1112_v41  ;;  %v4060_v5 = vmul.f32 %v1112_v41, %v3768_v54  ;;  %v5004_v23 = vrot.slane %v4037_v59, 4  ;;  %v1617_v54 = vsel %vm269_vm4, %v1616_v30, 0.0 }
 0x23d   :  { %2885 = vpow2.f32 %v1348_v51  ;;  %v1644_v7 = vsel %vm256_vm2, 0.0, %v5005_v50  ;;  %v4084_v30 = vadd.f32 %v1214_v56, %v3978_v0  ;;  %v1211_v8 = vsel %vm271_vm6, %v1201_v14, 0.0  ;;  %v967_v27 = vpop.f32.mrf.mxu3 }
 0x23e   :  { %v1135_v60 = vmul.f32 1.442695, %v1128_v58  ;;  %v1140_v58 = vmul.f32 %v4060_v5, %v915_v13  ;;  %v1503_v51 = vsel %vm1249_vm15, 0.0, %v5004_v23  ;;  %v1621_v3 = vmul.f32 %v1617_v54, %v4025_v52 }
 0x23f   :  { %v1475_v13 = vsel %vm1249_vm15, 0.0, %v5006_v4  ;;  %v1758_v0 = vsel %vm308_vm5, %v1757_v37, 0.0  ;;  %v1343_v56 = vmul.f32 %v3819_v24, %v1112_v41  ;;  %v1645_v14 = vsel %vm269_vm4, %v1644_v7, 0.0 }
 0x240   :  { %2887 = vpow2.f32 %v1135_v60  ;;  %v4093_v60 = vmul.f32 %v3976_v11, %v1187_v61  ;;  %v1762_v23 = vmul.f32 %v3957_v38, %v1758_v0  ;;  %v1150_v54 = vrot.slane %v1140_v58, 7 }
 0x241   :  { %2889 = vpow2.f32 %v1541_v40  ;;  %v1504_v61 = vsel %vm1262_vm9, %v1503_v51, 0.0  ;;  %v5009_v50 = vrot.slane %v3960_v39, 6  ;;  %v1476_v24 = vsel %vm1262_vm9, %v1475_v13, 0.0 }
 0x242   :  { %2891 = vpow2.f32 %v1734_v34  ;;  %v1215_v40 = vmul.f32 %v1211_v8, %v4093_v60  ;;  %v1536_v34 = vmul.f32 %v3837_v2, %v1112_v41  ;;  %v4115_v7 = vadd.f32 %v1621_v3, %v3999_v19 }
 0x243   :  { %v4108_v4 = vpop.eup %2885  ;;  %v1729_v8 = vmul.f32 %v3851_v57, %v1112_v41  ;;  %v4121_v51 = vmul.f32 %v1645_v14, %v4025_v52  ;;  %v4124_v31 = vadd.f32 %v1762_v23, %v4028_v26  ;;  %v5011_v37 = vrot.slane %v3957_v38, 7 }
 0x244   :  { %v1350_v49 = vmul.f32 1.442695, %v1343_v56  ;;  %v1508_v13 = vmul.f32 %v1504_v61, %v4037_v59  ;;  %v1236_v3 = vsel %vm256_vm2, 0.0, %v5009_v50  ;;  %v4135_v57 = vadd.f32 %v1215_v40, %v4013_v55 }
 0x245   :  { %v1151_v41 = vsel %vm295_vm3, %v1148_v25, %v1150_v54  ;;  %v1480_v23 = vmul.f32 %v1476_v24, %v4037_v59  ;;  %v1237_v56 = vsel %vm269_vm4, %v1236_v3, 0.0  ;;  %v4145_v61 = vmul.f32 1.442695, %v1536_v34  ;;  %v929_v24 = vpop.f32.mrf.mxu0 }
 0x246   :  { %v4117_v0 = vpop.eup %2887  ;;  %v5015_v50 = vrot.slane %v4115_v7, 4  ;;  %v4150_v40 = vmul.f32 %v1237_v56, %v3960_v39  ;;  %v4152_v32 = vmul.f32 1.442695, %v1729_v8  ;;  %v1785_v25 = vsel %vm295_vm3, 0.0, %v5011_v37 }
 0x247   :  { %v4132_v12 = vpop.eup %2889  ;;  %v1164_v2 = vmul.f32 %v4117_v0, %v1151_v41  ;;  %2893 = vpow2.f32 %v1350_v49  ;;  %v1178_v34 = vrot.slane %v4117_v0, 7  ;;  %v4160_v3 = vmul.f32 0.0, %v1508_v13 }
 0x248   :  { %v4143_v14 = vpop.eup %2891  ;;  %v5016_v41 = vrot.slane %v4150_v40, 4  ;;  %v4164_v56 = vadd.f32 %v1480_v23, %v4047_v48  ;;  %v1261_v8 = vsel %vm1249_vm15, 0.0, %v5014_v20  ;;  %v4170_v45 = vmul.f32 %v3871_v22, %v929_v24 }
 0x249   :  { %v4173_v54 = vadd.f32 %v1164_v2, %v1140_v58  ;;  %v1668_v49 = vsel %vm1249_vm15, 0.0, %v5015_v50  ;;  %v1786_v13 = vsel %vm308_vm5, %v1785_v25, 0.0  ;;  %v5053_v20 = vrot.slane %v4121_v51, 4 }
 0x24a   :  { %v1301_v23 = vsel %vm1249_vm15, 0.0, %v5016_v41  ;;  %v5054_v37 = vrot.slane %v4124_v31, 6  ;;  %v5017_v2 = vrot.slane %v4170_v45, 7  ;;  %v5055_v50 = vrot.slane %v3967_v16, 7 }
 0x24b   :  { %v1696_v24 = vsel %vm1249_vm15, 0.0, %v5053_v20  ;;  %v5057_v41 = vrot.slane %v3976_v11, 7  ;;  %v1274_v20 = vsel %vm1262_vm9, %v1261_v8, 0.0  ;;  %v1302_v28 = vsel %vm1262_vm9, %v1301_v23, 0.0 }
 0x24c   :  { %v1809_v58 = vsel %vm256_vm2, 0.0, %v5054_v37  ;;  %v1390_v25 = vsel %vm295_vm3, %v5056_v1, %v5055_v50  ;;  %v1362_v1 = vsel %vm295_vm3, %v5058_v18, %v5017_v2  ;;  %v4211_v50 = vmul.f32 %v3871_v22, %v948_v62 }
 0x24d   :  { %v1179_v21 = vsel %vm295_vm3, %v5057_v41, %v1178_v34  ;;  %v4203_v37 = vmul.f32 %v3967_v16, %v1390_v25  ;;  %v5018_v11 = vrot.slane %v3984_v9, 7  ;;  %v4215_v34 = vmul.f32 %v3871_v22, %v967_v27  ;;  %v4217_v41 = vpop.eup %2893 }
 0x24e   :  { %v1202_v8 = vrot.slane %v4173_v54, 6  ;;  %v1810_v23 = vsel %vm269_vm4, %v1809_v58, 0.0  ;;  %v1377_v25 = vmul.f32 %v3967_v16, %v1362_v1  ;;  %v1278_v18 = vmul.f32 %v1274_v20, %v4150_v40 }
 0x24f   :  { %v5019_v15 = vrot.slane %v4203_v37, 6  ;;  %v5059_v27 = vrot.slane %v3938_v29, 7  ;;  %v5020_v2 = vrot.slane %v4215_v34, 7  ;;  %v1306_v47 = vmul.f32 %v1302_v28, %v4150_v40 }
 0x250   :  { %v4234_v58 = vadd.f32 %v1377_v25, %v4170_v45  ;;  %v5060_v1 = vrot.slane %v3945_v33, 6  ;;  %v1669_v29 = vsel %vm1262_vm9, %v1668_v49, 0.0  ;;  %v5061_v28 = vrot.slane %v4211_v50, 7 }
 0x251   :  { %v1583_v22 = vsel %vm295_vm3, %v5059_v27, %v5018_v11  ;;  %v4247_v27 = vmul.f32 %v3957_v38, %v1786_v13  ;;  %v5062_v25 = vrot.slane %v3896_v53, 7  ;;  %v5063_v33 = vrot.slane %v4028_v26, 7 }
 0x252   :  { %v1442_v20 = vsel %vm256_vm2, %v5060_v1, %v5019_v15  ;;  %v4242_v62 = vmul.f32 %v3984_v9, %v1583_v22  ;;  %v4260_v22 = vmul.f32 %v4117_v0, %v1179_v21  ;;  %v1697_v49 = vsel %vm1262_vm9, %v1696_v24, 0.0 }
 0x253   :  { %v1555_v11 = vsel %vm295_vm3, %v5062_v25, %v5061_v28  ;;  %v1748_v1 = vsel %vm295_vm3, %v5063_v33, %v5020_v2  ;;  %v5024_v13 = vrot.slane %v4234_v58, 6  ;;  %v5064_v53 = vrot.slane %v4013_v55, 6 }
 0x254   :  { %v1570_v15 = vmul.f32 %v3984_v9, %v1555_v11  ;;  %v1814_v25 = vmul.f32 %v1810_v23, %v4247_v27  ;;  %v4271_v26 = vmul.f32 %v1442_v20, %v4203_v37  ;;  %v5021_v33 = vrot.slane %v4242_v62, 6 }
 0x255   :  { %v1203_v28 = vsel %vm256_vm2, %v5064_v53, %v1202_v8  ;;  %v4275_v21 = vadd.f32 %v1278_v18, %v4031_v36  ;;  %v1322_v0 = vmul.f32 0.0, %v1306_v47  ;;  %v1763_v24 = vmul.f32 %v3993_v10, %v1748_v1 }
 0x256   :  { %v5065_v2 = vrot.slane %v4050_v46, 6  ;;  %v5066_v11 = vrot.slane %v3960_v39, 6  ;;  %v1673_v8 = vmul.f32 %v1669_v29, %v4121_v51  ;;  %v1701_v23 = vmul.f32 %v1697_v49, %v4121_v51 }
 0x257   :  { %v5067_v20 = vrot.slane %v3952_v35, 6  ;;  %v4291_v47 = vadd.f32 %v1570_v15, %v4211_v50  ;;  %2895 = vpow2.f32 %v4145_v61  ;;  %v1216_v39 = vmul.f32 %v1203_v28, %v4260_v22 }
 0x258   :  { %v1227_v55 = vsel %vm256_vm2, %v5066_v11, %v5065_v2  ;;  %v5022_v2 = vrot.slane %v3993_v10, 7  ;;  %2897 = vpow2.f32 %v4152_v32  ;;  %v5023_v29 = vrot.slane %v4271_v26, 4 }
 0x259   :  { %v1414_v18 = vsel %vm256_vm2, %v5067_v20, %v5024_v13  ;;  %v5068_v35 = vrot.slane %v4025_v52, 6  ;;  %v4305_v15 = vmul.f32 %v1227_v55, %v4050_v46  ;;  %v4308_v53 = vadd.f32 %v1814_v25, %v4124_v31  ;;  %v932_v25 = vpop.f32.mrf.mxu0 }
 0x25a   :  { %v1326_v61 = vadd.f32 %v1322_v0, %v4275_v21  ;;  %v1429_v28 = vmul.f32 %v1414_v18, %v4203_v37  ;;  %v4313_v32 = vadd.f32 %v1763_v24, %v4215_v34  ;;  %v4317_v11 = vadd.f32 %v4160_v3, %v4164_v56  ;;  %v984_v18 = vpop.f32.mrf.mxu2 }
 0x25b   :  { %v1635_v49 = vsel %vm256_vm2, %v5068_v35, %v5021_v33  ;;  %v4320_v52 = vadd.f32 %v1673_v8, %v4115_v7  ;;  %v4322_v20 = vmul.f32 0.0, %v1701_v23  ;;  %v5025_v55 = vrot.slane %v4291_v47, 6 }
 0x25c   :  { %v4326_v35 = vadd.f32 %v1216_v39, %v4173_v54  ;;  %v4330_v24 = vmul.f32 %v1635_v49, %v4242_v62  ;;  %v5070_v3 = vrot.slane %v3957_v38, 7  ;;  %v5071_v23 = vrot.slane %v4037_v59, 4 }
 0x25d   :  { %5069 = vst [vmem:[#allocation8_spill] sm:$0xff] %v4322_v20  ;;  %v5027_v54 = vrot.slane %v4305_v15, 4  ;;  %v4344_v39 = vmul.f32 %v3914_v63, %v932_v25  ;;  %v5026_v49 = vrot.slane %v4108_v4, 7  ;;  %v4347_v0 = vpop.eup %2895  ;;  %v4350_v33 = vmul.f32 %v1326_v61, %v984_v18  ;;  %v951_v18 = vpop.f32.mrf.mxu1 }
 0x25e   :  { %v1776_v8 = vsel %vm295_vm3, %v5070_v3, %v5022_v2  ;;  %v1494_v1 = vsel %vm1249_vm15, %v5071_v23, %v5023_v29  ;;  %v4353_v3 = vadd.f32 %v1429_v28, %v4234_v58  ;;  %v4356_v2 = vpop.eup %2897  ;;  %v5072_v25 = vrot.slane %v3999_v19, 6 }
 0x25f   :  { %v4364_v29 = vmul.f32 %v3993_v10, %v1776_v8  ;;  %v5028_v38 = vrot.slane %v4344_v39, 7  ;;  %v5073_v61 = vrot.slane %v3967_v16, 7  ;;  %v4373_v13 = vmul.f32 %v1494_v1, %v4271_v26 }
 0x260   :  { %v1607_v23 = vsel %vm256_vm2, %v5072_v25, %v5025_v55  ;;  %v5074_v19 = vrot.slane %v4084_v30, 4  ;;  %v5075_v25 = vrot.slane %v4031_v36, 4  ;;  %v5076_v16 = vrot.slane %v4150_v40, 4 }
 0x261   :  { %v1392_v28 = vsel %vm295_vm3, %v5073_v61, %v5026_v49  ;;  %v5077_v1 = vrot.slane %v4170_v45, 7  ;;  %v4397_v36 = vmul.f32 %v3914_v63, %v951_v18  ;;  %v5078_v40 = vrot.slane %v4313_v32, 6 }
 0x262   :  { %v1252_v8 = vsel %vm1249_vm15, %v5075_v25, %v5074_v19  ;;  %v1402_v55 = vsel %vm310_vm7, %v1392_v28, 0.0  ;;  %v1292_v61 = vsel %vm1249_vm15, %v5076_v16, %v5027_v54  ;;  %v970_v19 = vpop.f32.mrf.mxu3  ;;  %v1622_v25 = vmul.f32 %v1607_v23, %v4242_v62 }
 0x263   :  { %v1364_v49 = vsel %vm295_vm3, %v5077_v1, %v5028_v38  ;;  %v4394_v59 = vmul.f32 %v4108_v4, %v1402_v55  ;;  %v5079_v16 = vrot.slane %v4124_v31, 6  ;;  %v5031_v18 = vrot.slane %v4397_v36, 7 }
 0x264   :  { %v1374_v45 = vsel %vm310_vm7, %v1364_v49, 0.0  ;;  %v5033_v38 = vrot.slane %v4132_v12, 7  ;;  %v5080_v28 = vrot.slane %v4330_v24, 4  ;;  %v5081_v23 = vrot.slane %v4121_v51, 4 }
 0x265   :  { %v1800_v54 = vsel %vm256_vm2, %v5079_v16, %v5078_v40  ;;  %v1378_v55 = vmul.f32 %v4108_v4, %v1374_v45  ;;  %v5029_v1 = vrot.slane %v4394_v59, 6  ;;  %v1279_v31 = vmul.f32 %v1252_v8, %v4305_v15 }
 0x266   :  { %v1687_v20 = vsel %vm1249_vm15, %v5081_v23, %v5080_v28  ;;  %v1307_v40 = vmul.f32 %v1292_v61, %v4305_v15  ;;  %v4420_v49 = vmul.f32 %v3914_v63, %v970_v19  ;;  %vm1264_vm5 = vcmp.ge.s32.totalorder %v3213_v43, 4 }
 0x267   :  { %v4424_v16 = vadd.f32 %v1378_v55, %v4344_v39  ;;  %v5082_v45 = vrot.slane %v4203_v37, 6  ;;  %v5083_v8 = vrot.slane %v4211_v50, 7  ;;  %v5084_v63 = vrot.slane %v3984_v9, 7 }
 0x268   :  { %v4442_v28 = vadd.f32 %v1622_v25, %v4291_v47  ;;  %v1815_v55 = vmul.f32 %v1800_v54, %v4364_v29  ;;  %v1283_v25 = vadd.f32 %v1279_v31, %v4084_v30  ;;  %v1323_v54 = vmul.f32 %v1307_v40, %v4275_v21 }
 0x269   :  { %v1444_v51 = vsel %vm256_vm2, %v5082_v45, %v5029_v1  ;;  %v1557_v61 = vsel %vm295_vm3, %v5083_v8, %v5031_v18  ;;  %v1585_v19 = vsel %vm295_vm3, %v5084_v63, %v5033_v38  ;;  %v5030_v50 = vrot.slane %v4424_v16, 6  ;;  %v934_v38 = vpop.f32.mrf.mxu0 }
 0x26a   :  { %v1454_v37 = vsel %vm271_vm6, %v1444_v51, 0.0  ;;  %v1567_v23 = vsel %vm310_vm7, %v1557_v61, 0.0  ;;  %v1595_v8 = vsel %vm310_vm7, %v1585_v19, 0.0  ;;  %v5032_v51 = vrot.slane %v4420_v49, 7 }
 0x26b   :  { %v4451_v45 = vmul.f32 %v1454_v37, %v4394_v59  ;;  %v1571_v9 = vmul.f32 %v4132_v12, %v1567_v23  ;;  %v4459_v63 = vmul.f32 %v4132_v12, %v1595_v8  ;;  %v5085_v61 = vrot.slane %v4353_v3, 4 }
 0x26c   :  { %v5086_v1 = vrot.slane %v4047_v48, 4  ;;  %v5087_v23 = vrot.slane %v4234_v58, 6  ;;  %v5088_v48 = vrot.slane %v4215_v34, 7  ;;  %v5039_v58 = vrot.slane %v4143_v14, 7 }
 0x26d   :  { %v5035_v31 = vrot.slane %v4451_v45, 4  ;;  %v4474_v21 = vadd.f32 %v1571_v9, %v4397_v36  ;;  %v5040_v8 = vrot.slane %v4459_v63, 6  ;;  %v1327_v18 = vadd.f32 %v1323_v54, %v1283_v25 }
 0x26e   :  { %v1466_v37 = vsel %vm1249_vm15, %v5086_v1, %v5085_v61  ;;  %v1416_v19 = vsel %vm256_vm2, %v5087_v23, %v5030_v50  ;;  %v1750_v1 = vsel %vm295_vm3, %v5088_v48, %v5032_v51  ;;  %v5089_v34 = vrot.slane %v4242_v62, 6 }
 0x26f   :  { %v1426_v40 = vsel %vm271_vm6, %v1416_v19, 0.0  ;;  %v5034_v9 = vrot.slane %v4474_v21, 6  ;;  %v1760_v50 = vsel %vm310_vm7, %v1750_v1, 0.0  ;;  %v1481_v19 = vmul.f32 %v1466_v37, %v4271_v26 }
 0x270   :  { %v1430_v23 = vmul.f32 %v1426_v40, %v4394_v59  ;;  %v1637_v48 = vsel %vm256_vm2, %v5089_v34, %v5040_v8  ;;  %v1764_v51 = vmul.f32 %v4143_v14, %v1760_v50  ;;  %v5090_v40 = vrot.slane %v4271_v26, 4 }
 0x271   :  { %v5091_v25 = vrot.slane %v4291_v47, 6  ;;  %v1647_v54 = vsel %vm271_vm6, %v1637_v48, 0.0  ;;  %v5092_v26 = vrot.slane %v3993_v10, 7  ;;  %v1516_v34 = vmul.f32 %v4373_v13, %v4164_v56 }
 0x272   :  { %v4498_v61 = vadd.f32 %v1430_v23, %v4424_v16  ;;  %v1496_v1 = vsel %vm1249_vm15, %v5090_v40, %v5035_v31  ;;  %v4515_v37 = vmul.f32 %v1647_v54, %v4459_v63  ;;  %v4518_v23 = vadd.f32 %v1764_v51, %v4420_v49 }
 0x273   :  { %v1609_v62 = vsel %vm256_vm2, %v5091_v25, %v5034_v9  ;;  %v1778_v47 = vsel %vm295_vm3, %v5092_v26, %v5039_v58  ;;  %v5093_v48 = vrot.slane %v4442_v28, 4  ;;  %v5094_v40 = vrot.slane %v4115_v7, 4 }
 0x274   :  { %v1619_v50 = vsel %vm271_vm6, %v1609_v62, 0.0  ;;  %v1702_v62 = vmul.f32 %v1687_v20, %v4330_v24  ;;  %v5036_v51 = vrot.slane %v4498_v61, 4  ;;  %v4535_v54 = vadd.f32 %v1815_v55, %v4313_v32 }
 0x275   :  { %v1659_v25 = vsel %vm1249_vm15, %v5094_v40, %v5093_v48  ;;  %v1506_v10 = vsel %vm1264_vm5, %v1496_v1, 0.0  ;;  %v5038_v26 = vrot.slane %v4518_v23, 6  ;;  %v5095_v56 = vrot.slane %v4093_v60, 6  ;;  %v986_v40 = vpop.f32.mrf.mxu2 }
 0x276   :  { %v5096_v13 = vrot.slane %v4050_v46, 6  ;;  %v1485_v48 = vadd.f32 %v1481_v19, %v4353_v3  ;;  %v1623_v20 = vmul.f32 %v1619_v50, %v4459_v63  ;;  %v1788_v55 = vsel %vm310_vm7, %v1778_v47, 0.0 }
 0x277   :  { %v1674_v1 = vmul.f32 %v1659_v25, %v4330_v24  ;;  %v1331_v31 = vmul.f32 %v1327_v18, %v986_v40  ;;  %v5097_v46 = vrot.slane %v4353_v3, 4  ;;  %v5037_v19 = vrot.slane %v4515_v37, 4  ;;  %v972_v3 = vpop.f32.mrf.mxu3 }
 0x278   :  { %v1229_v7 = vsel %vm256_vm2, %v5096_v13, %v5095_v56  ;;  %v953_v13 = vpop.f32.mrf.mxu1  ;;  %v4561_v47 = vadd.f32 %v4350_v33, %v3864_v17  ;;  %v4568_v18 = vmul.f32 %v1702_v62, %v4320_v52  ;;  %v4572_v40 = vmul.f32 %v4143_v14, %v1788_v55  ;;  %v4599_v33 = vpop.f32.mrf.mxu0 }
 0x279   :  { %v1239_v9 = vsel %vm271_vm6, %v1229_v7, 0.0  ;;  %v1468_v56 = vsel %vm1249_vm15, %v5097_v46, %v5036_v51  ;;  %v1510_v7 = vmul.f32 %v1506_v10, %v4451_v45  ;;  %v5098_v46 = vrot.slane %v4313_v32, 6 }
 0x27a   :  { %v4565_v25 = vmul.f32 %v1239_v9, %v4093_v60  ;;  %v1478_v9 = vsel %vm1264_vm5, %v1468_v56, 0.0  ;;  %v4583_v10 = vadd.f32 %v1623_v20, %v4474_v21  ;;  %v1355_v62 = vmul.f32 %v4060_v5, %v934_v38 }
 0x27b   :  { %v1802_v17 = vsel %vm256_vm2, %v5098_v46, %v5038_v26  ;;  %v4586_v51 = vadd.f32 %v1516_v34, %v1485_v48  ;;  %v4589_v55 = vadd.f32 %v1674_v1, %v4442_v28  ;;  %v4592_v32 = vadd.f32 %v1331_v31, %v3878_v6 }
 0x27c   :  { %v5099_v46 = vrot.slane %v4330_v24, 4  ;;  %v4601_v20 = vmul.f32 0.0, %v1510_v7  ;;  %v1812_v38 = vsel %vm271_vm6, %v1802_v17, 0.0  ;;  %v5100_v34 = vrot.slane %v4135_v57, 4 }
 0x27d   :  { %v5101_v48 = vrot.slane %v4084_v30, 4  ;;  %v1293_v31 = vrot.slane %v4565_v25, 4  ;;  %v1482_v1 = vmul.f32 %v1478_v9, %v4451_v45  ;;  %v1548_v50 = vmul.f32 %v4060_v5, %v953_v13 }
 0x27e   :  { %v1689_v56 = vsel %vm1249_vm15, %v5099_v46, %v5037_v19  ;;  %v1365_v46 = vrot.slane %v1355_v62, 7  ;;  %v1393_v19 = vrot.slane %v4217_v41, 7  ;;  %v1586_v30 = vrot.slane %v4347_v0, 7 }
 0x27f   :  { %v1254_v6 = vsel %vm1249_vm15, %v5101_v48, %v5100_v34  ;;  %v4617_v17 = vsel %vm1264_vm5, %v1689_v56, 0.0  ;;  %v1816_v34 = vmul.f32 %v1812_v38, %v4572_v40  ;;  %v5102_v48 = vrot.slane %v4344_v39, 7 }
 0x280   :  { %v5103_v24 = vrot.slane %v4108_v4, 7  ;;  %v1741_v58 = vmul.f32 %v4060_v5, %v972_v3  ;;  %v5104_v56 = vrot.slane %v4305_v15, 4  ;;  %v1558_v7 = vrot.slane %v1548_v50, 7 }
 0x281   :  { %v1366_v9 = vsel %vm295_vm3, %v5102_v48, %v1365_v46  ;;  %v4637_v39 = vadd.f32 %v1482_v1, %v4498_v61  ;;  %v1276_v4 = vsel %vm1264_vm5, %v1254_v6, 0.0  ;;  %v5106_v15 = vrot.slane %v4583_v10, 4 }
 0x282   :  { %v1394_v26 = vsel %vm295_vm3, %v5103_v24, %v1393_v19  ;;  %v1294_v13 = vsel %vm1249_vm15, %v5104_v56, %v1293_v31  ;;  %v1379_v8 = vmul.f32 %v4217_v41, %v1366_v9  ;;  %v5105_v19 = vrot.slane %v4132_v12, 7  ;;  %v4644_v24 = vpop.f32.mrf.mxu1 }
 0x283   :  { %v1407_v38 = vmul.f32 %v4217_v41, %v1394_v26  ;;  %v1751_v3 = vrot.slane %v1741_v58, 7  ;;  %v5107_v46 = vrot.slane %v4442_v28, 4  ;;  %v5108_v1 = vrot.slane %v4397_v36, 7 }
 0x284   :  { %v1587_v5 = vsel %vm295_vm3, %v5105_v19, %v1586_v30  ;;  %v1383_v26 = vadd.f32 %v1379_v8, %v1355_v62  ;;  %v1304_v12 = vsel %vm1264_vm5, %v1294_v13, 0.0  ;;  %v5109_v56 = vrot.slane %v4420_v49, 7 }
 0x285   :  { %v1661_v41 = vsel %vm1249_vm15, %v5107_v46, %v5106_v15  ;;  %v1445_v48 = vrot.slane %v1407_v38, 6  ;;  %v1559_v9 = vsel %vm295_vm3, %v5108_v1, %v1558_v7  ;;  %v1600_v30 = vmul.f32 %v4347_v0, %v1587_v5  ;;  %v4666_v7 = vpop.f32.mrf.mxu3  ;;  %v4669_v5 = vpop.f32.mrf.mxu0 }
 0x286   :  { %v1572_v6 = vmul.f32 %v4347_v0, %v1559_v9  ;;  %v1752_v19 = vsel %vm295_vm3, %v5109_v56, %v1751_v3  ;;  %v1417_v28 = vrot.slane %v1383_v26, 6  ;;  %v5110_v15 = vrot.slane %v4394_v59, 6 }
 0x287   :  { %v1765_v36 = vmul.f32 %v4356_v2, %v1752_v19  ;;  %v1779_v62 = vrot.slane %v4356_v2, 7  ;;  %v1280_v13 = vmul.f32 %v1276_v4, %v4565_v25  ;;  %v1638_v0 = vrot.slane %v1600_v30, 6 }
 0x288   :  { %v1446_v8 = vsel %vm256_vm2, %v5110_v15, %v1445_v48  ;;  %v1576_v1 = vadd.f32 %v1572_v6, %v1548_v50  ;;  %v4672_v49 = vadd.f32 %v1816_v34, %v4518_v23  ;;  %v5111_v59 = vrot.slane %v4424_v16, 6 }
 0x289   :  { %v1459_v46 = vmul.f32 %v1446_v8, %v1407_v38  ;;  %v1769_v48 = vadd.f32 %v1765_v36, %v1741_v58  ;;  %v5112_v9 = vrot.slane %v4260_v22, 6  ;;  %v5113_v56 = vrot.slane %v4093_v60, 6 }
 0x28a   :  { %v1418_v3 = vsel %vm256_vm2, %v5111_v59, %v1417_v28  ;;  %v1308_v4 = vmul.f32 %v1304_v12, %v4565_v25  ;;  %v1610_v15 = vrot.slane %v1576_v1, 6  ;;  %v5114_v8 = vrot.slane %v4459_v63, 6  ;;  %v989_v63 = vpop.f32.mrf.mxu2 }
 0x28b   :  { %v1231_v19 = vsel %vm256_vm2, %v5113_v56, %v5112_v9  ;;  %v1431_v50 = vmul.f32 %v1418_v3, %v1407_v38  ;;  %v1497_v6 = vrot.slane %v1459_v46, 4  ;;  %v5115_v16 = vrot.slane %v4143_v14, 7 }
 0x28c   :  { %v1639_v34 = vsel %vm256_vm2, %v5114_v8, %v1638_v0  ;;  %v1803_v58 = vrot.slane %v1769_v48, 6  ;;  %v1244_v36 = vmul.f32 %v1231_v19, %v4260_v22  ;;  %v5116_v60 = vrot.slane %v4451_v45, 4 }
 0x28d   :  { %v1780_v28 = vsel %vm295_vm3, %v5115_v16, %v1779_v62  ;;  %v1435_v59 = vadd.f32 %v1431_v50, %v1383_v26  ;;  %v5117_v38 = vrot.slane %v4474_v21, 6  ;;  %v1652_v3 = vmul.f32 %v1639_v34, %v1600_v30 }
 0x28e   :  { %v1498_v9 = vsel %vm1249_vm15, %v5116_v60, %v1497_v6  ;;  %v1284_v0 = vadd.f32 %v1280_v13, %v4135_v57  ;;  %v5118_v14 = vrot.slane %v4518_v23, 6  ;;  %v5119_v22 = vrot.slane %v4326_v35, 4 }
 0x28f   :  { %v1611_v12 = vsel %vm256_vm2, %v5117_v38, %v1610_v15  ;;  %v5120_v26 = vrot.slane %v4135_v57, 4  ;;  %v1469_v19 = vrot.slane %v1435_v59, 4  ;;  %v1690_v50 = vrot.slane %v1652_v3, 4  ;;  %v4708_v15 = vpop.f32.mrf.mxu1 }
 0x290   :  { %v1624_v56 = vmul.f32 %v1611_v12, %v1600_v30  ;;  %v1804_v62 = vsel %vm256_vm2, %v5118_v14, %v1803_v58  ;;  %v4706_v21 = vmul.f32 %v4356_v2, %v1780_v28  ;;  %v1324_v13 = vmul.f32 0.0, %v1308_v4 }
 0x291   :  { %v1256_v45 = vsel %vm1249_vm15, %v5120_v26, %v5119_v22  ;;  %v1511_v30 = vmul.f32 %v1498_v9, %v1459_v46  ;;  %v1295_v23 = vrot.slane %v1244_v36, 4  ;;  %v1671_v34 = vsel %vm1264_vm5, %v1661_v41, 0.0  ;;  %v4726_v9 = vpop.f32.mrf.mxu3 }
 0x292   :  { %v1281_v6 = vmul.f32 %v1256_v45, %v1244_v36  ;;  %v1628_v8 = vadd.f32 %v1624_v56, %v1576_v1  ;;  %v1703_v57 = vmul.f32 %v4617_v17, %v4515_v37  ;;  %v5121_v16 = vrot.slane %v4498_v61, 4  ;;  %v1008_v56 = vpop.f32.mrf.mxu0 }
 0x293   :  { %v1817_v2 = vmul.f32 %v1804_v62, %v4706_v21  ;;  %v1521_v28 = vadd.f32 %v4601_v20, %v4637_v39  ;;  %v5122_v4 = vrot.slane %v4515_v37, 4  ;;  %v1296_v41 = vsel %vm1249_vm15, %v1293_v31, %v1295_v23 }
 0x294   :  { %v1470_v58 = vsel %vm1249_vm15, %v5121_v16, %v1469_v19  ;;  %v1662_v60 = vrot.slane %v1628_v8, 4  ;;  %v1285_v61 = vadd.f32 %v1281_v6, %v4326_v35  ;;  %v1309_v38 = vmul.f32 %v1296_v41, %v1244_v36  ;;  %v991_v16 = vpop.f32.mrf.mxu2 }
 0x295   :  { %v1691_v1 = vsel %vm1249_vm15, %v5122_v4, %v1690_v50  ;;  %v1483_v17 = vmul.f32 %v1470_v58, %v1459_v46  ;;  %v1826_v12 = vrot.slane %v4247_v27, 6  ;;  %v1675_v20 = vmul.f32 %v1671_v34, %v4515_v37 }
 0x296   :  { %v1853_v14 = vrot.slane %v4672_v49, 4  ;;  %v1328_v62 = vadd.f32 %v1324_v13, %v1284_v0  ;;  %v1518_v22 = vmul.f32 %v1511_v30, %v4637_v39  ;;  %v5123_v25 = vrot.slane %v4583_v10, 4 }
 0x297   :  { %v1821_v26 = vadd.f32 %v1817_v2, %v1769_v48  ;;  %v1325_v45 = vmul.f32 %v1309_v38, %v1284_v0  ;;  %v1837_v46 = vsel %vm256_vm2, 0.0, %v1826_v12  ;;  %v1704_v35 = vmul.f32 %v1691_v1, %v1652_v3 }
 0x298   :  { %v1663_v31 = vsel %vm1249_vm15, %v5123_v25, %v1662_v60  ;;  %v1838_v36 = vsel %vm269_vm4, %v1837_v46, 0.0  ;;  %v5124_v19 = vrot.slane %v4308_v53, 4  ;;  %v5125_v50 = vrot.slane %v4364_v29, 6 }
 0x299   :  { %v1487_v6 = vadd.f32 %v1483_v17, %v1435_v59  ;;  %v1329_v13 = vadd.f32 %v1325_v45, %v1285_v61  ;;  %v1842_v30 = vmul.f32 %v1838_v36, %v4247_v27  ;;  %v1679_v0 = vadd.f32 %v1675_v20, %v4583_v10  ;;  %v1027_v17 = vpop.f32.mrf.mxu1  ;;  %v1046_v36 = vpop.f32.mrf.mxu3 }
 0x29a   :  { %v1861_v37 = vsel %vm1249_vm15, 0.0, %v5124_v19  ;;  %v1828_v39 = vsel %vm256_vm2, %v1826_v12, %v5125_v50  ;;  %v1710_v23 = vmul.f32 0.0, %v1703_v57  ;;  %v1676_v34 = vmul.f32 %v1663_v31, %v1652_v3 }
 0x29b   :  { %v1843_v48 = vmul.f32 %v1828_v39, %v4364_v29  ;;  %v5126_v58 = vrot.slane %v4572_v40, 6  ;;  %v5127_v2 = vmov %v5125_v50  ;;  %v1831_v4 = vrot.slane %v4706_v21, 6 }
 0x29c   :  { %v1333_v1 = vmul.f32 %v1329_v13, %v991_v16  ;;  %v1878_v59 = vrot.slane %v1842_v30, 4  ;;  %v5128_v41 = vrot.slane %v4535_v54, 4  ;;  %v1855_v61 = vrot.slane %v1821_v26, 4 }
 0x29d   :  { %v1830_v60 = vsel %vm256_vm2, %v5127_v2, %v5126_v58  ;;  %v1862_v10 = vsel %vm1262_vm9, %v1861_v37, 0.0  ;;  %v1879_v3 = vrot.slane %v1843_v48, 4  ;;  %v1525_v29 = vmul.f32 %v1521_v28, %v1008_v56  ;;  %v1010_v56 = vpop.f32.mrf.mxu0 }
 0x29e   :  { %v1854_v27 = vsel %vm1249_vm15, %v5128_v41, %v1853_v14  ;;  %v1840_v57 = vsel %vm271_vm6, %v1830_v60, 0.0  ;;  %v1332_v38 = vmul.f32 %v1328_v62, %v989_v63  ;;  %v1522_v12 = vadd.f32 %v1518_v22, %v1487_v6 }
 0x29f   :  { %v1711_v20 = vmul.f32 %v1704_v35, %v1679_v0  ;;  %v1680_v25 = vadd.f32 %v1676_v34, %v1628_v8  ;;  %v5129_v31 = vmov %v5128_v41  ;;  %v5130_v45 = vmov %v5124_v19  ;;  %v5132_v34 = vld [vmem:[#allocation7_spill] sm:$0xff] }
 0x2a0   :  { %v1852_v46 = vsel %vm1249_vm15, %v5130_v45, %v5129_v31  ;;  %v1844_v19 = vmul.f32 %v1840_v57, %v4572_v40  ;;  %v1864_v37 = vsel %vm1264_vm5, %v1854_v27, 0.0  ;;  %v1337_v50 = vadd.f32 %v1333_v1, %v3965_v44 }
 0x2a1   :  { %v1866_v39 = vmul.f32 %v1862_v10, %v1842_v30  ;;  %v1889_v63 = vsel %vm1249_vm15, 0.0, %v1878_v59  ;;  %v5131_v28 = vmov %v5126_v58  ;;  %v1880_v62 = vsel %vm1249_vm15, %v1878_v59, %v1879_v3  ;;  %v1029_v43 = vpop.f32.mrf.mxu1 }
 0x2a2   :  { %v1832_v8 = vsel %vm256_vm2, %v5131_v28, %v1831_v4  ;;  %v1881_v22 = vrot.slane %v1844_v19, 4  ;;  %v1856_v6 = vsel %vm1249_vm15, %v1853_v14, %v1855_v61  ;;  %v1714_v13 = vadd.f32 %v1710_v23, %v1679_v0  ;;  %v2814_v28 = vld [vmem:[%s4994_s7 + $0x38] sm:$0xff] }
 0x2a3   :  { %v1845_v35 = vmul.f32 %v1832_v8, %v4706_v21  ;;  %v1336_v16 = vadd.f32 %v1332_v38, %v5132_v34  ;;  %v1526_v58 = vmul.f32 %v1522_v12, %v1010_v56  ;;  %v1868_v44 = vmul.f32 %v1864_v37, %v1844_v19  ;;  %2100 = vmatpush.bf16.msrb.mxu0 %v2814_v28  ;;  %v2939_v56 = vld [vmem:[%s4992_s4] sm:$0xff]  ;;  %v63_v34 = vld [vmem:[%s4991_s3 + $0x8] sm:$0xff] }
 0x2a4   :  { %v1890_v2 = vsel %vm1262_vm9, %v1889_v63, 0.0  ;;  %v1882_v40 = vsel %vm1249_vm15, %v1879_v3, %v1881_v22  ;;  %v1715_v1 = vadd.f32 %v1711_v20, %v1680_v25  ;;  %v1867_v41 = vmul.f32 %v1852_v46, %v1843_v48  ;;  %2815 = vmatpush.bf16.msrb.mxu1 %v2814_v28 }
 0x2a5   :  { %v1869_v60 = vmul.f32 %v1856_v6, %v1845_v35  ;;  %v1883_v4 = vrot.slane %v1845_v35, 4  ;;  %v1895_v59 = vmul.f32 %v1880_v62, %v1843_v48  ;;  %v1892_v21 = vsel %vm1264_vm5, %v1882_v40, 0.0  ;;  %v2811_v62 = vld [vmem:[%s4994_s7 + $0x20] sm:$0xff]  ;;  %v2941_v6 = vld [vmem:[%s4992_s4 + $0x10] sm:$0xff] }
 0x2a6   :  { %v1530_v27 = vadd.f32 %v1526_v58, %v1337_v50  ;;  %v1870_v14 = vadd.f32 %v1866_v39, %v4308_v53  ;;  %v1896_v0 = vmul.f32 %v1892_v21, %v1844_v19  ;;  %v1894_v61 = vmul.f32 %v1890_v2, %v1842_v30  ;;  %v5134_v58 = vld [vmem:[#allocation3_spill] sm:$0xff]  ;;  %v5135_v2 = vld [vmem:[#allocation4_spill] sm:$0xff] }
 0x2a7   :  { %v1884_v23 = vsel %vm1249_vm15, %v1881_v22, %v1883_v4  ;;  %v1872_v42 = vadd.f32 %v1868_v44, %v4672_v49  ;;  %v1873_v10 = vadd.f32 %v1869_v60, %v1821_v26  ;;  %v1524_v3 = vmul.f32 %v4586_v51, %v4669_v5  ;;  %v5133_v49 = vld [vmem:[#allocation8_spill] sm:$0xff]  ;;  %v1048_v5 = vpop.f32.mrf.mxu3  ;;  %v2810_v22 = vld [vmem:[%s4994_s7 + $0x18] sm:$0xff] }
 0x2a8   :  { %v1897_v57 = vmul.f32 %v1884_v23, %v1845_v35  ;;  %v1713_v48 = vadd.f32 %v4568_v18, %v4589_v55  ;;  %v1529_v38 = vadd.f32 %v1525_v29, %v1336_v16  ;;  %v1903_v12 = vmul.f32 0.0, %v1896_v0  ;;  %v2940_v35 = vld [vmem:[%s4992_s4 + $0x8] sm:$0xff]  ;;  %v65_v16 = vld [vmem:[%s4991_s3 + $0x18] sm:$0xff] }
 0x2a9   :  { %v1719_v20 = vmul.f32 %v1715_v1, %v1029_v43  ;;  %v1871_v53 = vadd.f32 %v1867_v41, %v4535_v54  ;;  %v1902_v25 = vmul.f32 %v1895_v59, %v1870_v14  ;;  %v1523_v30 = vmul.f32 %v4317_v11, %v4599_v33  ;;  %v67_v1 = vld [vmem:[%s4991_s3 + $0x28] sm:$0xff]  ;;  %v69_v59 = vld [vmem:[%s4991_s3 + $0x38] sm:$0xff] }
 0x2aa   :  { %v1904_v31 = vmul.f32 %v1897_v57, %v1872_v42  ;;  %v1712_v26 = vadd.f32 %v5133_v49, %v4320_v52  ;;  %v1528_v45 = vadd.f32 %v1524_v3, %v4592_v32  ;;  %v1718_v51 = vmul.f32 %v1714_v13, %v1027_v17  ;;  %v2942_v13 = vld [vmem:[%s4992_s4 + $0x18] sm:$0xff] }
 0x2ab   :  { %v1901_v46 = vmul.f32 0.0, %v1894_v61  ;;  %v1907_v18 = vadd.f32 %v1903_v12, %v1872_v42  ;;  %v1723_v55 = vadd.f32 %v1719_v20, %v1530_v27  ;;  %v1527_v19 = vadd.f32 %v1523_v30, %v4561_v47  ;;  %v2809_v27 = vld [vmem:[%s4994_s7 + $0x10] sm:$0xff]  ;;  %v5137_v61 = vld [vmem:[#allocation6_spill] sm:$0xff] }
 0x2ac   :  { %v1908_v29 = vadd.f32 %v1904_v31, %v1873_v10  ;;  %v1717_v54 = vmul.f32 %v1713_v48, %v4708_v15  ;;  %v1906_v37 = vadd.f32 %v1902_v25, %v1871_v53  ;;  %v1722_v50 = vadd.f32 %v1718_v51, %v1529_v38  ;;  %v2808_v10 = vld [vmem:[%s4994_s7 + $0x8] sm:$0xff]  ;;  %v2807_v38 = vld [vmem:[%s4994_s7] sm:$0xff] }
 0x2ad   :  { %v1911_v39 = vmul.f32 %v1907_v18, %v1046_v36  ;;  %v1716_v11 = vmul.f32 %v1712_v26, %v4644_v24  ;;  %v1905_v33 = vadd.f32 %v1901_v46, %v1870_v14  ;;  %v2813_v24 = vld [vmem:[%s4994_s7 + $0x30] sm:$0xff]  ;;  %v4851_v44 = vadd.f32 %v5134_v58, %v63_v34  ;;  %v5136_v14 = vld [vmem:[#allocation5_spill] sm:$0xff] }
 0x2ae   :  { %v1912_v63 = vmul.f32 %v1908_v29, %v1048_v5  ;;  %v1721_v52 = vadd.f32 %v1717_v54, %v1528_v45  ;;  %v1910_v32 = vmul.f32 %v1906_v37, %v4726_v9  ;;  %2101 = vmatpush.bf16.msrb.mxu0 %v2813_v24  ;;  %2816 = vmatpush.bf16.msrb.mxu1 %v2813_v24 }
 0x2af   :  { %v1720_v8 = vadd.f32 %v1716_v11, %v1527_v19  ;;  %v1909_v47 = vmul.f32 %v1905_v33, %v4666_v7  ;;  %v4806_v15 = vadd.f32 %v1911_v39, %v1722_v50  ;;  %v2812_v7 = vld [vmem:[%s4994_s7 + $0x28] sm:$0xff]  ;;  %v4854_v40 = vadd.f32 %v5135_v2, %v65_v16 }
 0x2b0   :  { %v4800_v17 = vadd.f32 %v1912_v63, %v1723_v55  ;;  %v4812_v9 = vadd.f32 %v1910_v32, %v1721_v52  ;;  %v2679_v60 = vmul.f32 -1.442695, %v4851_v44  ;;  %v4868_v0 = vadd.f32 %v5136_v14, %v67_v1 }
 0x2b1   :  { %v4815_v36 = vadd.f32 %v1909_v47, %v1720_v8  ;;  %v2680_v4 = vmul.f32 -1.442695, %v4854_v40  ;;  %v4871_v42 = vadd.f32 %v5137_v61, %v69_v59 }
 0x2b2   :  { %1929 = vmatpush.msrb.mxu2 %v4800_v17  ;;  %2102 = vmatpush.bf16.msrb.mxu0 %v2812_v7  ;;  %2899 = vpow2.f32 %v2679_v60  ;;  %v2681_v3 = vmul.f32 -1.442695, %v4868_v0 }
 0x2b3   :  { %2817 = vmatpush.bf16.msrb.mxu1 %v2812_v7  ;;  %2901 = vpow2.f32 %v2680_v4  ;;  %v2682_v48 = vmul.f32 -1.442695, %v4871_v42 }
 0x2b4   :  { %1930 = vmatpush.msrb.mxu2 %v4806_v15 }
 0x2b6   :  { %1931 = vmatpush.msrb.mxu2 %v4812_v9  ;;  %2103 = vmatpush.bf16.msrb.mxu0 %v2811_v62 }
 0x2b7   :  { %2818 = vmatpush.bf16.msrb.mxu1 %v2811_v62 }
 0x2b8   :  { %1932 = vmatpush.msrb.mxu2 %v4815_v36  ;;  %v2900_v41 = vpop.eup %2899 }
 0x2b9   :  { %2675 = vmatmul.msk.f32.vlgmr.msrb.gmra.mxu2 %vm204_vm0, %v2939_v56  ;;  %v2902_v21 = vpop.eup %2901  ;;  %v1962_v23 = vadd.f32 1.0, %v2900_v41 }
 0x2ba   :  { %2104 = vmatpush.bf16.msrb.mxu0 %v2810_v22  ;;  %v1963_v57 = vadd.f32 1.0, %v2902_v21 }
 0x2bb   :  { %2819 = vmatpush.bf16.msrb.mxu1 %v2810_v22  ;;  %2903 = vrcp.f32 %v1962_v23  ;;  %v1975_v46 = vand.u32 2147483647, %v1962_v23  ;;  %v1977_v18 = vand.u32 2147483648, %v1962_v23 }
 0x2bc   :  { %2905 = vrcp.f32 %v1963_v57  ;;  %vm1986_vm3 = vweird.f32 %v1963_v57  ;;  %v1990_v55 = vand.u32 2147483647, %v1963_v57  ;;  %v1992_v29 = vand.u32 2147483648, %v1963_v57 }
 0x2bd   :  { %2907 = vpow2.f32 %v2681_v3  ;;  %vm1976_vm10 = vcmp.eq.f32.partialorder %v1975_v46, 8.507059e+37  ;;  %v1978_v63 = vor.u32 1.1754944e-38, %v1977_v18 }
 0x2be   :  { %2105 = vmatpush.bf16.msrb.mxu0 %v2809_v27  ;;  %2909 = vpow2.f32 %v2682_v48  ;;  %vm1991_vm11 = vcmp.eq.f32.partialorder %v1990_v55, 8.507059e+37  ;;  %v1993_v11 = vor.u32 1.1754944e-38, %v1992_v29 }
 0x2bf   :  { %2820 = vmatpush.bf16.msrb.mxu1 %v2809_v27 }
 0x2c1   :  { %2676 = vmatmul.msk.f32.gmra.mxu2 %vm204_vm0, %v2940_v35  ;;  %v2904_v43 = vpop.eup %2903 }
 0x2c2   :  { %2106 = vmatpush.bf16.msrb.mxu0 %v2808_v10  ;;  %v2906_v12 = vpop.eup %2905  ;;  %v1967_v25 = vmul.f32 %v2904_v43, %v1962_v23  ;;  %vm1972_vm2 = vweird.f32 %v2904_v43 }
 0x2c3   :  { %2821 = vmatpush.bf16.msrb.mxu1 %v2808_v10  ;;  %v2908_v20 = vpop.eup %2907  ;;  %v1982_v31 = vmul.f32 %v2906_v12, %v1963_v57  ;;  %vm1987_vm4 = vweird.f32 %v2906_v12 }
 0x2c4   :  { %v2910_v53 = vpop.eup %2909  ;;  %v4881_v30 = vadd.f32 1.0, %v2908_v20  ;;  %v1968_v26 = vsub.f32 1.0, %v1967_v25  ;;  %vm1988_vm7 = vmor %vm1986_vm3, %vm1987_vm4 }
 0x2c5   :  { %v4883_v49 = vadd.f32 1.0, %v2910_v53  ;;  %v1983_v45 = vsub.f32 1.0, %v1982_v31 }
 0x2c6   :  { %2107 = vmatpush.bf16.msrb.mxu0 %v2807_v38  ;;  %2911 = vrcp.f32 %v4881_v30  ;;  %v1969_v51 = vmul.f32 %v2904_v43, %v1968_v26  ;;  %vm2001_vm12 = vweird.f32 %v4881_v30  ;;  %v2005_v4 = vand.u32 2147483647, %v4881_v30 }
 0x2c7   :  { %2822 = vmatpush.bf16.msrb.mxu1 %v2807_v38  ;;  %2913 = vrcp.f32 %v4883_v49  ;;  %v1984_v5 = vmul.f32 %v2906_v12, %v1983_v45  ;;  %vm2016_vm14 = vweird.f32 %v4883_v49  ;;  %v2020_v1 = vand.u32 2147483647, %v4883_v49 }
 0x2c8   :  { %v1970_v54 = vadd.f32 %v2904_v43, %v1969_v51  ;;  %vm2006_vm5 = vcmp.eq.f32.partialorder %v2005_v4, 8.507059e+37 }
 0x2c9   :  { %2677 = vmatmul.msk.f32.gmra.mxu2 %vm204_vm0, %v2941_v6  ;;  %v1985_v37 = vadd.f32 %v2906_v12, %v1984_v5 }
 0x2cb   :  { %v1989_v52 = vsel %vm1988_vm7, %v2906_v12, %v1985_v37 }
 0x2cc   :  { %v2912_v19 = vpop.eup %2911  ;;  %v1994_v47 = vsel %vm1991_vm11, %v1993_v11, %v1989_v52 }
 0x2cd   :  { %v2914_v50 = vpop.eup %2913  ;;  %v1997_v32 = vmul.f32 %v2912_v19, %v4881_v30  ;;  %v2027_v35 = vmul.f32 %v1994_v47, %v4854_v40  ;;  %vm2002_vm13 = vweird.f32 %v2912_v19  ;;  %v2022_v40 = vand.u32 2147483648, %v4883_v49 }
 0x2ce   :  { %v2012_v28 = vmul.f32 %v2914_v50, %v4883_v49  ;;  %vm2017_vm15 = vweird.f32 %v2914_v50  ;;  %vm2003_vm8 = vmor %vm2001_vm12, %vm2002_vm13 }
 0x2cf   :  { %v1998_v24 = vsub.f32 1.0, %v1997_v32  ;;  %vm2018_vm9 = vmor %vm2016_vm14, %vm2017_vm15  ;;  %v2023_v21 = vor.u32 1.1754944e-38, %v2022_v40 }
 0x2d0   :  { %v2013_v7 = vsub.f32 1.0, %v2012_v28 }
 0x2d1   :  { %2678 = vmatmul.msk.f32.gmra.mxu2 %vm204_vm0, %v2942_v13  ;;  %vm1971_vm0 = vweird.f32 %v1962_v23  ;;  %v1999_v34 = vmul.f32 %v2912_v19, %v1998_v24 }
 0x2d2   :  { %vm1973_vm6 = vmor %vm1971_vm0, %vm1972_vm2  ;;  %v2014_v16 = vmul.f32 %v2914_v50, %v2013_v7  ;;  %vm2021_vm0 = vcmp.eq.f32.partialorder %v2020_v1, 8.507059e+37  ;;  %v4944_v1 = vld [vmem:[%s4995_s8 + $0x1] ss:$0 sm:$0xff] }
 0x2d3   :  { %v1974_v33 = vsel %vm1973_vm6, %v2904_v43, %v1970_v54  ;;  %v2000_v60 = vadd.f32 %v2912_v19, %v1999_v34 }
 0x2d4   :  { %v1979_v8 = vsel %vm1976_vm10, %v1978_v63, %v1974_v33 }
 0x2d5   :  { %v2026_v22 = vmul.f32 %v1979_v8, %v4851_v44  ;;  %v2007_v44 = vand.u32 2147483648, %v4881_v30  ;;  %v2004_v27 = vsel %vm2003_vm8, %v2912_v19, %v2000_v60  ;;  %v4939_v60 = vld [vmem:[%s4995_s8] ss:$0 sm:$0xff] }
 0x2d7   :  { %v2008_v59 = vor.u32 1.1754944e-38, %v2007_v44 }
 0x2d9   :  { %v2009_v23 = vsel %vm2006_vm5, %v2008_v59, %v2004_v27 }
 0x2da   :  { %v2028_v57 = vmul.f32 %v2009_v23, %v4868_v0 }
 0x33c   :  { %v1934_v39 = vpop.f32.mrf.mxu2 }
 0x33d   :  { %v1946_v62 = vsel %vm190_vm1, %v4815_v36, %v1934_v39 }
 0x33e   :  { %v2030_v58 = vmul.f32 %v2026_v22, %v1946_v62 }
 0x344   :  { %v1937_v6 = vpop.f32.mrf.mxu2 }
 0x345   :  { %v1947_v13 = vsel %vm190_vm1, %v4812_v9, %v1937_v6  ;;  %v2015_v9 = vadd.f32 %v2914_v50, %v2014_v16 }
 0x346   :  { %v2031_v2 = vmul.f32 %v2027_v35, %v1947_v13 }
 0x347   :  { %v2019_v14 = vsel %vm2018_vm9, %v2914_v50, %v2015_v9 }
 0x348   :  { %v2034_v36 = vpack.c.bf16 %v2031_v2, %v2030_v58  ;;  %v2024_v61 = vsel %vm2021_vm0, %v2023_v21, %v2019_v14 }
 0x349   :  { %v2029_v3 = vmul.f32 %v2024_v61, %v4871_v42 }
 0x34a   :  { %2108 = vmatmul.bf16.vlgmr.msrb.gmra.mxu0 %v2034_v36 }
 0x34c   :  { %v1940_v41 = vpop.f32.mrf.mxu2 }
 0x34d   :  { %v1948_v10 = vsel %vm190_vm1, %v4806_v15, %v1940_v41 }
 0x34e   :  { %v2032_v43 = vmul.f32 %v2028_v57, %v1948_v10 }
 0x354   :  { %v1943_v48 = vpop.f32.mrf.mxu2 }
 0x355   :  { %v1949_v38 = vsel %vm190_vm1, %v4800_v17, %v1943_v48 }
 0x356   :  { %v2033_v12 = vmul.f32 %v2029_v3, %v1949_v38 }
 0x358   :  { %v2035_v20 = vpack.c.bf16 %v2033_v12, %v2032_v43 }
 0x35a   :  { %2113 = vmatmul.bf16.vlgmr.msrb.gmra.mxu1 %v2035_v20 }
 0x3c7   :  { %v2109_v53 = vpop.f32.mrf.mxu0 }
 0x3c8   :  { %v4911_v25 = vmul.f32 0.5, %v2109_v53 }
 0x3ca   :  { %2123 = vadd.xlane.f32.xlu0 %v4911_v25  ;;  %v2135_v15 = vmul.f32 %v4911_v25, %v4911_v25 }
 0x3cc   :  { %2139 = vadd.xlane.f32.xlu2 %v2135_v15 }
 0x3cf   :  { %v2111_v0 = vpop.f32.mrf.mxu0 }
 0x3d0   :  { %v4916_v42 = vmul.f32 0.5, %v2111_v0 }
 0x3d2   :  { %2125 = vadd.xlane.f32.xlu0 %v4916_v42  ;;  %v2136_v17 = vmul.f32 %v4916_v42, %v4916_v42 }
 0x3d4   :  { %2141 = vadd.xlane.f32.xlu2 %v2136_v17 }
 0x3d7   :  { %v2114_v31 = vpop.f32.mrf.mxu1 }
 0x3d8   :  { %v4921_v30 = vmul.f32 0.5, %v2114_v31 }
 0x3da   :  { %2127 = vadd.xlane.f32.xlu1 %v4921_v30  ;;  %v2137_v49 = vmul.f32 %v4921_v30, %v4921_v30 }
 0x3dc   :  { %2143 = vadd.xlane.f32.xlu0 %v2137_v49 }
 0x3df   :  { %v2116_v26 = vpop.f32.mrf.mxu1 }
 0x3e0   :  { %v4926_v45 = vmul.f32 0.5, %v2116_v26 }
 0x3e2   :  { %2129 = vadd.xlane.f32.xlu1 %v4926_v45  ;;  %v2138_v51 = vmul.f32 %v4926_v45, %v4926_v45 }
 0x3ea   :  { %2145 = vadd.xlane.f32.xlu1 %v2138_v51 }
 0x43d   :  { %v2124_v5 = vpop.xlane.xlu0 %2123 }
 0x43e   :  { %v2131_v46 = vmul.f32 0.083333336, %v2124_v5 }
 0x43f   :  { %v2140_v18 = vpop.xlane.xlu2 %2139 }
 0x440   :  { %v2151_v55 = vmul.f32 %v2131_v46, %v2131_v46  ;;  %v2147_v29 = vmul.f32 0.083333336, %v2140_v18  ;;  %v2163_v40 = vsub.f32 %v4911_v25, %v2131_v46 }
 0x442   :  { %v2155_v19 = vsub.f32 %v2147_v29, %v2151_v55 }
 0x444   :  { %v2159_v54 = vmax.f32 %v2155_v19, 0.0 }
 0x445   :  { %v2126_v37 = vpop.xlane.xlu0 %2125 }
 0x446   :  { %v2167_v50 = vadd.f32 1e-05, %v2159_v54  ;;  %v2132_v39 = vmul.f32 0.083333336, %v2126_v37 }
 0x447   :  { %v2142_v63 = vpop.xlane.xlu2 %2141 }
 0x448   :  { %2915 = vrsqrt.f32 %v2167_v50  ;;  %v2152_v11 = vmul.f32 %v2132_v39, %v2132_v39  ;;  %v2148_v33 = vmul.f32 0.083333336, %v2142_v63  ;;  %vm2177_vm2 = vweird.f32 %v2167_v50 }
 0x449   :  { %v2164_v53 = vsub.f32 %v4916_v42, %v2132_v39 }
 0x44a   :  { %v2156_v52 = vsub.f32 %v2148_v33, %v2152_v11 }
 0x44c   :  { %v2160_v32 = vmax.f32 %v2156_v52, 0.0 }
 0x44d   :  { %v2128_v28 = vpop.xlane.xlu1 %2127 }
 0x44e   :  { %v2916_v8 = vpop.eup %2915  ;;  %v4931_v47 = vmul.f32 0.083333336, %v2128_v28  ;;  %v2168_v7 = vadd.f32 1e-05, %v2160_v32 }
 0x44f   :  { %v2172_v24 = vmul.f32 %v2916_v8, %v2167_v50  ;;  %v2144_v56 = vpop.xlane.xlu0 %2143  ;;  %vm2178_vm1 = vweird.f32 %v2916_v8 }
 0x450   :  { %v2153_v62 = vmul.f32 %v4931_v47, %v4931_v47  ;;  %v2149_v22 = vmul.f32 0.083333336, %v2144_v56  ;;  %2917 = vrsqrt.f32 %v2168_v7  ;;  %vm2179_vm3 = vmor %vm2177_vm2, %vm2178_vm1  ;;  %vm2187_vm6 = vweird.f32 %v2168_v7 }
 0x451   :  { %v2173_v35 = vmul.f32 %v2916_v8, %v2172_v24  ;;  %v2165_v42 = vsub.f32 %v4921_v30, %v4931_v47 }
 0x452   :  { %v2157_v6 = vsub.f32 %v2149_v22, %v2153_v62 }
 0x453   :  { %v2174_v13 = vmul.f32 0.5, %v2173_v35 }
 0x454   :  { %v2161_v34 = vmax.f32 %v2157_v6, 0.0 }
 0x455   :  { %v2175_v16 = vsub.f32 1.5, %v2174_v13  ;;  %v2130_v58 = vpop.xlane.xlu1 %2129 }
 0x456   :  { %v2169_v2 = vadd.f32 1e-05, %v2161_v34  ;;  %v2918_v36 = vpop.eup %2917  ;;  %v4946_v21 = vmul.f32 0.083333336, %v2130_v58 }
 0x457   :  { %v2176_v44 = vmul.f32 %v2916_v8, %v2175_v16  ;;  %v2182_v4 = vmul.f32 %v2918_v36, %v2168_v7  ;;  %vm2188_vm4 = vweird.f32 %v2918_v36 }
 0x458   :  { %2919 = vrsqrt.f32 %v2169_v2  ;;  %v2154_v3 = vmul.f32 %v4946_v21, %v4946_v21  ;;  %vm2189_vm7 = vmor %vm2187_vm6, %vm2188_vm4  ;;  %vm2197_vm11 = vweird.f32 %v2169_v2  ;;  %v2166_v35 = vsub.f32 %v4926_v45, %v4946_v21 }
 0x459   :  { %v2180_v9 = vsel %vm2179_vm3, %v2916_v8, %v2176_v44  ;;  %v2183_v59 = vmul.f32 %v2918_v36, %v2182_v4 }
 0x45a   :  { %v2211_v41 = vmul.f32 %v2180_v9, %v2163_v40 }
 0x45b   :  { %v2184_v14 = vmul.f32 0.5, %v2183_v59 }
 0x45c   :  { %v2217_v27 = vmul.f32 %v4939_v60, %v2211_v41 }
 0x45d   :  { %v2146_v23 = vpop.xlane.xlu1 %2145  ;;  %v2185_v57 = vsub.f32 1.5, %v2184_v14 }
 0x45e   :  { %v2920_v61 = vpop.eup %2919  ;;  %v4950_v10 = vadd.f32 %v4944_v1, %v2217_v27  ;;  %v2150_v48 = vmul.f32 0.083333336, %v2146_v23 }
 0x45f   :  { %v2192_v38 = vmul.f32 %v2920_v61, %v2169_v2  ;;  %v2186_v12 = vmul.f32 %v2918_v36, %v2185_v57  ;;  %vm2198_vm10 = vweird.f32 %v2920_v61 }
 0x460   :  { %v2715_v43 = vmul.f32 -1.442695, %v4950_v10  ;;  %v2158_v20 = vsub.f32 %v2150_v48, %v2154_v3  ;;  %vm2199_vm12 = vmor %vm2197_vm11, %vm2198_vm10 }
 0x461   :  { %v2193_v25 = vmul.f32 %v2920_v61, %v2192_v38  ;;  %v2190_v15 = vsel %vm2189_vm7, %v2918_v36, %v2186_v12 }
 0x462   :  { %2921 = vpow2.f32 %v2715_v43  ;;  %v2162_v0 = vmax.f32 %v2158_v20, 0.0  ;;  %v2212_v17 = vmul.f32 %v2190_v15, %v2164_v53 }
 0x463   :  { %v2194_v31 = vmul.f32 0.5, %v2193_v25 }
 0x464   :  { %v2170_v49 = vadd.f32 1e-05, %v2162_v0  ;;  %v2218_v26 = vmul.f32 %v4939_v60, %v2212_v17 }
 0x465   :  { %v2195_v51 = vsub.f32 1.5, %v2194_v31 }
 0x466   :  { %2923 = vrsqrt.f32 %v2170_v49  ;;  %v4958_v5 = vadd.f32 %v4944_v1, %v2218_v26  ;;  %vm2207_vm14 = vweird.f32 %v2170_v49 }
 0x467   :  { %v2196_v46 = vmul.f32 %v2920_v61, %v2195_v51 }
 0x468   :  { %v2922_v18 = vpop.eup %2921  ;;  %v2716_v29 = vmul.f32 -1.442695, %v4958_v5 }
 0x469   :  { %v2239_v55 = vadd.f32 1.0, %v2922_v18  ;;  %v2200_v19 = vsel %vm2199_vm12, %v2920_v61, %v2196_v46 }
 0x46a   :  { %v2213_v54 = vmul.f32 %v2200_v19, %v2165_v42 }
 0x46b   :  { %2925 = vrcp.f32 %v2239_v55  ;;  %v2254_v7 = vand.u32 2147483648, %v2239_v55  ;;  %v2252_v62 = vand.u32 2147483647, %v2239_v55  ;;  %vm2248_vm9 = vweird.f32 %v2239_v55 }
 0x46c   :  { %v2924_v37 = vpop.eup %2923  ;;  %2927 = vpow2.f32 %v2716_v29  ;;  %v2219_v50 = vmul.f32 %v4939_v60, %v2213_v54 }
 0x46d   :  { %v2202_v39 = vmul.f32 %v2924_v37, %v2170_v49  ;;  %vm2208_vm13 = vweird.f32 %v2924_v37  ;;  %v2255_v16 = vor.u32 1.1754944e-38, %v2254_v7  ;;  %vm2253_vm0 = vcmp.eq.f32.partialorder %v2252_v62, 8.507059e+37 }
 0x46e   :  { %v4965_v63 = vadd.f32 %v4944_v1, %v2219_v50  ;;  %vm2209_vm8 = vmor %vm2207_vm14, %vm2208_vm13 }
 0x46f   :  { %v2203_v11 = vmul.f32 %v2924_v37, %v2202_v39 }
 0x470   :  { %v2717_v33 = vmul.f32 -1.442695, %v4965_v63 }
 0x471   :  { %v2926_v52 = vpop.eup %2925  ;;  %v2204_v30 = vmul.f32 0.5, %v2203_v11 }
 0x472   :  { %v2928_v32 = vpop.eup %2927  ;;  %v2244_v28 = vmul.f32 %v2926_v52, %v2239_v55  ;;  %2929 = vpow2.f32 %v2717_v33  ;;  %vm2249_vm15 = vweird.f32 %v2926_v52 }
 0x473   :  { %v2240_v8 = vadd.f32 1.0, %v2928_v32  ;;  %v2205_v47 = vsub.f32 1.5, %v2204_v30  ;;  %vm2250_vm5 = vmor %vm2248_vm9, %vm2249_vm15 }
 0x474   :  { %v2245_v24 = vsub.f32 1.0, %v2244_v28 }
 0x475   :  { %2931 = vrcp.f32 %v2240_v8  ;;  %v2206_v22 = vmul.f32 %v2924_v37, %v2205_v47  ;;  %v2269_v59 = vand.u32 2147483648, %v2240_v8  ;;  %v2267_v14 = vand.u32 2147483647, %v2240_v8 }
 0x476   :  { %v2246_v56 = vmul.f32 %v2926_v52, %v2245_v24  ;;  %vm2263_vm2 = vweird.f32 %v2240_v8 }
 0x477   :  { %v2210_v34 = vsel %vm2209_vm8, %v2924_v37, %v2206_v22  ;;  %vm2268_vm4 = vcmp.eq.f32.partialorder %v2267_v14, 8.507059e+37 }
 0x478   :  { %v2930_v6 = vpop.eup %2929  ;;  %v2247_v13 = vadd.f32 %v2926_v52, %v2246_v56  ;;  %v2214_v2 = vmul.f32 %v2210_v34, %v2166_v35 }
 0x479   :  { %v2241_v58 = vadd.f32 1.0, %v2930_v6 }
 0x47a   :  { %v2251_v36 = vsel %vm2250_vm5, %v2926_v52, %v2247_v13  ;;  %v2220_v41 = vmul.f32 %v4939_v60, %v2214_v2 }
 0x47b   :  { %v2932_v44 = vpop.eup %2931  ;;  %v2256_v40 = vsel %vm2253_vm0, %v2255_v16, %v2251_v36  ;;  %2933 = vrcp.f32 %v2241_v58  ;;  %v2284_v43 = vand.u32 2147483648, %v2241_v58  ;;  %vm2278_vm7 = vweird.f32 %v2241_v58 }
 0x47c   :  { %v2303_v4 = vmul.f32 %v2256_v40, %v4950_v10  ;;  %v2259_v9 = vmul.f32 %v2932_v44, %v2240_v8  ;;  %v2226_v21 = vadd.f32 %v4944_v1, %v2220_v41  ;;  %vm2264_vm1 = vweird.f32 %v2932_v44 }
 0x47d   :  { %vm2265_vm3 = vmor %vm2263_vm2, %vm2264_vm1  ;;  %v2270_v10 = vor.u32 1.1754944e-38, %v2269_v59  ;;  %v2282_v1 = vand.u32 2147483647, %v2241_v58  ;;  %v2285_v15 = vor.u32 1.1754944e-38, %v2284_v43 }
 0x47e   :  { %2307 = vst [vmem:[%s4996_s9] sm:$0xff] %v2303_v4  ;;  %v2260_v45 = vsub.f32 1.0, %v2259_v9  ;;  %v2718_v61 = vmul.f32 -1.442695, %v2226_v21 }
 0x47f   :  { %vm2283_vm11 = vcmp.eq.f32.partialorder %v2282_v1, 8.507059e+37 }
 0x480   :  { %v2261_v27 = vmul.f32 %v2932_v44, %v2260_v45  ;;  %2935 = vpow2.f32 %v2718_v61 }
 0x481   :  { %v2934_v23 = vpop.eup %2933 }
 0x482   :  { %v2262_v57 = vadd.f32 %v2932_v44, %v2261_v27  ;;  %v2274_v3 = vmul.f32 %v2934_v23, %v2241_v58  ;;  %vm2279_vm6 = vweird.f32 %v2934_v23 }
 0x483   :  { %vm2280_vm10 = vmor %vm2278_vm7, %vm2279_vm6 }
 0x484   :  { %v2266_v60 = vsel %vm2265_vm3, %v2932_v44, %v2262_v57  ;;  %v2275_v48 = vsub.f32 1.0, %v2274_v3 }
 0x485   :  { %v2271_v38 = vsel %vm2268_vm4, %v2270_v10, %v2266_v60 }
 0x486   :  { %v2304_v12 = vmul.f32 %v2271_v38, %v4958_v5  ;;  %v2276_v20 = vmul.f32 %v2934_v23, %v2275_v48  ;;  %v2936_v25 = vpop.eup %2935 }
 0x487   :  { %v2242_v17 = vadd.f32 1.0, %v2936_v25 }
 0x488   :  { %2308 = vst [vmem:[%s4996_s9 + $0x8] sm:$0xff] %v2304_v12  ;;  %v2277_v53 = vadd.f32 %v2934_v23, %v2276_v20 }
 0x489   :  { %2937 = vrcp.f32 %v2242_v17  ;;  %v2299_v46 = vand.u32 2147483648, %v2242_v17  ;;  %v2297_v42 = vand.u32 2147483647, %v2242_v17  ;;  %vm2293_vm13 = vweird.f32 %v2242_v17 }
 0x48a   :  { %v2281_v0 = vsel %vm2280_vm10, %v2934_v23, %v2277_v53 }
 0x48b   :  { %v2286_v31 = vsel %vm2283_vm11, %v2285_v15, %v2281_v0  ;;  %v2300_v29 = vor.u32 1.1754944e-38, %v2299_v46  ;;  %vm2298_vm15 = vcmp.eq.f32.partialorder %v2297_v42, 8.507059e+37 }
 0x48c   :  { %v2305_v49 = vmul.f32 %v2286_v31, %v4965_v63 }
 0x48e   :  { %2309 = vst [vmem:[%s4996_s9 + $0x10] sm:$0xff] %v2305_v49 }
 0x48f   :  { %v2938_v26 = vpop.eup %2937 }
 0x490   :  { %v2289_v51 = vmul.f32 %v2938_v26, %v2242_v17  ;;  %vm2294_vm12 = vweird.f32 %v2938_v26 }
 0x491   :  { %vm2295_vm14 = vmor %vm2293_vm13, %vm2294_vm12 }
 0x492   :  { %v2290_v5 = vsub.f32 1.0, %v2289_v51 }
 0x494   :  { %v2291_v18 = vmul.f32 %v2938_v26, %v2290_v5 }
 0x496   :  { %v2292_v55 = vadd.f32 %v2938_v26, %v2291_v18 }
 0x498   :  { %v2296_v19 = vsel %vm2295_vm14, %v2938_v26, %v2292_v55 }
 0x499   :  { %v2301_v54 = vsel %vm2298_vm15, %v2300_v29, %v2296_v19 }
 0x49a   :  { %v2306_v37 = vmul.f32 %v2301_v54, %v2226_v21 }
 0x49c   :  { %2310 = vst [vmem:[%s4996_s9 + $0x18] sm:$0xff] %v2306_v37 }

</bundles_post_ra>
